<compile_context>
chip_gen: v6e
topology: v6e:2x2x1
jax: 0.10.0
libtpu: 0.0.40
codegen_flags: <defaults>
</compile_context>

<pallas_src>
import functools
import math

import numpy as np
import jax
import jax.numpy as jnp
from jax import lax
from jax.experimental import pallas as pl
from jax.experimental.pallas import tpu as pltpu  # noqa: F401  (TPU backend)

# ----------------------------- model config ---------------------------------
IN_CHANNELS      = 4
WIDTHS           = [16, 32]
DEPTHS           = [1, 1]
NUM_HEADS        = [1, 2]
PATCH_SIZES      = [7, 3]
OVERLAP_SIZES    = [4, 2]
REDUCTION_RATIOS = [2, 1]
MLP_EXPANSIONS   = [2, 2]
DECODER_CHANNELS = 32
SCALE_FACTORS    = [2, 1]          # applied to feats[::-1]
NUM_CLASSES      = 3
LN_EPS = 1e-5
BN_EPS = 1e-5

APPROX_RECIP = True   # softmax denom via pl.reciprocal(approx=True); set False for tight parity


# ----------------------------- in-kernel helpers -----------------------------

def _gelu(x):
    # exact GELU (torch nn.GELU default): 0.5*x*(1+erf(x/sqrt(2)))
    return 0.5 * x * (1.0 + lax.erf(x * 0.7071067811865476))


def _ln(x, g, b, eps=LN_EPS):
    mu = jnp.mean(x, axis=-1, keepdims=True)
    var = jnp.mean(jnp.square(x - mu), axis=-1, keepdims=True)
    return (x - mu) * lax.rsqrt(var + eps) * g + b


def _softmax_lastdim(s):
    s = s - jnp.max(s, axis=-1, keepdims=True)
    e = jnp.exp(s)
    d = jnp.sum(e, axis=-1, keepdims=True)
    if APPROX_RECIP:
        return e * pl.reciprocal(d, approx=True)
    return e / d


# ============================ Pallas kernels =================================

def _patch_embed_kernel(p_ref, w_ref, g_ref, b_ref, o_ref):
    # overlap patch-merging conv (as im2col matmul, bias=False) + LayerNorm2d
    t = jnp.dot(p_ref[...], w_ref[...], preferred_element_type=jnp.float32)
    o_ref[...] = _ln(t, g_ref[...], b_ref[...])


def patch_embed(patches, w_mat, ln_g, ln_b):
    M = patches.shape[0]
    C = w_mat.shape[1]
    return pl.pallas_call(
        _patch_embed_kernel,
        out_shape=jax.ShapeDtypeStruct((M, C), jnp.float32),
    )(patches, w_mat, ln_g, ln_b)


def _encoder_block_kernel(
        x_ref, xp_ref,
        ln1g_ref, ln1b_ref,
        redw_ref, redb_ref, rlng_ref, rlnb_ref,
        wq_ref, bq_ref, wk_ref, bk_ref, wv_ref, bv_ref, wo_ref, bo_ref,
        ln2g_ref, ln2b_ref,
        w1_ref, b1_ref, wdw_ref, bdw_ref, w2_ref, b2_ref,
        nlg_ref, nlb_ref,
        o_ref,
        *, B, H, W, Nr, P, nh, hd, e, scale, apply_final_ln):
    """Whole SegFormer encoder block for all images, entirely in VMEM."""
    f32 = jnp.float32
    C = nh * hd
    N = H * W

    x = x_ref[...]                                    # (B*N, C)
    xp = xp_ref[...]                                  # (P, B*Nr, C) reducer patch view of x
    ln1g, ln1b = ln1g_ref[...], ln1b_ref[...]
    redw, redb = redw_ref[...], redb_ref[...]         # (P, C, C), (1, C)
    rlng, rlnb = rlng_ref[...], rlnb_ref[...]
    wq, bq = wq_ref[...], bq_ref[...]                 # (nh, C, hd), (nh, 1, hd)
    wk, bk = wk_ref[...], bk_ref[...]
    wv, bv = wv_ref[...], bv_ref[...]
    wo, bo = wo_ref[...], bo_ref[...]                 # (nh, hd, C), (1, C)
    ln2g, ln2b = ln2g_ref[...], ln2b_ref[...]
    w1, b1 = w1_ref[...], b1_ref[...]                 # (C, C), (1, C)
    wdw, bdw = wdw_ref[...], bdw_ref[...]             # (e, 9, C), (e, 1, C)
    w2, b2 = w2_ref[...], b2_ref[...]                 # (e, C, C), (1, C)

    for b in range(B):                                # static loops: B*N <= 32 pixels
        x_b = x[b * N:(b + 1) * N, :]                 # (N, C)
        xn_b = _ln(x_b, ln1g, ln1b)

        # --- spatial-reduction conv (rr x rr, stride rr) + LayerNorm (K/V source)
        acc = None
        for p in range(P):
            xpn = _ln(xp[p, b * Nr:(b + 1) * Nr, :], ln1g, ln1b)         # (Nr, C)
            t = jnp.dot(xpn, redw[p], preferred_element_type=f32)
            acc = t if acc is None else acc + t
        red_b_img = _ln(acc + redb, rlng, rlnb)                          # (Nr, C)

        # --- multi-head attention; out-projection folded per head (no lane concat)
        att = bo                                                         # (1, C)
        for h in range(nh):
            q = jnp.dot(xn_b, wq[h], preferred_element_type=f32) + bq[h]        # (N, hd)
            k = jnp.dot(red_b_img, wk[h], preferred_element_type=f32) + bk[h]   # (Nr, hd)
            v = jnp.dot(red_b_img, wv[h], preferred_element_type=f32) + bv[h]   # (Nr, hd)
            s = lax.dot_general(q, k, (((1,), (1,)), ((), ())),
                                preferred_element_type=f32) * scale             # (N, Nr)
            o_h = jnp.dot(_softmax_lastdim(s), v, preferred_element_type=f32)   # (N, hd)
            att = att + jnp.dot(o_h, wo[h], preferred_element_type=f32)         # (N, C)
        xmid = x_b + att                                                 # residual 1

        # --- MixMLP: LN -> 1x1 conv -> depthwise 3x3 + GELU -> 1x1 conv, residual
        h1 = jnp.dot(_ln(xmid, ln2g, ln2b), w1, preferred_element_type=f32) + b1  # (N, C)

        # hoist the W-axis (sublane) shifts: the 3 shifted views of each spatial
        # row are built once and reused across the 3 vertical taps and the e
        # expansion slices.
        zrow = jnp.zeros((1, C), f32)
        rowviews = []
        for i in range(H):
            prow = jnp.concatenate([zrow, h1[i * W:(i + 1) * W, :], zrow], axis=0)
            rowviews.append([prow[dj:dj + W, :] for dj in range(3)])

        mlp_rows = []
        for i in range(H):
            mlp = b2                                   # (1, C) broadcasts to (W, C)
            for ei in range(e):                        # expansion slice of the DW conv
                dw = None
                for di in range(3):
                    si = i + di - 1
                    if si < 0 or si >= H:
                        continue                       # zero halo row
                    for dj in range(3):
                        t = rowviews[si][dj] * wdw[ei, di * 3 + dj]
                        dw = t if dw is None else dw + t
                g = _gelu(dw + bdw[ei])                # (W, C)
                mlp = mlp + jnp.dot(g, w2[ei], preferred_element_type=f32)
            mlp_rows.append(mlp)
        mlp_img = mlp_rows[0] if H == 1 else jnp.concatenate(mlp_rows, axis=0)
        out_b = xmid + mlp_img                         # residual 2

        if apply_final_ln:                             # stage-final LayerNorm2d
            out_b = _ln(out_b, nlg_ref[...], nlb_ref[...])
        o_ref[b * N:(b + 1) * N, :] = out_b


def encoder_block(x_flat, x_patch, bp, norm_g, norm_b, *,
                  B, H, W, C, rr, nh, e, apply_final_ln):
    N = H * W
    kern = functools.partial(
        _encoder_block_kernel,
        B=B, H=H, W=W, Nr=(H // rr) * (W // rr), P=rr * rr,
        nh=nh, hd=C // nh, e=e, scale=1.0 / math.sqrt(C // nh),
        apply_final_ln=apply_final_ln)
    return pl.pallas_call(
        kern,
        out_shape=jax.ShapeDtypeStruct((B * N, C), jnp.float32),
    )(x_flat, x_patch,
      bp["ln1_g"], bp["ln1_b"],
      bp["red_w"], bp["red_b"], bp["red_ln_g"], bp["red_ln_b"],
      bp["wq"], bp["bq"], bp["wk"], bp["bk"], bp["wv"], bp["bv"],
      bp["wo"], bp["bo"],
      bp["ln2_g"], bp["ln2_b"],
      bp["w1"], bp["b1"], bp["wdw"], bp["bdw"], bp["w2"], bp["b2"],
      norm_g, norm_b)


def _head_kernel(*refs, n_feats):
    # decoder 1x1 convs + channel-concat fuse 1x1 (no bias) + ReLU +
    # BatchNorm2d (batch statistics) + predict 1x1, all fused.
    f32 = jnp.float32
    o_ref = refs[-1]
    t = None
    for d in range(n_feats):
        f = refs[d][...]
        wd = refs[n_feats + 3 * d][...]
        bd = refs[n_feats + 3 * d + 1][...]
        wf = refs[n_feats + 3 * d + 2][...]
        y = jnp.dot(f, wd, preferred_element_type=f32) + bd     # decoder 1x1 conv
        c = jnp.dot(y, wf, preferred_element_type=f32)          # fuse-conv row slice
        t = c if t is None else t + c
    base = 4 * n_feats
    bn_g, bn_b = refs[base][...], refs[base + 1][...]
    wp, bp = refs[base + 2][...], refs[base + 3][...]
    t = jnp.maximum(t, 0.0)                                     # ReLU
    mu = jnp.mean(t, axis=0, keepdims=True)
    var = jnp.mean(jnp.square(t - mu), axis=0, keepdims=True)
    t = (t - mu) * lax.rsqrt(var + BN_EPS) * bn_g + bn_b        # BatchNorm2d
    o_ref[...] = jnp.dot(t, wp, preferred_element_type=f32) + bp


def decoder_head(dec_feats_flat, hp):
    n = len(dec_feats_flat)
    R = dec_feats_flat[0].shape[0]
    args = list(dec_feats_flat)
    for d in range(n):
        args += [hp["dec_w"][d], hp["dec_b"][d], hp["fuse_w"][d]]
    args += [hp["bn_g"], hp["bn_b"], hp["pred_w"], hp["pred_b"]]
    return pl.pallas_call(
        functools.partial(_head_kernel, n_feats=n),
        out_shape=jax.ShapeDtypeStruct((R, NUM_CLASSES), jnp.float32),
    )(*args)


# ============================ XLA-side layout glue ===========================

def im2col(x, k, stride, pad):
    """x:(B,H,W,C) -> (B*Ho*Wo, k*k*C); patch order (kh, kw, C) via one gather."""
    B, H, W, C = x.shape
    xpad = jnp.pad(x, ((0, 0), (pad, pad), (pad, pad), (0, 0)))
    Ho = (H + 2 * pad - k) // stride + 1
    Wo = (W + 2 * pad - k) // stride + 1
    oi = np.arange(Ho)[:, None, None, None]
    oj = np.arange(Wo)[None, :, None, None]
    di = np.arange(k)[None, None, :, None]
    dj = np.arange(k)[None, None, None, :]
    rows = oi * stride + di                    # (Ho, 1, k, 1)
    cols = oj * stride + dj                    # (1, Wo, 1, k)
    patches = xpad[:, rows, cols, :]           # (B, Ho, Wo, k, k, C)
    return patches.reshape(B * Ho * Wo, k * k * C), Ho, Wo


def reducer_patch_view(x_flat, B, H, W, C, rr):
    """Non-overlapping rr x rr patch view of x, ordered p = di*rr + dj."""
    if rr == 1:
        return x_flat.reshape(1, B * H * W, C)
    Hr, Wr = H // rr, W // rr
    x6 = x_flat.reshape(B, Hr, rr, Wr, rr, C)
    xp = jnp.transpose(x6, (2, 4, 0, 1, 3, 5))       # (rr, rr, B, Hr, Wr, C)
    return xp.reshape(rr * rr, B * Hr * Wr, C)


def conv_w_to_mat(w):
    """torch conv weight (Cout,Cin,kh,kw) -> im2col matrix (kh*kw*Cin, Cout)."""
    return jnp.transpose(w, (2, 3, 1, 0)).reshape(-1, w.shape[0])


def bilinear_matrix(n_in, n_out):
    """align_corners=True interpolation matrix (nn.UpsamplingBilinear2d)."""
    M = np.zeros((n_out, n_in), np.float32)
    if n_out == 1 or n_in == 1:
        M[:, 0] = 1.0
        return jnp.asarray(M)
    src = np.arange(n_out) * (n_in - 1) / (n_out - 1)
    lo = np.clip(np.floor(src).astype(np.int64), 0, n_in - 1)
    hi = np.minimum(lo + 1, n_in - 1)
    frac = (src - lo).astype(np.float32)
    for o in range(n_out):
        M[o, lo[o]] += 1.0 - frac[o]
        M[o, hi[o]] += frac[o]
    return jnp.asarray(M)


def upsample_bilinear(x, scale):
    # tiny (K<=8) interpolation matmuls: plain XLA, not worth a pallas_call
    if scale == 1:
        return x
    B, H, W, C = x.shape
    Ho, Wo = int(H * scale), int(W * scale)
    Mh, Mw = bilinear_matrix(H, Ho), bilinear_matrix(W, Wo)
    y = jnp.einsum('oh,bhwc->bowc', Mh, x)
    return jnp.einsum('pw,bowc->bopc', Mw, y)


# ============================ model forward ==================================

def segformer_forward(params, x_nchw):
    x = jnp.transpose(x_nchw.astype(jnp.float32), (0, 2, 3, 1))   # NCHW -> NHWC
    B = x.shape[0]
    feats = []
    for s, sp in enumerate(params["stages"]):
        k, stride, rr = PATCH_SIZES[s], OVERLAP_SIZES[s], REDUCTION_RATIOS[s]
        nh, ex, C = NUM_HEADS[s], MLP_EXPANSIONS[s], WIDTHS[s]
        patches, H, W = im2col(x, k, stride, k // 2)
        xf = patch_embed(patches, sp["patch_w_mat"], sp["patch_ln_g"], sp["patch_ln_b"])
        nblk = len(sp["blocks"])
        for bi, bp in enumerate(sp["blocks"]):
            xpv = reducer_patch_view(xf, B, H, W, C, rr)
            xf = encoder_block(xf, xpv, bp, sp["norm_g"], sp["norm_b"],
                               B=B, H=H, W=W, C=C, rr=rr, nh=nh, e=ex,
                               apply_final_ln=(bi == nblk - 1))
        x = xf.reshape(B, H, W, C)
        feats.append(x)

    # decoder (bilinear upsample in XLA) + fully fused decoder-conv/head kernel
    dec_flat = []
    for feat, sf in zip(feats[::-1], SCALE_FACTORS):
        y = upsample_bilinear(feat, sf)
        dec_flat.append(y.reshape(-1, feat.shape[-1]))
    Hh, Wh = feats[0].shape[1], feats[0].shape[2]
    seg = decoder_head(dec_flat, params["head"])
    seg = seg.reshape(B, Hh, Wh, NUM_CLASSES)
    return jnp.transpose(seg, (0, 3, 1, 2))            # back to NCHW


# ============================ deterministic init =============================

def init_params(key):
    keys = iter(jax.random.split(key, 256))

    def nrm(shape, std=0.05):
        return jax.random.normal(next(keys), shape, jnp.float32) * std

    def row(v):
        return jnp.asarray(v, jnp.float32).reshape(1, -1)

    P = {"stages": []}
    in_c = IN_CHANNELS
    for s in range(len(WIDTHS)):
        C, k, rr, ex, nh, depth = (WIDTHS[s], PATCH_SIZES[s], REDUCTION_RATIOS[s],
                                   MLP_EXPANSIONS[s], NUM_HEADS[s], DEPTHS[s])
        hd = C // nh
        sp = {
            "patch_w_mat": conv_w_to_mat(nrm((C, in_c, k, k))),     # bias=False
            "patch_ln_g": row(jnp.ones((C,))), "patch_ln_b": row(jnp.zeros((C,))),
            "norm_g": row(jnp.ones((C,))), "norm_b": row(jnp.zeros((C,))),
            "blocks": [],
        }
        for _ in range(depth):
            # torch-layout weights, packed once into kernel-ready layouts
            red_w = nrm((C, C, rr, rr)); red_b = nrm((C,), 0.02)
            in_proj_w = nrm((3 * C, C)); in_proj_b = nrm((3 * C,), 0.02)
            out_proj_w = nrm((C, C));    out_proj_b = nrm((C,), 0.02)
            w1 = nrm((C, C, 1, 1));      b1 = nrm((C,), 0.02)
            wdw = nrm((C * ex, 1, 3, 3)); bdw = nrm((C * ex,), 0.02)
            w2 = nrm((C, C * ex, 1, 1)); b2 = nrm((C,), 0.02)

            def per_head(wslab, bslab):
                w = wslab.reshape(nh, hd, C).transpose(0, 2, 1)     # (nh, C, hd)
                b = bslab.reshape(nh, 1, hd)
                return w, b

            wq, bq = per_head(in_proj_w[:C], in_proj_b[:C])
            wk, bk = per_head(in_proj_w[C:2 * C], in_proj_b[C:2 * C])
            wv, bv = per_head(in_proj_w[2 * C:], in_proj_b[2 * C:])

            bp = {
                "ln1_g": row(jnp.ones((C,))), "ln1_b": row(jnp.zeros((C,))),
                "red_w": jnp.transpose(red_w, (2, 3, 1, 0)).reshape(rr * rr, C, C),
                "red_b": row(red_b),
                "red_ln_g": row(jnp.ones((C,))), "red_ln_b": row(jnp.zeros((C,))),
                "wq": wq, "bq": bq, "wk": wk, "bk": bk, "wv": wv, "bv": bv,
                "wo": out_proj_w.T.reshape(nh, hd, C),              # out-proj split per head
                "bo": row(out_proj_b),
                "ln2_g": row(jnp.ones((C,))), "ln2_b": row(jnp.zeros((C,))),
                "w1": w1[:, :, 0, 0].T, "b1": row(b1),
                # depthwise weights regrouped expansion-major: wdw[ei, tap, c]
                "wdw": jnp.transpose(wdw.reshape(C, ex, 3, 3), (1, 2, 3, 0)).reshape(ex, 9, C),
                "bdw": jnp.transpose(bdw.reshape(C, ex), (1, 0)).reshape(ex, 1, C),
                # second 1x1 weight split per expansion slice: w2[ei] : (C, C)
                "w2": jnp.transpose(w2[:, :, 0, 0].T.reshape(C, ex, C), (1, 0, 2)),
                "b2": row(b2),
            }
            sp["blocks"].append(bp)
        P["stages"].append(sp)
        in_c = C

    # decoder 1x1 convs + segmentation head (all fused into one kernel)
    dec_w, dec_b = [], []
    for C_in in WIDTHS[::-1]:
        w = nrm((DECODER_CHANNELS, C_in, 1, 1)); b = nrm((DECODER_CHANNELS,), 0.02)
        dec_w.append(w[:, :, 0, 0].T)                               # (C_in, DEC)
        dec_b.append(row(b))
    fuse = nrm((DECODER_CHANNELS, DECODER_CHANNELS * len(WIDTHS), 1, 1))
    fuse_mat = fuse[:, :, 0, 0].T                                   # (n*DEC, DEC)
    fuse_split = [fuse_mat[d * DECODER_CHANNELS:(d + 1) * DECODER_CHANNELS]
                  for d in range(len(WIDTHS))]
    predict = nrm((NUM_CLASSES, DECODER_CHANNELS, 1, 1)); pred_b = nrm((NUM_CLASSES,), 0.02)
    P["head"] = {
        "dec_w": dec_w, "dec_b": dec_b, "fuse_w": fuse_split,
        "bn_g": row(jnp.ones((DECODER_CHANNELS,))),
        "bn_b": row(jnp.zeros((DECODER_CHANNELS,))),
        "pred_w": predict[:, :, 0, 0].T, "pred_b": row(pred_b),
    }
    return P


# =============================== main ========================================

if __name__ == "__main__":
    key = jax.random.PRNGKey(0)
    k_in, k_par = jax.random.split(key)
    x = jax.random.normal(k_in, (2, IN_CHANNELS, 16, 16), jnp.float32)   # NCHW input
    params = init_params(k_par)

    seg = jax.jit(segformer_forward)(params, x)
    seg = jax.block_until_ready(seg)

    assert seg.shape == (2, NUM_CLASSES, 4, 4), seg.shape
    assert bool(jnp.all(jnp.isfinite(seg)))
    print("KERNEL_OK")
</pallas_src>

<mosaic_0001>
module attributes {stable_mosaic.version = 11 : i64} {
  func.func @_patch_embed_kernel(%arg0: memref<32x196xf32, #tpu.memory_space<vmem>>, %arg1: memref<196x16xf32, #tpu.memory_space<vmem>>, %arg2: memref<1x16xf32, #tpu.memory_space<vmem>>, %arg3: memref<1x16xf32, #tpu.memory_space<vmem>>, %arg4: memref<32x16xf32, #tpu.memory_space<vmem>>) attributes {dimension_semantics = [], scalar_prefetch = 0 : i64, scratch_operands = 0 : i64, tpu.core_type = #tpu.core_type<tc>} {
    %c0 = arith.constant 0 : index
    %c0_0 = arith.constant 0 : index
    %0 = vector.load %arg0[%c0, %c0_0] : memref<32x196xf32, #tpu.memory_space<vmem>>, vector<32x196xf32>
    %c0_1 = arith.constant 0 : index
    %c0_2 = arith.constant 0 : index
    %1 = vector.load %arg1[%c0_1, %c0_2] : memref<196x16xf32, #tpu.memory_space<vmem>>, vector<196x16xf32>
    %cst = arith.constant dense<0.000000e+00> : vector<32x16xf32>
    %2 = tpu.matmul %0, %1, %cst {dimension_numbers = #tpu.dot_dimension_numbers<[1], [0], [0], [1], [0, 0, 1, 1], [], []>} : vector<32x196xf32>, vector<196x16xf32>, vector<32x16xf32> -> vector<32x16xf32>
    %c0_3 = arith.constant 0 : index
    %c0_4 = arith.constant 0 : index
    %3 = vector.load %arg2[%c0_3, %c0_4] : memref<1x16xf32, #tpu.memory_space<vmem>>, vector<1x16xf32>
    %c0_5 = arith.constant 0 : index
    %c0_6 = arith.constant 0 : index
    %4 = vector.load %arg3[%c0_5, %c0_6] : memref<1x16xf32, #tpu.memory_space<vmem>>, vector<1x16xf32>
    %cst_7 = arith.constant dense<0.000000e+00> : vector<32xf32>
    %5 = vector.multi_reduction <add>, %2, %cst_7 [1] : vector<32x16xf32> to vector<32xf32>
    %6 = vector.shape_cast %5 : vector<32xf32> to vector<32x1xf32>
    %cst_8 = arith.constant 1.600000e+01 : f32
    %7 = vector.broadcast %cst_8 : f32 to vector<32x1xf32>
    %8 = arith.divf %6, %7 : vector<32x1xf32>
    %9 = vector.broadcast %8 : vector<32x1xf32> to vector<32x16xf32>
    %10 = arith.subf %2, %9 : vector<32x16xf32>
    %11 = arith.mulf %10, %10 : vector<32x16xf32>
    %cst_9 = arith.constant dense<0.000000e+00> : vector<32xf32>
    %12 = vector.multi_reduction <add>, %11, %cst_9 [1] : vector<32x16xf32> to vector<32xf32>
    %13 = vector.shape_cast %12 : vector<32xf32> to vector<32x1xf32>
    %cst_10 = arith.constant 1.600000e+01 : f32
    %14 = vector.broadcast %cst_10 : f32 to vector<32x1xf32>
    %15 = arith.divf %13, %14 : vector<32x1xf32>
    %16 = vector.broadcast %8 : vector<32x1xf32> to vector<32x16xf32>
    %17 = arith.subf %2, %16 : vector<32x16xf32>
    %cst_11 = arith.constant 9.99999974E-6 : f32
    %18 = vector.broadcast %cst_11 : f32 to vector<32x1xf32>
    %19 = arith.addf %15, %18 : vector<32x1xf32>
    %20 = math.rsqrt %19 : vector<32x1xf32>
    %21 = vector.broadcast %20 : vector<32x1xf32> to vector<32x16xf32>
    %22 = arith.mulf %17, %21 : vector<32x16xf32>
    %23 = vector.broadcast %3 : vector<1x16xf32> to vector<32x16xf32>
    %24 = arith.mulf %22, %23 : vector<32x16xf32>
    %25 = vector.broadcast %4 : vector<1x16xf32> to vector<32x16xf32>
    %26 = arith.addf %24, %25 : vector<32x16xf32>
    %c0_12 = arith.constant 0 : index
    %c0_13 = arith.constant 0 : index
    %27 = vector.load %arg4[%c0_12, %c0_13] : memref<32x16xf32, #tpu.memory_space<vmem>>, vector<32x16xf32>
    tpu.vector_store %arg4[%c0_12, %c0_13], %26 {strides = array<i32>} : memref<32x16xf32, #tpu.memory_space<vmem>>, vector<32x16xf32>,
    return
  }
}

module attributes {stable_mosaic.version = 11 : i64} {
  func.func @_encoder_block_kernel(%arg0: memref<32x16xf32, #tpu.memory_space<vmem>>, %arg1: memref<4x8x16xf32, #tpu.memory_space<vmem>>, %arg2: memref<1x16xf32, #tpu.memory_space<vmem>>, %arg3: memref<1x16xf32, #tpu.memory_space<vmem>>, %arg4: memref<4x16x16xf32, #tpu.memory_space<vmem>>, %arg5: memref<1x16xf32, #tpu.memory_space<vmem>>, %arg6: memref<1x16xf32, #tpu.memory_space<vmem>>, %arg7: memref<1x16xf32, #tpu.memory_space<vmem>>, %arg8: memref<1x16x16xf32, #tpu.memory_space<vmem>>, %arg9: memref<1x1x16xf32, #tpu.memory_space<vmem>>, %arg10: memref<1x16x16xf32, #tpu.memory_space<vmem>>, %arg11: memref<1x1x16xf32, #tpu.memory_space<vmem>>, %arg12: memref<1x16x16xf32, #tpu.memory_space<vmem>>, %arg13: memref<1x1x16xf32, #tpu.memory_space<vmem>>, %arg14: memref<1x16x16xf32, #tpu.memory_space<vmem>>, %arg15: memref<1x16xf32, #tpu.memory_space<vmem>>, %arg16: memref<1x16xf32, #tpu.memory_space<vmem>>, %arg17: memref<1x16xf32, #tpu.memory_space<vmem>>, %arg18: memref<16x16xf32, #tpu.memory_space<vmem>>, %arg19: memref<1x16xf32, #tpu.memory_space<vmem>>, %arg20: memref<2x9x16xf32, #tpu.memory_space<vmem>>, %arg21: memref<2x1x16xf32, #tpu.memory_space<vmem>>, %arg22: memref<2x16x16xf32, #tpu.memory_space<vmem>>, %arg23: memref<1x16xf32, #tpu.memory_space<vmem>>, %arg24: memref<1x16xf32, #tpu.memory_space<vmem>>, %arg25: memref<1x16xf32, #tpu.memory_space<vmem>>, %arg26: memref<32x16xf32, #tpu.memory_space<vmem>>) attributes {dimension_semantics = [], scalar_prefetch = 0 : i64, scratch_operands = 0 : i64, tpu.core_type = #tpu.core_type<tc>} {
    %c0 = arith.constant 0 : index
    %c0_0 = arith.constant 0 : index
    %0 = vector.load %arg0[%c0, %c0_0] : memref<32x16xf32, #tpu.memory_space<vmem>>, vector<32x16xf32>
    %c0_1 = arith.constant 0 : index
    %c0_2 = arith.constant 0 : index
    %c0_3 = arith.constant 0 : index
    %1 = vector.load %arg1[%c0_1, %c0_2, %c0_3] : memref<4x8x16xf32, #tpu.memory_space<vmem>>, vector<4x8x16xf32>
    %c0_4 = arith.constant 0 : index
    %c0_5 = arith.constant 0 : index
    %2 = vector.load %arg2[%c0_4, %c0_5] : memref<1x16xf32, #tpu.memory_space<vmem>>, vector<1x16xf32>
    %c0_6 = arith.constant 0 : index
    %c0_7 = arith.constant 0 : index
    %3 = vector.load %arg3[%c0_6, %c0_7] : memref<1x16xf32, #tpu.memory_space<vmem>>, vector<1x16xf32>
    %c0_8 = arith.constant 0 : index
    %c0_9 = arith.constant 0 : index
    %c0_10 = arith.constant 0 : index
    %4 = vector.load %arg4[%c0_8, %c0_9, %c0_10] : memref<4x16x16xf32, #tpu.memory_space<vmem>>, vector<4x16x16xf32>
    %c0_11 = arith.constant 0 : index
    %c0_12 = arith.constant 0 : index
    %5 = vector.load %arg5[%c0_11, %c0_12] : memref<1x16xf32, #tpu.memory_space<vmem>>, vector<1x16xf32>
    %c0_13 = arith.constant 0 : index
    %c0_14 = arith.constant 0 : index
    %6 = vector.load %arg6[%c0_13, %c0_14] : memref<1x16xf32, #tpu.memory_space<vmem>>, vector<1x16xf32>
    %c0_15 = arith.constant 0 : index
    %c0_16 = arith.constant 0 : index
    %7 = vector.load %arg7[%c0_15, %c0_16] : memref<1x16xf32, #tpu.memory_space<vmem>>, vector<1x16xf32>
    %c0_17 = arith.constant 0 : index
    %c0_18 = arith.constant 0 : index
    %c0_19 = arith.constant 0 : index
    %8 = vector.load %arg8[%c0_17, %c0_18, %c0_19] : memref<1x16x16xf32, #tpu.memory_space<vmem>>, vector<1x16x16xf32>
    %c0_20 = arith.constant 0 : index
    %c0_21 = arith.constant 0 : index
    %c0_22 = arith.constant 0 : index
    %9 = vector.load %arg9[%c0_20, %c0_21, %c0_22] : memref<1x1x16xf32, #tpu.memory_space<vmem>>, vector<1x1x16xf32>
    %c0_23 = arith.constant 0 : index
    %c0_24 = arith.constant 0 : index
    %c0_25 = arith.constant 0 : index
    %10 = vector.load %arg10[%c0_23, %c0_24, %c0_25] : memref<1x16x16xf32, #tpu.memory_space<vmem>>, vector<1x16x16xf32>
    %c0_26 = arith.constant 0 : index
    %c0_27 = arith.constant 0 : index
    %c0_28 = arith.constant 0 : index
    %11 = vector.load %arg11[%c0_26, %c0_27, %c0_28] : memref<1x1x16xf32, #tpu.memory_space<vmem>>, vector<1x1x16xf32>
    %c0_29 = arith.constant 0 : index
    %c0_30 = arith.constant 0 : index
    %c0_31 = arith.constant 0 : index
    %12 = vector.load %arg12[%c0_29, %c0_30, %c0_31] : memref<1x16x16xf32, #tpu.memory_space<vmem>>, vector<1x16x16xf32>
    %c0_32 = arith.constant 0 : index
    %c0_33 = arith.constant 0 : index
    %c0_34 = arith.constant 0 : index
    %13 = vector.load %arg13[%c0_32, %c0_33, %c0_34] : memref<1x1x16xf32, #tpu.memory_space<vmem>>, vector<1x1x16xf32>
    %c0_35 = arith.constant 0 : index
    %c0_36 = arith.constant 0 : index
    %c0_37 = arith.constant 0 : index
    %14 = vector.load %arg14[%c0_35, %c0_36, %c0_37] : memref<1x16x16xf32, #tpu.memory_space<vmem>>, vector<1x16x16xf32>
    %c0_38 = arith.constant 0 : index
    %c0_39 = arith.constant 0 : index
    %15 = vector.load %arg15[%c0_38, %c0_39] : memref<1x16xf32, #tpu.memory_space<vmem>>, vector<1x16xf32>
    %c0_40 = arith.constant 0 : index
    %c0_41 = arith.constant 0 : index
    %16 = vector.load %arg16[%c0_40, %c0_41] : memref<1x16xf32, #tpu.memory_space<vmem>>, vector<1x16xf32>
    %c0_42 = arith.constant 0 : index
    %c0_43 = arith.constant 0 : index
    %17 = vector.load %arg17[%c0_42, %c0_43] : memref<1x16xf32, #tpu.memory_space<vmem>>, vector<1x16xf32>
    %c0_44 = arith.constant 0 : index
    %c0_45 = arith.constant 0 : index
    %18 = vector.load %arg18[%c0_44, %c0_45] : memref<16x16xf32, #tpu.memory_space<vmem>>, vector<16x16xf32>
    %c0_46 = arith.constant 0 : index
    %c0_47 = arith.constant 0 : index
    %19 = vector.load %arg19[%c0_46, %c0_47] : memref<1x16xf32, #tpu.memory_space<vmem>>, vector<1x16xf32>
    %c0_48 = arith.constant 0 : index
    %c0_49 = arith.constant 0 : index
    %c0_50 = arith.constant 0 : index
    %20 = vector.load %arg20[%c0_48, %c0_49, %c0_50] : memref<2x9x16xf32, #tpu.memory_space<vmem>>, vector<2x9x16xf32>
    %c0_51 = arith.constant 0 : index
    %c0_52 = arith.constant 0 : index
    %c0_53 = arith.constant 0 : index
    %21 = vector.load %arg21[%c0_51, %c0_52, %c0_53] : memref<2x1x16xf32, #tpu.memory_space<vmem>>, vector<2x1x16xf32>
    %c0_54 = arith.constant 0 : index
    %c0_55 = arith.constant 0 : index
    %c0_56 = arith.constant 0 : index
    %22 = vector.load %arg22[%c0_54, %c0_55, %c0_56] : memref<2x16x16xf32, #tpu.memory_space<vmem>>, vector<2x16x16xf32>
    %c0_57 = arith.constant 0 : index
    %c0_58 = arith.constant 0 : index
    %23 = vector.load %arg23[%c0_57, %c0_58] : memref<1x16xf32, #tpu.memory_space<vmem>>, vector<1x16xf32>
    %24 = vector.extract_strided_slice %0 {offsets = [0, 0], sizes = [16, 16], strides = [1, 1]} : vector<32x16xf32> to vector<16x16xf32>
    %cst = arith.constant dense<0.000000e+00> : vector<16xf32>
    %25 = vector.multi_reduction <add>, %24, %cst [1] : vector<16x16xf32> to vector<16xf32>
    %26 = vector.shape_cast %25 : vector<16xf32> to vector<16x1xf32>
    %cst_59 = arith.constant 1.600000e+01 : f32
    %27 = vector.broadcast %cst_59 : f32 to vector<16x1xf32>
    %28 = arith.divf %26, %27 : vector<16x1xf32>
    %29 = vector.broadcast %28 : vector<16x1xf32> to vector<16x16xf32>
    %30 = arith.subf %24, %29 : vector<16x16xf32>
    %31 = arith.mulf %30, %30 : vector<16x16xf32>
    %cst_60 = arith.constant dense<0.000000e+00> : vector<16xf32>
    %32 = vector.multi_reduction <add>, %31, %cst_60 [1] : vector<16x16xf32> to vector<16xf32>
    %33 = vector.shape_cast %32 : vector<16xf32> to vector<16x1xf32>
    %cst_61 = arith.constant 1.600000e+01 : f32
    %34 = vector.broadcast %cst_61 : f32 to vector<16x1xf32>
    %35 = arith.divf %33, %34 : vector<16x1xf32>
    %36 = vector.broadcast %28 : vector<16x1xf32> to vector<16x16xf32>
    %37 = arith.subf %24, %36 : vector<16x16xf32>
    %cst_62 = arith.constant 9.99999974E-6 : f32
    %38 = vector.broadcast %cst_62 : f32 to vector<16x1xf32>
    %39 = arith.addf %35, %38 : vector<16x1xf32>
    %40 = math.rsqrt %39 : vector<16x1xf32>
    %41 = vector.broadcast %40 : vector<16x1xf32> to vector<16x16xf32>
    %42 = arith.mulf %37, %41 : vector<16x16xf32>
    %43 = vector.broadcast %2 : vector<1x16xf32> to vector<16x16xf32>
    %44 = arith.mulf %42, %43 : vector<16x16xf32>
    %45 = vector.broadcast %3 : vector<1x16xf32> to vector<16x16xf32>
    %46 = arith.addf %44, %45 : vector<16x16xf32>
    %47 = vector.extract_strided_slice %1 {offsets = [0, 0, 0], sizes = [1, 4, 16], strides = [1, 1, 1]} : vector<4x8x16xf32> to vector<1x4x16xf32>
    %48 = vector.shape_cast %47 : vector<1x4x16xf32> to vector<4x16xf32>
    %cst_63 = arith.constant dense<0.000000e+00> : vector<4xf32>
    %49 = vector.multi_reduction <add>, %48, %cst_63 [1] : vector<4x16xf32> to vector<4xf32>
    %50 = vector.shape_cast %49 : vector<4xf32> to vector<4x1xf32>
    %cst_64 = arith.constant 1.600000e+01 : f32
    %51 = vector.broadcast %cst_64 : f32 to vector<4x1xf32>
    %52 = arith.divf %50, %51 : vector<4x1xf32>
    %53 = vector.broadcast %52 : vector<4x1xf32> to vector<4x16xf32>
    %54 = arith.subf %48, %53 : vector<4x16xf32>
    %55 = arith.mulf %54, %54 : vector<4x16xf32>
    %cst_65 = arith.constant dense<0.000000e+00> : vector<4xf32>
    %56 = vector.multi_reduction <add>, %55, %cst_65 [1] : vector<4x16xf32> to vector<4xf32>
    %57 = vector.shape_cast %56 : vector<4xf32> to vector<4x1xf32>
    %cst_66 = arith.constant 1.600000e+01 : f32
    %58 = vector.broadcast %cst_66 : f32 to vector<4x1xf32>
    %59 = arith.divf %57, %58 : vector<4x1xf32>
    %60 = vector.broadcast %52 : vector<4x1xf32> to vector<4x16xf32>
    %61 = arith.subf %48, %60 : vector<4x16xf32>
    %cst_67 = arith.constant 9.99999974E-6 : f32
    %62 = vector.broadcast %cst_67 : f32 to vector<4x1xf32>
    %63 = arith.addf %59, %62 : vector<4x1xf32>
    %64 = math.rsqrt %63 : vector<4x1xf32>
    %65 = vector.broadcast %64 : vector<4x1xf32> to vector<4x16xf32>
    %66 = arith.mulf %61, %65 : vector<4x16xf32>
    %67 = vector.broadcast %2 : vector<1x16xf32> to vector<4x16xf32>
    %68 = arith.mulf %66, %67 : vector<4x16xf32>
    %69 = vector.broadcast %3 : vector<1x16xf32> to vector<4x16xf32>
    %70 = arith.addf %68, %69 : vector<4x16xf32>
    %71 = vector.extract_strided_slice %4 {offsets = [0, 0, 0], sizes = [1, 16, 16], strides = [1, 1, 1]} : vector<4x16x16xf32> to vector<1x16x16xf32>
    %72 = vector.shape_cast %71 : vector<1x16x16xf32> to vector<16x16xf32>
    %cst_68 = arith.constant dense<0.000000e+00> : vector<4x16xf32>
    %73 = tpu.matmul %70, %72, %cst_68 {dimension_numbers = #tpu.dot_dimension_numbers<[1], [0], [0], [1], [0, 0, 1, 1], [], []>} : vector<4x16xf32>, vector<16x16xf32>, vector<4x16xf32> -> vector<4x16xf32>
    %74 = vector.extract_strided_slice %1 {offsets = [1, 0, 0], sizes = [1, 4, 16], strides = [1, 1, 1]} : vector<4x8x16xf32> to vector<1x4x16xf32>
    %75 = vector.shape_cast %74 : vector<1x4x16xf32> to vector<4x16xf32>
    %cst_69 = arith.constant dense<0.000000e+00> : vector<4xf32>
    %76 = vector.multi_reduction <add>, %75, %cst_69 [1] : vector<4x16xf32> to vector<4xf32>
    %77 = vector.shape_cast %76 : vector<4xf32> to vector<4x1xf32>
    %cst_70 = arith.constant 1.600000e+01 : f32
    %78 = vector.broadcast %cst_70 : f32 to vector<4x1xf32>
    %79 = arith.divf %77, %78 : vector<4x1xf32>
    %80 = vector.broadcast %79 : vector<4x1xf32> to vector<4x16xf32>
    %81 = arith.subf %75, %80 : vector<4x16xf32>
    %82 = arith.mulf %81, %81 : vector<4x16xf32>
    %cst_71 = arith.constant dense<0.000000e+00> : vector<4xf32>
    %83 = vector.multi_reduction <add>, %82, %cst_71 [1] : vector<4x16xf32> to vector<4xf32>
    %84 = vector.shape_cast %83 : vector<4xf32> to vector<4x1xf32>
    %cst_72 = arith.constant 1.600000e+01 : f32
    %85 = vector.broadcast %cst_72 : f32 to vector<4x1xf32>
    %86 = arith.divf %84, %85 : vector<4x1xf32>
    %87 = vector.broadcast %79 : vector<4x1xf32> to vector<4x16xf32>
    %88 = arith.subf %75, %87 : vector<4x16xf32>
    %cst_73 = arith.constant 9.99999974E-6 : f32
    %89 = vector.broadcast %cst_73 : f32 to vector<4x1xf32>
    %90 = arith.addf %86, %89 : vector<4x1xf32>
    %91 = math.rsqrt %90 : vector<4x1xf32>
    %92 = vector.broadcast %91 : vector<4x1xf32> to vector<4x16xf32>
    %93 = arith.mulf %88, %92 : vector<4x16xf32>
    %94 = vector.broadcast %2 : vector<1x16xf32> to vector<4x16xf32>
    %95 = arith.mulf %93, %94 : vector<4x16xf32>
    %96 = vector.broadcast %3 : vector<1x16xf32> to vector<4x16xf32>
    %97 = arith.addf %95, %96 : vector<4x16xf32>
    %98 = vector.extract_strided_slice %4 {offsets = [1, 0, 0], sizes = [1, 16, 16], strides = [1, 1, 1]} : vector<4x16x16xf32> to vector<1x16x16xf32>
    %99 = vector.shape_cast %98 : vector<1x16x16xf32> to vector<16x16xf32>
    %cst_74 = arith.constant dense<0.000000e+00> : vector<4x16xf32>
    %100 = tpu.matmul %97, %99, %cst_74 {dimension_numbers = #tpu.dot_dimension_numbers<[1], [0], [0], [1], [0, 0, 1, 1], [], []>} : vector<4x16xf32>, vector<16x16xf32>, vector<4x16xf32> -> vector<4x16xf32>
    %101 = arith.addf %73, %100 : vector<4x16xf32>
    %102 = vector.extract_strided_slice %1 {offsets = [2, 0, 0], sizes = [1, 4, 16], strides = [1, 1, 1]} : vector<4x8x16xf32> to vector<1x4x16xf32>
    %103 = vector.shape_cast %102 : vector<1x4x16xf32> to vector<4x16xf32>
    %cst_75 = arith.constant dense<0.000000e+00> : vector<4xf32>
    %104 = vector.multi_reduction <add>, %103, %cst_75 [1] : vector<4x16xf32> to vector<4xf32>
    %105 = vector.shape_cast %104 : vector<4xf32> to vector<4x1xf32>
    %cst_76 = arith.constant 1.600000e+01 : f32
    %106 = vector.broadcast %cst_76 : f32 to vector<4x1xf32>
    %107 = arith.divf %105, %106 : vector<4x1xf32>
    %108 = vector.broadcast %107 : vector<4x1xf32> to vector<4x16xf32>
    %109 = arith.subf %103, %108 : vector<4x16xf32>
    %110 = arith.mulf %109, %109 : vector<4x16xf32>
    %cst_77 = arith.constant dense<0.000000e+00> : vector<4xf32>
    %111 = vector.multi_reduction <add>, %110, %cst_77 [1] : vector<4x16xf32> to vector<4xf32>
    %112 = vector.shape_cast %111 : vector<4xf32> to vector<4x1xf32>
    %cst_78 = arith.constant 1.600000e+01 : f32
    %113 = vector.broadcast %cst_78 : f32 to vector<4x1xf32>
    %114 = arith.divf %112, %113 : vector<4x1xf32>
    %115 = vector.broadcast %107 : vector<4x1xf32> to vector<4x16xf32>
    %116 = arith.subf %103, %115 : vector<4x16xf32>
    %cst_79 = arith.constant 9.99999974E-6 : f32
    %117 = vector.broadcast %cst_79 : f32 to vector<4x1xf32>
    %118 = arith.addf %114, %117 : vector<4x1xf32>
    %119 = math.rsqrt %118 : vector<4x1xf32>
    %120 = vector.broadcast %119 : vector<4x1xf32> to vector<4x16xf32>
    %121 = arith.mulf %116, %120 : vector<4x16xf32>
    %122 = vector.broadcast %2 : vector<1x16xf32> to vector<4x16xf32>
    %123 = arith.mulf %121, %122 : vector<4x16xf32>
    %124 = vector.broadcast %3 : vector<1x16xf32> to vector<4x16xf32>
    %125 = arith.addf %123, %124 : vector<4x16xf32>
    %126 = vector.extract_strided_slice %4 {offsets = [2, 0, 0], sizes = [1, 16, 16], strides = [1, 1, 1]} : vector<4x16x16xf32> to vector<1x16x16xf32>
    %127 = vector.shape_cast %126 : vector<1x16x16xf32> to vector<16x16xf32>
    %cst_80 = arith.constant dense<0.000000e+00> : vector<4x16xf32>
    %128 = tpu.matmul %125, %127, %cst_80 {dimension_numbers = #tpu.dot_dimension_numbers<[1], [0], [0], [1], [0, 0, 1, 1], [], []>} : vector<4x16xf32>, vector<16x16xf32>, vector<4x16xf32> -> vector<4x16xf32>
    %129 = arith.addf %101, %128 : vector<4x16xf32>
    %130 = vector.extract_strided_slice %1 {offsets = [3, 0, 0], sizes = [1, 4, 16], strides = [1, 1, 1]} : vector<4x8x16xf32> to vector<1x4x16xf32>
    %131 = vector.shape_cast %130 : vector<1x4x16xf32> to vector<4x16xf32>
    %cst_81 = arith.constant dense<0.000000e+00> : vector<4xf32>
    %132 = vector.multi_reduction <add>, %131, %cst_81 [1] : vector<4x16xf32> to vector<4xf32>
    %133 = vector.shape_cast %132 : vector<4xf32> to vector<4x1xf32>
    %cst_82 = arith.constant 1.600000e+01 : f32
    %134 = vector.broadcast %cst_82 : f32 to vector<4x1xf32>
    %135 = arith.divf %133, %134 : vector<4x1xf32>
    %136 = vector.broadcast %135 : vector<4x1xf32> to vector<4x16xf32>
    %137 = arith.subf %131, %136 : vector<4x16xf32>
    %138 = arith.mulf %137, %137 : vector<4x16xf32>
    %cst_83 = arith.constant dense<0.000000e+00> : vector<4xf32>
    %139 = vector.multi_reduction <add>, %138, %cst_83 [1] : vector<4x16xf32> to vector<4xf32>
    %140 = vector.shape_cast %139 : vector<4xf32> to vector<4x1xf32>
    %cst_84 = arith.constant 1.600000e+01 : f32
    %141 = vector.broadcast %cst_84 : f32 to vector<4x1xf32>
    %142 = arith.divf %140, %141 : vector<4x1xf32>
    %143 = vector.broadcast %135 : vector<4x1xf32> to vector<4x16xf32>
    %144 = arith.subf %131, %143 : vector<4x16xf32>
    %cst_85 = arith.constant 9.99999974E-6 : f32
    %145 = vector.broadcast %cst_85 : f32 to vector<4x1xf32>
    %146 = arith.addf %142, %145 : vector<4x1xf32>
    %147 = math.rsqrt %146 : vector<4x1xf32>
    %148 = vector.broadcast %147 : vector<4x1xf32> to vector<4x16xf32>
    %149 = arith.mulf %144, %148 : vector<4x16xf32>
    %150 = vector.broadcast %2 : vector<1x16xf32> to vector<4x16xf32>
    %151 = arith.mulf %149, %150 : vector<4x16xf32>
    %152 = vector.broadcast %3 : vector<1x16xf32> to vector<4x16xf32>
    %153 = arith.addf %151, %152 : vector<4x16xf32>
    %154 = vector.extract_strided_slice %4 {offsets = [3, 0, 0], sizes = [1, 16, 16], strides = [1, 1, 1]} : vector<4x16x16xf32> to vector<1x16x16xf32>
    %155 = vector.shape_cast %154 : vector<1x16x16xf32> to vector<16x16xf32>
    %cst_86 = arith.constant dense<0.000000e+00> : vector<4x16xf32>
    %156 = tpu.matmul %153, %155, %cst_86 {dimension_numbers = #tpu.dot_dimension_numbers<[1], [0], [0], [1], [0, 0, 1, 1], [], []>} : vector<4x16xf32>, vector<16x16xf32>, vector<4x16xf32> -> vector<4x16xf32>
    %157 = arith.addf %129, %156 : vector<4x16xf32>
    %158 = vector.broadcast %5 : vector<1x16xf32> to vector<4x16xf32>
    %159 = arith.addf %157, %158 : vector<4x16xf32>
    %cst_87 = arith.constant dense<0.000000e+00> : vector<4xf32>
    %160 = vector.multi_reduction <add>, %159, %cst_87 [1] : vector<4x16xf32> to vector<4xf32>
    %161 = vector.shape_cast %160 : vector<4xf32> to vector<4x1xf32>
    %cst_88 = arith.constant 1.600000e+01 : f32
    %162 = vector.broadcast %cst_88 : f32 to vector<4x1xf32>
    %163 = arith.divf %161, %162 : vector<4x1xf32>
    %164 = vector.broadcast %163 : vector<4x1xf32> to vector<4x16xf32>
    %165 = arith.subf %159, %164 : vector<4x16xf32>
    %166 = arith.mulf %165, %165 : vector<4x16xf32>
    %cst_89 = arith.constant dense<0.000000e+00> : vector<4xf32>
    %167 = vector.multi_reduction <add>, %166, %cst_89 [1] : vector<4x16xf32> to vector<4xf32>
    %168 = vector.shape_cast %167 : vector<4xf32> to vector<4x1xf32>
    %cst_90 = arith.constant 1.600000e+01 : f32
    %169 = vector.broadcast %cst_90 : f32 to vector<4x1xf32>
    %170 = arith.divf %168, %169 : vector<4x1xf32>
    %171 = vector.broadcast %163 : vector<4x1xf32> to vector<4x16xf32>
    %172 = arith.subf %159, %171 : vector<4x16xf32>
    %cst_91 = arith.constant 9.99999974E-6 : f32
    %173 = vector.broadcast %cst_91 : f32 to vector<4x1xf32>
    %174 = arith.addf %170, %173 : vector<4x1xf32>
    %175 = math.rsqrt %174 : vector<4x1xf32>
    %176 = vector.broadcast %175 : vector<4x1xf32> to vector<4x16xf32>
    %177 = arith.mulf %172, %176 : vector<4x16xf32>
    %178 = vector.broadcast %6 : vector<1x16xf32> to vector<4x16xf32>
    %179 = arith.mulf %177, %178 : vector<4x16xf32>
    %180 = vector.broadcast %7 : vector<1x16xf32> to vector<4x16xf32>
    %181 = arith.addf %179, %180 : vector<4x16xf32>
    %182 = vector.shape_cast %8 : vector<1x16x16xf32> to vector<16x16xf32>
    %cst_92 = arith.constant dense<0.000000e+00> : vector<16x16xf32>
    %183 = tpu.matmul %46, %182, %cst_92 {dimension_numbers = #tpu.dot_dimension_numbers<[1], [0], [0], [1], [0, 0, 1, 1], [], []>} : vector<16x16xf32>, vector<16x16xf32>, vector<16x16xf32> -> vector<16x16xf32>
    %184 = vector.shape_cast %9 : vector<1x1x16xf32> to vector<1x16xf32>
    %185 = vector.broadcast %184 : vector<1x16xf32> to vector<16x16xf32>
    %186 = arith.addf %183, %185 : vector<16x16xf32>
    %187 = vector.shape_cast %10 : vector<1x16x16xf32> to vector<16x16xf32>
    %cst_93 = arith.constant dense<0.000000e+00> : vector<4x16xf32>
    %188 = tpu.matmul %181, %187, %cst_93 {dimension_numbers = #tpu.dot_dimension_numbers<[1], [0], [0], [1], [0, 0, 1, 1], [], []>} : vector<4x16xf32>, vector<16x16xf32>, vector<4x16xf32> -> vector<4x16xf32>
    %189 = vector.shape_cast %11 : vector<1x1x16xf32> to vector<1x16xf32>
    %190 = vector.broadcast %189 : vector<1x16xf32> to vector<4x16xf32>
    %191 = arith.addf %188, %190 : vector<4x16xf32>
    %192 = vector.shape_cast %12 : vector<1x16x16xf32> to vector<16x16xf32>
    %cst_94 = arith.constant dense<0.000000e+00> : vector<4x16xf32>
    %193 = tpu.matmul %181, %192, %cst_94 {dimension_numbers = #tpu.dot_dimension_numbers<[1], [0], [0], [1], [0, 0, 1, 1], [], []>} : vector<4x16xf32>, vector<16x16xf32>, vector<4x16xf32> -> vector<4x16xf32>
    %194 = vector.shape_cast %13 : vector<1x1x16xf32> to vector<1x16xf32>
    %195 = vector.broadcast %194 : vector<1x16xf32> to vector<4x16xf32>
    %196 = arith.addf %193, %195 : vector<4x16xf32>
    %cst_95 = arith.constant dense<0.000000e+00> : vector<16x4xf32>
    %197 = tpu.matmul %186, %191, %cst_95 {dimension_numbers = #tpu.dot_dimension_numbers<[1], [1], [0], [0], [0, 0, 1, 0], [], []>} : vector<16x16xf32>, vector<4x16xf32>, vector<16x4xf32> -> vector<16x4xf32>
    %cst_96 = arith.constant 2.500000e-01 : f32
    %198 = vector.broadcast %cst_96 : f32 to vector<16x4xf32>
    %199 = arith.mulf %197, %198 : vector<16x4xf32>
    %cst_97 = arith.constant dense<0xFF800000> : vector<16xf32>
    %200 = vector.multi_reduction <maximumf>, %199, %cst_97 [1] : vector<16x4xf32> to vector<16xf32>
    %201 = vector.shape_cast %200 : vector<16xf32> to vector<16x1xf32>
    %202 = vector.broadcast %201 : vector<16x1xf32> to vector<16x4xf32>
    %203 = arith.subf %199, %202 : vector<16x4xf32>
    %204 = math.exp %203 : vector<16x4xf32>
    %cst_98 = arith.constant dense<0.000000e+00> : vector<16xf32>
    %205 = vector.multi_reduction <add>, %204, %cst_98 [1] : vector<16x4xf32> to vector<16xf32>
    %206 = vector.shape_cast %205 : vector<16xf32> to vector<16x1xf32>
    %207 = tpu.reciprocal %206 {approx = true} : vector<16x1xf32> -> vector<16x1xf32>
    %208 = vector.broadcast %207 : vector<16x1xf32> to vector<16x4xf32>
    %209 = arith.mulf %204, %208 : vector<16x4xf32>
    %cst_99 = arith.constant dense<0.000000e+00> : vector<16x16xf32>
    %210 = tpu.matmul %209, %196, %cst_99 {dimension_numbers = #tpu.dot_dimension_numbers<[1], [0], [0], [1], [0, 0, 1, 1], [], []>} : vector<16x4xf32>, vector<4x16xf32>, vector<16x16xf32> -> vector<16x16xf32>
    %211 = vector.shape_cast %14 : vector<1x16x16xf32> to vector<16x16xf32>
    %cst_100 = arith.constant dense<0.000000e+00> : vector<16x16xf32>
    %212 = tpu.matmul %210, %211, %cst_100 {dimension_numbers = #tpu.dot_dimension_numbers<[1], [0], [0], [1], [0, 0, 1, 1], [], []>} : vector<16x16xf32>, vector<16x16xf32>, vector<16x16xf32> -> vector<16x16xf32>
    %213 = vector.broadcast %15 : vector<1x16xf32> to vector<16x16xf32>
    %214 = arith.addf %213, %212 : vector<16x16xf32>
    %215 = arith.addf %24, %214 : vector<16x16xf32>
    %cst_101 = arith.constant dense<0.000000e+00> : vector<16xf32>
    %216 = vector.multi_reduction <add>, %215, %cst_101 [1] : vector<16x16xf32> to vector<16xf32>
    %217 = vector.shape_cast %216 : vector<16xf32> to vector<16x1xf32>
    %cst_102 = arith.constant 1.600000e+01 : f32
    %218 = vector.broadcast %cst_102 : f32 to vector<16x1xf32>
    %219 = arith.divf %217, %218 : vector<16x1xf32>
    %220 = vector.broadcast %219 : vector<16x1xf32> to vector<16x16xf32>
    %221 = arith.subf %215, %220 : vector<16x16xf32>
    %222 = arith.mulf %221, %221 : vector<16x16xf32>
    %cst_103 = arith.constant dense<0.000000e+00> : vector<16xf32>
    %223 = vector.multi_reduction <add>, %222, %cst_103 [1] : vector<16x16xf32> to vector<16xf32>
    %224 = vector.shape_cast %223 : vector<16xf32> to vector<16x1xf32>
    %cst_104 = arith.constant 1.600000e+01 : f32
    %225 = vector.broadcast %cst_104 : f32 to vector<16x1xf32>
    %226 = arith.divf %224, %225 : vector<16x1xf32>
    %227 = vector.broadcast %219 : vector<16x1xf32> to vector<16x16xf32>
    %228 = arith.subf %215, %227 : vector<16x16xf32>
    %cst_105 = arith.constant 9.99999974E-6 : f32
    %229 = vector.broadcast %cst_105 : f32 to vector<16x1xf32>
    %230 = arith.addf %226, %229 : vector<16x1xf32>
    %231 = math.rsqrt %230 : vector<16x1xf32>
    %232 = vector.broadcast %231 : vector<16x1xf32> to vector<16x16xf32>
    %233 = arith.mulf %228, %232 : vector<16x16xf32>
    %234 = vector.broadcast %16 : vector<1x16xf32> to vector<16x16xf32>
    %235 = arith.mulf %233, %234 : vector<16x16xf32>
    %236 = vector.broadcast %17 : vector<1x16xf32> to vector<16x16xf32>
    %237 = arith.addf %235, %236 : vector<16x16xf32>
    %cst_106 = arith.constant dense<0.000000e+00> : vector<16x16xf32>
    %238 = tpu.matmul %237, %18, %cst_106 {dimension_numbers = #tpu.dot_dimension_numbers<[1], [0], [0], [1], [0, 0, 1, 1], [], []>} : vector<16x16xf32>, vector<16x16xf32>, vector<16x16xf32> -> vector<16x16xf32>
    %239 = vector.broadcast %19 : vector<1x16xf32> to vector<16x16xf32>
    %240 = arith.addf %238, %239 : vector<16x16xf32>
    %cst_107 = arith.constant 0.000000e+00 : f32
    %241 = vector.broadcast %cst_107 : f32 to vector<1x16xf32>
    %242 = vector.extract_strided_slice %240 {offsets = [0, 0], sizes = [4, 16], strides = [1, 1]} : vector<16x16xf32> to vector<4x16xf32>
    %243 = tpu.concatenate %241, %242, %241 in 0 : vector<1x16xf32>, vector<4x16xf32>, vector<1x16xf32> -> vector<6x16xf32>
    %244 = vector.extract_strided_slice %243 {offsets = [0, 0], sizes = [4, 16], strides = [1, 1]} : vector<6x16xf32> to vector<4x16xf32>
    %245 = vector.extract_strided_slice %243 {offsets = [1, 0], sizes = [4, 16], strides = [1, 1]} : vector<6x16xf32> to vector<4x16xf32>
    %246 = vector.extract_strided_slice %243 {offsets = [2, 0], sizes = [4, 16], strides = [1, 1]} : vector<6x16xf32> to vector<4x16xf32>
    %247 = vector.extract_strided_slice %240 {offsets = [4, 0], sizes = [4, 16], strides = [1, 1]} : vector<16x16xf32> to vector<4x16xf32>
    %248 = tpu.concatenate %241, %247, %241 in 0 : vector<1x16xf32>, vector<4x16xf32>, vector<1x16xf32> -> vector<6x16xf32>
    %249 = vector.extract_strided_slice %248 {offsets = [0, 0], sizes = [4, 16], strides = [1, 1]} : vector<6x16xf32> to vector<4x16xf32>
    %250 = vector.extract_strided_slice %248 {offsets = [1, 0], sizes = [4, 16], strides = [1, 1]} : vector<6x16xf32> to vector<4x16xf32>
    %251 = vector.extract_strided_slice %248 {offsets = [2, 0], sizes = [4, 16], strides = [1, 1]} : vector<6x16xf32> to vector<4x16xf32>
    %252 = vector.extract_strided_slice %240 {offsets = [8, 0], sizes = [4, 16], strides = [1, 1]} : vector<16x16xf32> to vector<4x16xf32>
    %253 = tpu.concatenate %241, %252, %241 in 0 : vector<1x16xf32>, vector<4x16xf32>, vector<1x16xf32> -> vector<6x16xf32>
    %254 = vector.extract_strided_slice %253 {offsets = [0, 0], sizes = [4, 16], strides = [1, 1]} : vector<6x16xf32> to vector<4x16xf32>
    %255 = vector.extract_strided_slice %253 {offsets = [1, 0], sizes = [4, 16], strides = [1, 1]} : vector<6x16xf32> to vector<4x16xf32>
    %256 = vector.extract_strided_slice %253 {offsets = [2, 0], sizes = [4, 16], strides = [1, 1]} : vector<6x16xf32> to vector<4x16xf32>
    %257 = vector.extract_strided_slice %240 {offsets = [12, 0], sizes = [4, 16], strides = [1, 1]} : vector<16x16xf32> to vector<4x16xf32>
    %258 = tpu.concatenate %241, %257, %241 in 0 : vector<1x16xf32>, vector<4x16xf32>, vector<1x16xf32> -> vector<6x16xf32>
    %259 = vector.extract_strided_slice %258 {offsets = [0, 0], sizes = [4, 16], strides = [1, 1]} : vector<6x16xf32> to vector<4x16xf32>
    %260 = vector.extract_strided_slice %258 {offsets = [1, 0], sizes = [4, 16], strides = [1, 1]} : vector<6x16xf32> to vector<4x16xf32>
    %261 = vector.extract_strided_slice %258 {offsets = [2, 0], sizes = [4, 16], strides = [1, 1]} : vector<6x16xf32> to vector<4x16xf32>
    %262 = vector.extract_strided_slice %20 {offsets = [0, 3, 0], sizes = [1, 1, 16], strides = [1, 1, 1]} : vector<2x9x16xf32> to vector<1x1x16xf32>
    %263 = vector.shape_cast %262 : vector<1x1x16xf32> to vector<16xf32>
    %264 = vector.shape_cast %263 : vector<16xf32> to vector<1x16xf32>
    %265 = vector.broadcast %264 : vector<1x16xf32> to vector<4x16xf32>
    %266 = arith.mulf %244, %265 : vector<4x16xf32>
    %267 = vector.extract_strided_slice %20 {offsets = [0, 4, 0], sizes = [1, 1, 16], strides = [1, 1, 1]} : vector<2x9x16xf32> to vector<1x1x16xf32>
    %268 = vector.shape_cast %267 : vector<1x1x16xf32> to vector<16xf32>
    %269 = vector.shape_cast %268 : vector<16xf32> to vector<1x16xf32>
    %270 = vector.broadcast %269 : vector<1x16xf32> to vector<4x16xf32>
    %271 = arith.mulf %245, %270 : vector<4x16xf32>
    %272 = arith.addf %266, %271 : vector<4x16xf32>
    %273 = vector.extract_strided_slice %20 {offsets = [0, 5, 0], sizes = [1, 1, 16], strides = [1, 1, 1]} : vector<2x9x16xf32> to vector<1x1x16xf32>
    %274 = vector.shape_cast %273 : vector<1x1x16xf32> to vector<16xf32>
    %275 = vector.shape_cast %274 : vector<16xf32> to vector<1x16xf32>
    %276 = vector.broadcast %275 : vector<1x16xf32> to vector<4x16xf32>
    %277 = arith.mulf %246, %276 : vector<4x16xf32>
    %278 = arith.addf %272, %277 : vector<4x16xf32>
    %279 = vector.extract_strided_slice %20 {offsets = [0, 6, 0], sizes = [1, 1, 16], strides = [1, 1, 1]} : vector<2x9x16xf32> to vector<1x1x16xf32>
    %280 = vector.shape_cast %279 : vector<1x1x16xf32> to vector<16xf32>
    %281 = vector.shape_cast %280 : vector<16xf32> to vector<1x16xf32>
    %282 = vector.broadcast %281 : vector<1x16xf32> to vector<4x16xf32>
    %283 = arith.mulf %249, %282 : vector<4x16xf32>
    %284 = arith.addf %278, %283 : vector<4x16xf32>
    %285 = vector.extract_strided_slice %20 {offsets = [0, 7, 0], sizes = [1, 1, 16], strides = [1, 1, 1]} : vector<2x9x16xf32> to vector<1x1x16xf32>
    %286 = vector.shape_cast %285 : vector<1x1x16xf32> to vector<16xf32>
    %287 = vector.shape_cast %286 : vector<16xf32> to vector<1x16xf32>
    %288 = vector.broadcast %287 : vector<1x16xf32> to vector<4x16xf32>
    %289 = arith.mulf %250, %288 : vector<4x16xf32>
    %290 = arith.addf %284, %289 : vector<4x16xf32>
    %291 = vector.extract_strided_slice %20 {offsets = [0, 8, 0], sizes = [1, 1, 16], strides = [1, 1, 1]} : vector<2x9x16xf32> to vector<1x1x16xf32>
    %292 = vector.shape_cast %291 : vector<1x1x16xf32> to vector<16xf32>
    %293 = vector.shape_cast %292 : vector<16xf32> to vector<1x16xf32>
    %294 = vector.broadcast %293 : vector<1x16xf32> to vector<4x16xf32>
    %295 = arith.mulf %251, %294 : vector<4x16xf32>
    %296 = arith.addf %290, %295 : vector<4x16xf32>
    %297 = vector.extract_strided_slice %21 {offsets = [0, 0, 0], sizes = [1, 1, 16], strides = [1, 1, 1]} : vector<2x1x16xf32> to vector<1x1x16xf32>
    %298 = vector.shape_cast %297 : vector<1x1x16xf32> to vector<1x16xf32>
    %299 = vector.broadcast %298 : vector<1x16xf32> to vector<4x16xf32>
    %300 = arith.addf %296, %299 : vector<4x16xf32>
    %cst_108 = arith.constant 5.000000e-01 : f32
    %301 = vector.broadcast %cst_108 : f32 to vector<4x16xf32>
    %302 = arith.mulf %301, %300 : vector<4x16xf32>
    %cst_109 = arith.constant 0.707106769 : f32
    %303 = vector.broadcast %cst_109 : f32 to vector<4x16xf32>
    %304 = arith.mulf %300, %303 : vector<4x16xf32>
    %305 = math.erf %304 : vector<4x16xf32>
    %cst_110 = arith.constant 1.000000e+00 : f32
    %306 = vector.broadcast %cst_110 : f32 to vector<4x16xf32>
    %307 = arith.addf %306, %305 : vector<4x16xf32>
    %308 = arith.mulf %302, %307 : vector<4x16xf32>
    %309 = vector.extract_strided_slice %22 {offsets = [0, 0, 0], sizes = [1, 16, 16], strides = [1, 1, 1]} : vector<2x16x16xf32> to vector<1x16x16xf32>
    %310 = vector.shape_cast %309 : vector<1x16x16xf32> to vector<16x16xf32>
    %cst_111 = arith.constant dense<0.000000e+00> : vector<4x16xf32>
    %311 = tpu.matmul %308, %310, %cst_111 {dimension_numbers = #tpu.dot_dimension_numbers<[1], [0], [0], [1], [0, 0, 1, 1], [], []>} : vector<4x16xf32>, vector<16x16xf32>, vector<4x16xf32> -> vector<4x16xf32>
    %312 = vector.broadcast %23 : vector<1x16xf32> to vector<4x16xf32>
    %313 = arith.addf %312, %311 : vector<4x16xf32>
    %314 = vector.extract_strided_slice %20 {offsets = [1, 3, 0], sizes = [1, 1, 16], strides = [1, 1, 1]} : vector<2x9x16xf32> to vector<1x1x16xf32>
    %315 = vector.shape_cast %314 : vector<1x1x16xf32> to vector<16xf32>
    %316 = vector.shape_cast %315 : vector<16xf32> to vector<1x16xf32>
    %317 = vector.broadcast %316 : vector<1x16xf32> to vector<4x16xf32>
    %318 = arith.mulf %244, %317 : vector<4x16xf32>
    %319 = vector.extract_strided_slice %20 {offsets = [1, 4, 0], sizes = [1, 1, 16], strides = [1, 1, 1]} : vector<2x9x16xf32> to vector<1x1x16xf32>
    %320 = vector.shape_cast %319 : vector<1x1x16xf32> to vector<16xf32>
    %321 = vector.shape_cast %320 : vector<16xf32> to vector<1x16xf32>
    %322 = vector.broadcast %321 : vector<1x16xf32> to vector<4x16xf32>
    %323 = arith.mulf %245, %322 : vector<4x16xf32>
    %324 = arith.addf %318, %323 : vector<4x16xf32>
    %325 = vector.extract_strided_slice %20 {offsets = [1, 5, 0], sizes = [1, 1, 16], strides = [1, 1, 1]} : vector<2x9x16xf32> to vector<1x1x16xf32>
    %326 = vector.shape_cast %325 : vector<1x1x16xf32> to vector<16xf32>
    %327 = vector.shape_cast %326 : vector<16xf32> to vector<1x16xf32>
    %328 = vector.broadcast %327 : vector<1x16xf32> to vector<4x16xf32>
    %329 = arith.mulf %246, %328 : vector<4x16xf32>
    %330 = arith.addf %324, %329 : vector<4x16xf32>
    %331 = vector.extract_strided_slice %20 {offsets = [1, 6, 0], sizes = [1, 1, 16], strides = [1, 1, 1]} : vector<2x9x16xf32> to vector<1x1x16xf32>
    %332 = vector.shape_cast %331 : vector<1x1x16xf32> to vector<16xf32>
    %333 = vector.shape_cast %332 : vector<16xf32> to vector<1x16xf32>
    %334 = vector.broadcast %333 : vector<1x16xf32> to vector<4x16xf32>
    %335 = arith.mulf %249, %334 : vector<4x16xf32>
    %336 = arith.addf %330, %335 : vector<4x16xf32>
    %337 = vector.extract_strided_slice %20 {offsets = [1, 7, 0], sizes = [1, 1, 16], strides = [1, 1, 1]} : vector<2x9x16xf32> to vector<1x1x16xf32>
    %338 = vector.shape_cast %337 : vector<1x1x16xf32> to vector<16xf32>
    %339 = vector.shape_cast %338 : vector<16xf32> to vector<1x16xf32>
    %340 = vector.broadcast %339 : vector<1x16xf32> to vector<4x16xf32>
    %341 = arith.mulf %250, %340 : vector<4x16xf32>
    %342 = arith.addf %336, %341 : vector<4x16xf32>
    %343 = vector.extract_strided_slice %20 {offsets = [1, 8, 0], sizes = [1, 1, 16], strides = [1, 1, 1]} : vector<2x9x16xf32> to vector<1x1x16xf32>
    %344 = vector.shape_cast %343 : vector<1x1x16xf32> to vector<16xf32>
    %345 = vector.shape_cast %344 : vector<16xf32> to vector<1x16xf32>
    %346 = vector.broadcast %345 : vector<1x16xf32> to vector<4x16xf32>
    %347 = arith.mulf %251, %346 : vector<4x16xf32>
    %348 = arith.addf %342, %347 : vector<4x16xf32>
    %349 = vector.extract_strided_slice %21 {offsets = [1, 0, 0], sizes = [1, 1, 16], strides = [1, 1, 1]} : vector<2x1x16xf32> to vector<1x1x16xf32>
    %350 = vector.shape_cast %349 : vector<1x1x16xf32> to vector<1x16xf32>
    %351 = vector.broadcast %350 : vector<1x16xf32> to vector<4x16xf32>
    %352 = arith.addf %348, %351 : vector<4x16xf32>
    %cst_112 = arith.constant 5.000000e-01 : f32
    %353 = vector.broadcast %cst_112 : f32 to vector<4x16xf32>
    %354 = arith.mulf %353, %352 : vector<4x16xf32>
    %cst_113 = arith.constant 0.707106769 : f32
    %355 = vector.broadcast %cst_113 : f32 to vector<4x16xf32>
    %356 = arith.mulf %352, %355 : vector<4x16xf32>
    %357 = math.erf %356 : vector<4x16xf32>
    %cst_114 = arith.constant 1.000000e+00 : f32
    %358 = vector.broadcast %cst_114 : f32 to vector<4x16xf32>
    %359 = arith.addf %358, %357 : vector<4x16xf32>
    %360 = arith.mulf %354, %359 : vector<4x16xf32>
    %361 = vector.extract_strided_slice %22 {offsets = [1, 0, 0], sizes = [1, 16, 16], strides = [1, 1, 1]} : vector<2x16x16xf32> to vector<1x16x16xf32>
    %362 = vector.shape_cast %361 : vector<1x16x16xf32> to vector<16x16xf32>
    %cst_115 = arith.constant dense<0.000000e+00> : vector<4x16xf32>
    %363 = tpu.matmul %360, %362, %cst_115 {dimension_numbers = #tpu.dot_dimension_numbers<[1], [0], [0], [1], [0, 0, 1, 1], [], []>} : vector<4x16xf32>, vector<16x16xf32>, vector<4x16xf32> -> vector<4x16xf32>
    %364 = arith.addf %313, %363 : vector<4x16xf32>
    %365 = vector.extract_strided_slice %20 {offsets = [0, 0, 0], sizes = [1, 1, 16], strides = [1, 1, 1]} : vector<2x9x16xf32> to vector<1x1x16xf32>
    %366 = vector.shape_cast %365 : vector<1x1x16xf32> to vector<16xf32>
    %367 = vector.shape_cast %366 : vector<16xf32> to vector<1x16xf32>
    %368 = vector.broadcast %367 : vector<1x16xf32> to vector<4x16xf32>
    %369 = arith.mulf %244, %368 : vector<4x16xf32>
    %370 = vector.extract_strided_slice %20 {offsets = [0, 1, 0], sizes = [1, 1, 16], strides = [1, 1, 1]} : vector<2x9x16xf32> to vector<1x1x16xf32>
    %371 = vector.shape_cast %370 : vector<1x1x16xf32> to vector<16xf32>
    %372 = vector.shape_cast %371 : vector<16xf32> to vector<1x16xf32>
    %373 = vector.broadcast %372 : vector<1x16xf32> to vector<4x16xf32>
    %374 = arith.mulf %245, %373 : vector<4x16xf32>
    %375 = arith.addf %369, %374 : vector<4x16xf32>
    %376 = vector.extract_strided_slice %20 {offsets = [0, 2, 0], sizes = [1, 1, 16], strides = [1, 1, 1]} : vector<2x9x16xf32> to vector<1x1x16xf32>
    %377 = vector.shape_cast %376 : vector<1x1x16xf32> to vector<16xf32>
    %378 = vector.shape_cast %377 : vector<16xf32> to vector<1x16xf32>
    %379 = vector.broadcast %378 : vector<1x16xf32> to vector<4x16xf32>
    %380 = arith.mulf %246, %379 : vector<4x16xf32>
    %381 = arith.addf %375, %380 : vector<4x16xf32>
    %382 = vector.extract_strided_slice %20 {offsets = [0, 3, 0], sizes = [1, 1, 16], strides = [1, 1, 1]} : vector<2x9x16xf32> to vector<1x1x16xf32>
    %383 = vector.shape_cast %382 : vector<1x1x16xf32> to vector<16xf32>
    %384 = vector.shape_cast %383 : vector<16xf32> to vector<1x16xf32>
    %385 = vector.broadcast %384 : vector<1x16xf32> to vector<4x16xf32>
    %386 = arith.mulf %249, %385 : vector<4x16xf32>
    %387 = arith.addf %381, %386 : vector<4x16xf32>
    %388 = vector.extract_strided_slice %20 {offsets = [0, 4, 0], sizes = [1, 1, 16], strides = [1, 1, 1]} : vector<2x9x16xf32> to vector<1x1x16xf32>
    %389 = vector.shape_cast %388 : vector<1x1x16xf32> to vector<16xf32>
    %390 = vector.shape_cast %389 : vector<16xf32> to vector<1x16xf32>
    %391 = vector.broadcast %390 : vector<1x16xf32> to vector<4x16xf32>
    %392 = arith.mulf %250, %391 : vector<4x16xf32>
    %393 = arith.addf %387, %392 : vector<4x16xf32>
    %394 = vector.extract_strided_slice %20 {offsets = [0, 5, 0], sizes = [1, 1, 16], strides = [1, 1, 1]} : vector<2x9x16xf32> to vector<1x1x16xf32>
    %395 = vector.shape_cast %394 : vector<1x1x16xf32> to vector<16xf32>
    %396 = vector.shape_cast %395 : vector<16xf32> to vector<1x16xf32>
    %397 = vector.broadcast %396 : vector<1x16xf32> to vector<4x16xf32>
    %398 = arith.mulf %251, %397 : vector<4x16xf32>
    %399 = arith.addf %393, %398 : vector<4x16xf32>
    %400 = vector.extract_strided_slice %20 {offsets = [0, 6, 0], sizes = [1, 1, 16], strides = [1, 1, 1]} : vector<2x9x16xf32> to vector<1x1x16xf32>
    %401 = vector.shape_cast %400 : vector<1x1x16xf32> to vector<16xf32>
    %402 = vector.shape_cast %401 : vector<16xf32> to vector<1x16xf32>
    %403 = vector.broadcast %402 : vector<1x16xf32> to vector<4x16xf32>
    %404 = arith.mulf %254, %403 : vector<4x16xf32>
    %405 = arith.addf %399, %404 : vector<4x16xf32>
    %406 = vector.extract_strided_slice %20 {offsets = [0, 7, 0], sizes = [1, 1, 16], strides = [1, 1, 1]} : vector<2x9x16xf32> to vector<1x1x16xf32>
    %407 = vector.shape_cast %406 : vector<1x1x16xf32> to vector<16xf32>
    %408 = vector.shape_cast %407 : vector<16xf32> to vector<1x16xf32>
    %409 = vector.broadcast %408 : vector<1x16xf32> to vector<4x16xf32>
    %410 = arith.mulf %255, %409 : vector<4x16xf32>
    %411 = arith.addf %405, %410 : vector<4x16xf32>
    %412 = vector.extract_strided_slice %20 {offsets = [0, 8, 0], sizes = [1, 1, 16], strides = [1, 1, 1]} : vector<2x9x16xf32> to vector<1x1x16xf32>
    %413 = vector.shape_cast %412 : vector<1x1x16xf32> to vector<16xf32>
    %414 = vector.shape_cast %413 : vector<16xf32> to vector<1x16xf32>
    %415 = vector.broadcast %414 : vector<1x16xf32> to vector<4x16xf32>
    %416 = arith.mulf %256, %415 : vector<4x16xf32>
    %417 = arith.addf %411, %416 : vector<4x16xf32>
    %418 = vector.extract_strided_slice %21 {offsets = [0, 0, 0], sizes = [1, 1, 16], strides = [1, 1, 1]} : vector<2x1x16xf32> to vector<1x1x16xf32>
    %419 = vector.shape_cast %418 : vector<1x1x16xf32> to vector<1x16xf32>
    %420 = vector.broadcast %419 : vector<1x16xf32> to vector<4x16xf32>
    %421 = arith.addf %417, %420 : vector<4x16xf32>
    %cst_116 = arith.constant 5.000000e-01 : f32
    %422 = vector.broadcast %cst_116 : f32 to vector<4x16xf32>
    %423 = arith.mulf %422, %421 : vector<4x16xf32>
    %cst_117 = arith.constant 0.707106769 : f32
    %424 = vector.broadcast %cst_117 : f32 to vector<4x16xf32>
    %425 = arith.mulf %421, %424 : vector<4x16xf32>
    %426 = math.erf %425 : vector<4x16xf32>
    %cst_118 = arith.constant 1.000000e+00 : f32
    %427 = vector.broadcast %cst_118 : f32 to vector<4x16xf32>
    %428 = arith.addf %427, %426 : vector<4x16xf32>
    %429 = arith.mulf %423, %428 : vector<4x16xf32>
    %430 = vector.extract_strided_slice %22 {offsets = [0, 0, 0], sizes = [1, 16, 16], strides = [1, 1, 1]} : vector<2x16x16xf32> to vector<1x16x16xf32>
    %431 = vector.shape_cast %430 : vector<1x16x16xf32> to vector<16x16xf32>
    %cst_119 = arith.constant dense<0.000000e+00> : vector<4x16xf32>
    %432 = tpu.matmul %429, %431, %cst_119 {dimension_numbers = #tpu.dot_dimension_numbers<[1], [0], [0], [1], [0, 0, 1, 1], [], []>} : vector<4x16xf32>, vector<16x16xf32>, vector<4x16xf32> -> vector<4x16xf32>
    %433 = vector.broadcast %23 : vector<1x16xf32> to vector<4x16xf32>
    %434 = arith.addf %433, %432 : vector<4x16xf32>
    %435 = vector.extract_strided_slice %20 {offsets = [1, 0, 0], sizes = [1, 1, 16], strides = [1, 1, 1]} : vector<2x9x16xf32> to vector<1x1x16xf32>
    %436 = vector.shape_cast %435 : vector<1x1x16xf32> to vector<16xf32>
    %437 = vector.shape_cast %436 : vector<16xf32> to vector<1x16xf32>
    %438 = vector.broadcast %437 : vector<1x16xf32> to vector<4x16xf32>
    %439 = arith.mulf %244, %438 : vector<4x16xf32>
    %440 = vector.extract_strided_slice %20 {offsets = [1, 1, 0], sizes = [1, 1, 16], strides = [1, 1, 1]} : vector<2x9x16xf32> to vector<1x1x16xf32>
    %441 = vector.shape_cast %440 : vector<1x1x16xf32> to vector<16xf32>
    %442 = vector.shape_cast %441 : vector<16xf32> to vector<1x16xf32>
    %443 = vector.broadcast %442 : vector<1x16xf32> to vector<4x16xf32>
    %444 = arith.mulf %245, %443 : vector<4x16xf32>
    %445 = arith.addf %439, %444 : vector<4x16xf32>
    %446 = vector.extract_strided_slice %20 {offsets = [1, 2, 0], sizes = [1, 1, 16], strides = [1, 1, 1]} : vector<2x9x16xf32> to vector<1x1x16xf32>
    %447 = vector.shape_cast %446 : vector<1x1x16xf32> to vector<16xf32>
    %448 = vector.shape_cast %447 : vector<16xf32> to vector<1x16xf32>
    %449 = vector.broadcast %448 : vector<1x16xf32> to vector<4x16xf32>
    %450 = arith.mulf %246, %449 : vector<4x16xf32>
    %451 = arith.addf %445, %450 : vector<4x16xf32>
    %452 = vector.extract_strided_slice %20 {offsets = [1, 3, 0], sizes = [1, 1, 16], strides = [1, 1, 1]} : vector<2x9x16xf32> to vector<1x1x16xf32>
    %453 = vector.shape_cast %452 : vector<1x1x16xf32> to vector<16xf32>
    %454 = vector.shape_cast %453 : vector<16xf32> to vector<1x16xf32>
    %455 = vector.broadcast %454 : vector<1x16xf32> to vector<4x16xf32>
    %456 = arith.mulf %249, %455 : vector<4x16xf32>
    %457 = arith.addf %451, %456 : vector<4x16xf32>
    %458 = vector.extract_strided_slice %20 {offsets = [1, 4, 0], sizes = [1, 1, 16], strides = [1, 1, 1]} : vector<2x9x16xf32> to vector<1x1x16xf32>
    %459 = vector.shape_cast %458 : vector<1x1x16xf32> to vector<16xf32>
    %460 = vector.shape_cast %459 : vector<16xf32> to vector<1x16xf32>
    %461 = vector.broadcast %460 : vector<1x16xf32> to vector<4x16xf32>
    %462 = arith.mulf %250, %461 : vector<4x16xf32>
    %463 = arith.addf %457, %462 : vector<4x16xf32>
    %464 = vector.extract_strided_slice %20 {offsets = [1, 5, 0], sizes = [1, 1, 16], strides = [1, 1, 1]} : vector<2x9x16xf32> to vector<1x1x16xf32>
    %465 = vector.shape_cast %464 : vector<1x1x16xf32> to vector<16xf32>
    %466 = vector.shape_cast %465 : vector<16xf32> to vector<1x16xf32>
    %467 = vector.broadcast %466 : vector<1x16xf32> to vector<4x16xf32>
    %468 = arith.mulf %251, %467 : vector<4x16xf32>
    %469 = arith.addf %463, %468 : vector<4x16xf32>
    %470 = vector.extract_strided_slice %20 {offsets = [1, 6, 0], sizes = [1, 1, 16], strides = [1, 1, 1]} : vector<2x9x16xf32> to vector<1x1x16xf32>
    %471 = vector.shape_cast %470 : vector<1x1x16xf32> to vector<16xf32>
    %472 = vector.shape_cast %471 : vector<16xf32> to vector<1x16xf32>
    %473 = vector.broadcast %472 : vector<1x16xf32> to vector<4x16xf32>
    %474 = arith.mulf %254, %473 : vector<4x16xf32>
    %475 = arith.addf %469, %474 : vector<4x16xf32>
    %476 = vector.extract_strided_slice %20 {offsets = [1, 7, 0], sizes = [1, 1, 16], strides = [1, 1, 1]} : vector<2x9x16xf32> to vector<1x1x16xf32>
    %477 = vector.shape_cast %476 : vector<1x1x16xf32> to vector<16xf32>
    %478 = vector.shape_cast %477 : vector<16xf32> to vector<1x16xf32>
    %479 = vector.broadcast %478 : vector<1x16xf32> to vector<4x16xf32>
    %480 = arith.mulf %255, %479 : vector<4x16xf32>
    %481 = arith.addf %475, %480 : vector<4x16xf32>
    %482 = vector.extract_strided_slice %20 {offsets = [1, 8, 0], sizes = [1, 1, 16], strides = [1, 1, 1]} : vector<2x9x16xf32> to vector<1x1x16xf32>
    %483 = vector.shape_cast %482 : vector<1x1x16xf32> to vector<16xf32>
    %484 = vector.shape_cast %483 : vector<16xf32> to vector<1x16xf32>
    %485 = vector.broadcast %484 : vector<1x16xf32> to vector<4x16xf32>
    %486 = arith.mulf %256, %485 : vector<4x16xf32>
    %487 = arith.addf %481, %486 : vector<4x16xf32>
    %488 = vector.extract_strided_slice %21 {offsets = [1, 0, 0], sizes = [1, 1, 16], strides = [1, 1, 1]} : vector<2x1x16xf32> to vector<1x1x16xf32>
    %489 = vector.shape_cast %488 : vector<1x1x16xf32> to vector<1x16xf32>
    %490 = vector.broadcast %489 : vector<1x16xf32> to vector<4x16xf32>
    %491 = arith.addf %487, %490 : vector<4x16xf32>
    %cst_120 = arith.constant 5.000000e-01 : f32
    %492 = vector.broadcast %cst_120 : f32 to vector<4x16xf32>
    %493 = arith.mulf %492, %491 : vector<4x16xf32>
    %cst_121 = arith.constant 0.707106769 : f32
    %494 = vector.broadcast %cst_121 : f32 to vector<4x16xf32>
    %495 = arith.mulf %491, %494 : vector<4x16xf32>
    %496 = math.erf %495 : vector<4x16xf32>
    %cst_122 = arith.constant 1.000000e+00 : f32
    %497 = vector.broadcast %cst_122 : f32 to vector<4x16xf32>
    %498 = arith.addf %497, %496 : vector<4x16xf32>
    %499 = arith.mulf %493, %498 : vector<4x16xf32>
    %500 = vector.extract_strided_slice %22 {offsets = [1, 0, 0], sizes = [1, 16, 16], strides = [1, 1, 1]} : vector<2x16x16xf32> to vector<1x16x16xf32>
    %501 = vector.shape_cast %500 : vector<1x16x16xf32> to vector<16x16xf32>
    %cst_123 = arith.constant dense<0.000000e+00> : vector<4x16xf32>
    %502 = tpu.matmul %499, %501, %cst_123 {dimension_numbers = #tpu.dot_dimension_numbers<[1], [0], [0], [1], [0, 0, 1, 1], [], []>} : vector<4x16xf32>, vector<16x16xf32>, vector<4x16xf32> -> vector<4x16xf32>
    %503 = arith.addf %434, %502 : vector<4x16xf32>
    %504 = vector.extract_strided_slice %20 {offsets = [0, 0, 0], sizes = [1, 1, 16], strides = [1, 1, 1]} : vector<2x9x16xf32> to vector<1x1x16xf32>
    %505 = vector.shape_cast %504 : vector<1x1x16xf32> to vector<16xf32>
    %506 = vector.shape_cast %505 : vector<16xf32> to vector<1x16xf32>
    %507 = vector.broadcast %506 : vector<1x16xf32> to vector<4x16xf32>
    %508 = arith.mulf %249, %507 : vector<4x16xf32>
    %509 = vector.extract_strided_slice %20 {offsets = [0, 1, 0], sizes = [1, 1, 16], strides = [1, 1, 1]} : vector<2x9x16xf32> to vector<1x1x16xf32>
    %510 = vector.shape_cast %509 : vector<1x1x16xf32> to vector<16xf32>
    %511 = vector.shape_cast %510 : vector<16xf32> to vector<1x16xf32>
    %512 = vector.broadcast %511 : vector<1x16xf32> to vector<4x16xf32>
    %513 = arith.mulf %250, %512 : vector<4x16xf32>
    %514 = arith.addf %508, %513 : vector<4x16xf32>
    %515 = vector.extract_strided_slice %20 {offsets = [0, 2, 0], sizes = [1, 1, 16], strides = [1, 1, 1]} : vector<2x9x16xf32> to vector<1x1x16xf32>
    %516 = vector.shape_cast %515 : vector<1x1x16xf32> to vector<16xf32>
    %517 = vector.shape_cast %516 : vector<16xf32> to vector<1x16xf32>
    %518 = vector.broadcast %517 : vector<1x16xf32> to vector<4x16xf32>
    %519 = arith.mulf %251, %518 : vector<4x16xf32>
    %520 = arith.addf %514, %519 : vector<4x16xf32>
    %521 = vector.extract_strided_slice %20 {offsets = [0, 3, 0], sizes = [1, 1, 16], strides = [1, 1, 1]} : vector<2x9x16xf32> to vector<1x1x16xf32>
    %522 = vector.shape_cast %521 : vector<1x1x16xf32> to vector<16xf32>
    %523 = vector.shape_cast %522 : vector<16xf32> to vector<1x16xf32>
    %524 = vector.broadcast %523 : vector<1x16xf32> to vector<4x16xf32>
    %525 = arith.mulf %254, %524 : vector<4x16xf32>
    %526 = arith.addf %520, %525 : vector<4x16xf32>
    %527 = vector.extract_strided_slice %20 {offsets = [0, 4, 0], sizes = [1, 1, 16], strides = [1, 1, 1]} : vector<2x9x16xf32> to vector<1x1x16xf32>
    %528 = vector.shape_cast %527 : vector<1x1x16xf32> to vector<16xf32>
    %529 = vector.shape_cast %528 : vector<16xf32> to vector<1x16xf32>
    %530 = vector.broadcast %529 : vector<1x16xf32> to vector<4x16xf32>
    %531 = arith.mulf %255, %530 : vector<4x16xf32>
    %532 = arith.addf %526, %531 : vector<4x16xf32>
    %533 = vector.extract_strided_slice %20 {offsets = [0, 5, 0], sizes = [1, 1, 16], strides = [1, 1, 1]} : vector<2x9x16xf32> to vector<1x1x16xf32>
    %534 = vector.shape_cast %533 : vector<1x1x16xf32> to vector<16xf32>
    %535 = vector.shape_cast %534 : vector<16xf32> to vector<1x16xf32>
    %536 = vector.broadcast %535 : vector<1x16xf32> to vector<4x16xf32>
    %537 = arith.mulf %256, %536 : vector<4x16xf32>
    %538 = arith.addf %532, %537 : vector<4x16xf32>
    %539 = vector.extract_strided_slice %20 {offsets = [0, 6, 0], sizes = [1, 1, 16], strides = [1, 1, 1]} : vector<2x9x16xf32> to vector<1x1x16xf32>
    %540 = vector.shape_cast %539 : vector<1x1x16xf32> to vector<16xf32>
    %541 = vector.shape_cast %540 : vector<16xf32> to vector<1x16xf32>
    %542 = vector.broadcast %541 : vector<1x16xf32> to vector<4x16xf32>
    %543 = arith.mulf %259, %542 : vector<4x16xf32>
    %544 = arith.addf %538, %543 : vector<4x16xf32>
    %545 = vector.extract_strided_slice %20 {offsets = [0, 7, 0], sizes = [1, 1, 16], strides = [1, 1, 1]} : vector<2x9x16xf32> to vector<1x1x16xf32>
    %546 = vector.shape_cast %545 : vector<1x1x16xf32> to vector<16xf32>
    %547 = vector.shape_cast %546 : vector<16xf32> to vector<1x16xf32>
    %548 = vector.broadcast %547 : vector<1x16xf32> to vector<4x16xf32>
    %549 = arith.mulf %260, %548 : vector<4x16xf32>
    %550 = arith.addf %544, %549 : vector<4x16xf32>
    %551 = vector.extract_strided_slice %20 {offsets = [0, 8, 0], sizes = [1, 1, 16], strides = [1, 1, 1]} : vector<2x9x16xf32> to vector<1x1x16xf32>
    %552 = vector.shape_cast %551 : vector<1x1x16xf32> to vector<16xf32>
    %553 = vector.shape_cast %552 : vector<16xf32> to vector<1x16xf32>
    %554 = vector.broadcast %553 : vector<1x16xf32> to vector<4x16xf32>
    %555 = arith.mulf %261, %554 : vector<4x16xf32>
    %556 = arith.addf %550, %555 : vector<4x16xf32>
    %557 = vector.extract_strided_slice %21 {offsets = [0, 0, 0], sizes = [1, 1, 16], strides = [1, 1, 1]} : vector<2x1x16xf32> to vector<1x1x16xf32>
    %558 = vector.shape_cast %557 : vector<1x1x16xf32> to vector<1x16xf32>
    %559 = vector.broadcast %558 : vector<1x16xf32> to vector<4x16xf32>
    %560 = arith.addf %556, %559 : vector<4x16xf32>
    %cst_124 = arith.constant 5.000000e-01 : f32
    %561 = vector.broadcast %cst_124 : f32 to vector<4x16xf32>
    %562 = arith.mulf %561, %560 : vector<4x16xf32>
    %cst_125 = arith.constant 0.707106769 : f32
    %563 = vector.broadcast %cst_125 : f32 to vector<4x16xf32>
    %564 = arith.mulf %560, %563 : vector<4x16xf32>
    %565 = math.erf %564 : vector<4x16xf32>
    %cst_126 = arith.constant 1.000000e+00 : f32
    %566 = vector.broadcast %cst_126 : f32 to vector<4x16xf32>
    %567 = arith.addf %566, %565 : vector<4x16xf32>
    %568 = arith.mulf %562, %567 : vector<4x16xf32>
    %569 = vector.extract_strided_slice %22 {offsets = [0, 0, 0], sizes = [1, 16, 16], strides = [1, 1, 1]} : vector<2x16x16xf32> to vector<1x16x16xf32>
    %570 = vector.shape_cast %569 : vector<1x16x16xf32> to vector<16x16xf32>
    %cst_127 = arith.constant dense<0.000000e+00> : vector<4x16xf32>
    %571 = tpu.matmul %568, %570, %cst_127 {dimension_numbers = #tpu.dot_dimension_numbers<[1], [0], [0], [1], [0, 0, 1, 1], [], []>} : vector<4x16xf32>, vector<16x16xf32>, vector<4x16xf32> -> vector<4x16xf32>
    %572 = vector.broadcast %23 : vector<1x16xf32> to vector<4x16xf32>
    %573 = arith.addf %572, %571 : vector<4x16xf32>
    %574 = vector.extract_strided_slice %20 {offsets = [1, 0, 0], sizes = [1, 1, 16], strides = [1, 1, 1]} : vector<2x9x16xf32> to vector<1x1x16xf32>
    %575 = vector.shape_cast %574 : vector<1x1x16xf32> to vector<16xf32>
    %576 = vector.shape_cast %575 : vector<16xf32> to vector<1x16xf32>
    %577 = vector.broadcast %576 : vector<1x16xf32> to vector<4x16xf32>
    %578 = arith.mulf %249, %577 : vector<4x16xf32>
    %579 = vector.extract_strided_slice %20 {offsets = [1, 1, 0], sizes = [1, 1, 16], strides = [1, 1, 1]} : vector<2x9x16xf32> to vector<1x1x16xf32>
    %580 = vector.shape_cast %579 : vector<1x1x16xf32> to vector<16xf32>
    %581 = vector.shape_cast %580 : vector<16xf32> to vector<1x16xf32>
    %582 = vector.broadcast %581 : vector<1x16xf32> to vector<4x16xf32>
    %583 = arith.mulf %250, %582 : vector<4x16xf32>
    %584 = arith.addf %578, %583 : vector<4x16xf32>
    %585 = vector.extract_strided_slice %20 {offsets = [1, 2, 0], sizes = [1, 1, 16], strides = [1, 1, 1]} : vector<2x9x16xf32> to vector<1x1x16xf32>
    %586 = vector.shape_cast %585 : vector<1x1x16xf32> to vector<16xf32>
    %587 = vector.shape_cast %586 : vector<16xf32> to vector<1x16xf32>
    %588 = vector.broadcast %587 : vector<1x16xf32> to vector<4x16xf32>
    %589 = arith.mulf %251, %588 : vector<4x16xf32>
    %590 = arith.addf %584, %589 : vector<4x16xf32>
    %591 = vector.extract_strided_slice %20 {offsets = [1, 3, 0], sizes = [1, 1, 16], strides = [1, 1, 1]} : vector<2x9x16xf32> to vector<1x1x16xf32>
    %592 = vector.shape_cast %591 : vector<1x1x16xf32> to vector<16xf32>
    %593 = vector.shape_cast %592 : vector<16xf32> to vector<1x16xf32>
    %594 = vector.broadcast %593 : vector<1x16xf32> to vector<4x16xf32>
    %595 = arith.mulf %254, %594 : vector<4x16xf32>
    %596 = arith.addf %590, %595 : vector<4x16xf32>
    %597 = vector.extract_strided_slice %20 {offsets = [1, 4, 0], sizes = [1, 1, 16], strides = [1, 1, 1]} : vector<2x9x16xf32> to vector<1x1x16xf32>
    %598 = vector.shape_cast %597 : vector<1x1x16xf32> to vector<16xf32>
    %599 = vector.shape_cast %598 : vector<16xf32> to vector<1x16xf32>
    %600 = vector.broadcast %599 : vector<1x16xf32> to vector<4x16xf32>
    %601 = arith.mulf %255, %600 : vector<4x16xf32>
    %602 = arith.addf %596, %601 : vector<4x16xf32>
    %603 = vector.extract_strided_slice %20 {offsets = [1, 5, 0], sizes = [1, 1, 16], strides = [1, 1, 1]} : vector<2x9x16xf32> to vector<1x1x16xf32>
    %604 = vector.shape_cast %603 : vector<1x1x16xf32> to vector<16xf32>
    %605 = vector.shape_cast %604 : vector<16xf32> to vector<1x16xf32>
    %606 = vector.broadcast %605 : vector<1x16xf32> to vector<4x16xf32>
    %607 = arith.mulf %256, %606 : vector<4x16xf32>
    %608 = arith.addf %602, %607 : vector<4x16xf32>
    %609 = vector.extract_strided_slice %20 {offsets = [1, 6, 0], sizes = [1, 1, 16], strides = [1, 1, 1]} : vector<2x9x16xf32> to vector<1x1x16xf32>
    %610 = vector.shape_cast %609 : vector<1x1x16xf32> to vector<16xf32>
    %611 = vector.shape_cast %610 : vector<16xf32> to vector<1x16xf32>
    %612 = vector.broadcast %611 : vector<1x16xf32> to vector<4x16xf32>
    %613 = arith.mulf %259, %612 : vector<4x16xf32>
    %614 = arith.addf %608, %613 : vector<4x16xf32>
    %615 = vector.extract_strided_slice %20 {offsets = [1, 7, 0], sizes = [1, 1, 16], strides = [1, 1, 1]} : vector<2x9x16xf32> to vector<1x1x16xf32>
    %616 = vector.shape_cast %615 : vector<1x1x16xf32> to vector<16xf32>
    %617 = vector.shape_cast %616 : vector<16xf32> to vector<1x16xf32>
    %618 = vector.broadcast %617 : vector<1x16xf32> to vector<4x16xf32>
    %619 = arith.mulf %260, %618 : vector<4x16xf32>
    %620 = arith.addf %614, %619 : vector<4x16xf32>
    %621 = vector.extract_strided_slice %20 {offsets = [1, 8, 0], sizes = [1, 1, 16], strides = [1, 1, 1]} : vector<2x9x16xf32> to vector<1x1x16xf32>
    %622 = vector.shape_cast %621 : vector<1x1x16xf32> to vector<16xf32>
    %623 = vector.shape_cast %622 : vector<16xf32> to vector<1x16xf32>
    %624 = vector.broadcast %623 : vector<1x16xf32> to vector<4x16xf32>
    %625 = arith.mulf %261, %624 : vector<4x16xf32>
    %626 = arith.addf %620, %625 : vector<4x16xf32>
    %627 = vector.extract_strided_slice %21 {offsets = [1, 0, 0], sizes = [1, 1, 16], strides = [1, 1, 1]} : vector<2x1x16xf32> to vector<1x1x16xf32>
    %628 = vector.shape_cast %627 : vector<1x1x16xf32> to vector<1x16xf32>
    %629 = vector.broadcast %628 : vector<1x16xf32> to vector<4x16xf32>
    %630 = arith.addf %626, %629 : vector<4x16xf32>
    %cst_128 = arith.constant 5.000000e-01 : f32
    %631 = vector.broadcast %cst_128 : f32 to vector<4x16xf32>
    %632 = arith.mulf %631, %630 : vector<4x16xf32>
    %cst_129 = arith.constant 0.707106769 : f32
    %633 = vector.broadcast %cst_129 : f32 to vector<4x16xf32>
    %634 = arith.mulf %630, %633 : vector<4x16xf32>
    %635 = math.erf %634 : vector<4x16xf32>
    %cst_130 = arith.constant 1.000000e+00 : f32
    %636 = vector.broadcast %cst_130 : f32 to vector<4x16xf32>
    %637 = arith.addf %636, %635 : vector<4x16xf32>
    %638 = arith.mulf %632, %637 : vector<4x16xf32>
    %639 = vector.extract_strided_slice %22 {offsets = [1, 0, 0], sizes = [1, 16, 16], strides = [1, 1, 1]} : vector<2x16x16xf32> to vector<1x16x16xf32>
    %640 = vector.shape_cast %639 : vector<1x16x16xf32> to vector<16x16xf32>
    %cst_131 = arith.constant dense<0.000000e+00> : vector<4x16xf32>
    %641 = tpu.matmul %638, %640, %cst_131 {dimension_numbers = #tpu.dot_dimension_numbers<[1], [0], [0], [1], [0, 0, 1, 1], [], []>} : vector<4x16xf32>, vector<16x16xf32>, vector<4x16xf32> -> vector<4x16xf32>
    %642 = arith.addf %573, %641 : vector<4x16xf32>
    %643 = vector.extract_strided_slice %20 {offsets = [0, 0, 0], sizes = [1, 1, 16], strides = [1, 1, 1]} : vector<2x9x16xf32> to vector<1x1x16xf32>
    %644 = vector.shape_cast %643 : vector<1x1x16xf32> to vector<16xf32>
    %645 = vector.shape_cast %644 : vector<16xf32> to vector<1x16xf32>
    %646 = vector.broadcast %645 : vector<1x16xf32> to vector<4x16xf32>
    %647 = arith.mulf %254, %646 : vector<4x16xf32>
    %648 = vector.extract_strided_slice %20 {offsets = [0, 1, 0], sizes = [1, 1, 16], strides = [1, 1, 1]} : vector<2x9x16xf32> to vector<1x1x16xf32>
    %649 = vector.shape_cast %648 : vector<1x1x16xf32> to vector<16xf32>
    %650 = vector.shape_cast %649 : vector<16xf32> to vector<1x16xf32>
    %651 = vector.broadcast %650 : vector<1x16xf32> to vector<4x16xf32>
    %652 = arith.mulf %255, %651 : vector<4x16xf32>
    %653 = arith.addf %647, %652 : vector<4x16xf32>
    %654 = vector.extract_strided_slice %20 {offsets = [0, 2, 0], sizes = [1, 1, 16], strides = [1, 1, 1]} : vector<2x9x16xf32> to vector<1x1x16xf32>
    %655 = vector.shape_cast %654 : vector<1x1x16xf32> to vector<16xf32>
    %656 = vector.shape_cast %655 : vector<16xf32> to vector<1x16xf32>
    %657 = vector.broadcast %656 : vector<1x16xf32> to vector<4x16xf32>
    %658 = arith.mulf %256, %657 : vector<4x16xf32>
    %659 = arith.addf %653, %658 : vector<4x16xf32>
    %660 = vector.extract_strided_slice %20 {offsets = [0, 3, 0], sizes = [1, 1, 16], strides = [1, 1, 1]} : vector<2x9x16xf32> to vector<1x1x16xf32>
    %661 = vector.shape_cast %660 : vector<1x1x16xf32> to vector<16xf32>
    %662 = vector.shape_cast %661 : vector<16xf32> to vector<1x16xf32>
    %663 = vector.broadcast %662 : vector<1x16xf32> to vector<4x16xf32>
    %664 = arith.mulf %259, %663 : vector<4x16xf32>
    %665 = arith.addf %659, %664 : vector<4x16xf32>
    %666 = vector.extract_strided_slice %20 {offsets = [0, 4, 0], sizes = [1, 1, 16], strides = [1, 1, 1]} : vector<2x9x16xf32> to vector<1x1x16xf32>
    %667 = vector.shape_cast %666 : vector<1x1x16xf32> to vector<16xf32>
    %668 = vector.shape_cast %667 : vector<16xf32> to vector<1x16xf32>
    %669 = vector.broadcast %668 : vector<1x16xf32> to vector<4x16xf32>
    %670 = arith.mulf %260, %669 : vector<4x16xf32>
    %671 = arith.addf %665, %670 : vector<4x16xf32>
    %672 = vector.extract_strided_slice %20 {offsets = [0, 5, 0], sizes = [1, 1, 16], strides = [1, 1, 1]} : vector<2x9x16xf32> to vector<1x1x16xf32>
    %673 = vector.shape_cast %672 : vector<1x1x16xf32> to vector<16xf32>
    %674 = vector.shape_cast %673 : vector<16xf32> to vector<1x16xf32>
    %675 = vector.broadcast %674 : vector<1x16xf32> to vector<4x16xf32>
    %676 = arith.mulf %261, %675 : vector<4x16xf32>
    %677 = arith.addf %671, %676 : vector<4x16xf32>
    %678 = vector.extract_strided_slice %21 {offsets = [0, 0, 0], sizes = [1, 1, 16], strides = [1, 1, 1]} : vector<2x1x16xf32> to vector<1x1x16xf32>
    %679 = vector.shape_cast %678 : vector<1x1x16xf32> to vector<1x16xf32>
    %680 = vector.broadcast %679 : vector<1x16xf32> to vector<4x16xf32>
    %681 = arith.addf %677, %680 : vector<4x16xf32>
    %cst_132 = arith.constant 5.000000e-01 : f32
    %682 = vector.broadcast %cst_132 : f32 to vector<4x16xf32>
    %683 = arith.mulf %682, %681 : vector<4x16xf32>
    %cst_133 = arith.constant 0.707106769 : f32
    %684 = vector.broadcast %cst_133 : f32 to vector<4x16xf32>
    %685 = arith.mulf %681, %684 : vector<4x16xf32>
    %686 = math.erf %685 : vector<4x16xf32>
    %cst_134 = arith.constant 1.000000e+00 : f32
    %687 = vector.broadcast %cst_134 : f32 to vector<4x16xf32>
    %688 = arith.addf %687, %686 : vector<4x16xf32>
    %689 = arith.mulf %683, %688 : vector<4x16xf32>
    %690 = vector.extract_strided_slice %22 {offsets = [0, 0, 0], sizes = [1, 16, 16], strides = [1, 1, 1]} : vector<2x16x16xf32> to vector<1x16x16xf32>
    %691 = vector.shape_cast %690 : vector<1x16x16xf32> to vector<16x16xf32>
    %cst_135 = arith.constant dense<0.000000e+00> : vector<4x16xf32>
    %692 = tpu.matmul %689, %691, %cst_135 {dimension_numbers = #tpu.dot_dimension_numbers<[1], [0], [0], [1], [0, 0, 1, 1], [], []>} : vector<4x16xf32>, vector<16x16xf32>, vector<4x16xf32> -> vector<4x16xf32>
    %693 = vector.broadcast %23 : vector<1x16xf32> to vector<4x16xf32>
    %694 = arith.addf %693, %692 : vector<4x16xf32>
    %695 = vector.extract_strided_slice %20 {offsets = [1, 0, 0], sizes = [1, 1, 16], strides = [1, 1, 1]} : vector<2x9x16xf32> to vector<1x1x16xf32>
    %696 = vector.shape_cast %695 : vector<1x1x16xf32> to vector<16xf32>
    %697 = vector.shape_cast %696 : vector<16xf32> to vector<1x16xf32>
    %698 = vector.broadcast %697 : vector<1x16xf32> to vector<4x16xf32>
    %699 = arith.mulf %254, %698 : vector<4x16xf32>
    %700 = vector.extract_strided_slice %20 {offsets = [1, 1, 0], sizes = [1, 1, 16], strides = [1, 1, 1]} : vector<2x9x16xf32> to vector<1x1x16xf32>
    %701 = vector.shape_cast %700 : vector<1x1x16xf32> to vector<16xf32>
    %702 = vector.shape_cast %701 : vector<16xf32> to vector<1x16xf32>
    %703 = vector.broadcast %702 : vector<1x16xf32> to vector<4x16xf32>
    %704 = arith.mulf %255, %703 : vector<4x16xf32>
    %705 = arith.addf %699, %704 : vector<4x16xf32>
    %706 = vector.extract_strided_slice %20 {offsets = [1, 2, 0], sizes = [1, 1, 16], strides = [1, 1, 1]} : vector<2x9x16xf32> to vector<1x1x16xf32>
    %707 = vector.shape_cast %706 : vector<1x1x16xf32> to vector<16xf32>
    %708 = vector.shape_cast %707 : vector<16xf32> to vector<1x16xf32>
    %709 = vector.broadcast %708 : vector<1x16xf32> to vector<4x16xf32>
    %710 = arith.mulf %256, %709 : vector<4x16xf32>
    %711 = arith.addf %705, %710 : vector<4x16xf32>
    %712 = vector.extract_strided_slice %20 {offsets = [1, 3, 0], sizes = [1, 1, 16], strides = [1, 1, 1]} : vector<2x9x16xf32> to vector<1x1x16xf32>
    %713 = vector.shape_cast %712 : vector<1x1x16xf32> to vector<16xf32>
    %714 = vector.shape_cast %713 : vector<16xf32> to vector<1x16xf32>
    %715 = vector.broadcast %714 : vector<1x16xf32> to vector<4x16xf32>
    %716 = arith.mulf %259, %715 : vector<4x16xf32>
    %717 = arith.addf %711, %716 : vector<4x16xf32>
    %718 = vector.extract_strided_slice %20 {offsets = [1, 4, 0], sizes = [1, 1, 16], strides = [1, 1, 1]} : vector<2x9x16xf32> to vector<1x1x16xf32>
    %719 = vector.shape_cast %718 : vector<1x1x16xf32> to vector<16xf32>
    %720 = vector.shape_cast %719 : vector<16xf32> to vector<1x16xf32>
    %721 = vector.broadcast %720 : vector<1x16xf32> to vector<4x16xf32>
    %722 = arith.mulf %260, %721 : vector<4x16xf32>
    %723 = arith.addf %717, %722 : vector<4x16xf32>
    %724 = vector.extract_strided_slice %20 {offsets = [1, 5, 0], sizes = [1, 1, 16], strides = [1, 1, 1]} : vector<2x9x16xf32> to vector<1x1x16xf32>
    %725 = vector.shape_cast %724 : vector<1x1x16xf32> to vector<16xf32>
    %726 = vector.shape_cast %725 : vector<16xf32> to vector<1x16xf32>
    %727 = vector.broadcast %726 : vector<1x16xf32> to vector<4x16xf32>
    %728 = arith.mulf %261, %727 : vector<4x16xf32>
    %729 = arith.addf %723, %728 : vector<4x16xf32>
    %730 = vector.extract_strided_slice %21 {offsets = [1, 0, 0], sizes = [1, 1, 16], strides = [1, 1, 1]} : vector<2x1x16xf32> to vector<1x1x16xf32>
    %731 = vector.shape_cast %730 : vector<1x1x16xf32> to vector<1x16xf32>
    %732 = vector.broadcast %731 : vector<1x16xf32> to vector<4x16xf32>
    %733 = arith.addf %729, %732 : vector<4x16xf32>
    %cst_136 = arith.constant 5.000000e-01 : f32
    %734 = vector.broadcast %cst_136 : f32 to vector<4x16xf32>
    %735 = arith.mulf %734, %733 : vector<4x16xf32>
    %cst_137 = arith.constant 0.707106769 : f32
    %736 = vector.broadcast %cst_137 : f32 to vector<4x16xf32>
    %737 = arith.mulf %733, %736 : vector<4x16xf32>
    %738 = math.erf %737 : vector<4x16xf32>
    %cst_138 = arith.constant 1.000000e+00 : f32
    %739 = vector.broadcast %cst_138 : f32 to vector<4x16xf32>
    %740 = arith.addf %739, %738 : vector<4x16xf32>
    %741 = arith.mulf %735, %740 : vector<4x16xf32>
    %742 = vector.extract_strided_slice %22 {offsets = [1, 0, 0], sizes = [1, 16, 16], strides = [1, 1, 1]} : vector<2x16x16xf32> to vector<1x16x16xf32>
    %743 = vector.shape_cast %742 : vector<1x16x16xf32> to vector<16x16xf32>
    %cst_139 = arith.constant dense<0.000000e+00> : vector<4x16xf32>
    %744 = tpu.matmul %741, %743, %cst_139 {dimension_numbers = #tpu.dot_dimension_numbers<[1], [0], [0], [1], [0, 0, 1, 1], [], []>} : vector<4x16xf32>, vector<16x16xf32>, vector<4x16xf32> -> vector<4x16xf32>
    %745 = arith.addf %694, %744 : vector<4x16xf32>
    %746 = tpu.concatenate %364, %503, %642, %745 in 0 : vector<4x16xf32>, vector<4x16xf32>, vector<4x16xf32>, vector<4x16xf32> -> vector<16x16xf32>
    %747 = arith.addf %215, %746 : vector<16x16xf32>
    %c0_140 = arith.constant 0 : index
    %c0_141 = arith.constant 0 : index
    %748 = vector.load %arg24[%c0_140, %c0_141] : memref<1x16xf32, #tpu.memory_space<vmem>>, vector<1x16xf32>
    %c0_142 = arith.constant 0 : index
    %c0_143 = arith.constant 0 : index
    %749 = vector.load %arg25[%c0_142, %c0_143] : memref<1x16xf32, #tpu.memory_space<vmem>>, vector<1x16xf32>
    %cst_144 = arith.constant dense<0.000000e+00> : vector<16xf32>
    %750 = vector.multi_reduction <add>, %747, %cst_144 [1] : vector<16x16xf32> to vector<16xf32>
    %751 = vector.shape_cast %750 : vector<16xf32> to vector<16x1xf32>
    %cst_145 = arith.constant 1.600000e+01 : f32
    %752 = vector.broadcast %cst_145 : f32 to vector<16x1xf32>
    %753 = arith.divf %751, %752 : vector<16x1xf32>
    %754 = vector.broadcast %753 : vector<16x1xf32> to vector<16x16xf32>
    %755 = arith.subf %747, %754 : vector<16x16xf32>
    %756 = arith.mulf %755, %755 : vector<16x16xf32>
    %cst_146 = arith.constant dense<0.000000e+00> : vector<16xf32>
    %757 = vector.multi_reduction <add>, %756, %cst_146 [1] : vector<16x16xf32> to vector<16xf32>
    %758 = vector.shape_cast %757 : vector<16xf32> to vector<16x1xf32>
    %cst_147 = arith.constant 1.600000e+01 : f32
    %759 = vector.broadcast %cst_147 : f32 to vector<16x1xf32>
    %760 = arith.divf %758, %759 : vector<16x1xf32>
    %761 = vector.broadcast %753 : vector<16x1xf32> to vector<16x16xf32>
    %762 = arith.subf %747, %761 : vector<16x16xf32>
    %cst_148 = arith.constant 9.99999974E-6 : f32
    %763 = vector.broadcast %cst_148 : f32 to vector<16x1xf32>
    %764 = arith.addf %760, %763 : vector<16x1xf32>
    %765 = math.rsqrt %764 : vector<16x1xf32>
    %766 = vector.broadcast %765 : vector<16x1xf32> to vector<16x16xf32>
    %767 = arith.mulf %762, %766 : vector<16x16xf32>
    %768 = vector.broadcast %748 : vector<1x16xf32> to vector<16x16xf32>
    %769 = arith.mulf %767, %768 : vector<16x16xf32>
    %770 = vector.broadcast %749 : vector<1x16xf32> to vector<16x16xf32>
    %771 = arith.addf %769, %770 : vector<16x16xf32>
    %c0_149 = arith.constant 0 : index
    %c0_150 = arith.constant 0 : index
    %772 = vector.load %arg26[%c0_149, %c0_150] : memref<32x16xf32, #tpu.memory_space<vmem>>, vector<16x16xf32>
    tpu.vector_store %arg26[%c0_149, %c0_150], %771 {strides = array<i32>} : memref<32x16xf32, #tpu.memory_space<vmem>>, vector<16x16xf32>,
    %773 = vector.extract_strided_slice %0 {offsets = [16, 0], sizes = [16, 16], strides = [1, 1]} : vector<32x16xf32> to vector<16x16xf32>
    %cst_151 = arith.constant dense<0.000000e+00> : vector<16xf32>
    %774 = vector.multi_reduction <add>, %773, %cst_151 [1] : vector<16x16xf32> to vector<16xf32>
    %775 = vector.shape_cast %774 : vector<16xf32> to vector<16x1xf32>
    %cst_152 = arith.constant 1.600000e+01 : f32
    %776 = vector.broadcast %cst_152 : f32 to vector<16x1xf32>
    %777 = arith.divf %775, %776 : vector<16x1xf32>
    %778 = vector.broadcast %777 : vector<16x1xf32> to vector<16x16xf32>
    %779 = arith.subf %773, %778 : vector<16x16xf32>
    %780 = arith.mulf %779, %779 : vector<16x16xf32>
    %cst_153 = arith.constant dense<0.000000e+00> : vector<16xf32>
    %781 = vector.multi_reduction <add>, %780, %cst_153 [1] : vector<16x16xf32> to vector<16xf32>
    %782 = vector.shape_cast %781 : vector<16xf32> to vector<16x1xf32>
    %cst_154 = arith.constant 1.600000e+01 : f32
    %783 = vector.broadcast %cst_154 : f32 to vector<16x1xf32>
    %784 = arith.divf %782, %783 : vector<16x1xf32>
    %785 = vector.broadcast %777 : vector<16x1xf32> to vector<16x16xf32>
    %786 = arith.subf %773, %785 : vector<16x16xf32>
    %cst_155 = arith.constant 9.99999974E-6 : f32
    %787 = vector.broadcast %cst_155 : f32 to vector<16x1xf32>
    %788 = arith.addf %784, %787 : vector<16x1xf32>
    %789 = math.rsqrt %788 : vector<16x1xf32>
    %790 = vector.broadcast %789 : vector<16x1xf32> to vector<16x16xf32>
    %791 = arith.mulf %786, %790 : vector<16x16xf32>
    %792 = vector.broadcast %2 : vector<1x16xf32> to vector<16x16xf32>
    %793 = arith.mulf %791, %792 : vector<16x16xf32>
    %794 = vector.broadcast %3 : vector<1x16xf32> to vector<16x16xf32>
    %795 = arith.addf %793, %794 : vector<16x16xf32>
    %796 = vector.extract_strided_slice %1 {offsets = [0, 4, 0], sizes = [1, 4, 16], strides = [1, 1, 1]} : vector<4x8x16xf32> to vector<1x4x16xf32>
    %797 = vector.shape_cast %796 : vector<1x4x16xf32> to vector<4x16xf32>
    %cst_156 = arith.constant dense<0.000000e+00> : vector<4xf32>
    %798 = vector.multi_reduction <add>, %797, %cst_156 [1] : vector<4x16xf32> to vector<4xf32>
    %799 = vector.shape_cast %798 : vector<4xf32> to vector<4x1xf32>
    %cst_157 = arith.constant 1.600000e+01 : f32
    %800 = vector.broadcast %cst_157 : f32 to vector<4x1xf32>
    %801 = arith.divf %799, %800 : vector<4x1xf32>
    %802 = vector.broadcast %801 : vector<4x1xf32> to vector<4x16xf32>
    %803 = arith.subf %797, %802 : vector<4x16xf32>
    %804 = arith.mulf %803, %803 : vector<4x16xf32>
    %cst_158 = arith.constant dense<0.000000e+00> : vector<4xf32>
    %805 = vector.multi_reduction <add>, %804, %cst_158 [1] : vector<4x16xf32> to vector<4xf32>
    %806 = vector.shape_cast %805 : vector<4xf32> to vector<4x1xf32>
    %cst_159 = arith.constant 1.600000e+01 : f32
    %807 = vector.broadcast %cst_159 : f32 to vector<4x1xf32>
    %808 = arith.divf %806, %807 : vector<4x1xf32>
    %809 = vector.broadcast %801 : vector<4x1xf32> to vector<4x16xf32>
    %810 = arith.subf %797, %809 : vector<4x16xf32>
    %cst_160 = arith.constant 9.99999974E-6 : f32
    %811 = vector.broadcast %cst_160 : f32 to vector<4x1xf32>
    %812 = arith.addf %808, %811 : vector<4x1xf32>
    %813 = math.rsqrt %812 : vector<4x1xf32>
    %814 = vector.broadcast %813 : vector<4x1xf32> to vector<4x16xf32>
    %815 = arith.mulf %810, %814 : vector<4x16xf32>
    %816 = vector.broadcast %2 : vector<1x16xf32> to vector<4x16xf32>
    %817 = arith.mulf %815, %816 : vector<4x16xf32>
    %818 = vector.broadcast %3 : vector<1x16xf32> to vector<4x16xf32>
    %819 = arith.addf %817, %818 : vector<4x16xf32>
    %820 = vector.extract_strided_slice %4 {offsets = [0, 0, 0], sizes = [1, 16, 16], strides = [1, 1, 1]} : vector<4x16x16xf32> to vector<1x16x16xf32>
    %821 = vector.shape_cast %820 : vector<1x16x16xf32> to vector<16x16xf32>
    %cst_161 = arith.constant dense<0.000000e+00> : vector<4x16xf32>
    %822 = tpu.matmul %819, %821, %cst_161 {dimension_numbers = #tpu.dot_dimension_numbers<[1], [0], [0], [1], [0, 0, 1, 1], [], []>} : vector<4x16xf32>, vector<16x16xf32>, vector<4x16xf32> -> vector<4x16xf32>
    %823 = vector.extract_strided_slice %1 {offsets = [1, 4, 0], sizes = [1, 4, 16], strides = [1, 1, 1]} : vector<4x8x16xf32> to vector<1x4x16xf32>
    %824 = vector.shape_cast %823 : vector<1x4x16xf32> to vector<4x16xf32>
    %cst_162 = arith.constant dense<0.000000e+00> : vector<4xf32>
    %825 = vector.multi_reduction <add>, %824, %cst_162 [1] : vector<4x16xf32> to vector<4xf32>
    %826 = vector.shape_cast %825 : vector<4xf32> to vector<4x1xf32>
    %cst_163 = arith.constant 1.600000e+01 : f32
    %827 = vector.broadcast %cst_163 : f32 to vector<4x1xf32>
    %828 = arith.divf %826, %827 : vector<4x1xf32>
    %829 = vector.broadcast %828 : vector<4x1xf32> to vector<4x16xf32>
    %830 = arith.subf %824, %829 : vector<4x16xf32>
    %831 = arith.mulf %830, %830 : vector<4x16xf32>
    %cst_164 = arith.constant dense<0.000000e+00> : vector<4xf32>
    %832 = vector.multi_reduction <add>, %831, %cst_164 [1] : vector<4x16xf32> to vector<4xf32>
    %833 = vector.shape_cast %832 : vector<4xf32> to vector<4x1xf32>
    %cst_165 = arith.constant 1.600000e+01 : f32
    %834 = vector.broadcast %cst_165 : f32 to vector<4x1xf32>
    %835 = arith.divf %833, %834 : vector<4x1xf32>
    %836 = vector.broadcast %828 : vector<4x1xf32> to vector<4x16xf32>
    %837 = arith.subf %824, %836 : vector<4x16xf32>
    %cst_166 = arith.constant 9.99999974E-6 : f32
    %838 = vector.broadcast %cst_166 : f32 to vector<4x1xf32>
    %839 = arith.addf %835, %838 : vector<4x1xf32>
    %840 = math.rsqrt %839 : vector<4x1xf32>
    %841 = vector.broadcast %840 : vector<4x1xf32> to vector<4x16xf32>
    %842 = arith.mulf %837, %841 : vector<4x16xf32>
    %843 = vector.broadcast %2 : vector<1x16xf32> to vector<4x16xf32>
    %844 = arith.mulf %842, %843 : vector<4x16xf32>
    %845 = vector.broadcast %3 : vector<1x16xf32> to vector<4x16xf32>
    %846 = arith.addf %844, %845 : vector<4x16xf32>
    %847 = vector.extract_strided_slice %4 {offsets = [1, 0, 0], sizes = [1, 16, 16], strides = [1, 1, 1]} : vector<4x16x16xf32> to vector<1x16x16xf32>
    %848 = vector.shape_cast %847 : vector<1x16x16xf32> to vector<16x16xf32>
    %cst_167 = arith.constant dense<0.000000e+00> : vector<4x16xf32>
    %849 = tpu.matmul %846, %848, %cst_167 {dimension_numbers = #tpu.dot_dimension_numbers<[1], [0], [0], [1], [0, 0, 1, 1], [], []>} : vector<4x16xf32>, vector<16x16xf32>, vector<4x16xf32> -> vector<4x16xf32>
    %850 = arith.addf %822, %849 : vector<4x16xf32>
    %851 = vector.extract_strided_slice %1 {offsets = [2, 4, 0], sizes = [1, 4, 16], strides = [1, 1, 1]} : vector<4x8x16xf32> to vector<1x4x16xf32>
    %852 = vector.shape_cast %851 : vector<1x4x16xf32> to vector<4x16xf32>
    %cst_168 = arith.constant dense<0.000000e+00> : vector<4xf32>
    %853 = vector.multi_reduction <add>, %852, %cst_168 [1] : vector<4x16xf32> to vector<4xf32>
    %854 = vector.shape_cast %853 : vector<4xf32> to vector<4x1xf32>
    %cst_169 = arith.constant 1.600000e+01 : f32
    %855 = vector.broadcast %cst_169 : f32 to vector<4x1xf32>
    %856 = arith.divf %854, %855 : vector<4x1xf32>
    %857 = vector.broadcast %856 : vector<4x1xf32> to vector<4x16xf32>
    %858 = arith.subf %852, %857 : vector<4x16xf32>
    %859 = arith.mulf %858, %858 : vector<4x16xf32>
    %cst_170 = arith.constant dense<0.000000e+00> : vector<4xf32>
    %860 = vector.multi_reduction <add>, %859, %cst_170 [1] : vector<4x16xf32> to vector<4xf32>
    %861 = vector.shape_cast %860 : vector<4xf32> to vector<4x1xf32>
    %cst_171 = arith.constant 1.600000e+01 : f32
    %862 = vector.broadcast %cst_171 : f32 to vector<4x1xf32>
    %863 = arith.divf %861, %862 : vector<4x1xf32>
    %864 = vector.broadcast %856 : vector<4x1xf32> to vector<4x16xf32>
    %865 = arith.subf %852, %864 : vector<4x16xf32>
    %cst_172 = arith.constant 9.99999974E-6 : f32
    %866 = vector.broadcast %cst_172 : f32 to vector<4x1xf32>
    %867 = arith.addf %863, %866 : vector<4x1xf32>
    %868 = math.rsqrt %867 : vector<4x1xf32>
    %869 = vector.broadcast %868 : vector<4x1xf32> to vector<4x16xf32>
    %870 = arith.mulf %865, %869 : vector<4x16xf32>
    %871 = vector.broadcast %2 : vector<1x16xf32> to vector<4x16xf32>
    %872 = arith.mulf %870, %871 : vector<4x16xf32>
    %873 = vector.broadcast %3 : vector<1x16xf32> to vector<4x16xf32>
    %874 = arith.addf %872, %873 : vector<4x16xf32>
    %875 = vector.extract_strided_slice %4 {offsets = [2, 0, 0], sizes = [1, 16, 16], strides = [1, 1, 1]} : vector<4x16x16xf32> to vector<1x16x16xf32>
    %876 = vector.shape_cast %875 : vector<1x16x16xf32> to vector<16x16xf32>
    %cst_173 = arith.constant dense<0.000000e+00> : vector<4x16xf32>
    %877 = tpu.matmul %874, %876, %cst_173 {dimension_numbers = #tpu.dot_dimension_numbers<[1], [0], [0], [1], [0, 0, 1, 1], [], []>} : vector<4x16xf32>, vector<16x16xf32>, vector<4x16xf32> -> vector<4x16xf32>
    %878 = arith.addf %850, %877 : vector<4x16xf32>
    %879 = vector.extract_strided_slice %1 {offsets = [3, 4, 0], sizes = [1, 4, 16], strides = [1, 1, 1]} : vector<4x8x16xf32> to vector<1x4x16xf32>
    %880 = vector.shape_cast %879 : vector<1x4x16xf32> to vector<4x16xf32>
    %cst_174 = arith.constant dense<0.000000e+00> : vector<4xf32>
    %881 = vector.multi_reduction <add>, %880, %cst_174 [1] : vector<4x16xf32> to vector<4xf32>
    %882 = vector.shape_cast %881 : vector<4xf32> to vector<4x1xf32>
    %cst_175 = arith.constant 1.600000e+01 : f32
    %883 = vector.broadcast %cst_175 : f32 to vector<4x1xf32>
    %884 = arith.divf %882, %883 : vector<4x1xf32>
    %885 = vector.broadcast %884 : vector<4x1xf32> to vector<4x16xf32>
    %886 = arith.subf %880, %885 : vector<4x16xf32>
    %887 = arith.mulf %886, %886 : vector<4x16xf32>
    %cst_176 = arith.constant dense<0.000000e+00> : vector<4xf32>
    %888 = vector.multi_reduction <add>, %887, %cst_176 [1] : vector<4x16xf32> to vector<4xf32>
    %889 = vector.shape_cast %888 : vector<4xf32> to vector<4x1xf32>
    %cst_177 = arith.constant 1.600000e+01 : f32
    %890 = vector.broadcast %cst_177 : f32 to vector<4x1xf32>
    %891 = arith.divf %889, %890 : vector<4x1xf32>
    %892 = vector.broadcast %884 : vector<4x1xf32> to vector<4x16xf32>
    %893 = arith.subf %880, %892 : vector<4x16xf32>
    %cst_178 = arith.constant 9.99999974E-6 : f32
    %894 = vector.broadcast %cst_178 : f32 to vector<4x1xf32>
    %895 = arith.addf %891, %894 : vector<4x1xf32>
    %896 = math.rsqrt %895 : vector<4x1xf32>
    %897 = vector.broadcast %896 : vector<4x1xf32> to vector<4x16xf32>
    %898 = arith.mulf %893, %897 : vector<4x16xf32>
    %899 = vector.broadcast %2 : vector<1x16xf32> to vector<4x16xf32>
    %900 = arith.mulf %898, %899 : vector<4x16xf32>
    %901 = vector.broadcast %3 : vector<1x16xf32> to vector<4x16xf32>
    %902 = arith.addf %900, %901 : vector<4x16xf32>
    %903 = vector.extract_strided_slice %4 {offsets = [3, 0, 0], sizes = [1, 16, 16], strides = [1, 1, 1]} : vector<4x16x16xf32> to vector<1x16x16xf32>
    %904 = vector.shape_cast %903 : vector<1x16x16xf32> to vector<16x16xf32>
    %cst_179 = arith.constant dense<0.000000e+00> : vector<4x16xf32>
    %905 = tpu.matmul %902, %904, %cst_179 {dimension_numbers = #tpu.dot_dimension_numbers<[1], [0], [0], [1], [0, 0, 1, 1], [], []>} : vector<4x16xf32>, vector<16x16xf32>, vector<4x16xf32> -> vector<4x16xf32>
    %906 = arith.addf %878, %905 : vector<4x16xf32>
    %907 = vector.broadcast %5 : vector<1x16xf32> to vector<4x16xf32>
    %908 = arith.addf %906, %907 : vector<4x16xf32>
    %cst_180 = arith.constant dense<0.000000e+00> : vector<4xf32>
    %909 = vector.multi_reduction <add>, %908, %cst_180 [1] : vector<4x16xf32> to vector<4xf32>
    %910 = vector.shape_cast %909 : vector<4xf32> to vector<4x1xf32>
    %cst_181 = arith.constant 1.600000e+01 : f32
    %911 = vector.broadcast %cst_181 : f32 to vector<4x1xf32>
    %912 = arith.divf %910, %911 : vector<4x1xf32>
    %913 = vector.broadcast %912 : vector<4x1xf32> to vector<4x16xf32>
    %914 = arith.subf %908, %913 : vector<4x16xf32>
    %915 = arith.mulf %914, %914 : vector<4x16xf32>
    %cst_182 = arith.constant dense<0.000000e+00> : vector<4xf32>
    %916 = vector.multi_reduction <add>, %915, %cst_182 [1] : vector<4x16xf32> to vector<4xf32>
    %917 = vector.shape_cast %916 : vector<4xf32> to vector<4x1xf32>
    %cst_183 = arith.constant 1.600000e+01 : f32
    %918 = vector.broadcast %cst_183 : f32 to vector<4x1xf32>
    %919 = arith.divf %917, %918 : vector<4x1xf32>
    %920 = vector.broadcast %912 : vector<4x1xf32> to vector<4x16xf32>
    %921 = arith.subf %908, %920 : vector<4x16xf32>
    %cst_184 = arith.constant 9.99999974E-6 : f32
    %922 = vector.broadcast %cst_184 : f32 to vector<4x1xf32>
    %923 = arith.addf %919, %922 : vector<4x1xf32>
    %924 = math.rsqrt %923 : vector<4x1xf32>
    %925 = vector.broadcast %924 : vector<4x1xf32> to vector<4x16xf32>
    %926 = arith.mulf %921, %925 : vector<4x16xf32>
    %927 = vector.broadcast %6 : vector<1x16xf32> to vector<4x16xf32>
    %928 = arith.mulf %926, %927 : vector<4x16xf32>
    %929 = vector.broadcast %7 : vector<1x16xf32> to vector<4x16xf32>
    %930 = arith.addf %928, %929 : vector<4x16xf32>
    %931 = vector.shape_cast %8 : vector<1x16x16xf32> to vector<16x16xf32>
    %cst_185 = arith.constant dense<0.000000e+00> : vector<16x16xf32>
    %932 = tpu.matmul %795, %931, %cst_185 {dimension_numbers = #tpu.dot_dimension_numbers<[1], [0], [0], [1], [0, 0, 1, 1], [], []>} : vector<16x16xf32>, vector<16x16xf32>, vector<16x16xf32> -> vector<16x16xf32>
    %933 = vector.shape_cast %9 : vector<1x1x16xf32> to vector<1x16xf32>
    %934 = vector.broadcast %933 : vector<1x16xf32> to vector<16x16xf32>
    %935 = arith.addf %932, %934 : vector<16x16xf32>
    %936 = vector.shape_cast %10 : vector<1x16x16xf32> to vector<16x16xf32>
    %cst_186 = arith.constant dense<0.000000e+00> : vector<4x16xf32>
    %937 = tpu.matmul %930, %936, %cst_186 {dimension_numbers = #tpu.dot_dimension_numbers<[1], [0], [0], [1], [0, 0, 1, 1], [], []>} : vector<4x16xf32>, vector<16x16xf32>, vector<4x16xf32> -> vector<4x16xf32>
    %938 = vector.shape_cast %11 : vector<1x1x16xf32> to vector<1x16xf32>
    %939 = vector.broadcast %938 : vector<1x16xf32> to vector<4x16xf32>
    %940 = arith.addf %937, %939 : vector<4x16xf32>
    %941 = vector.shape_cast %12 : vector<1x16x16xf32> to vector<16x16xf32>
    %cst_187 = arith.constant dense<0.000000e+00> : vector<4x16xf32>
    %942 = tpu.matmul %930, %941, %cst_187 {dimension_numbers = #tpu.dot_dimension_numbers<[1], [0], [0], [1], [0, 0, 1, 1], [], []>} : vector<4x16xf32>, vector<16x16xf32>, vector<4x16xf32> -> vector<4x16xf32>
    %943 = vector.shape_cast %13 : vector<1x1x16xf32> to vector<1x16xf32>
    %944 = vector.broadcast %943 : vector<1x16xf32> to vector<4x16xf32>
    %945 = arith.addf %942, %944 : vector<4x16xf32>
    %cst_188 = arith.constant dense<0.000000e+00> : vector<16x4xf32>
    %946 = tpu.matmul %935, %940, %cst_188 {dimension_numbers = #tpu.dot_dimension_numbers<[1], [1], [0], [0], [0, 0, 1, 0], [], []>} : vector<16x16xf32>, vector<4x16xf32>, vector<16x4xf32> -> vector<16x4xf32>
    %cst_189 = arith.constant 2.500000e-01 : f32
    %947 = vector.broadcast %cst_189 : f32 to vector<16x4xf32>
    %948 = arith.mulf %946, %947 : vector<16x4xf32>
    %cst_190 = arith.constant dense<0xFF800000> : vector<16xf32>
    %949 = vector.multi_reduction <maximumf>, %948, %cst_190 [1] : vector<16x4xf32> to vector<16xf32>
    %950 = vector.shape_cast %949 : vector<16xf32> to vector<16x1xf32>
    %951 = vector.broadcast %950 : vector<16x1xf32> to vector<16x4xf32>
    %952 = arith.subf %948, %951 : vector<16x4xf32>
    %953 = math.exp %952 : vector<16x4xf32>
    %cst_191 = arith.constant dense<0.000000e+00> : vector<16xf32>
    %954 = vector.multi_reduction <add>, %953, %cst_191 [1] : vector<16x4xf32> to vector<16xf32>
    %955 = vector.shape_cast %954 : vector<16xf32> to vector<16x1xf32>
    %956 = tpu.reciprocal %955 {approx = true} : vector<16x1xf32> -> vector<16x1xf32>
    %957 = vector.broadcast %956 : vector<16x1xf32> to vector<16x4xf32>
    %958 = arith.mulf %953, %957 : vector<16x4xf32>
    %cst_192 = arith.constant dense<0.000000e+00> : vector<16x16xf32>
    %959 = tpu.matmul %958, %945, %cst_192 {dimension_numbers = #tpu.dot_dimension_numbers<[1], [0], [0], [1], [0, 0, 1, 1], [], []>} : vector<16x4xf32>, vector<4x16xf32>, vector<16x16xf32> -> vector<16x16xf32>
    %960 = vector.shape_cast %14 : vector<1x16x16xf32> to vector<16x16xf32>
    %cst_193 = arith.constant dense<0.000000e+00> : vector<16x16xf32>
    %961 = tpu.matmul %959, %960, %cst_193 {dimension_numbers = #tpu.dot_dimension_numbers<[1], [0], [0], [1], [0, 0, 1, 1], [], []>} : vector<16x16xf32>, vector<16x16xf32>, vector<16x16xf32> -> vector<16x16xf32>
    %962 = vector.broadcast %15 : vector<1x16xf32> to vector<16x16xf32>
    %963 = arith.addf %962, %961 : vector<16x16xf32>
    %964 = arith.addf %773, %963 : vector<16x16xf32>
    %cst_194 = arith.constant dense<0.000000e+00> : vector<16xf32>
    %965 = vector.multi_reduction <add>, %964, %cst_194 [1] : vector<16x16xf32> to vector<16xf32>
    %966 = vector.shape_cast %965 : vector<16xf32> to vector<16x1xf32>
    %cst_195 = arith.constant 1.600000e+01 : f32
    %967 = vector.broadcast %cst_195 : f32 to vector<16x1xf32>
    %968 = arith.divf %966, %967 : vector<16x1xf32>
    %969 = vector.broadcast %968 : vector<16x1xf32> to vector<16x16xf32>
    %970 = arith.subf %964, %969 : vector<16x16xf32>
    %971 = arith.mulf %970, %970 : vector<16x16xf32>
    %cst_196 = arith.constant dense<0.000000e+00> : vector<16xf32>
    %972 = vector.multi_reduction <add>, %971, %cst_196 [1] : vector<16x16xf32> to vector<16xf32>
    %973 = vector.shape_cast %972 : vector<16xf32> to vector<16x1xf32>
    %cst_197 = arith.constant 1.600000e+01 : f32
    %974 = vector.broadcast %cst_197 : f32 to vector<16x1xf32>
    %975 = arith.divf %973, %974 : vector<16x1xf32>
    %976 = vector.broadcast %968 : vector<16x1xf32> to vector<16x16xf32>
    %977 = arith.subf %964, %976 : vector<16x16xf32>
    %cst_198 = arith.constant 9.99999974E-6 : f32
    %978 = vector.broadcast %cst_198 : f32 to vector<16x1xf32>
    %979 = arith.addf %975, %978 : vector<16x1xf32>
    %980 = math.rsqrt %979 : vector<16x1xf32>
    %981 = vector.broadcast %980 : vector<16x1xf32> to vector<16x16xf32>
    %982 = arith.mulf %977, %981 : vector<16x16xf32>
    %983 = vector.broadcast %16 : vector<1x16xf32> to vector<16x16xf32>
    %984 = arith.mulf %982, %983 : vector<16x16xf32>
    %985 = vector.broadcast %17 : vector<1x16xf32> to vector<16x16xf32>
    %986 = arith.addf %984, %985 : vector<16x16xf32>
    %cst_199 = arith.constant dense<0.000000e+00> : vector<16x16xf32>
    %987 = tpu.matmul %986, %18, %cst_199 {dimension_numbers = #tpu.dot_dimension_numbers<[1], [0], [0], [1], [0, 0, 1, 1], [], []>} : vector<16x16xf32>, vector<16x16xf32>, vector<16x16xf32> -> vector<16x16xf32>
    %988 = vector.broadcast %19 : vector<1x16xf32> to vector<16x16xf32>
    %989 = arith.addf %987, %988 : vector<16x16xf32>
    %cst_200 = arith.constant 0.000000e+00 : f32
    %990 = vector.broadcast %cst_200 : f32 to vector<1x16xf32>
    %991 = vector.extract_strided_slice %989 {offsets = [0, 0], sizes = [4, 16], strides = [1, 1]} : vector<16x16xf32> to vector<4x16xf32>
    %992 = tpu.concatenate %990, %991, %990 in 0 : vector<1x16xf32>, vector<4x16xf32>, vector<1x16xf32> -> vector<6x16xf32>
    %993 = vector.extract_strided_slice %992 {offsets = [0, 0], sizes = [4, 16], strides = [1, 1]} : vector<6x16xf32> to vector<4x16xf32>
    %994 = vector.extract_strided_slice %992 {offsets = [1, 0], sizes = [4, 16], strides = [1, 1]} : vector<6x16xf32> to vector<4x16xf32>
    %995 = vector.extract_strided_slice %992 {offsets = [2, 0], sizes = [4, 16], strides = [1, 1]} : vector<6x16xf32> to vector<4x16xf32>
    %996 = vector.extract_strided_slice %989 {offsets = [4, 0], sizes = [4, 16], strides = [1, 1]} : vector<16x16xf32> to vector<4x16xf32>
    %997 = tpu.concatenate %990, %996, %990 in 0 : vector<1x16xf32>, vector<4x16xf32>, vector<1x16xf32> -> vector<6x16xf32>
    %998 = vector.extract_strided_slice %997 {offsets = [0, 0], sizes = [4, 16], strides = [1, 1]} : vector<6x16xf32> to vector<4x16xf32>
    %999 = vector.extract_strided_slice %997 {offsets = [1, 0], sizes = [4, 16], strides = [1, 1]} : vector<6x16xf32> to vector<4x16xf32>
    %1000 = vector.extract_strided_slice %997 {offsets = [2, 0], sizes = [4, 16], strides = [1, 1]} : vector<6x16xf32> to vector<4x16xf32>
    %1001 = vector.extract_strided_slice %989 {offsets = [8, 0], sizes = [4, 16], strides = [1, 1]} : vector<16x16xf32> to vector<4x16xf32>
    %1002 = tpu.concatenate %990, %1001, %990 in 0 : vector<1x16xf32>, vector<4x16xf32>, vector<1x16xf32> -> vector<6x16xf32>
    %1003 = vector.extract_strided_slice %1002 {offsets = [0, 0], sizes = [4, 16], strides = [1, 1]} : vector<6x16xf32> to vector<4x16xf32>
    %1004 = vector.extract_strided_slice %1002 {offsets = [1, 0], sizes = [4, 16], strides = [1, 1]} : vector<6x16xf32> to vector<4x16xf32>
    %1005 = vector.extract_strided_slice %1002 {offsets = [2, 0], sizes = [4, 16], strides = [1, 1]} : vector<6x16xf32> to vector<4x16xf32>
    %1006 = vector.extract_strided_slice %989 {offsets = [12, 0], sizes = [4, 16], strides = [1, 1]} : vector<16x16xf32> to vector<4x16xf32>
    %1007 = tpu.concatenate %990, %1006, %990 in 0 : vector<1x16xf32>, vector<4x16xf32>, vector<1x16xf32> -> vector<6x16xf32>
    %1008 = vector.extract_strided_slice %1007 {offsets = [0, 0], sizes = [4, 16], strides = [1, 1]} : vector<6x16xf32> to vector<4x16xf32>
    %1009 = vector.extract_strided_slice %1007 {offsets = [1, 0], sizes = [4, 16], strides = [1, 1]} : vector<6x16xf32> to vector<4x16xf32>
    %1010 = vector.extract_strided_slice %1007 {offsets = [2, 0], sizes = [4, 16], strides = [1, 1]} : vector<6x16xf32> to vector<4x16xf32>
    %1011 = vector.extract_strided_slice %20 {offsets = [0, 3, 0], sizes = [1, 1, 16], strides = [1, 1, 1]} : vector<2x9x16xf32> to vector<1x1x16xf32>
    %1012 = vector.shape_cast %1011 : vector<1x1x16xf32> to vector<16xf32>
    %1013 = vector.shape_cast %1012 : vector<16xf32> to vector<1x16xf32>
    %1014 = vector.broadcast %1013 : vector<1x16xf32> to vector<4x16xf32>
    %1015 = arith.mulf %993, %1014 : vector<4x16xf32>
    %1016 = vector.extract_strided_slice %20 {offsets = [0, 4, 0], sizes = [1, 1, 16], strides = [1, 1, 1]} : vector<2x9x16xf32> to vector<1x1x16xf32>
    %1017 = vector.shape_cast %1016 : vector<1x1x16xf32> to vector<16xf32>
    %1018 = vector.shape_cast %1017 : vector<16xf32> to vector<1x16xf32>
    %1019 = vector.broadcast %1018 : vector<1x16xf32> to vector<4x16xf32>
    %1020 = arith.mulf %994, %1019 : vector<4x16xf32>
    %1021 = arith.addf %1015, %1020 : vector<4x16xf32>
    %1022 = vector.extract_strided_slice %20 {offsets = [0, 5, 0], sizes = [1, 1, 16], strides = [1, 1, 1]} : vector<2x9x16xf32> to vector<1x1x16xf32>
    %1023 = vector.shape_cast %1022 : vector<1x1x16xf32> to vector<16xf32>
    %1024 = vector.shape_cast %1023 : vector<16xf32> to vector<1x16xf32>
    %1025 = vector.broadcast %1024 : vector<1x16xf32> to vector<4x16xf32>
    %1026 = arith.mulf %995, %1025 : vector<4x16xf32>
    %1027 = arith.addf %1021, %1026 : vector<4x16xf32>
    %1028 = vector.extract_strided_slice %20 {offsets = [0, 6, 0], sizes = [1, 1, 16], strides = [1, 1, 1]} : vector<2x9x16xf32> to vector<1x1x16xf32>
    %1029 = vector.shape_cast %1028 : vector<1x1x16xf32> to vector<16xf32>
    %1030 = vector.shape_cast %1029 : vector<16xf32> to vector<1x16xf32>
    %1031 = vector.broadcast %1030 : vector<1x16xf32> to vector<4x16xf32>
    %1032 = arith.mulf %998, %1031 : vector<4x16xf32>
    %1033 = arith.addf %1027, %1032 : vector<4x16xf32>
    %1034 = vector.extract_strided_slice %20 {offsets = [0, 7, 0], sizes = [1, 1, 16], strides = [1, 1, 1]} : vector<2x9x16xf32> to vector<1x1x16xf32>
    %1035 = vector.shape_cast %1034 : vector<1x1x16xf32> to vector<16xf32>
    %1036 = vector.shape_cast %1035 : vector<16xf32> to vector<1x16xf32>
    %1037 = vector.broadcast %1036 : vector<1x16xf32> to vector<4x16xf32>
    %1038 = arith.mulf %999, %1037 : vector<4x16xf32>
    %1039 = arith.addf %1033, %1038 : vector<4x16xf32>
    %1040 = vector.extract_strided_slice %20 {offsets = [0, 8, 0], sizes = [1, 1, 16], strides = [1, 1, 1]} : vector<2x9x16xf32> to vector<1x1x16xf32>
    %1041 = vector.shape_cast %1040 : vector<1x1x16xf32> to vector<16xf32>
    %1042 = vector.shape_cast %1041 : vector<16xf32> to vector<1x16xf32>
    %1043 = vector.broadcast %1042 : vector<1x16xf32> to vector<4x16xf32>
    %1044 = arith.mulf %1000, %1043 : vector<4x16xf32>
    %1045 = arith.addf %1039, %1044 : vector<4x16xf32>
    %1046 = vector.extract_strided_slice %21 {offsets = [0, 0, 0], sizes = [1, 1, 16], strides = [1, 1, 1]} : vector<2x1x16xf32> to vector<1x1x16xf32>
    %1047 = vector.shape_cast %1046 : vector<1x1x16xf32> to vector<1x16xf32>
    %1048 = vector.broadcast %1047 : vector<1x16xf32> to vector<4x16xf32>
    %1049 = arith.addf %1045, %1048 : vector<4x16xf32>
    %cst_201 = arith.constant 5.000000e-01 : f32
    %1050 = vector.broadcast %cst_201 : f32 to vector<4x16xf32>
    %1051 = arith.mulf %1050, %1049 : vector<4x16xf32>
    %cst_202 = arith.constant 0.707106769 : f32
    %1052 = vector.broadcast %cst_202 : f32 to vector<4x16xf32>
    %1053 = arith.mulf %1049, %1052 : vector<4x16xf32>
    %1054 = math.erf %1053 : vector<4x16xf32>
    %cst_203 = arith.constant 1.000000e+00 : f32
    %1055 = vector.broadcast %cst_203 : f32 to vector<4x16xf32>
    %1056 = arith.addf %1055, %1054 : vector<4x16xf32>
    %1057 = arith.mulf %1051, %1056 : vector<4x16xf32>
    %1058 = vector.extract_strided_slice %22 {offsets = [0, 0, 0], sizes = [1, 16, 16], strides = [1, 1, 1]} : vector<2x16x16xf32> to vector<1x16x16xf32>
    %1059 = vector.shape_cast %1058 : vector<1x16x16xf32> to vector<16x16xf32>
    %cst_204 = arith.constant dense<0.000000e+00> : vector<4x16xf32>
    %1060 = tpu.matmul %1057, %1059, %cst_204 {dimension_numbers = #tpu.dot_dimension_numbers<[1], [0], [0], [1], [0, 0, 1, 1], [], []>} : vector<4x16xf32>, vector<16x16xf32>, vector<4x16xf32> -> vector<4x16xf32>
    %1061 = vector.broadcast %23 : vector<1x16xf32> to vector<4x16xf32>
    %1062 = arith.addf %1061, %1060 : vector<4x16xf32>
    %1063 = vector.extract_strided_slice %20 {offsets = [1, 3, 0], sizes = [1, 1, 16], strides = [1, 1, 1]} : vector<2x9x16xf32> to vector<1x1x16xf32>
    %1064 = vector.shape_cast %1063 : vector<1x1x16xf32> to vector<16xf32>
    %1065 = vector.shape_cast %1064 : vector<16xf32> to vector<1x16xf32>
    %1066 = vector.broadcast %1065 : vector<1x16xf32> to vector<4x16xf32>
    %1067 = arith.mulf %993, %1066 : vector<4x16xf32>
    %1068 = vector.extract_strided_slice %20 {offsets = [1, 4, 0], sizes = [1, 1, 16], strides = [1, 1, 1]} : vector<2x9x16xf32> to vector<1x1x16xf32>
    %1069 = vector.shape_cast %1068 : vector<1x1x16xf32> to vector<16xf32>
    %1070 = vector.shape_cast %1069 : vector<16xf32> to vector<1x16xf32>
    %1071 = vector.broadcast %1070 : vector<1x16xf32> to vector<4x16xf32>
    %1072 = arith.mulf %994, %1071 : vector<4x16xf32>
    %1073 = arith.addf %1067, %1072 : vector<4x16xf32>
    %1074 = vector.extract_strided_slice %20 {offsets = [1, 5, 0], sizes = [1, 1, 16], strides = [1, 1, 1]} : vector<2x9x16xf32> to vector<1x1x16xf32>
    %1075 = vector.shape_cast %1074 : vector<1x1x16xf32> to vector<16xf32>
    %1076 = vector.shape_cast %1075 : vector<16xf32> to vector<1x16xf32>
    %1077 = vector.broadcast %1076 : vector<1x16xf32> to vector<4x16xf32>
    %1078 = arith.mulf %995, %1077 : vector<4x16xf32>
    %1079 = arith.addf %1073, %1078 : vector<4x16xf32>
    %1080 = vector.extract_strided_slice %20 {offsets = [1, 6, 0], sizes = [1, 1, 16], strides = [1, 1, 1]} : vector<2x9x16xf32> to vector<1x1x16xf32>
    %1081 = vector.shape_cast %1080 : vector<1x1x16xf32> to vector<16xf32>
    %1082 = vector.shape_cast %1081 : vector<16xf32> to vector<1x16xf32>
    %1083 = vector.broadcast %1082 : vector<1x16xf32> to vector<4x16xf32>
    %1084 = arith.mulf %998, %1083 : vector<4x16xf32>
    %1085 = arith.addf %1079, %1084 : vector<4x16xf32>
    %1086 = vector.extract_strided_slice %20 {offsets = [1, 7, 0], sizes = [1, 1, 16], strides = [1, 1, 1]} : vector<2x9x16xf32> to vector<1x1x16xf32>
    %1087 = vector.shape_cast %1086 : vector<1x1x16xf32> to vector<16xf32>
    %1088 = vector.shape_cast %1087 : vector<16xf32> to vector<1x16xf32>
    %1089 = vector.broadcast %1088 : vector<1x16xf32> to vector<4x16xf32>
    %1090 = arith.mulf %999, %1089 : vector<4x16xf32>
    %1091 = arith.addf %1085, %1090 : vector<4x16xf32>
    %1092 = vector.extract_strided_slice %20 {offsets = [1, 8, 0], sizes = [1, 1, 16], strides = [1, 1, 1]} : vector<2x9x16xf32> to vector<1x1x16xf32>
    %1093 = vector.shape_cast %1092 : vector<1x1x16xf32> to vector<16xf32>
    %1094 = vector.shape_cast %1093 : vector<16xf32> to vector<1x16xf32>
    %1095 = vector.broadcast %1094 : vector<1x16xf32> to vector<4x16xf32>
    %1096 = arith.mulf %1000, %1095 : vector<4x16xf32>
    %1097 = arith.addf %1091, %1096 : vector<4x16xf32>
    %1098 = vector.extract_strided_slice %21 {offsets = [1, 0, 0], sizes = [1, 1, 16], strides = [1, 1, 1]} : vector<2x1x16xf32> to vector<1x1x16xf32>
    %1099 = vector.shape_cast %1098 : vector<1x1x16xf32> to vector<1x16xf32>
    %1100 = vector.broadcast %1099 : vector<1x16xf32> to vector<4x16xf32>
    %1101 = arith.addf %1097, %1100 : vector<4x16xf32>
    %cst_205 = arith.constant 5.000000e-01 : f32
    %1102 = vector.broadcast %cst_205 : f32 to vector<4x16xf32>
    %1103 = arith.mulf %1102, %1101 : vector<4x16xf32>
    %cst_206 = arith.constant 0.707106769 : f32
    %1104 = vector.broadcast %cst_206 : f32 to vector<4x16xf32>
    %1105 = arith.mulf %1101, %1104 : vector<4x16xf32>
    %1106 = math.erf %1105 : vector<4x16xf32>
    %cst_207 = arith.constant 1.000000e+00 : f32
    %1107 = vector.broadcast %cst_207 : f32 to vector<4x16xf32>
    %1108 = arith.addf %1107, %1106 : vector<4x16xf32>
    %1109 = arith.mulf %1103, %1108 : vector<4x16xf32>
    %1110 = vector.extract_strided_slice %22 {offsets = [1, 0, 0], sizes = [1, 16, 16], strides = [1, 1, 1]} : vector<2x16x16xf32> to vector<1x16x16xf32>
    %1111 = vector.shape_cast %1110 : vector<1x16x16xf32> to vector<16x16xf32>
    %cst_208 = arith.constant dense<0.000000e+00> : vector<4x16xf32>
    %1112 = tpu.matmul %1109, %1111, %cst_208 {dimension_numbers = #tpu.dot_dimension_numbers<[1], [0], [0], [1], [0, 0, 1, 1], [], []>} : vector<4x16xf32>, vector<16x16xf32>, vector<4x16xf32> -> vector<4x16xf32>
    %1113 = arith.addf %1062, %1112 : vector<4x16xf32>
    %1114 = vector.extract_strided_slice %20 {offsets = [0, 0, 0], sizes = [1, 1, 16], strides = [1, 1, 1]} : vector<2x9x16xf32> to vector<1x1x16xf32>
    %1115 = vector.shape_cast %1114 : vector<1x1x16xf32> to vector<16xf32>
    %1116 = vector.shape_cast %1115 : vector<16xf32> to vector<1x16xf32>
    %1117 = vector.broadcast %1116 : vector<1x16xf32> to vector<4x16xf32>
    %1118 = arith.mulf %993, %1117 : vector<4x16xf32>
    %1119 = vector.extract_strided_slice %20 {offsets = [0, 1, 0], sizes = [1, 1, 16], strides = [1, 1, 1]} : vector<2x9x16xf32> to vector<1x1x16xf32>
    %1120 = vector.shape_cast %1119 : vector<1x1x16xf32> to vector<16xf32>
    %1121 = vector.shape_cast %1120 : vector<16xf32> to vector<1x16xf32>
    %1122 = vector.broadcast %1121 : vector<1x16xf32> to vector<4x16xf32>
    %1123 = arith.mulf %994, %1122 : vector<4x16xf32>
    %1124 = arith.addf %1118, %1123 : vector<4x16xf32>
    %1125 = vector.extract_strided_slice %20 {offsets = [0, 2, 0], sizes = [1, 1, 16], strides = [1, 1, 1]} : vector<2x9x16xf32> to vector<1x1x16xf32>
    %1126 = vector.shape_cast %1125 : vector<1x1x16xf32> to vector<16xf32>
    %1127 = vector.shape_cast %1126 : vector<16xf32> to vector<1x16xf32>
    %1128 = vector.broadcast %1127 : vector<1x16xf32> to vector<4x16xf32>
    %1129 = arith.mulf %995, %1128 : vector<4x16xf32>
    %1130 = arith.addf %1124, %1129 : vector<4x16xf32>
    %1131 = vector.extract_strided_slice %20 {offsets = [0, 3, 0], sizes = [1, 1, 16], strides = [1, 1, 1]} : vector<2x9x16xf32> to vector<1x1x16xf32>
    %1132 = vector.shape_cast %1131 : vector<1x1x16xf32> to vector<16xf32>
    %1133 = vector.shape_cast %1132 : vector<16xf32> to vector<1x16xf32>
    %1134 = vector.broadcast %1133 : vector<1x16xf32> to vector<4x16xf32>
    %1135 = arith.mulf %998, %1134 : vector<4x16xf32>
    %1136 = arith.addf %1130, %1135 : vector<4x16xf32>
    %1137 = vector.extract_strided_slice %20 {offsets = [0, 4, 0], sizes = [1, 1, 16], strides = [1, 1, 1]} : vector<2x9x16xf32> to vector<1x1x16xf32>
    %1138 = vector.shape_cast %1137 : vector<1x1x16xf32> to vector<16xf32>
    %1139 = vector.shape_cast %1138 : vector<16xf32> to vector<1x16xf32>
    %1140 = vector.broadcast %1139 : vector<1x16xf32> to vector<4x16xf32>
    %1141 = arith.mulf %999, %1140 : vector<4x16xf32>
    %1142 = arith.addf %1136, %1141 : vector<4x16xf32>
    %1143 = vector.extract_strided_slice %20 {offsets = [0, 5, 0], sizes = [1, 1, 16], strides = [1, 1, 1]} : vector<2x9x16xf32> to vector<1x1x16xf32>
    %1144 = vector.shape_cast %1143 : vector<1x1x16xf32> to vector<16xf32>
    %1145 = vector.shape_cast %1144 : vector<16xf32> to vector<1x16xf32>
    %1146 = vector.broadcast %1145 : vector<1x16xf32> to vector<4x16xf32>
    %1147 = arith.mulf %1000, %1146 : vector<4x16xf32>
    %1148 = arith.addf %1142, %1147 : vector<4x16xf32>
    %1149 = vector.extract_strided_slice %20 {offsets = [0, 6, 0], sizes = [1, 1, 16], strides = [1, 1, 1]} : vector<2x9x16xf32> to vector<1x1x16xf32>
    %1150 = vector.shape_cast %1149 : vector<1x1x16xf32> to vector<16xf32>
    %1151 = vector.shape_cast %1150 : vector<16xf32> to vector<1x16xf32>
    %1152 = vector.broadcast %1151 : vector<1x16xf32> to vector<4x16xf32>
    %1153 = arith.mulf %1003, %1152 : vector<4x16xf32>
    %1154 = arith.addf %1148, %1153 : vector<4x16xf32>
    %1155 = vector.extract_strided_slice %20 {offsets = [0, 7, 0], sizes = [1, 1, 16], strides = [1, 1, 1]} : vector<2x9x16xf32> to vector<1x1x16xf32>
    %1156 = vector.shape_cast %1155 : vector<1x1x16xf32> to vector<16xf32>
    %1157 = vector.shape_cast %1156 : vector<16xf32> to vector<1x16xf32>
    %1158 = vector.broadcast %1157 : vector<1x16xf32> to vector<4x16xf32>
    %1159 = arith.mulf %1004, %1158 : vector<4x16xf32>
    %1160 = arith.addf %1154, %1159 : vector<4x16xf32>
    %1161 = vector.extract_strided_slice %20 {offsets = [0, 8, 0], sizes = [1, 1, 16], strides = [1, 1, 1]} : vector<2x9x16xf32> to vector<1x1x16xf32>
    %1162 = vector.shape_cast %1161 : vector<1x1x16xf32> to vector<16xf32>
    %1163 = vector.shape_cast %1162 : vector<16xf32> to vector<1x16xf32>
    %1164 = vector.broadcast %1163 : vector<1x16xf32> to vector<4x16xf32>
    %1165 = arith.mulf %1005, %1164 : vector<4x16xf32>
    %1166 = arith.addf %1160, %1165 : vector<4x16xf32>
    %1167 = vector.extract_strided_slice %21 {offsets = [0, 0, 0], sizes = [1, 1, 16], strides = [1, 1, 1]} : vector<2x1x16xf32> to vector<1x1x16xf32>
    %1168 = vector.shape_cast %1167 : vector<1x1x16xf32> to vector<1x16xf32>
    %1169 = vector.broadcast %1168 : vector<1x16xf32> to vector<4x16xf32>
    %1170 = arith.addf %1166, %1169 : vector<4x16xf32>
    %cst_209 = arith.constant 5.000000e-01 : f32
    %1171 = vector.broadcast %cst_209 : f32 to vector<4x16xf32>
    %1172 = arith.mulf %1171, %1170 : vector<4x16xf32>
    %cst_210 = arith.constant 0.707106769 : f32
    %1173 = vector.broadcast %cst_210 : f32 to vector<4x16xf32>
    %1174 = arith.mulf %1170, %1173 : vector<4x16xf32>
    %1175 = math.erf %1174 : vector<4x16xf32>
    %cst_211 = arith.constant 1.000000e+00 : f32
    %1176 = vector.broadcast %cst_211 : f32 to vector<4x16xf32>
    %1177 = arith.addf %1176, %1175 : vector<4x16xf32>
    %1178 = arith.mulf %1172, %1177 : vector<4x16xf32>
    %1179 = vector.extract_strided_slice %22 {offsets = [0, 0, 0], sizes = [1, 16, 16], strides = [1, 1, 1]} : vector<2x16x16xf32> to vector<1x16x16xf32>
    %1180 = vector.shape_cast %1179 : vector<1x16x16xf32> to vector<16x16xf32>
    %cst_212 = arith.constant dense<0.000000e+00> : vector<4x16xf32>
    %1181 = tpu.matmul %1178, %1180, %cst_212 {dimension_numbers = #tpu.dot_dimension_numbers<[1], [0], [0], [1], [0, 0, 1, 1], [], []>} : vector<4x16xf32>, vector<16x16xf32>, vector<4x16xf32> -> vector<4x16xf32>
    %1182 = vector.broadcast %23 : vector<1x16xf32> to vector<4x16xf32>
    %1183 = arith.addf %1182, %1181 : vector<4x16xf32>
    %1184 = vector.extract_strided_slice %20 {offsets = [1, 0, 0], sizes = [1, 1, 16], strides = [1, 1, 1]} : vector<2x9x16xf32> to vector<1x1x16xf32>
    %1185 = vector.shape_cast %1184 : vector<1x1x16xf32> to vector<16xf32>
    %1186 = vector.shape_cast %1185 : vector<16xf32> to vector<1x16xf32>
    %1187 = vector.broadcast %1186 : vector<1x16xf32> to vector<4x16xf32>
    %1188 = arith.mulf %993, %1187 : vector<4x16xf32>
    %1189 = vector.extract_strided_slice %20 {offsets = [1, 1, 0], sizes = [1, 1, 16], strides = [1, 1, 1]} : vector<2x9x16xf32> to vector<1x1x16xf32>
    %1190 = vector.shape_cast %1189 : vector<1x1x16xf32> to vector<16xf32>
    %1191 = vector.shape_cast %1190 : vector<16xf32> to vector<1x16xf32>
    %1192 = vector.broadcast %1191 : vector<1x16xf32> to vector<4x16xf32>
    %1193 = arith.mulf %994, %1192 : vector<4x16xf32>
    %1194 = arith.addf %1188, %1193 : vector<4x16xf32>
    %1195 = vector.extract_strided_slice %20 {offsets = [1, 2, 0], sizes = [1, 1, 16], strides = [1, 1, 1]} : vector<2x9x16xf32> to vector<1x1x16xf32>
    %1196 = vector.shape_cast %1195 : vector<1x1x16xf32> to vector<16xf32>
    %1197 = vector.shape_cast %1196 : vector<16xf32> to vector<1x16xf32>
    %1198 = vector.broadcast %1197 : vector<1x16xf32> to vector<4x16xf32>
    %1199 = arith.mulf %995, %1198 : vector<4x16xf32>
    %1200 = arith.addf %1194, %1199 : vector<4x16xf32>
    %1201 = vector.extract_strided_slice %20 {offsets = [1, 3, 0], sizes = [1, 1, 16], strides = [1, 1, 1]} : vector<2x9x16xf32> to vector<1x1x16xf32>
    %1202 = vector.shape_cast %1201 : vector<1x1x16xf32> to vector<16xf32>
    %1203 = vector.shape_cast %1202 : vector<16xf32> to vector<1x16xf32>
    %1204 = vector.broadcast %1203 : vector<1x16xf32> to vector<4x16xf32>
    %1205 = arith.mulf %998, %1204 : vector<4x16xf32>
    %1206 = arith.addf %1200, %1205 : vector<4x16xf32>
    %1207 = vector.extract_strided_slice %20 {offsets = [1, 4, 0], sizes = [1, 1, 16], strides = [1, 1, 1]} : vector<2x9x16xf32> to vector<1x1x16xf32>
    %1208 = vector.shape_cast %1207 : vector<1x1x16xf32> to vector<16xf32>
    %1209 = vector.shape_cast %1208 : vector<16xf32> to vector<1x16xf32>
    %1210 = vector.broadcast %1209 : vector<1x16xf32> to vector<4x16xf32>
    %1211 = arith.mulf %999, %1210 : vector<4x16xf32>
    %1212 = arith.addf %1206, %1211 : vector<4x16xf32>
    %1213 = vector.extract_strided_slice %20 {offsets = [1, 5, 0], sizes = [1, 1, 16], strides = [1, 1, 1]} : vector<2x9x16xf32> to vector<1x1x16xf32>
    %1214 = vector.shape_cast %1213 : vector<1x1x16xf32> to vector<16xf32>
    %1215 = vector.shape_cast %1214 : vector<16xf32> to vector<1x16xf32>
    %1216 = vector.broadcast %1215 : vector<1x16xf32> to vector<4x16xf32>
    %1217 = arith.mulf %1000, %1216 : vector<4x16xf32>
    %1218 = arith.addf %1212, %1217 : vector<4x16xf32>
    %1219 = vector.extract_strided_slice %20 {offsets = [1, 6, 0], sizes = [1, 1, 16], strides = [1, 1, 1]} : vector<2x9x16xf32> to vector<1x1x16xf32>
    %1220 = vector.shape_cast %1219 : vector<1x1x16xf32> to vector<16xf32>
    %1221 = vector.shape_cast %1220 : vector<16xf32> to vector<1x16xf32>
    %1222 = vector.broadcast %1221 : vector<1x16xf32> to vector<4x16xf32>
    %1223 = arith.mulf %1003, %1222 : vector<4x16xf32>
    %1224 = arith.addf %1218, %1223 : vector<4x16xf32>
    %1225 = vector.extract_strided_slice %20 {offsets = [1, 7, 0], sizes = [1, 1, 16], strides = [1, 1, 1]} : vector<2x9x16xf32> to vector<1x1x16xf32>
    %1226 = vector.shape_cast %1225 : vector<1x1x16xf32> to vector<16xf32>
    %1227 = vector.shape_cast %1226 : vector<16xf32> to vector<1x16xf32>
    %1228 = vector.broadcast %1227 : vector<1x16xf32> to vector<4x16xf32>
    %1229 = arith.mulf %1004, %1228 : vector<4x16xf32>
    %1230 = arith.addf %1224, %1229 : vector<4x16xf32>
    %1231 = vector.extract_strided_slice %20 {offsets = [1, 8, 0], sizes = [1, 1, 16], strides = [1, 1, 1]} : vector<2x9x16xf32> to vector<1x1x16xf32>
    %1232 = vector.shape_cast %1231 : vector<1x1x16xf32> to vector<16xf32>
    %1233 = vector.shape_cast %1232 : vector<16xf32> to vector<1x16xf32>
    %1234 = vector.broadcast %1233 : vector<1x16xf32> to vector<4x16xf32>
    %1235 = arith.mulf %1005, %1234 : vector<4x16xf32>
    %1236 = arith.addf %1230, %1235 : vector<4x16xf32>
    %1237 = vector.extract_strided_slice %21 {offsets = [1, 0, 0], sizes = [1, 1, 16], strides = [1, 1, 1]} : vector<2x1x16xf32> to vector<1x1x16xf32>
    %1238 = vector.shape_cast %1237 : vector<1x1x16xf32> to vector<1x16xf32>
    %1239 = vector.broadcast %1238 : vector<1x16xf32> to vector<4x16xf32>
    %1240 = arith.addf %1236, %1239 : vector<4x16xf32>
    %cst_213 = arith.constant 5.000000e-01 : f32
    %1241 = vector.broadcast %cst_213 : f32 to vector<4x16xf32>
    %1242 = arith.mulf %1241, %1240 : vector<4x16xf32>
    %cst_214 = arith.constant 0.707106769 : f32
    %1243 = vector.broadcast %cst_214 : f32 to vector<4x16xf32>
    %1244 = arith.mulf %1240, %1243 : vector<4x16xf32>
    %1245 = math.erf %1244 : vector<4x16xf32>
    %cst_215 = arith.constant 1.000000e+00 : f32
    %1246 = vector.broadcast %cst_215 : f32 to vector<4x16xf32>
    %1247 = arith.addf %1246, %1245 : vector<4x16xf32>
    %1248 = arith.mulf %1242, %1247 : vector<4x16xf32>
    %1249 = vector.extract_strided_slice %22 {offsets = [1, 0, 0], sizes = [1, 16, 16], strides = [1, 1, 1]} : vector<2x16x16xf32> to vector<1x16x16xf32>
    %1250 = vector.shape_cast %1249 : vector<1x16x16xf32> to vector<16x16xf32>
    %cst_216 = arith.constant dense<0.000000e+00> : vector<4x16xf32>
    %1251 = tpu.matmul %1248, %1250, %cst_216 {dimension_numbers = #tpu.dot_dimension_numbers<[1], [0], [0], [1], [0, 0, 1, 1], [], []>} : vector<4x16xf32>, vector<16x16xf32>, vector<4x16xf32> -> vector<4x16xf32>
    %1252 = arith.addf %1183, %1251 : vector<4x16xf32>
    %1253 = vector.extract_strided_slice %20 {offsets = [0, 0, 0], sizes = [1, 1, 16], strides = [1, 1, 1]} : vector<2x9x16xf32> to vector<1x1x16xf32>
    %1254 = vector.shape_cast %1253 : vector<1x1x16xf32> to vector<16xf32>
    %1255 = vector.shape_cast %1254 : vector<16xf32> to vector<1x16xf32>
    %1256 = vector.broadcast %1255 : vector<1x16xf32> to vector<4x16xf32>
    %1257 = arith.mulf %998, %1256 : vector<4x16xf32>
    %1258 = vector.extract_strided_slice %20 {offsets = [0, 1, 0], sizes = [1, 1, 16], strides = [1, 1, 1]} : vector<2x9x16xf32> to vector<1x1x16xf32>
    %1259 = vector.shape_cast %1258 : vector<1x1x16xf32> to vector<16xf32>
    %1260 = vector.shape_cast %1259 : vector<16xf32> to vector<1x16xf32>
    %1261 = vector.broadcast %1260 : vector<1x16xf32> to vector<4x16xf32>
    %1262 = arith.mulf %999, %1261 : vector<4x16xf32>
    %1263 = arith.addf %1257, %1262 : vector<4x16xf32>
    %1264 = vector.extract_strided_slice %20 {offsets = [0, 2, 0], sizes = [1, 1, 16], strides = [1, 1, 1]} : vector<2x9x16xf32> to vector<1x1x16xf32>
    %1265 = vector.shape_cast %1264 : vector<1x1x16xf32> to vector<16xf32>
    %1266 = vector.shape_cast %1265 : vector<16xf32> to vector<1x16xf32>
    %1267 = vector.broadcast %1266 : vector<1x16xf32> to vector<4x16xf32>
    %1268 = arith.mulf %1000, %1267 : vector<4x16xf32>
    %1269 = arith.addf %1263, %1268 : vector<4x16xf32>
    %1270 = vector.extract_strided_slice %20 {offsets = [0, 3, 0], sizes = [1, 1, 16], strides = [1, 1, 1]} : vector<2x9x16xf32> to vector<1x1x16xf32>
    %1271 = vector.shape_cast %1270 : vector<1x1x16xf32> to vector<16xf32>
    %1272 = vector.shape_cast %1271 : vector<16xf32> to vector<1x16xf32>
    %1273 = vector.broadcast %1272 : vector<1x16xf32> to vector<4x16xf32>
    %1274 = arith.mulf %1003, %1273 : vector<4x16xf32>
    %1275 = arith.addf %1269, %1274 : vector<4x16xf32>
    %1276 = vector.extract_strided_slice %20 {offsets = [0, 4, 0], sizes = [1, 1, 16], strides = [1, 1, 1]} : vector<2x9x16xf32> to vector<1x1x16xf32>
    %1277 = vector.shape_cast %1276 : vector<1x1x16xf32> to vector<16xf32>
    %1278 = vector.shape_cast %1277 : vector<16xf32> to vector<1x16xf32>
    %1279 = vector.broadcast %1278 : vector<1x16xf32> to vector<4x16xf32>
    %1280 = arith.mulf %1004, %1279 : vector<4x16xf32>
    %1281 = arith.addf %1275, %1280 : vector<4x16xf32>
    %1282 = vector.extract_strided_slice %20 {offsets = [0, 5, 0], sizes = [1, 1, 16], strides = [1, 1, 1]} : vector<2x9x16xf32> to vector<1x1x16xf32>
    %1283 = vector.shape_cast %1282 : vector<1x1x16xf32> to vector<16xf32>
    %1284 = vector.shape_cast %1283 : vector<16xf32> to vector<1x16xf32>
    %1285 = vector.broadcast %1284 : vector<1x16xf32> to vector<4x16xf32>
    %1286 = arith.mulf %1005, %1285 : vector<4x16xf32>
    %1287 = arith.addf %1281, %1286 : vector<4x16xf32>
    %1288 = vector.extract_strided_slice %20 {offsets = [0, 6, 0], sizes = [1, 1, 16], strides = [1, 1, 1]} : vector<2x9x16xf32> to vector<1x1x16xf32>
    %1289 = vector.shape_cast %1288 : vector<1x1x16xf32> to vector<16xf32>
    %1290 = vector.shape_cast %1289 : vector<16xf32> to vector<1x16xf32>
    %1291 = vector.broadcast %1290 : vector<1x16xf32> to vector<4x16xf32>
    %1292 = arith.mulf %1008, %1291 : vector<4x16xf32>
    %1293 = arith.addf %1287, %1292 : vector<4x16xf32>
    %1294 = vector.extract_strided_slice %20 {offsets = [0, 7, 0], sizes = [1, 1, 16], strides = [1, 1, 1]} : vector<2x9x16xf32> to vector<1x1x16xf32>
    %1295 = vector.shape_cast %1294 : vector<1x1x16xf32> to vector<16xf32>
    %1296 = vector.shape_cast %1295 : vector<16xf32> to vector<1x16xf32>
    %1297 = vector.broadcast %1296 : vector<1x16xf32> to vector<4x16xf32>
    %1298 = arith.mulf %1009, %1297 : vector<4x16xf32>
    %1299 = arith.addf %1293, %1298 : vector<4x16xf32>
    %1300 = vector.extract_strided_slice %20 {offsets = [0, 8, 0], sizes = [1, 1, 16], strides = [1, 1, 1]} : vector<2x9x16xf32> to vector<1x1x16xf32>
    %1301 = vector.shape_cast %1300 : vector<1x1x16xf32> to vector<16xf32>
    %1302 = vector.shape_cast %1301 : vector<16xf32> to vector<1x16xf32>
    %1303 = vector.broadcast %1302 : vector<1x16xf32> to vector<4x16xf32>
    %1304 = arith.mulf %1010, %1303 : vector<4x16xf32>
    %1305 = arith.addf %1299, %1304 : vector<4x16xf32>
    %1306 = vector.extract_strided_slice %21 {offsets = [0, 0, 0], sizes = [1, 1, 16], strides = [1, 1, 1]} : vector<2x1x16xf32> to vector<1x1x16xf32>
    %1307 = vector.shape_cast %1306 : vector<1x1x16xf32> to vector<1x16xf32>
    %1308 = vector.broadcast %1307 : vector<1x16xf32> to vector<4x16xf32>
    %1309 = arith.addf %1305, %1308 : vector<4x16xf32>
    %cst_217 = arith.constant 5.000000e-01 : f32
    %1310 = vector.broadcast %cst_217 : f32 to vector<4x16xf32>
    %1311 = arith.mulf %1310, %1309 : vector<4x16xf32>
    %cst_218 = arith.constant 0.707106769 : f32
    %1312 = vector.broadcast %cst_218 : f32 to vector<4x16xf32>
    %1313 = arith.mulf %1309, %1312 : vector<4x16xf32>
    %1314 = math.erf %1313 : vector<4x16xf32>
    %cst_219 = arith.constant 1.000000e+00 : f32
    %1315 = vector.broadcast %cst_219 : f32 to vector<4x16xf32>
    %1316 = arith.addf %1315, %1314 : vector<4x16xf32>
    %1317 = arith.mulf %1311, %1316 : vector<4x16xf32>
    %1318 = vector.extract_strided_slice %22 {offsets = [0, 0, 0], sizes = [1, 16, 16], strides = [1, 1, 1]} : vector<2x16x16xf32> to vector<1x16x16xf32>
    %1319 = vector.shape_cast %1318 : vector<1x16x16xf32> to vector<16x16xf32>
    %cst_220 = arith.constant dense<0.000000e+00> : vector<4x16xf32>
    %1320 = tpu.matmul %1317, %1319, %cst_220 {dimension_numbers = #tpu.dot_dimension_numbers<[1], [0], [0], [1], [0, 0, 1, 1], [], []>} : vector<4x16xf32>, vector<16x16xf32>, vector<4x16xf32> -> vector<4x16xf32>
    %1321 = vector.broadcast %23 : vector<1x16xf32> to vector<4x16xf32>
    %1322 = arith.addf %1321, %1320 : vector<4x16xf32>
    %1323 = vector.extract_strided_slice %20 {offsets = [1, 0, 0], sizes = [1, 1, 16], strides = [1, 1, 1]} : vector<2x9x16xf32> to vector<1x1x16xf32>
    %1324 = vector.shape_cast %1323 : vector<1x1x16xf32> to vector<16xf32>
    %1325 = vector.shape_cast %1324 : vector<16xf32> to vector<1x16xf32>
    %1326 = vector.broadcast %1325 : vector<1x16xf32> to vector<4x16xf32>
    %1327 = arith.mulf %998, %1326 : vector<4x16xf32>
    %1328 = vector.extract_strided_slice %20 {offsets = [1, 1, 0], sizes = [1, 1, 16], strides = [1, 1, 1]} : vector<2x9x16xf32> to vector<1x1x16xf32>
    %1329 = vector.shape_cast %1328 : vector<1x1x16xf32> to vector<16xf32>
    %1330 = vector.shape_cast %1329 : vector<16xf32> to vector<1x16xf32>
    %1331 = vector.broadcast %1330 : vector<1x16xf32> to vector<4x16xf32>
    %1332 = arith.mulf %999, %1331 : vector<4x16xf32>
    %1333 = arith.addf %1327, %1332 : vector<4x16xf32>
    %1334 = vector.extract_strided_slice %20 {offsets = [1, 2, 0], sizes = [1, 1, 16], strides = [1, 1, 1]} : vector<2x9x16xf32> to vector<1x1x16xf32>
    %1335 = vector.shape_cast %1334 : vector<1x1x16xf32> to vector<16xf32>
    %1336 = vector.shape_cast %1335 : vector<16xf32> to vector<1x16xf32>
    %1337 = vector.broadcast %1336 : vector<1x16xf32> to vector<4x16xf32>
    %1338 = arith.mulf %1000, %1337 : vector<4x16xf32>
    %1339 = arith.addf %1333, %1338 : vector<4x16xf32>
    %1340 = vector.extract_strided_slice %20 {offsets = [1, 3, 0], sizes = [1, 1, 16], strides = [1, 1, 1]} : vector<2x9x16xf32> to vector<1x1x16xf32>
    %1341 = vector.shape_cast %1340 : vector<1x1x16xf32> to vector<16xf32>
    %1342 = vector.shape_cast %1341 : vector<16xf32> to vector<1x16xf32>
    %1343 = vector.broadcast %1342 : vector<1x16xf32> to vector<4x16xf32>
    %1344 = arith.mulf %1003, %1343 : vector<4x16xf32>
    %1345 = arith.addf %1339, %1344 : vector<4x16xf32>
    %1346 = vector.extract_strided_slice %20 {offsets = [1, 4, 0], sizes = [1, 1, 16], strides = [1, 1, 1]} : vector<2x9x16xf32> to vector<1x1x16xf32>
    %1347 = vector.shape_cast %1346 : vector<1x1x16xf32> to vector<16xf32>
    %1348 = vector.shape_cast %1347 : vector<16xf32> to vector<1x16xf32>
    %1349 = vector.broadcast %1348 : vector<1x16xf32> to vector<4x16xf32>
    %1350 = arith.mulf %1004, %1349 : vector<4x16xf32>
    %1351 = arith.addf %1345, %1350 : vector<4x16xf32>
    %1352 = vector.extract_strided_slice %20 {offsets = [1, 5, 0], sizes = [1, 1, 16], strides = [1, 1, 1]} : vector<2x9x16xf32> to vector<1x1x16xf32>
    %1353 = vector.shape_cast %1352 : vector<1x1x16xf32> to vector<16xf32>
    %1354 = vector.shape_cast %1353 : vector<16xf32> to vector<1x16xf32>
    %1355 = vector.broadcast %1354 : vector<1x16xf32> to vector<4x16xf32>
    %1356 = arith.mulf %1005, %1355 : vector<4x16xf32>
    %1357 = arith.addf %1351, %1356 : vector<4x16xf32>
    %1358 = vector.extract_strided_slice %20 {offsets = [1, 6, 0], sizes = [1, 1, 16], strides = [1, 1, 1]} : vector<2x9x16xf32> to vector<1x1x16xf32>
    %1359 = vector.shape_cast %1358 : vector<1x1x16xf32> to vector<16xf32>
    %1360 = vector.shape_cast %1359 : vector<16xf32> to vector<1x16xf32>
    %1361 = vector.broadcast %1360 : vector<1x16xf32> to vector<4x16xf32>
    %1362 = arith.mulf %1008, %1361 : vector<4x16xf32>
    %1363 = arith.addf %1357, %1362 : vector<4x16xf32>
    %1364 = vector.extract_strided_slice %20 {offsets = [1, 7, 0], sizes = [1, 1, 16], strides = [1, 1, 1]} : vector<2x9x16xf32> to vector<1x1x16xf32>
    %1365 = vector.shape_cast %1364 : vector<1x1x16xf32> to vector<16xf32>
    %1366 = vector.shape_cast %1365 : vector<16xf32> to vector<1x16xf32>
    %1367 = vector.broadcast %1366 : vector<1x16xf32> to vector<4x16xf32>
    %1368 = arith.mulf %1009, %1367 : vector<4x16xf32>
    %1369 = arith.addf %1363, %1368 : vector<4x16xf32>
    %1370 = vector.extract_strided_slice %20 {offsets = [1, 8, 0], sizes = [1, 1, 16], strides = [1, 1, 1]} : vector<2x9x16xf32> to vector<1x1x16xf32>
    %1371 = vector.shape_cast %1370 : vector<1x1x16xf32> to vector<16xf32>
    %1372 = vector.shape_cast %1371 : vector<16xf32> to vector<1x16xf32>
    %1373 = vector.broadcast %1372 : vector<1x16xf32> to vector<4x16xf32>
    %1374 = arith.mulf %1010, %1373 : vector<4x16xf32>
    %1375 = arith.addf %1369, %1374 : vector<4x16xf32>
    %1376 = vector.extract_strided_slice %21 {offsets = [1, 0, 0], sizes = [1, 1, 16], strides = [1, 1, 1]} : vector<2x1x16xf32> to vector<1x1x16xf32>
    %1377 = vector.shape_cast %1376 : vector<1x1x16xf32> to vector<1x16xf32>
    %1378 = vector.broadcast %1377 : vector<1x16xf32> to vector<4x16xf32>
    %1379 = arith.addf %1375, %1378 : vector<4x16xf32>
    %cst_221 = arith.constant 5.000000e-01 : f32
    %1380 = vector.broadcast %cst_221 : f32 to vector<4x16xf32>
    %1381 = arith.mulf %1380, %1379 : vector<4x16xf32>
    %cst_222 = arith.constant 0.707106769 : f32
    %1382 = vector.broadcast %cst_222 : f32 to vector<4x16xf32>
    %1383 = arith.mulf %1379, %1382 : vector<4x16xf32>
    %1384 = math.erf %1383 : vector<4x16xf32>
    %cst_223 = arith.constant 1.000000e+00 : f32
    %1385 = vector.broadcast %cst_223 : f32 to vector<4x16xf32>
    %1386 = arith.addf %1385, %1384 : vector<4x16xf32>
    %1387 = arith.mulf %1381, %1386 : vector<4x16xf32>
    %1388 = vector.extract_strided_slice %22 {offsets = [1, 0, 0], sizes = [1, 16, 16], strides = [1, 1, 1]} : vector<2x16x16xf32> to vector<1x16x16xf32>
    %1389 = vector.shape_cast %1388 : vector<1x16x16xf32> to vector<16x16xf32>
    %cst_224 = arith.constant dense<0.000000e+00> : vector<4x16xf32>
    %1390 = tpu.matmul %1387, %1389, %cst_224 {dimension_numbers = #tpu.dot_dimension_numbers<[1], [0], [0], [1], [0, 0, 1, 1], [], []>} : vector<4x16xf32>, vector<16x16xf32>, vector<4x16xf32> -> vector<4x16xf32>
    %1391 = arith.addf %1322, %1390 : vector<4x16xf32>
    %1392 = vector.extract_strided_slice %20 {offsets = [0, 0, 0], sizes = [1, 1, 16], strides = [1, 1, 1]} : vector<2x9x16xf32> to vector<1x1x16xf32>
    %1393 = vector.shape_cast %1392 : vector<1x1x16xf32> to vector<16xf32>
    %1394 = vector.shape_cast %1393 : vector<16xf32> to vector<1x16xf32>
    %1395 = vector.broadcast %1394 : vector<1x16xf32> to vector<4x16xf32>
    %1396 = arith.mulf %1003, %1395 : vector<4x16xf32>
    %1397 = vector.extract_strided_slice %20 {offsets = [0, 1, 0], sizes = [1, 1, 16], strides = [1, 1, 1]} : vector<2x9x16xf32> to vector<1x1x16xf32>
    %1398 = vector.shape_cast %1397 : vector<1x1x16xf32> to vector<16xf32>
    %1399 = vector.shape_cast %1398 : vector<16xf32> to vector<1x16xf32>
    %1400 = vector.broadcast %1399 : vector<1x16xf32> to vector<4x16xf32>
    %1401 = arith.mulf %1004, %1400 : vector<4x16xf32>
    %1402 = arith.addf %1396, %1401 : vector<4x16xf32>
    %1403 = vector.extract_strided_slice %20 {offsets = [0, 2, 0], sizes = [1, 1, 16], strides = [1, 1, 1]} : vector<2x9x16xf32> to vector<1x1x16xf32>
    %1404 = vector.shape_cast %1403 : vector<1x1x16xf32> to vector<16xf32>
    %1405 = vector.shape_cast %1404 : vector<16xf32> to vector<1x16xf32>
    %1406 = vector.broadcast %1405 : vector<1x16xf32> to vector<4x16xf32>
    %1407 = arith.mulf %1005, %1406 : vector<4x16xf32>
    %1408 = arith.addf %1402, %1407 : vector<4x16xf32>
    %1409 = vector.extract_strided_slice %20 {offsets = [0, 3, 0], sizes = [1, 1, 16], strides = [1, 1, 1]} : vector<2x9x16xf32> to vector<1x1x16xf32>
    %1410 = vector.shape_cast %1409 : vector<1x1x16xf32> to vector<16xf32>
    %1411 = vector.shape_cast %1410 : vector<16xf32> to vector<1x16xf32>
    %1412 = vector.broadcast %1411 : vector<1x16xf32> to vector<4x16xf32>
    %1413 = arith.mulf %1008, %1412 : vector<4x16xf32>
    %1414 = arith.addf %1408, %1413 : vector<4x16xf32>
    %1415 = vector.extract_strided_slice %20 {offsets = [0, 4, 0], sizes = [1, 1, 16], strides = [1, 1, 1]} : vector<2x9x16xf32> to vector<1x1x16xf32>
    %1416 = vector.shape_cast %1415 : vector<1x1x16xf32> to vector<16xf32>
    %1417 = vector.shape_cast %1416 : vector<16xf32> to vector<1x16xf32>
    %1418 = vector.broadcast %1417 : vector<1x16xf32> to vector<4x16xf32>
    %1419 = arith.mulf %1009, %1418 : vector<4x16xf32>
    %1420 = arith.addf %1414, %1419 : vector<4x16xf32>
    %1421 = vector.extract_strided_slice %20 {offsets = [0, 5, 0], sizes = [1, 1, 16], strides = [1, 1, 1]} : vector<2x9x16xf32> to vector<1x1x16xf32>
    %1422 = vector.shape_cast %1421 : vector<1x1x16xf32> to vector<16xf32>
    %1423 = vector.shape_cast %1422 : vector<16xf32> to vector<1x16xf32>
    %1424 = vector.broadcast %1423 : vector<1x16xf32> to vector<4x16xf32>
    %1425 = arith.mulf %1010, %1424 : vector<4x16xf32>
    %1426 = arith.addf %1420, %1425 : vector<4x16xf32>
    %1427 = vector.extract_strided_slice %21 {offsets = [0, 0, 0], sizes = [1, 1, 16], strides = [1, 1, 1]} : vector<2x1x16xf32> to vector<1x1x16xf32>
    %1428 = vector.shape_cast %1427 : vector<1x1x16xf32> to vector<1x16xf32>
    %1429 = vector.broadcast %1428 : vector<1x16xf32> to vector<4x16xf32>
    %1430 = arith.addf %1426, %1429 : vector<4x16xf32>
    %cst_225 = arith.constant 5.000000e-01 : f32
    %1431 = vector.broadcast %cst_225 : f32 to vector<4x16xf32>
    %1432 = arith.mulf %1431, %1430 : vector<4x16xf32>
    %cst_226 = arith.constant 0.707106769 : f32
    %1433 = vector.broadcast %cst_226 : f32 to vector<4x16xf32>
    %1434 = arith.mulf %1430, %1433 : vector<4x16xf32>
    %1435 = math.erf %1434 : vector<4x16xf32>
    %cst_227 = arith.constant 1.000000e+00 : f32
    %1436 = vector.broadcast %cst_227 : f32 to vector<4x16xf32>
    %1437 = arith.addf %1436, %1435 : vector<4x16xf32>
    %1438 = arith.mulf %1432, %1437 : vector<4x16xf32>
    %1439 = vector.extract_strided_slice %22 {offsets = [0, 0, 0], sizes = [1, 16, 16], strides = [1, 1, 1]} : vector<2x16x16xf32> to vector<1x16x16xf32>
    %1440 = vector.shape_cast %1439 : vector<1x16x16xf32> to vector<16x16xf32>
    %cst_228 = arith.constant dense<0.000000e+00> : vector<4x16xf32>
    %1441 = tpu.matmul %1438, %1440, %cst_228 {dimension_numbers = #tpu.dot_dimension_numbers<[1], [0], [0], [1], [0, 0, 1, 1], [], []>} : vector<4x16xf32>, vector<16x16xf32>, vector<4x16xf32> -> vector<4x16xf32>
    %1442 = vector.broadcast %23 : vector<1x16xf32> to vector<4x16xf32>
    %1443 = arith.addf %1442, %1441 : vector<4x16xf32>
    %1444 = vector.extract_strided_slice %20 {offsets = [1, 0, 0], sizes = [1, 1, 16], strides = [1, 1, 1]} : vector<2x9x16xf32> to vector<1x1x16xf32>
    %1445 = vector.shape_cast %1444 : vector<1x1x16xf32> to vector<16xf32>
    %1446 = vector.shape_cast %1445 : vector<16xf32> to vector<1x16xf32>
    %1447 = vector.broadcast %1446 : vector<1x16xf32> to vector<4x16xf32>
    %1448 = arith.mulf %1003, %1447 : vector<4x16xf32>
    %1449 = vector.extract_strided_slice %20 {offsets = [1, 1, 0], sizes = [1, 1, 16], strides = [1, 1, 1]} : vector<2x9x16xf32> to vector<1x1x16xf32>
    %1450 = vector.shape_cast %1449 : vector<1x1x16xf32> to vector<16xf32>
    %1451 = vector.shape_cast %1450 : vector<16xf32> to vector<1x16xf32>
    %1452 = vector.broadcast %1451 : vector<1x16xf32> to vector<4x16xf32>
    %1453 = arith.mulf %1004, %1452 : vector<4x16xf32>
    %1454 = arith.addf %1448, %1453 : vector<4x16xf32>
    %1455 = vector.extract_strided_slice %20 {offsets = [1, 2, 0], sizes = [1, 1, 16], strides = [1, 1, 1]} : vector<2x9x16xf32> to vector<1x1x16xf32>
    %1456 = vector.shape_cast %1455 : vector<1x1x16xf32> to vector<16xf32>
    %1457 = vector.shape_cast %1456 : vector<16xf32> to vector<1x16xf32>
    %1458 = vector.broadcast %1457 : vector<1x16xf32> to vector<4x16xf32>
    %1459 = arith.mulf %1005, %1458 : vector<4x16xf32>
    %1460 = arith.addf %1454, %1459 : vector<4x16xf32>
    %1461 = vector.extract_strided_slice %20 {offsets = [1, 3, 0], sizes = [1, 1, 16], strides = [1, 1, 1]} : vector<2x9x16xf32> to vector<1x1x16xf32>
    %1462 = vector.shape_cast %1461 : vector<1x1x16xf32> to vector<16xf32>
    %1463 = vector.shape_cast %1462 : vector<16xf32> to vector<1x16xf32>
    %1464 = vector.broadcast %1463 : vector<1x16xf32> to vector<4x16xf32>
    %1465 = arith.mulf %1008, %1464 : vector<4x16xf32>
    %1466 = arith.addf %1460, %1465 : vector<4x16xf32>
    %1467 = vector.extract_strided_slice %20 {offsets = [1, 4, 0], sizes = [1, 1, 16], strides = [1, 1, 1]} : vector<2x9x16xf32> to vector<1x1x16xf32>
    %1468 = vector.shape_cast %1467 : vector<1x1x16xf32> to vector<16xf32>
    %1469 = vector.shape_cast %1468 : vector<16xf32> to vector<1x16xf32>
    %1470 = vector.broadcast %1469 : vector<1x16xf32> to vector<4x16xf32>
    %1471 = arith.mulf %1009, %1470 : vector<4x16xf32>
    %1472 = arith.addf %1466, %1471 : vector<4x16xf32>
    %1473 = vector.extract_strided_slice %20 {offsets = [1, 5, 0], sizes = [1, 1, 16], strides = [1, 1, 1]} : vector<2x9x16xf32> to vector<1x1x16xf32>
    %1474 = vector.shape_cast %1473 : vector<1x1x16xf32> to vector<16xf32>
    %1475 = vector.shape_cast %1474 : vector<16xf32> to vector<1x16xf32>
    %1476 = vector.broadcast %1475 : vector<1x16xf32> to vector<4x16xf32>
    %1477 = arith.mulf %1010, %1476 : vector<4x16xf32>
    %1478 = arith.addf %1472, %1477 : vector<4x16xf32>
    %1479 = vector.extract_strided_slice %21 {offsets = [1, 0, 0], sizes = [1, 1, 16], strides = [1, 1, 1]} : vector<2x1x16xf32> to vector<1x1x16xf32>
    %1480 = vector.shape_cast %1479 : vector<1x1x16xf32> to vector<1x16xf32>
    %1481 = vector.broadcast %1480 : vector<1x16xf32> to vector<4x16xf32>
    %1482 = arith.addf %1478, %1481 : vector<4x16xf32>
    %cst_229 = arith.constant 5.000000e-01 : f32
    %1483 = vector.broadcast %cst_229 : f32 to vector<4x16xf32>
    %1484 = arith.mulf %1483, %1482 : vector<4x16xf32>
    %cst_230 = arith.constant 0.707106769 : f32
    %1485 = vector.broadcast %cst_230 : f32 to vector<4x16xf32>
    %1486 = arith.mulf %1482, %1485 : vector<4x16xf32>
    %1487 = math.erf %1486 : vector<4x16xf32>
    %cst_231 = arith.constant 1.000000e+00 : f32
    %1488 = vector.broadcast %cst_231 : f32 to vector<4x16xf32>
    %1489 = arith.addf %1488, %1487 : vector<4x16xf32>
    %1490 = arith.mulf %1484, %1489 : vector<4x16xf32>
    %1491 = vector.extract_strided_slice %22 {offsets = [1, 0, 0], sizes = [1, 16, 16], strides = [1, 1, 1]} : vector<2x16x16xf32> to vector<1x16x16xf32>
    %1492 = vector.shape_cast %1491 : vector<1x16x16xf32> to vector<16x16xf32>
    %cst_232 = arith.constant dense<0.000000e+00> : vector<4x16xf32>
    %1493 = tpu.matmul %1490, %1492, %cst_232 {dimension_numbers = #tpu.dot_dimension_numbers<[1], [0], [0], [1], [0, 0, 1, 1], [], []>} : vector<4x16xf32>, vector<16x16xf32>, vector<4x16xf32> -> vector<4x16xf32>
    %1494 = arith.addf %1443, %1493 : vector<4x16xf32>
    %1495 = tpu.concatenate %1113, %1252, %1391, %1494 in 0 : vector<4x16xf32>, vector<4x16xf32>, vector<4x16xf32>, vector<4x16xf32> -> vector<16x16xf32>
    %1496 = arith.addf %964, %1495 : vector<16x16xf32>
    %c0_233 = arith.constant 0 : index
    %c0_234 = arith.constant 0 : index
    %1497 = vector.load %arg24[%c0_233, %c0_234] : memref<1x16xf32, #tpu.memory_space<vmem>>, vector<1x16xf32>
    %c0_235 = arith.constant 0 : index
    %c0_236 = arith.constant 0 : index
    %1498 = vector.load %arg25[%c0_235, %c0_236] : memref<1x16xf32, #tpu.memory_space<vmem>>, vector<1x16xf32>
    %cst_237 = arith.constant dense<0.000000e+00> : vector<16xf32>
    %1499 = vector.multi_reduction <add>, %1496, %cst_237 [1] : vector<16x16xf32> to vector<16xf32>
    %1500 = vector.shape_cast %1499 : vector<16xf32> to vector<16x1xf32>
    %cst_238 = arith.constant 1.600000e+01 : f32
    %1501 = vector.broadcast %cst_238 : f32 to vector<16x1xf32>
    %1502 = arith.divf %1500, %1501 : vector<16x1xf32>
    %1503 = vector.broadcast %1502 : vector<16x1xf32> to vector<16x16xf32>
    %1504 = arith.subf %1496, %1503 : vector<16x16xf32>
    %1505 = arith.mulf %1504, %1504 : vector<16x16xf32>
    %cst_239 = arith.constant dense<0.000000e+00> : vector<16xf32>
    %1506 = vector.multi_reduction <add>, %1505, %cst_239 [1] : vector<16x16xf32> to vector<16xf32>
    %1507 = vector.shape_cast %1506 : vector<16xf32> to vector<16x1xf32>
    %cst_240 = arith.constant 1.600000e+01 : f32
    %1508 = vector.broadcast %cst_240 : f32 to vector<16x1xf32>
    %1509 = arith.divf %1507, %1508 : vector<16x1xf32>
    %1510 = vector.broadcast %1502 : vector<16x1xf32> to vector<16x16xf32>
    %1511 = arith.subf %1496, %1510 : vector<16x16xf32>
    %cst_241 = arith.constant 9.99999974E-6 : f32
    %1512 = vector.broadcast %cst_241 : f32 to vector<16x1xf32>
    %1513 = arith.addf %1509, %1512 : vector<16x1xf32>
    %1514 = math.rsqrt %1513 : vector<16x1xf32>
    %1515 = vector.broadcast %1514 : vector<16x1xf32> to vector<16x16xf32>
    %1516 = arith.mulf %1511, %1515 : vector<16x16xf32>
    %1517 = vector.broadcast %1497 : vector<1x16xf32> to vector<16x16xf32>
    %1518 = arith.mulf %1516, %1517 : vector<16x16xf32>
    %1519 = vector.broadcast %1498 : vector<1x16xf32> to vector<16x16xf32>
    %1520 = arith.addf %1518, %1519 : vector<16x16xf32>
    %c16 = arith.constant 16 : index
    %c0_242 = arith.constant 0 : index
    %1521 = vector.load %arg26[%c16, %c0_242] : memref<32x16xf32, #tpu.memory_space<vmem>>, vector<16x16xf32>
    tpu.vector_store %arg26[%c16, %c0_242], %1520 {strides = array<i32>} : memref<32x16xf32, #tpu.memory_space<vmem>>, vector<16x16xf32>,
    return
  }
}

module attributes {stable_mosaic.version = 11 : i64} {
  func.func @_patch_embed_kernel(%arg0: memref<8x144xf32, #tpu.memory_space<vmem>>, %arg1: memref<144x32xf32, #tpu.memory_space<vmem>>, %arg2: memref<1x32xf32, #tpu.memory_space<vmem>>, %arg3: memref<1x32xf32, #tpu.memory_space<vmem>>, %arg4: memref<8x32xf32, #tpu.memory_space<vmem>>) attributes {dimension_semantics = [], scalar_prefetch = 0 : i64, scratch_operands = 0 : i64, tpu.core_type = #tpu.core_type<tc>} {
    %c0 = arith.constant 0 : index
    %c0_0 = arith.constant 0 : index
    %0 = vector.load %arg0[%c0, %c0_0] : memref<8x144xf32, #tpu.memory_space<vmem>>, vector<8x144xf32>
    %c0_1 = arith.constant 0 : index
    %c0_2 = arith.constant 0 : index
    %1 = vector.load %arg1[%c0_1, %c0_2] : memref<144x32xf32, #tpu.memory_space<vmem>>, vector<144x32xf32>
    %cst = arith.constant dense<0.000000e+00> : vector<8x32xf32>
    %2 = tpu.matmul %0, %1, %cst {dimension_numbers = #tpu.dot_dimension_numbers<[1], [0], [0], [1], [0, 0, 1, 1], [], []>} : vector<8x144xf32>, vector<144x32xf32>, vector<8x32xf32> -> vector<8x32xf32>
    %c0_3 = arith.constant 0 : index
    %c0_4 = arith.constant 0 : index
    %3 = vector.load %arg2[%c0_3, %c0_4] : memref<1x32xf32, #tpu.memory_space<vmem>>, vector<1x32xf32>
    %c0_5 = arith.constant 0 : index
    %c0_6 = arith.constant 0 : index
    %4 = vector.load %arg3[%c0_5, %c0_6] : memref<1x32xf32, #tpu.memory_space<vmem>>, vector<1x32xf32>
    %cst_7 = arith.constant dense<0.000000e+00> : vector<8xf32>
    %5 = vector.multi_reduction <add>, %2, %cst_7 [1] : vector<8x32xf32> to vector<8xf32>
    %6 = vector.shape_cast %5 : vector<8xf32> to vector<8x1xf32>
    %cst_8 = arith.constant 3.200000e+01 : f32
    %7 = vector.broadcast %cst_8 : f32 to vector<8x1xf32>
    %8 = arith.divf %6, %7 : vector<8x1xf32>
    %9 = vector.broadcast %8 : vector<8x1xf32> to vector<8x32xf32>
    %10 = arith.subf %2, %9 : vector<8x32xf32>
    %11 = arith.mulf %10, %10 : vector<8x32xf32>
    %cst_9 = arith.constant dense<0.000000e+00> : vector<8xf32>
    %12 = vector.multi_reduction <add>, %11, %cst_9 [1] : vector<8x32xf32> to vector<8xf32>
    %13 = vector.shape_cast %12 : vector<8xf32> to vector<8x1xf32>
    %cst_10 = arith.constant 3.200000e+01 : f32
    %14 = vector.broadcast %cst_10 : f32 to vector<8x1xf32>
    %15 = arith.divf %13, %14 : vector<8x1xf32>
    %16 = vector.broadcast %8 : vector<8x1xf32> to vector<8x32xf32>
    %17 = arith.subf %2, %16 : vector<8x32xf32>
    %cst_11 = arith.constant 9.99999974E-6 : f32
    %18 = vector.broadcast %cst_11 : f32 to vector<8x1xf32>
    %19 = arith.addf %15, %18 : vector<8x1xf32>
    %20 = math.rsqrt %19 : vector<8x1xf32>
    %21 = vector.broadcast %20 : vector<8x1xf32> to vector<8x32xf32>
    %22 = arith.mulf %17, %21 : vector<8x32xf32>
    %23 = vector.broadcast %3 : vector<1x32xf32> to vector<8x32xf32>
    %24 = arith.mulf %22, %23 : vector<8x32xf32>
    %25 = vector.broadcast %4 : vector<1x32xf32> to vector<8x32xf32>
    %26 = arith.addf %24, %25 : vector<8x32xf32>
    %c0_12 = arith.constant 0 : index
    %c0_13 = arith.constant 0 : index
    %27 = vector.load %arg4[%c0_12, %c0_13] : memref<8x32xf32, #tpu.memory_space<vmem>>, vector<8x32xf32>
    tpu.vector_store %arg4[%c0_12, %c0_13], %26 {strides = array<i32>} : memref<8x32xf32, #tpu.memory_space<vmem>>, vector<8x32xf32>,
    return
  }
}

module attributes {stable_mosaic.version = 11 : i64} {
  func.func @_encoder_block_kernel(%arg0: memref<8x32xf32, #tpu.memory_space<vmem>>, %arg1: memref<1x8x32xf32, #tpu.memory_space<vmem>>, %arg2: memref<1x32xf32, #tpu.memory_space<vmem>>, %arg3: memref<1x32xf32, #tpu.memory_space<vmem>>, %arg4: memref<1x32x32xf32, #tpu.memory_space<vmem>>, %arg5: memref<1x32xf32, #tpu.memory_space<vmem>>, %arg6: memref<1x32xf32, #tpu.memory_space<vmem>>, %arg7: memref<1x32xf32, #tpu.memory_space<vmem>>, %arg8: memref<2x32x16xf32, #tpu.memory_space<vmem>>, %arg9: memref<2x1x16xf32, #tpu.memory_space<vmem>>, %arg10: memref<2x32x16xf32, #tpu.memory_space<vmem>>, %arg11: memref<2x1x16xf32, #tpu.memory_space<vmem>>, %arg12: memref<2x32x16xf32, #tpu.memory_space<vmem>>, %arg13: memref<2x1x16xf32, #tpu.memory_space<vmem>>, %arg14: memref<2x16x32xf32, #tpu.memory_space<vmem>>, %arg15: memref<1x32xf32, #tpu.memory_space<vmem>>, %arg16: memref<1x32xf32, #tpu.memory_space<vmem>>, %arg17: memref<1x32xf32, #tpu.memory_space<vmem>>, %arg18: memref<32x32xf32, #tpu.memory_space<vmem>>, %arg19: memref<1x32xf32, #tpu.memory_space<vmem>>, %arg20: memref<2x9x32xf32, #tpu.memory_space<vmem>>, %arg21: memref<2x1x32xf32, #tpu.memory_space<vmem>>, %arg22: memref<2x32x32xf32, #tpu.memory_space<vmem>>, %arg23: memref<1x32xf32, #tpu.memory_space<vmem>>, %arg24: memref<1x32xf32, #tpu.memory_space<vmem>>, %arg25: memref<1x32xf32, #tpu.memory_space<vmem>>, %arg26: memref<8x32xf32, #tpu.memory_space<vmem>>) attributes {dimension_semantics = [], scalar_prefetch = 0 : i64, scratch_operands = 0 : i64, tpu.core_type = #tpu.core_type<tc>} {
    %c0 = arith.constant 0 : index
    %c0_0 = arith.constant 0 : index
    %0 = vector.load %arg0[%c0, %c0_0] : memref<8x32xf32, #tpu.memory_space<vmem>>, vector<8x32xf32>
    %c0_1 = arith.constant 0 : index
    %c0_2 = arith.constant 0 : index
    %c0_3 = arith.constant 0 : index
    %1 = vector.load %arg1[%c0_1, %c0_2, %c0_3] : memref<1x8x32xf32, #tpu.memory_space<vmem>>, vector<1x8x32xf32>
    %c0_4 = arith.constant 0 : index
    %c0_5 = arith.constant 0 : index
    %2 = vector.load %arg2[%c0_4, %c0_5] : memref<1x32xf32, #tpu.memory_space<vmem>>, vector<1x32xf32>
    %c0_6 = arith.constant 0 : index
    %c0_7 = arith.constant 0 : index
    %3 = vector.load %arg3[%c0_6, %c0_7] : memref<1x32xf32, #tpu.memory_space<vmem>>, vector<1x32xf32>
    %c0_8 = arith.constant 0 : index
    %c0_9 = arith.constant 0 : index
    %c0_10 = arith.constant 0 : index
    %4 = vector.load %arg4[%c0_8, %c0_9, %c0_10] : memref<1x32x32xf32, #tpu.memory_space<vmem>>, vector<1x32x32xf32>
    %c0_11 = arith.constant 0 : index
    %c0_12 = arith.constant 0 : index
    %5 = vector.load %arg5[%c0_11, %c0_12] : memref<1x32xf32, #tpu.memory_space<vmem>>, vector<1x32xf32>
    %c0_13 = arith.constant 0 : index
    %c0_14 = arith.constant 0 : index
    %6 = vector.load %arg6[%c0_13, %c0_14] : memref<1x32xf32, #tpu.memory_space<vmem>>, vector<1x32xf32>
    %c0_15 = arith.constant 0 : index
    %c0_16 = arith.constant 0 : index
    %7 = vector.load %arg7[%c0_15, %c0_16] : memref<1x32xf32, #tpu.memory_space<vmem>>, vector<1x32xf32>
    %c0_17 = arith.constant 0 : index
    %c0_18 = arith.constant 0 : index
    %c0_19 = arith.constant 0 : index
    %8 = vector.load %arg8[%c0_17, %c0_18, %c0_19] : memref<2x32x16xf32, #tpu.memory_space<vmem>>, vector<2x32x16xf32>
    %c0_20 = arith.constant 0 : index
    %c0_21 = arith.constant 0 : index
    %c0_22 = arith.constant 0 : index
    %9 = vector.load %arg9[%c0_20, %c0_21, %c0_22] : memref<2x1x16xf32, #tpu.memory_space<vmem>>, vector<2x1x16xf32>
    %c0_23 = arith.constant 0 : index
    %c0_24 = arith.constant 0 : index
    %c0_25 = arith.constant 0 : index
    %10 = vector.load %arg10[%c0_23, %c0_24, %c0_25] : memref<2x32x16xf32, #tpu.memory_space<vmem>>, vector<2x32x16xf32>
    %c0_26 = arith.constant 0 : index
    %c0_27 = arith.constant 0 : index
    %c0_28 = arith.constant 0 : index
    %11 = vector.load %arg11[%c0_26, %c0_27, %c0_28] : memref<2x1x16xf32, #tpu.memory_space<vmem>>, vector<2x1x16xf32>
    %c0_29 = arith.constant 0 : index
    %c0_30 = arith.constant 0 : index
    %c0_31 = arith.constant 0 : index
    %12 = vector.load %arg12[%c0_29, %c0_30, %c0_31] : memref<2x32x16xf32, #tpu.memory_space<vmem>>, vector<2x32x16xf32>
    %c0_32 = arith.constant 0 : index
    %c0_33 = arith.constant 0 : index
    %c0_34 = arith.constant 0 : index
    %13 = vector.load %arg13[%c0_32, %c0_33, %c0_34] : memref<2x1x16xf32, #tpu.memory_space<vmem>>, vector<2x1x16xf32>
    %c0_35 = arith.constant 0 : index
    %c0_36 = arith.constant 0 : index
    %c0_37 = arith.constant 0 : index
    %14 = vector.load %arg14[%c0_35, %c0_36, %c0_37] : memref<2x16x32xf32, #tpu.memory_space<vmem>>, vector<2x16x32xf32>
    %c0_38 = arith.constant 0 : index
    %c0_39 = arith.constant 0 : index
    %15 = vector.load %arg15[%c0_38, %c0_39] : memref<1x32xf32, #tpu.memory_space<vmem>>, vector<1x32xf32>
    %c0_40 = arith.constant 0 : index
    %c0_41 = arith.constant 0 : index
    %16 = vector.load %arg16[%c0_40, %c0_41] : memref<1x32xf32, #tpu.memory_space<vmem>>, vector<1x32xf32>
    %c0_42 = arith.constant 0 : index
    %c0_43 = arith.constant 0 : index
    %17 = vector.load %arg17[%c0_42, %c0_43] : memref<1x32xf32, #tpu.memory_space<vmem>>, vector<1x32xf32>
    %c0_44 = arith.constant 0 : index
    %c0_45 = arith.constant 0 : index
    %18 = vector.load %arg18[%c0_44, %c0_45] : memref<32x32xf32, #tpu.memory_space<vmem>>, vector<32x32xf32>
    %c0_46 = arith.constant 0 : index
    %c0_47 = arith.constant 0 : index
    %19 = vector.load %arg19[%c0_46, %c0_47] : memref<1x32xf32, #tpu.memory_space<vmem>>, vector<1x32xf32>
    %c0_48 = arith.constant 0 : index
    %c0_49 = arith.constant 0 : index
    %c0_50 = arith.constant 0 : index
    %20 = vector.load %arg20[%c0_48, %c0_49, %c0_50] : memref<2x9x32xf32, #tpu.memory_space<vmem>>, vector<2x9x32xf32>
    %c0_51 = arith.constant 0 : index
    %c0_52 = arith.constant 0 : index
    %c0_53 = arith.constant 0 : index
    %21 = vector.load %arg21[%c0_51, %c0_52, %c0_53] : memref<2x1x32xf32, #tpu.memory_space<vmem>>, vector<2x1x32xf32>
    %c0_54 = arith.constant 0 : index
    %c0_55 = arith.constant 0 : index
    %c0_56 = arith.constant 0 : index
    %22 = vector.load %arg22[%c0_54, %c0_55, %c0_56] : memref<2x32x32xf32, #tpu.memory_space<vmem>>, vector<2x32x32xf32>
    %c0_57 = arith.constant 0 : index
    %c0_58 = arith.constant 0 : index
    %23 = vector.load %arg23[%c0_57, %c0_58] : memref<1x32xf32, #tpu.memory_space<vmem>>, vector<1x32xf32>
    %24 = vector.extract_strided_slice %0 {offsets = [0, 0], sizes = [4, 32], strides = [1, 1]} : vector<8x32xf32> to vector<4x32xf32>
    %cst = arith.constant dense<0.000000e+00> : vector<4xf32>
    %25 = vector.multi_reduction <add>, %24, %cst [1] : vector<4x32xf32> to vector<4xf32>
    %26 = vector.shape_cast %25 : vector<4xf32> to vector<4x1xf32>
    %cst_59 = arith.constant 3.200000e+01 : f32
    %27 = vector.broadcast %cst_59 : f32 to vector<4x1xf32>
    %28 = arith.divf %26, %27 : vector<4x1xf32>
    %29 = vector.broadcast %28 : vector<4x1xf32> to vector<4x32xf32>
    %30 = arith.subf %24, %29 : vector<4x32xf32>
    %31 = arith.mulf %30, %30 : vector<4x32xf32>
    %cst_60 = arith.constant dense<0.000000e+00> : vector<4xf32>
    %32 = vector.multi_reduction <add>, %31, %cst_60 [1] : vector<4x32xf32> to vector<4xf32>
    %33 = vector.shape_cast %32 : vector<4xf32> to vector<4x1xf32>
    %cst_61 = arith.constant 3.200000e+01 : f32
    %34 = vector.broadcast %cst_61 : f32 to vector<4x1xf32>
    %35 = arith.divf %33, %34 : vector<4x1xf32>
    %36 = vector.broadcast %28 : vector<4x1xf32> to vector<4x32xf32>
    %37 = arith.subf %24, %36 : vector<4x32xf32>
    %cst_62 = arith.constant 9.99999974E-6 : f32
    %38 = vector.broadcast %cst_62 : f32 to vector<4x1xf32>
    %39 = arith.addf %35, %38 : vector<4x1xf32>
    %40 = math.rsqrt %39 : vector<4x1xf32>
    %41 = vector.broadcast %40 : vector<4x1xf32> to vector<4x32xf32>
    %42 = arith.mulf %37, %41 : vector<4x32xf32>
    %43 = vector.broadcast %2 : vector<1x32xf32> to vector<4x32xf32>
    %44 = arith.mulf %42, %43 : vector<4x32xf32>
    %45 = vector.broadcast %3 : vector<1x32xf32> to vector<4x32xf32>
    %46 = arith.addf %44, %45 : vector<4x32xf32>
    %47 = vector.extract_strided_slice %1 {offsets = [0, 0, 0], sizes = [1, 4, 32], strides = [1, 1, 1]} : vector<1x8x32xf32> to vector<1x4x32xf32>
    %48 = vector.shape_cast %47 : vector<1x4x32xf32> to vector<4x32xf32>
    %cst_63 = arith.constant dense<0.000000e+00> : vector<4xf32>
    %49 = vector.multi_reduction <add>, %48, %cst_63 [1] : vector<4x32xf32> to vector<4xf32>
    %50 = vector.shape_cast %49 : vector<4xf32> to vector<4x1xf32>
    %cst_64 = arith.constant 3.200000e+01 : f32
    %51 = vector.broadcast %cst_64 : f32 to vector<4x1xf32>
    %52 = arith.divf %50, %51 : vector<4x1xf32>
    %53 = vector.broadcast %52 : vector<4x1xf32> to vector<4x32xf32>
    %54 = arith.subf %48, %53 : vector<4x32xf32>
    %55 = arith.mulf %54, %54 : vector<4x32xf32>
    %cst_65 = arith.constant dense<0.000000e+00> : vector<4xf32>
    %56 = vector.multi_reduction <add>, %55, %cst_65 [1] : vector<4x32xf32> to vector<4xf32>
    %57 = vector.shape_cast %56 : vector<4xf32> to vector<4x1xf32>
    %cst_66 = arith.constant 3.200000e+01 : f32
    %58 = vector.broadcast %cst_66 : f32 to vector<4x1xf32>
    %59 = arith.divf %57, %58 : vector<4x1xf32>
    %60 = vector.broadcast %52 : vector<4x1xf32> to vector<4x32xf32>
    %61 = arith.subf %48, %60 : vector<4x32xf32>
    %cst_67 = arith.constant 9.99999974E-6 : f32
    %62 = vector.broadcast %cst_67 : f32 to vector<4x1xf32>
    %63 = arith.addf %59, %62 : vector<4x1xf32>
    %64 = math.rsqrt %63 : vector<4x1xf32>
    %65 = vector.broadcast %64 : vector<4x1xf32> to vector<4x32xf32>
    %66 = arith.mulf %61, %65 : vector<4x32xf32>
    %67 = vector.broadcast %2 : vector<1x32xf32> to vector<4x32xf32>
    %68 = arith.mulf %66, %67 : vector<4x32xf32>
    %69 = vector.broadcast %3 : vector<1x32xf32> to vector<4x32xf32>
    %70 = arith.addf %68, %69 : vector<4x32xf32>
    %71 = vector.shape_cast %4 : vector<1x32x32xf32> to vector<32x32xf32>
    %cst_68 = arith.constant dense<0.000000e+00> : vector<4x32xf32>
    %72 = tpu.matmul %70, %71, %cst_68 {dimension_numbers = #tpu.dot_dimension_numbers<[1], [0], [0], [1], [0, 0, 1, 1], [], []>} : vector<4x32xf32>, vector<32x32xf32>, vector<4x32xf32> -> vector<4x32xf32>
    %73 = vector.broadcast %5 : vector<1x32xf32> to vector<4x32xf32>
    %74 = arith.addf %72, %73 : vector<4x32xf32>
    %cst_69 = arith.constant dense<0.000000e+00> : vector<4xf32>
    %75 = vector.multi_reduction <add>, %74, %cst_69 [1] : vector<4x32xf32> to vector<4xf32>
    %76 = vector.shape_cast %75 : vector<4xf32> to vector<4x1xf32>
    %cst_70 = arith.constant 3.200000e+01 : f32
    %77 = vector.broadcast %cst_70 : f32 to vector<4x1xf32>
    %78 = arith.divf %76, %77 : vector<4x1xf32>
    %79 = vector.broadcast %78 : vector<4x1xf32> to vector<4x32xf32>
    %80 = arith.subf %74, %79 : vector<4x32xf32>
    %81 = arith.mulf %80, %80 : vector<4x32xf32>
    %cst_71 = arith.constant dense<0.000000e+00> : vector<4xf32>
    %82 = vector.multi_reduction <add>, %81, %cst_71 [1] : vector<4x32xf32> to vector<4xf32>
    %83 = vector.shape_cast %82 : vector<4xf32> to vector<4x1xf32>
    %cst_72 = arith.constant 3.200000e+01 : f32
    %84 = vector.broadcast %cst_72 : f32 to vector<4x1xf32>
    %85 = arith.divf %83, %84 : vector<4x1xf32>
    %86 = vector.broadcast %78 : vector<4x1xf32> to vector<4x32xf32>
    %87 = arith.subf %74, %86 : vector<4x32xf32>
    %cst_73 = arith.constant 9.99999974E-6 : f32
    %88 = vector.broadcast %cst_73 : f32 to vector<4x1xf32>
    %89 = arith.addf %85, %88 : vector<4x1xf32>
    %90 = math.rsqrt %89 : vector<4x1xf32>
    %91 = vector.broadcast %90 : vector<4x1xf32> to vector<4x32xf32>
    %92 = arith.mulf %87, %91 : vector<4x32xf32>
    %93 = vector.broadcast %6 : vector<1x32xf32> to vector<4x32xf32>
    %94 = arith.mulf %92, %93 : vector<4x32xf32>
    %95 = vector.broadcast %7 : vector<1x32xf32> to vector<4x32xf32>
    %96 = arith.addf %94, %95 : vector<4x32xf32>
    %97 = vector.extract_strided_slice %8 {offsets = [0, 0, 0], sizes = [1, 32, 16], strides = [1, 1, 1]} : vector<2x32x16xf32> to vector<1x32x16xf32>
    %98 = vector.shape_cast %97 : vector<1x32x16xf32> to vector<32x16xf32>
    %cst_74 = arith.constant dense<0.000000e+00> : vector<4x16xf32>
    %99 = tpu.matmul %46, %98, %cst_74 {dimension_numbers = #tpu.dot_dimension_numbers<[1], [0], [0], [1], [0, 0, 1, 1], [], []>} : vector<4x32xf32>, vector<32x16xf32>, vector<4x16xf32> -> vector<4x16xf32>
    %100 = vector.extract_strided_slice %9 {offsets = [0, 0, 0], sizes = [1, 1, 16], strides = [1, 1, 1]} : vector<2x1x16xf32> to vector<1x1x16xf32>
    %101 = vector.shape_cast %100 : vector<1x1x16xf32> to vector<1x16xf32>
    %102 = vector.broadcast %101 : vector<1x16xf32> to vector<4x16xf32>
    %103 = arith.addf %99, %102 : vector<4x16xf32>
    %104 = vector.extract_strided_slice %10 {offsets = [0, 0, 0], sizes = [1, 32, 16], strides = [1, 1, 1]} : vector<2x32x16xf32> to vector<1x32x16xf32>
    %105 = vector.shape_cast %104 : vector<1x32x16xf32> to vector<32x16xf32>
    %cst_75 = arith.constant dense<0.000000e+00> : vector<4x16xf32>
    %106 = tpu.matmul %96, %105, %cst_75 {dimension_numbers = #tpu.dot_dimension_numbers<[1], [0], [0], [1], [0, 0, 1, 1], [], []>} : vector<4x32xf32>, vector<32x16xf32>, vector<4x16xf32> -> vector<4x16xf32>
    %107 = vector.extract_strided_slice %11 {offsets = [0, 0, 0], sizes = [1, 1, 16], strides = [1, 1, 1]} : vector<2x1x16xf32> to vector<1x1x16xf32>
    %108 = vector.shape_cast %107 : vector<1x1x16xf32> to vector<1x16xf32>
    %109 = vector.broadcast %108 : vector<1x16xf32> to vector<4x16xf32>
    %110 = arith.addf %106, %109 : vector<4x16xf32>
    %111 = vector.extract_strided_slice %12 {offsets = [0, 0, 0], sizes = [1, 32, 16], strides = [1, 1, 1]} : vector<2x32x16xf32> to vector<1x32x16xf32>
    %112 = vector.shape_cast %111 : vector<1x32x16xf32> to vector<32x16xf32>
    %cst_76 = arith.constant dense<0.000000e+00> : vector<4x16xf32>
    %113 = tpu.matmul %96, %112, %cst_76 {dimension_numbers = #tpu.dot_dimension_numbers<[1], [0], [0], [1], [0, 0, 1, 1], [], []>} : vector<4x32xf32>, vector<32x16xf32>, vector<4x16xf32> -> vector<4x16xf32>
    %114 = vector.extract_strided_slice %13 {offsets = [0, 0, 0], sizes = [1, 1, 16], strides = [1, 1, 1]} : vector<2x1x16xf32> to vector<1x1x16xf32>
    %115 = vector.shape_cast %114 : vector<1x1x16xf32> to vector<1x16xf32>
    %116 = vector.broadcast %115 : vector<1x16xf32> to vector<4x16xf32>
    %117 = arith.addf %113, %116 : vector<4x16xf32>
    %cst_77 = arith.constant dense<0.000000e+00> : vector<4x4xf32>
    %118 = tpu.matmul %103, %110, %cst_77 {dimension_numbers = #tpu.dot_dimension_numbers<[1], [1], [0], [0], [0, 0, 1, 0], [], []>} : vector<4x16xf32>, vector<4x16xf32>, vector<4x4xf32> -> vector<4x4xf32>
    %cst_78 = arith.constant 2.500000e-01 : f32
    %119 = vector.broadcast %cst_78 : f32 to vector<4x4xf32>
    %120 = arith.mulf %118, %119 : vector<4x4xf32>
    %cst_79 = arith.constant dense<0xFF800000> : vector<4xf32>
    %121 = vector.multi_reduction <maximumf>, %120, %cst_79 [1] : vector<4x4xf32> to vector<4xf32>
    %122 = vector.shape_cast %121 : vector<4xf32> to vector<4x1xf32>
    %123 = vector.broadcast %122 : vector<4x1xf32> to vector<4x4xf32>
    %124 = arith.subf %120, %123 : vector<4x4xf32>
    %125 = math.exp %124 : vector<4x4xf32>
    %cst_80 = arith.constant dense<0.000000e+00> : vector<4xf32>
    %126 = vector.multi_reduction <add>, %125, %cst_80 [1] : vector<4x4xf32> to vector<4xf32>
    %127 = vector.shape_cast %126 : vector<4xf32> to vector<4x1xf32>
    %128 = tpu.reciprocal %127 {approx = true} : vector<4x1xf32> -> vector<4x1xf32>
    %129 = vector.broadcast %128 : vector<4x1xf32> to vector<4x4xf32>
    %130 = arith.mulf %125, %129 : vector<4x4xf32>
    %cst_81 = arith.constant dense<0.000000e+00> : vector<4x16xf32>
    %131 = tpu.matmul %130, %117, %cst_81 {dimension_numbers = #tpu.dot_dimension_numbers<[1], [0], [0], [1], [0, 0, 1, 1], [], []>} : vector<4x4xf32>, vector<4x16xf32>, vector<4x16xf32> -> vector<4x16xf32>
    %132 = vector.extract_strided_slice %14 {offsets = [0, 0, 0], sizes = [1, 16, 32], strides = [1, 1, 1]} : vector<2x16x32xf32> to vector<1x16x32xf32>
    %133 = vector.shape_cast %132 : vector<1x16x32xf32> to vector<16x32xf32>
    %cst_82 = arith.constant dense<0.000000e+00> : vector<4x32xf32>
    %134 = tpu.matmul %131, %133, %cst_82 {dimension_numbers = #tpu.dot_dimension_numbers<[1], [0], [0], [1], [0, 0, 1, 1], [], []>} : vector<4x16xf32>, vector<16x32xf32>, vector<4x32xf32> -> vector<4x32xf32>
    %135 = vector.broadcast %15 : vector<1x32xf32> to vector<4x32xf32>
    %136 = arith.addf %135, %134 : vector<4x32xf32>
    %137 = vector.extract_strided_slice %8 {offsets = [1, 0, 0], sizes = [1, 32, 16], strides = [1, 1, 1]} : vector<2x32x16xf32> to vector<1x32x16xf32>
    %138 = vector.shape_cast %137 : vector<1x32x16xf32> to vector<32x16xf32>
    %cst_83 = arith.constant dense<0.000000e+00> : vector<4x16xf32>
    %139 = tpu.matmul %46, %138, %cst_83 {dimension_numbers = #tpu.dot_dimension_numbers<[1], [0], [0], [1], [0, 0, 1, 1], [], []>} : vector<4x32xf32>, vector<32x16xf32>, vector<4x16xf32> -> vector<4x16xf32>
    %140 = vector.extract_strided_slice %9 {offsets = [1, 0, 0], sizes = [1, 1, 16], strides = [1, 1, 1]} : vector<2x1x16xf32> to vector<1x1x16xf32>
    %141 = vector.shape_cast %140 : vector<1x1x16xf32> to vector<1x16xf32>
    %142 = vector.broadcast %141 : vector<1x16xf32> to vector<4x16xf32>
    %143 = arith.addf %139, %142 : vector<4x16xf32>
    %144 = vector.extract_strided_slice %10 {offsets = [1, 0, 0], sizes = [1, 32, 16], strides = [1, 1, 1]} : vector<2x32x16xf32> to vector<1x32x16xf32>
    %145 = vector.shape_cast %144 : vector<1x32x16xf32> to vector<32x16xf32>
    %cst_84 = arith.constant dense<0.000000e+00> : vector<4x16xf32>
    %146 = tpu.matmul %96, %145, %cst_84 {dimension_numbers = #tpu.dot_dimension_numbers<[1], [0], [0], [1], [0, 0, 1, 1], [], []>} : vector<4x32xf32>, vector<32x16xf32>, vector<4x16xf32> -> vector<4x16xf32>
    %147 = vector.extract_strided_slice %11 {offsets = [1, 0, 0], sizes = [1, 1, 16], strides = [1, 1, 1]} : vector<2x1x16xf32> to vector<1x1x16xf32>
    %148 = vector.shape_cast %147 : vector<1x1x16xf32> to vector<1x16xf32>
    %149 = vector.broadcast %148 : vector<1x16xf32> to vector<4x16xf32>
    %150 = arith.addf %146, %149 : vector<4x16xf32>
    %151 = vector.extract_strided_slice %12 {offsets = [1, 0, 0], sizes = [1, 32, 16], strides = [1, 1, 1]} : vector<2x32x16xf32> to vector<1x32x16xf32>
    %152 = vector.shape_cast %151 : vector<1x32x16xf32> to vector<32x16xf32>
    %cst_85 = arith.constant dense<0.000000e+00> : vector<4x16xf32>
    %153 = tpu.matmul %96, %152, %cst_85 {dimension_numbers = #tpu.dot_dimension_numbers<[1], [0], [0], [1], [0, 0, 1, 1], [], []>} : vector<4x32xf32>, vector<32x16xf32>, vector<4x16xf32> -> vector<4x16xf32>
    %154 = vector.extract_strided_slice %13 {offsets = [1, 0, 0], sizes = [1, 1, 16], strides = [1, 1, 1]} : vector<2x1x16xf32> to vector<1x1x16xf32>
    %155 = vector.shape_cast %154 : vector<1x1x16xf32> to vector<1x16xf32>
    %156 = vector.broadcast %155 : vector<1x16xf32> to vector<4x16xf32>
    %157 = arith.addf %153, %156 : vector<4x16xf32>
    %cst_86 = arith.constant dense<0.000000e+00> : vector<4x4xf32>
    %158 = tpu.matmul %143, %150, %cst_86 {dimension_numbers = #tpu.dot_dimension_numbers<[1], [1], [0], [0], [0, 0, 1, 0], [], []>} : vector<4x16xf32>, vector<4x16xf32>, vector<4x4xf32> -> vector<4x4xf32>
    %cst_87 = arith.constant 2.500000e-01 : f32
    %159 = vector.broadcast %cst_87 : f32 to vector<4x4xf32>
    %160 = arith.mulf %158, %159 : vector<4x4xf32>
    %cst_88 = arith.constant dense<0xFF800000> : vector<4xf32>
    %161 = vector.multi_reduction <maximumf>, %160, %cst_88 [1] : vector<4x4xf32> to vector<4xf32>
    %162 = vector.shape_cast %161 : vector<4xf32> to vector<4x1xf32>
    %163 = vector.broadcast %162 : vector<4x1xf32> to vector<4x4xf32>
    %164 = arith.subf %160, %163 : vector<4x4xf32>
    %165 = math.exp %164 : vector<4x4xf32>
    %cst_89 = arith.constant dense<0.000000e+00> : vector<4xf32>
    %166 = vector.multi_reduction <add>, %165, %cst_89 [1] : vector<4x4xf32> to vector<4xf32>
    %167 = vector.shape_cast %166 : vector<4xf32> to vector<4x1xf32>
    %168 = tpu.reciprocal %167 {approx = true} : vector<4x1xf32> -> vector<4x1xf32>
    %169 = vector.broadcast %168 : vector<4x1xf32> to vector<4x4xf32>
    %170 = arith.mulf %165, %169 : vector<4x4xf32>
    %cst_90 = arith.constant dense<0.000000e+00> : vector<4x16xf32>
    %171 = tpu.matmul %170, %157, %cst_90 {dimension_numbers = #tpu.dot_dimension_numbers<[1], [0], [0], [1], [0, 0, 1, 1], [], []>} : vector<4x4xf32>, vector<4x16xf32>, vector<4x16xf32> -> vector<4x16xf32>
    %172 = vector.extract_strided_slice %14 {offsets = [1, 0, 0], sizes = [1, 16, 32], strides = [1, 1, 1]} : vector<2x16x32xf32> to vector<1x16x32xf32>
    %173 = vector.shape_cast %172 : vector<1x16x32xf32> to vector<16x32xf32>
    %cst_91 = arith.constant dense<0.000000e+00> : vector<4x32xf32>
    %174 = tpu.matmul %171, %173, %cst_91 {dimension_numbers = #tpu.dot_dimension_numbers<[1], [0], [0], [1], [0, 0, 1, 1], [], []>} : vector<4x16xf32>, vector<16x32xf32>, vector<4x32xf32> -> vector<4x32xf32>
    %175 = arith.addf %136, %174 : vector<4x32xf32>
    %176 = arith.addf %24, %175 : vector<4x32xf32>
    %cst_92 = arith.constant dense<0.000000e+00> : vector<4xf32>
    %177 = vector.multi_reduction <add>, %176, %cst_92 [1] : vector<4x32xf32> to vector<4xf32>
    %178 = vector.shape_cast %177 : vector<4xf32> to vector<4x1xf32>
    %cst_93 = arith.constant 3.200000e+01 : f32
    %179 = vector.broadcast %cst_93 : f32 to vector<4x1xf32>
    %180 = arith.divf %178, %179 : vector<4x1xf32>
    %181 = vector.broadcast %180 : vector<4x1xf32> to vector<4x32xf32>
    %182 = arith.subf %176, %181 : vector<4x32xf32>
    %183 = arith.mulf %182, %182 : vector<4x32xf32>
    %cst_94 = arith.constant dense<0.000000e+00> : vector<4xf32>
    %184 = vector.multi_reduction <add>, %183, %cst_94 [1] : vector<4x32xf32> to vector<4xf32>
    %185 = vector.shape_cast %184 : vector<4xf32> to vector<4x1xf32>
    %cst_95 = arith.constant 3.200000e+01 : f32
    %186 = vector.broadcast %cst_95 : f32 to vector<4x1xf32>
    %187 = arith.divf %185, %186 : vector<4x1xf32>
    %188 = vector.broadcast %180 : vector<4x1xf32> to vector<4x32xf32>
    %189 = arith.subf %176, %188 : vector<4x32xf32>
    %cst_96 = arith.constant 9.99999974E-6 : f32
    %190 = vector.broadcast %cst_96 : f32 to vector<4x1xf32>
    %191 = arith.addf %187, %190 : vector<4x1xf32>
    %192 = math.rsqrt %191 : vector<4x1xf32>
    %193 = vector.broadcast %192 : vector<4x1xf32> to vector<4x32xf32>
    %194 = arith.mulf %189, %193 : vector<4x32xf32>
    %195 = vector.broadcast %16 : vector<1x32xf32> to vector<4x32xf32>
    %196 = arith.mulf %194, %195 : vector<4x32xf32>
    %197 = vector.broadcast %17 : vector<1x32xf32> to vector<4x32xf32>
    %198 = arith.addf %196, %197 : vector<4x32xf32>
    %cst_97 = arith.constant dense<0.000000e+00> : vector<4x32xf32>
    %199 = tpu.matmul %198, %18, %cst_97 {dimension_numbers = #tpu.dot_dimension_numbers<[1], [0], [0], [1], [0, 0, 1, 1], [], []>} : vector<4x32xf32>, vector<32x32xf32>, vector<4x32xf32> -> vector<4x32xf32>
    %200 = vector.broadcast %19 : vector<1x32xf32> to vector<4x32xf32>
    %201 = arith.addf %199, %200 : vector<4x32xf32>
    %cst_98 = arith.constant 0.000000e+00 : f32
    %202 = vector.broadcast %cst_98 : f32 to vector<1x32xf32>
    %203 = vector.extract_strided_slice %201 {offsets = [0, 0], sizes = [2, 32], strides = [1, 1]} : vector<4x32xf32> to vector<2x32xf32>
    %204 = tpu.concatenate %202, %203, %202 in 0 : vector<1x32xf32>, vector<2x32xf32>, vector<1x32xf32> -> vector<4x32xf32>
    %205 = vector.extract_strided_slice %204 {offsets = [0, 0], sizes = [2, 32], strides = [1, 1]} : vector<4x32xf32> to vector<2x32xf32>
    %206 = vector.extract_strided_slice %204 {offsets = [1, 0], sizes = [2, 32], strides = [1, 1]} : vector<4x32xf32> to vector<2x32xf32>
    %207 = vector.extract_strided_slice %204 {offsets = [2, 0], sizes = [2, 32], strides = [1, 1]} : vector<4x32xf32> to vector<2x32xf32>
    %208 = vector.extract_strided_slice %201 {offsets = [2, 0], sizes = [2, 32], strides = [1, 1]} : vector<4x32xf32> to vector<2x32xf32>
    %209 = tpu.concatenate %202, %208, %202 in 0 : vector<1x32xf32>, vector<2x32xf32>, vector<1x32xf32> -> vector<4x32xf32>
    %210 = vector.extract_strided_slice %209 {offsets = [0, 0], sizes = [2, 32], strides = [1, 1]} : vector<4x32xf32> to vector<2x32xf32>
    %211 = vector.extract_strided_slice %209 {offsets = [1, 0], sizes = [2, 32], strides = [1, 1]} : vector<4x32xf32> to vector<2x32xf32>
    %212 = vector.extract_strided_slice %209 {offsets = [2, 0], sizes = [2, 32], strides = [1, 1]} : vector<4x32xf32> to vector<2x32xf32>
    %213 = vector.extract_strided_slice %20 {offsets = [0, 3, 0], sizes = [1, 1, 32], strides = [1, 1, 1]} : vector<2x9x32xf32> to vector<1x1x32xf32>
    %214 = vector.shape_cast %213 : vector<1x1x32xf32> to vector<32xf32>
    %215 = vector.shape_cast %214 : vector<32xf32> to vector<1x32xf32>
    %216 = vector.broadcast %215 : vector<1x32xf32> to vector<2x32xf32>
    %217 = arith.mulf %205, %216 : vector<2x32xf32>
    %218 = vector.extract_strided_slice %20 {offsets = [0, 4, 0], sizes = [1, 1, 32], strides = [1, 1, 1]} : vector<2x9x32xf32> to vector<1x1x32xf32>
    %219 = vector.shape_cast %218 : vector<1x1x32xf32> to vector<32xf32>
    %220 = vector.shape_cast %219 : vector<32xf32> to vector<1x32xf32>
    %221 = vector.broadcast %220 : vector<1x32xf32> to vector<2x32xf32>
    %222 = arith.mulf %206, %221 : vector<2x32xf32>
    %223 = arith.addf %217, %222 : vector<2x32xf32>
    %224 = vector.extract_strided_slice %20 {offsets = [0, 5, 0], sizes = [1, 1, 32], strides = [1, 1, 1]} : vector<2x9x32xf32> to vector<1x1x32xf32>
    %225 = vector.shape_cast %224 : vector<1x1x32xf32> to vector<32xf32>
    %226 = vector.shape_cast %225 : vector<32xf32> to vector<1x32xf32>
    %227 = vector.broadcast %226 : vector<1x32xf32> to vector<2x32xf32>
    %228 = arith.mulf %207, %227 : vector<2x32xf32>
    %229 = arith.addf %223, %228 : vector<2x32xf32>
    %230 = vector.extract_strided_slice %20 {offsets = [0, 6, 0], sizes = [1, 1, 32], strides = [1, 1, 1]} : vector<2x9x32xf32> to vector<1x1x32xf32>
    %231 = vector.shape_cast %230 : vector<1x1x32xf32> to vector<32xf32>
    %232 = vector.shape_cast %231 : vector<32xf32> to vector<1x32xf32>
    %233 = vector.broadcast %232 : vector<1x32xf32> to vector<2x32xf32>
    %234 = arith.mulf %210, %233 : vector<2x32xf32>
    %235 = arith.addf %229, %234 : vector<2x32xf32>
    %236 = vector.extract_strided_slice %20 {offsets = [0, 7, 0], sizes = [1, 1, 32], strides = [1, 1, 1]} : vector<2x9x32xf32> to vector<1x1x32xf32>
    %237 = vector.shape_cast %236 : vector<1x1x32xf32> to vector<32xf32>
    %238 = vector.shape_cast %237 : vector<32xf32> to vector<1x32xf32>
    %239 = vector.broadcast %238 : vector<1x32xf32> to vector<2x32xf32>
    %240 = arith.mulf %211, %239 : vector<2x32xf32>
    %241 = arith.addf %235, %240 : vector<2x32xf32>
    %242 = vector.extract_strided_slice %20 {offsets = [0, 8, 0], sizes = [1, 1, 32], strides = [1, 1, 1]} : vector<2x9x32xf32> to vector<1x1x32xf32>
    %243 = vector.shape_cast %242 : vector<1x1x32xf32> to vector<32xf32>
    %244 = vector.shape_cast %243 : vector<32xf32> to vector<1x32xf32>
    %245 = vector.broadcast %244 : vector<1x32xf32> to vector<2x32xf32>
    %246 = arith.mulf %212, %245 : vector<2x32xf32>
    %247 = arith.addf %241, %246 : vector<2x32xf32>
    %248 = vector.extract_strided_slice %21 {offsets = [0, 0, 0], sizes = [1, 1, 32], strides = [1, 1, 1]} : vector<2x1x32xf32> to vector<1x1x32xf32>
    %249 = vector.shape_cast %248 : vector<1x1x32xf32> to vector<1x32xf32>
    %250 = vector.broadcast %249 : vector<1x32xf32> to vector<2x32xf32>
    %251 = arith.addf %247, %250 : vector<2x32xf32>
    %cst_99 = arith.constant 5.000000e-01 : f32
    %252 = vector.broadcast %cst_99 : f32 to vector<2x32xf32>
    %253 = arith.mulf %252, %251 : vector<2x32xf32>
    %cst_100 = arith.constant 0.707106769 : f32
    %254 = vector.broadcast %cst_100 : f32 to vector<2x32xf32>
    %255 = arith.mulf %251, %254 : vector<2x32xf32>
    %256 = math.erf %255 : vector<2x32xf32>
    %cst_101 = arith.constant 1.000000e+00 : f32
    %257 = vector.broadcast %cst_101 : f32 to vector<2x32xf32>
    %258 = arith.addf %257, %256 : vector<2x32xf32>
    %259 = arith.mulf %253, %258 : vector<2x32xf32>
    %260 = vector.extract_strided_slice %22 {offsets = [0, 0, 0], sizes = [1, 32, 32], strides = [1, 1, 1]} : vector<2x32x32xf32> to vector<1x32x32xf32>
    %261 = vector.shape_cast %260 : vector<1x32x32xf32> to vector<32x32xf32>
    %cst_102 = arith.constant dense<0.000000e+00> : vector<2x32xf32>
    %262 = tpu.matmul %259, %261, %cst_102 {dimension_numbers = #tpu.dot_dimension_numbers<[1], [0], [0], [1], [0, 0, 1, 1], [], []>} : vector<2x32xf32>, vector<32x32xf32>, vector<2x32xf32> -> vector<2x32xf32>
    %263 = vector.broadcast %23 : vector<1x32xf32> to vector<2x32xf32>
    %264 = arith.addf %263, %262 : vector<2x32xf32>
    %265 = vector.extract_strided_slice %20 {offsets = [1, 3, 0], sizes = [1, 1, 32], strides = [1, 1, 1]} : vector<2x9x32xf32> to vector<1x1x32xf32>
    %266 = vector.shape_cast %265 : vector<1x1x32xf32> to vector<32xf32>
    %267 = vector.shape_cast %266 : vector<32xf32> to vector<1x32xf32>
    %268 = vector.broadcast %267 : vector<1x32xf32> to vector<2x32xf32>
    %269 = arith.mulf %205, %268 : vector<2x32xf32>
    %270 = vector.extract_strided_slice %20 {offsets = [1, 4, 0], sizes = [1, 1, 32], strides = [1, 1, 1]} : vector<2x9x32xf32> to vector<1x1x32xf32>
    %271 = vector.shape_cast %270 : vector<1x1x32xf32> to vector<32xf32>
    %272 = vector.shape_cast %271 : vector<32xf32> to vector<1x32xf32>
    %273 = vector.broadcast %272 : vector<1x32xf32> to vector<2x32xf32>
    %274 = arith.mulf %206, %273 : vector<2x32xf32>
    %275 = arith.addf %269, %274 : vector<2x32xf32>
    %276 = vector.extract_strided_slice %20 {offsets = [1, 5, 0], sizes = [1, 1, 32], strides = [1, 1, 1]} : vector<2x9x32xf32> to vector<1x1x32xf32>
    %277 = vector.shape_cast %276 : vector<1x1x32xf32> to vector<32xf32>
    %278 = vector.shape_cast %277 : vector<32xf32> to vector<1x32xf32>
    %279 = vector.broadcast %278 : vector<1x32xf32> to vector<2x32xf32>
    %280 = arith.mulf %207, %279 : vector<2x32xf32>
    %281 = arith.addf %275, %280 : vector<2x32xf32>
    %282 = vector.extract_strided_slice %20 {offsets = [1, 6, 0], sizes = [1, 1, 32], strides = [1, 1, 1]} : vector<2x9x32xf32> to vector<1x1x32xf32>
    %283 = vector.shape_cast %282 : vector<1x1x32xf32> to vector<32xf32>
    %284 = vector.shape_cast %283 : vector<32xf32> to vector<1x32xf32>
    %285 = vector.broadcast %284 : vector<1x32xf32> to vector<2x32xf32>
    %286 = arith.mulf %210, %285 : vector<2x32xf32>
    %287 = arith.addf %281, %286 : vector<2x32xf32>
    %288 = vector.extract_strided_slice %20 {offsets = [1, 7, 0], sizes = [1, 1, 32], strides = [1, 1, 1]} : vector<2x9x32xf32> to vector<1x1x32xf32>
    %289 = vector.shape_cast %288 : vector<1x1x32xf32> to vector<32xf32>
    %290 = vector.shape_cast %289 : vector<32xf32> to vector<1x32xf32>
    %291 = vector.broadcast %290 : vector<1x32xf32> to vector<2x32xf32>
    %292 = arith.mulf %211, %291 : vector<2x32xf32>
    %293 = arith.addf %287, %292 : vector<2x32xf32>
    %294 = vector.extract_strided_slice %20 {offsets = [1, 8, 0], sizes = [1, 1, 32], strides = [1, 1, 1]} : vector<2x9x32xf32> to vector<1x1x32xf32>
    %295 = vector.shape_cast %294 : vector<1x1x32xf32> to vector<32xf32>
    %296 = vector.shape_cast %295 : vector<32xf32> to vector<1x32xf32>
    %297 = vector.broadcast %296 : vector<1x32xf32> to vector<2x32xf32>
    %298 = arith.mulf %212, %297 : vector<2x32xf32>
    %299 = arith.addf %293, %298 : vector<2x32xf32>
    %300 = vector.extract_strided_slice %21 {offsets = [1, 0, 0], sizes = [1, 1, 32], strides = [1, 1, 1]} : vector<2x1x32xf32> to vector<1x1x32xf32>
    %301 = vector.shape_cast %300 : vector<1x1x32xf32> to vector<1x32xf32>
    %302 = vector.broadcast %301 : vector<1x32xf32> to vector<2x32xf32>
    %303 = arith.addf %299, %302 : vector<2x32xf32>
    %cst_103 = arith.constant 5.000000e-01 : f32
    %304 = vector.broadcast %cst_103 : f32 to vector<2x32xf32>
    %305 = arith.mulf %304, %303 : vector<2x32xf32>
    %cst_104 = arith.constant 0.707106769 : f32
    %306 = vector.broadcast %cst_104 : f32 to vector<2x32xf32>
    %307 = arith.mulf %303, %306 : vector<2x32xf32>
    %308 = math.erf %307 : vector<2x32xf32>
    %cst_105 = arith.constant 1.000000e+00 : f32
    %309 = vector.broadcast %cst_105 : f32 to vector<2x32xf32>
    %310 = arith.addf %309, %308 : vector<2x32xf32>
    %311 = arith.mulf %305, %310 : vector<2x32xf32>
    %312 = vector.extract_strided_slice %22 {offsets = [1, 0, 0], sizes = [1, 32, 32], strides = [1, 1, 1]} : vector<2x32x32xf32> to vector<1x32x32xf32>
    %313 = vector.shape_cast %312 : vector<1x32x32xf32> to vector<32x32xf32>
    %cst_106 = arith.constant dense<0.000000e+00> : vector<2x32xf32>
    %314 = tpu.matmul %311, %313, %cst_106 {dimension_numbers = #tpu.dot_dimension_numbers<[1], [0], [0], [1], [0, 0, 1, 1], [], []>} : vector<2x32xf32>, vector<32x32xf32>, vector<2x32xf32> -> vector<2x32xf32>
    %315 = arith.addf %264, %314 : vector<2x32xf32>
    %316 = vector.extract_strided_slice %20 {offsets = [0, 0, 0], sizes = [1, 1, 32], strides = [1, 1, 1]} : vector<2x9x32xf32> to vector<1x1x32xf32>
    %317 = vector.shape_cast %316 : vector<1x1x32xf32> to vector<32xf32>
    %318 = vector.shape_cast %317 : vector<32xf32> to vector<1x32xf32>
    %319 = vector.broadcast %318 : vector<1x32xf32> to vector<2x32xf32>
    %320 = arith.mulf %205, %319 : vector<2x32xf32>
    %321 = vector.extract_strided_slice %20 {offsets = [0, 1, 0], sizes = [1, 1, 32], strides = [1, 1, 1]} : vector<2x9x32xf32> to vector<1x1x32xf32>
    %322 = vector.shape_cast %321 : vector<1x1x32xf32> to vector<32xf32>
    %323 = vector.shape_cast %322 : vector<32xf32> to vector<1x32xf32>
    %324 = vector.broadcast %323 : vector<1x32xf32> to vector<2x32xf32>
    %325 = arith.mulf %206, %324 : vector<2x32xf32>
    %326 = arith.addf %320, %325 : vector<2x32xf32>
    %327 = vector.extract_strided_slice %20 {offsets = [0, 2, 0], sizes = [1, 1, 32], strides = [1, 1, 1]} : vector<2x9x32xf32> to vector<1x1x32xf32>
    %328 = vector.shape_cast %327 : vector<1x1x32xf32> to vector<32xf32>
    %329 = vector.shape_cast %328 : vector<32xf32> to vector<1x32xf32>
    %330 = vector.broadcast %329 : vector<1x32xf32> to vector<2x32xf32>
    %331 = arith.mulf %207, %330 : vector<2x32xf32>
    %332 = arith.addf %326, %331 : vector<2x32xf32>
    %333 = vector.extract_strided_slice %20 {offsets = [0, 3, 0], sizes = [1, 1, 32], strides = [1, 1, 1]} : vector<2x9x32xf32> to vector<1x1x32xf32>
    %334 = vector.shape_cast %333 : vector<1x1x32xf32> to vector<32xf32>
    %335 = vector.shape_cast %334 : vector<32xf32> to vector<1x32xf32>
    %336 = vector.broadcast %335 : vector<1x32xf32> to vector<2x32xf32>
    %337 = arith.mulf %210, %336 : vector<2x32xf32>
    %338 = arith.addf %332, %337 : vector<2x32xf32>
    %339 = vector.extract_strided_slice %20 {offsets = [0, 4, 0], sizes = [1, 1, 32], strides = [1, 1, 1]} : vector<2x9x32xf32> to vector<1x1x32xf32>
    %340 = vector.shape_cast %339 : vector<1x1x32xf32> to vector<32xf32>
    %341 = vector.shape_cast %340 : vector<32xf32> to vector<1x32xf32>
    %342 = vector.broadcast %341 : vector<1x32xf32> to vector<2x32xf32>
    %343 = arith.mulf %211, %342 : vector<2x32xf32>
    %344 = arith.addf %338, %343 : vector<2x32xf32>
    %345 = vector.extract_strided_slice %20 {offsets = [0, 5, 0], sizes = [1, 1, 32], strides = [1, 1, 1]} : vector<2x9x32xf32> to vector<1x1x32xf32>
    %346 = vector.shape_cast %345 : vector<1x1x32xf32> to vector<32xf32>
    %347 = vector.shape_cast %346 : vector<32xf32> to vector<1x32xf32>
    %348 = vector.broadcast %347 : vector<1x32xf32> to vector<2x32xf32>
    %349 = arith.mulf %212, %348 : vector<2x32xf32>
    %350 = arith.addf %344, %349 : vector<2x32xf32>
    %351 = vector.extract_strided_slice %21 {offsets = [0, 0, 0], sizes = [1, 1, 32], strides = [1, 1, 1]} : vector<2x1x32xf32> to vector<1x1x32xf32>
    %352 = vector.shape_cast %351 : vector<1x1x32xf32> to vector<1x32xf32>
    %353 = vector.broadcast %352 : vector<1x32xf32> to vector<2x32xf32>
    %354 = arith.addf %350, %353 : vector<2x32xf32>
    %cst_107 = arith.constant 5.000000e-01 : f32
    %355 = vector.broadcast %cst_107 : f32 to vector<2x32xf32>
    %356 = arith.mulf %355, %354 : vector<2x32xf32>
    %cst_108 = arith.constant 0.707106769 : f32
    %357 = vector.broadcast %cst_108 : f32 to vector<2x32xf32>
    %358 = arith.mulf %354, %357 : vector<2x32xf32>
    %359 = math.erf %358 : vector<2x32xf32>
    %cst_109 = arith.constant 1.000000e+00 : f32
    %360 = vector.broadcast %cst_109 : f32 to vector<2x32xf32>
    %361 = arith.addf %360, %359 : vector<2x32xf32>
    %362 = arith.mulf %356, %361 : vector<2x32xf32>
    %363 = vector.extract_strided_slice %22 {offsets = [0, 0, 0], sizes = [1, 32, 32], strides = [1, 1, 1]} : vector<2x32x32xf32> to vector<1x32x32xf32>
    %364 = vector.shape_cast %363 : vector<1x32x32xf32> to vector<32x32xf32>
    %cst_110 = arith.constant dense<0.000000e+00> : vector<2x32xf32>
    %365 = tpu.matmul %362, %364, %cst_110 {dimension_numbers = #tpu.dot_dimension_numbers<[1], [0], [0], [1], [0, 0, 1, 1], [], []>} : vector<2x32xf32>, vector<32x32xf32>, vector<2x32xf32> -> vector<2x32xf32>
    %366 = vector.broadcast %23 : vector<1x32xf32> to vector<2x32xf32>
    %367 = arith.addf %366, %365 : vector<2x32xf32>
    %368 = vector.extract_strided_slice %20 {offsets = [1, 0, 0], sizes = [1, 1, 32], strides = [1, 1, 1]} : vector<2x9x32xf32> to vector<1x1x32xf32>
    %369 = vector.shape_cast %368 : vector<1x1x32xf32> to vector<32xf32>
    %370 = vector.shape_cast %369 : vector<32xf32> to vector<1x32xf32>
    %371 = vector.broadcast %370 : vector<1x32xf32> to vector<2x32xf32>
    %372 = arith.mulf %205, %371 : vector<2x32xf32>
    %373 = vector.extract_strided_slice %20 {offsets = [1, 1, 0], sizes = [1, 1, 32], strides = [1, 1, 1]} : vector<2x9x32xf32> to vector<1x1x32xf32>
    %374 = vector.shape_cast %373 : vector<1x1x32xf32> to vector<32xf32>
    %375 = vector.shape_cast %374 : vector<32xf32> to vector<1x32xf32>
    %376 = vector.broadcast %375 : vector<1x32xf32> to vector<2x32xf32>
    %377 = arith.mulf %206, %376 : vector<2x32xf32>
    %378 = arith.addf %372, %377 : vector<2x32xf32>
    %379 = vector.extract_strided_slice %20 {offsets = [1, 2, 0], sizes = [1, 1, 32], strides = [1, 1, 1]} : vector<2x9x32xf32> to vector<1x1x32xf32>
    %380 = vector.shape_cast %379 : vector<1x1x32xf32> to vector<32xf32>
    %381 = vector.shape_cast %380 : vector<32xf32> to vector<1x32xf32>
    %382 = vector.broadcast %381 : vector<1x32xf32> to vector<2x32xf32>
    %383 = arith.mulf %207, %382 : vector<2x32xf32>
    %384 = arith.addf %378, %383 : vector<2x32xf32>
    %385 = vector.extract_strided_slice %20 {offsets = [1, 3, 0], sizes = [1, 1, 32], strides = [1, 1, 1]} : vector<2x9x32xf32> to vector<1x1x32xf32>
    %386 = vector.shape_cast %385 : vector<1x1x32xf32> to vector<32xf32>
    %387 = vector.shape_cast %386 : vector<32xf32> to vector<1x32xf32>
    %388 = vector.broadcast %387 : vector<1x32xf32> to vector<2x32xf32>
    %389 = arith.mulf %210, %388 : vector<2x32xf32>
    %390 = arith.addf %384, %389 : vector<2x32xf32>
    %391 = vector.extract_strided_slice %20 {offsets = [1, 4, 0], sizes = [1, 1, 32], strides = [1, 1, 1]} : vector<2x9x32xf32> to vector<1x1x32xf32>
    %392 = vector.shape_cast %391 : vector<1x1x32xf32> to vector<32xf32>
    %393 = vector.shape_cast %392 : vector<32xf32> to vector<1x32xf32>
    %394 = vector.broadcast %393 : vector<1x32xf32> to vector<2x32xf32>
    %395 = arith.mulf %211, %394 : vector<2x32xf32>
    %396 = arith.addf %390, %395 : vector<2x32xf32>
    %397 = vector.extract_strided_slice %20 {offsets = [1, 5, 0], sizes = [1, 1, 32], strides = [1, 1, 1]} : vector<2x9x32xf32> to vector<1x1x32xf32>
    %398 = vector.shape_cast %397 : vector<1x1x32xf32> to vector<32xf32>
    %399 = vector.shape_cast %398 : vector<32xf32> to vector<1x32xf32>
    %400 = vector.broadcast %399 : vector<1x32xf32> to vector<2x32xf32>
    %401 = arith.mulf %212, %400 : vector<2x32xf32>
    %402 = arith.addf %396, %401 : vector<2x32xf32>
    %403 = vector.extract_strided_slice %21 {offsets = [1, 0, 0], sizes = [1, 1, 32], strides = [1, 1, 1]} : vector<2x1x32xf32> to vector<1x1x32xf32>
    %404 = vector.shape_cast %403 : vector<1x1x32xf32> to vector<1x32xf32>
    %405 = vector.broadcast %404 : vector<1x32xf32> to vector<2x32xf32>
    %406 = arith.addf %402, %405 : vector<2x32xf32>
    %cst_111 = arith.constant 5.000000e-01 : f32
    %407 = vector.broadcast %cst_111 : f32 to vector<2x32xf32>
    %408 = arith.mulf %407, %406 : vector<2x32xf32>
    %cst_112 = arith.constant 0.707106769 : f32
    %409 = vector.broadcast %cst_112 : f32 to vector<2x32xf32>
    %410 = arith.mulf %406, %409 : vector<2x32xf32>
    %411 = math.erf %410 : vector<2x32xf32>
    %cst_113 = arith.constant 1.000000e+00 : f32
    %412 = vector.broadcast %cst_113 : f32 to vector<2x32xf32>
    %413 = arith.addf %412, %411 : vector<2x32xf32>
    %414 = arith.mulf %408, %413 : vector<2x32xf32>
    %415 = vector.extract_strided_slice %22 {offsets = [1, 0, 0], sizes = [1, 32, 32], strides = [1, 1, 1]} : vector<2x32x32xf32> to vector<1x32x32xf32>
    %416 = vector.shape_cast %415 : vector<1x32x32xf32> to vector<32x32xf32>
    %cst_114 = arith.constant dense<0.000000e+00> : vector<2x32xf32>
    %417 = tpu.matmul %414, %416, %cst_114 {dimension_numbers = #tpu.dot_dimension_numbers<[1], [0], [0], [1], [0, 0, 1, 1], [], []>} : vector<2x32xf32>, vector<32x32xf32>, vector<2x32xf32> -> vector<2x32xf32>
    %418 = arith.addf %367, %417 : vector<2x32xf32>
    %419 = tpu.concatenate %315, %418 in 0 : vector<2x32xf32>, vector<2x32xf32> -> vector<4x32xf32>
    %420 = arith.addf %176, %419 : vector<4x32xf32>
    %c0_115 = arith.constant 0 : index
    %c0_116 = arith.constant 0 : index
    %421 = vector.load %arg24[%c0_115, %c0_116] : memref<1x32xf32, #tpu.memory_space<vmem>>, vector<1x32xf32>
    %c0_117 = arith.constant 0 : index
    %c0_118 = arith.constant 0 : index
    %422 = vector.load %arg25[%c0_117, %c0_118] : memref<1x32xf32, #tpu.memory_space<vmem>>, vector<1x32xf32>
    %cst_119 = arith.constant dense<0.000000e+00> : vector<4xf32>
    %423 = vector.multi_reduction <add>, %420, %cst_119 [1] : vector<4x32xf32> to vector<4xf32>
    %424 = vector.shape_cast %423 : vector<4xf32> to vector<4x1xf32>
    %cst_120 = arith.constant 3.200000e+01 : f32
    %425 = vector.broadcast %cst_120 : f32 to vector<4x1xf32>
    %426 = arith.divf %424, %425 : vector<4x1xf32>
    %427 = vector.broadcast %426 : vector<4x1xf32> to vector<4x32xf32>
    %428 = arith.subf %420, %427 : vector<4x32xf32>
    %429 = arith.mulf %428, %428 : vector<4x32xf32>
    %cst_121 = arith.constant dense<0.000000e+00> : vector<4xf32>
    %430 = vector.multi_reduction <add>, %429, %cst_121 [1] : vector<4x32xf32> to vector<4xf32>
    %431 = vector.shape_cast %430 : vector<4xf32> to vector<4x1xf32>
    %cst_122 = arith.constant 3.200000e+01 : f32
    %432 = vector.broadcast %cst_122 : f32 to vector<4x1xf32>
    %433 = arith.divf %431, %432 : vector<4x1xf32>
    %434 = vector.broadcast %426 : vector<4x1xf32> to vector<4x32xf32>
    %435 = arith.subf %420, %434 : vector<4x32xf32>
    %cst_123 = arith.constant 9.99999974E-6 : f32
    %436 = vector.broadcast %cst_123 : f32 to vector<4x1xf32>
    %437 = arith.addf %433, %436 : vector<4x1xf32>
    %438 = math.rsqrt %437 : vector<4x1xf32>
    %439 = vector.broadcast %438 : vector<4x1xf32> to vector<4x32xf32>
    %440 = arith.mulf %435, %439 : vector<4x32xf32>
    %441 = vector.broadcast %421 : vector<1x32xf32> to vector<4x32xf32>
    %442 = arith.mulf %440, %441 : vector<4x32xf32>
    %443 = vector.broadcast %422 : vector<1x32xf32> to vector<4x32xf32>
    %444 = arith.addf %442, %443 : vector<4x32xf32>
    %c0_124 = arith.constant 0 : index
    %c0_125 = arith.constant 0 : index
    %445 = vector.load %arg26[%c0_124, %c0_125] : memref<8x32xf32, #tpu.memory_space<vmem>>, vector<4x32xf32>
    tpu.vector_store %arg26[%c0_124, %c0_125], %444 {strides = array<i32>} : memref<8x32xf32, #tpu.memory_space<vmem>>, vector<4x32xf32>,
    %446 = vector.extract_strided_slice %0 {offsets = [4, 0], sizes = [4, 32], strides = [1, 1]} : vector<8x32xf32> to vector<4x32xf32>
    %cst_126 = arith.constant dense<0.000000e+00> : vector<4xf32>
    %447 = vector.multi_reduction <add>, %446, %cst_126 [1] : vector<4x32xf32> to vector<4xf32>
    %448 = vector.shape_cast %447 : vector<4xf32> to vector<4x1xf32>
    %cst_127 = arith.constant 3.200000e+01 : f32
    %449 = vector.broadcast %cst_127 : f32 to vector<4x1xf32>
    %450 = arith.divf %448, %449 : vector<4x1xf32>
    %451 = vector.broadcast %450 : vector<4x1xf32> to vector<4x32xf32>
    %452 = arith.subf %446, %451 : vector<4x32xf32>
    %453 = arith.mulf %452, %452 : vector<4x32xf32>
    %cst_128 = arith.constant dense<0.000000e+00> : vector<4xf32>
    %454 = vector.multi_reduction <add>, %453, %cst_128 [1] : vector<4x32xf32> to vector<4xf32>
    %455 = vector.shape_cast %454 : vector<4xf32> to vector<4x1xf32>
    %cst_129 = arith.constant 3.200000e+01 : f32
    %456 = vector.broadcast %cst_129 : f32 to vector<4x1xf32>
    %457 = arith.divf %455, %456 : vector<4x1xf32>
    %458 = vector.broadcast %450 : vector<4x1xf32> to vector<4x32xf32>
    %459 = arith.subf %446, %458 : vector<4x32xf32>
    %cst_130 = arith.constant 9.99999974E-6 : f32
    %460 = vector.broadcast %cst_130 : f32 to vector<4x1xf32>
    %461 = arith.addf %457, %460 : vector<4x1xf32>
    %462 = math.rsqrt %461 : vector<4x1xf32>
    %463 = vector.broadcast %462 : vector<4x1xf32> to vector<4x32xf32>
    %464 = arith.mulf %459, %463 : vector<4x32xf32>
    %465 = vector.broadcast %2 : vector<1x32xf32> to vector<4x32xf32>
    %466 = arith.mulf %464, %465 : vector<4x32xf32>
    %467 = vector.broadcast %3 : vector<1x32xf32> to vector<4x32xf32>
    %468 = arith.addf %466, %467 : vector<4x32xf32>
    %469 = vector.extract_strided_slice %1 {offsets = [0, 4, 0], sizes = [1, 4, 32], strides = [1, 1, 1]} : vector<1x8x32xf32> to vector<1x4x32xf32>
    %470 = vector.shape_cast %469 : vector<1x4x32xf32> to vector<4x32xf32>
    %cst_131 = arith.constant dense<0.000000e+00> : vector<4xf32>
    %471 = vector.multi_reduction <add>, %470, %cst_131 [1] : vector<4x32xf32> to vector<4xf32>
    %472 = vector.shape_cast %471 : vector<4xf32> to vector<4x1xf32>
    %cst_132 = arith.constant 3.200000e+01 : f32
    %473 = vector.broadcast %cst_132 : f32 to vector<4x1xf32>
    %474 = arith.divf %472, %473 : vector<4x1xf32>
    %475 = vector.broadcast %474 : vector<4x1xf32> to vector<4x32xf32>
    %476 = arith.subf %470, %475 : vector<4x32xf32>
    %477 = arith.mulf %476, %476 : vector<4x32xf32>
    %cst_133 = arith.constant dense<0.000000e+00> : vector<4xf32>
    %478 = vector.multi_reduction <add>, %477, %cst_133 [1] : vector<4x32xf32> to vector<4xf32>
    %479 = vector.shape_cast %478 : vector<4xf32> to vector<4x1xf32>
    %cst_134 = arith.constant 3.200000e+01 : f32
    %480 = vector.broadcast %cst_134 : f32 to vector<4x1xf32>
    %481 = arith.divf %479, %480 : vector<4x1xf32>
    %482 = vector.broadcast %474 : vector<4x1xf32> to vector<4x32xf32>
    %483 = arith.subf %470, %482 : vector<4x32xf32>
    %cst_135 = arith.constant 9.99999974E-6 : f32
    %484 = vector.broadcast %cst_135 : f32 to vector<4x1xf32>
    %485 = arith.addf %481, %484 : vector<4x1xf32>
    %486 = math.rsqrt %485 : vector<4x1xf32>
    %487 = vector.broadcast %486 : vector<4x1xf32> to vector<4x32xf32>
    %488 = arith.mulf %483, %487 : vector<4x32xf32>
    %489 = vector.broadcast %2 : vector<1x32xf32> to vector<4x32xf32>
    %490 = arith.mulf %488, %489 : vector<4x32xf32>
    %491 = vector.broadcast %3 : vector<1x32xf32> to vector<4x32xf32>
    %492 = arith.addf %490, %491 : vector<4x32xf32>
    %493 = vector.shape_cast %4 : vector<1x32x32xf32> to vector<32x32xf32>
    %cst_136 = arith.constant dense<0.000000e+00> : vector<4x32xf32>
    %494 = tpu.matmul %492, %493, %cst_136 {dimension_numbers = #tpu.dot_dimension_numbers<[1], [0], [0], [1], [0, 0, 1, 1], [], []>} : vector<4x32xf32>, vector<32x32xf32>, vector<4x32xf32> -> vector<4x32xf32>
    %495 = vector.broadcast %5 : vector<1x32xf32> to vector<4x32xf32>
    %496 = arith.addf %494, %495 : vector<4x32xf32>
    %cst_137 = arith.constant dense<0.000000e+00> : vector<4xf32>
    %497 = vector.multi_reduction <add>, %496, %cst_137 [1] : vector<4x32xf32> to vector<4xf32>
    %498 = vector.shape_cast %497 : vector<4xf32> to vector<4x1xf32>
    %cst_138 = arith.constant 3.200000e+01 : f32
    %499 = vector.broadcast %cst_138 : f32 to vector<4x1xf32>
    %500 = arith.divf %498, %499 : vector<4x1xf32>
    %501 = vector.broadcast %500 : vector<4x1xf32> to vector<4x32xf32>
    %502 = arith.subf %496, %501 : vector<4x32xf32>
    %503 = arith.mulf %502, %502 : vector<4x32xf32>
    %cst_139 = arith.constant dense<0.000000e+00> : vector<4xf32>
    %504 = vector.multi_reduction <add>, %503, %cst_139 [1] : vector<4x32xf32> to vector<4xf32>
    %505 = vector.shape_cast %504 : vector<4xf32> to vector<4x1xf32>
    %cst_140 = arith.constant 3.200000e+01 : f32
    %506 = vector.broadcast %cst_140 : f32 to vector<4x1xf32>
    %507 = arith.divf %505, %506 : vector<4x1xf32>
    %508 = vector.broadcast %500 : vector<4x1xf32> to vector<4x32xf32>
    %509 = arith.subf %496, %508 : vector<4x32xf32>
    %cst_141 = arith.constant 9.99999974E-6 : f32
    %510 = vector.broadcast %cst_141 : f32 to vector<4x1xf32>
    %511 = arith.addf %507, %510 : vector<4x1xf32>
    %512 = math.rsqrt %511 : vector<4x1xf32>
    %513 = vector.broadcast %512 : vector<4x1xf32> to vector<4x32xf32>
    %514 = arith.mulf %509, %513 : vector<4x32xf32>
    %515 = vector.broadcast %6 : vector<1x32xf32> to vector<4x32xf32>
    %516 = arith.mulf %514, %515 : vector<4x32xf32>
    %517 = vector.broadcast %7 : vector<1x32xf32> to vector<4x32xf32>
    %518 = arith.addf %516, %517 : vector<4x32xf32>
    %519 = vector.extract_strided_slice %8 {offsets = [0, 0, 0], sizes = [1, 32, 16], strides = [1, 1, 1]} : vector<2x32x16xf32> to vector<1x32x16xf32>
    %520 = vector.shape_cast %519 : vector<1x32x16xf32> to vector<32x16xf32>
    %cst_142 = arith.constant dense<0.000000e+00> : vector<4x16xf32>
    %521 = tpu.matmul %468, %520, %cst_142 {dimension_numbers = #tpu.dot_dimension_numbers<[1], [0], [0], [1], [0, 0, 1, 1], [], []>} : vector<4x32xf32>, vector<32x16xf32>, vector<4x16xf32> -> vector<4x16xf32>
    %522 = vector.extract_strided_slice %9 {offsets = [0, 0, 0], sizes = [1, 1, 16], strides = [1, 1, 1]} : vector<2x1x16xf32> to vector<1x1x16xf32>
    %523 = vector.shape_cast %522 : vector<1x1x16xf32> to vector<1x16xf32>
    %524 = vector.broadcast %523 : vector<1x16xf32> to vector<4x16xf32>
    %525 = arith.addf %521, %524 : vector<4x16xf32>
    %526 = vector.extract_strided_slice %10 {offsets = [0, 0, 0], sizes = [1, 32, 16], strides = [1, 1, 1]} : vector<2x32x16xf32> to vector<1x32x16xf32>
    %527 = vector.shape_cast %526 : vector<1x32x16xf32> to vector<32x16xf32>
    %cst_143 = arith.constant dense<0.000000e+00> : vector<4x16xf32>
    %528 = tpu.matmul %518, %527, %cst_143 {dimension_numbers = #tpu.dot_dimension_numbers<[1], [0], [0], [1], [0, 0, 1, 1], [], []>} : vector<4x32xf32>, vector<32x16xf32>, vector<4x16xf32> -> vector<4x16xf32>
    %529 = vector.extract_strided_slice %11 {offsets = [0, 0, 0], sizes = [1, 1, 16], strides = [1, 1, 1]} : vector<2x1x16xf32> to vector<1x1x16xf32>
    %530 = vector.shape_cast %529 : vector<1x1x16xf32> to vector<1x16xf32>
    %531 = vector.broadcast %530 : vector<1x16xf32> to vector<4x16xf32>
    %532 = arith.addf %528, %531 : vector<4x16xf32>
    %533 = vector.extract_strided_slice %12 {offsets = [0, 0, 0], sizes = [1, 32, 16], strides = [1, 1, 1]} : vector<2x32x16xf32> to vector<1x32x16xf32>
    %534 = vector.shape_cast %533 : vector<1x32x16xf32> to vector<32x16xf32>
    %cst_144 = arith.constant dense<0.000000e+00> : vector<4x16xf32>
    %535 = tpu.matmul %518, %534, %cst_144 {dimension_numbers = #tpu.dot_dimension_numbers<[1], [0], [0], [1], [0, 0, 1, 1], [], []>} : vector<4x32xf32>, vector<32x16xf32>, vector<4x16xf32> -> vector<4x16xf32>
    %536 = vector.extract_strided_slice %13 {offsets = [0, 0, 0], sizes = [1, 1, 16], strides = [1, 1, 1]} : vector<2x1x16xf32> to vector<1x1x16xf32>
    %537 = vector.shape_cast %536 : vector<1x1x16xf32> to vector<1x16xf32>
    %538 = vector.broadcast %537 : vector<1x16xf32> to vector<4x16xf32>
    %539 = arith.addf %535, %538 : vector<4x16xf32>
    %cst_145 = arith.constant dense<0.000000e+00> : vector<4x4xf32>
    %540 = tpu.matmul %525, %532, %cst_145 {dimension_numbers = #tpu.dot_dimension_numbers<[1], [1], [0], [0], [0, 0, 1, 0], [], []>} : vector<4x16xf32>, vector<4x16xf32>, vector<4x4xf32> -> vector<4x4xf32>
    %cst_146 = arith.constant 2.500000e-01 : f32
    %541 = vector.broadcast %cst_146 : f32 to vector<4x4xf32>
    %542 = arith.mulf %540, %541 : vector<4x4xf32>
    %cst_147 = arith.constant dense<0xFF800000> : vector<4xf32>
    %543 = vector.multi_reduction <maximumf>, %542, %cst_147 [1] : vector<4x4xf32> to vector<4xf32>
    %544 = vector.shape_cast %543 : vector<4xf32> to vector<4x1xf32>
    %545 = vector.broadcast %544 : vector<4x1xf32> to vector<4x4xf32>
    %546 = arith.subf %542, %545 : vector<4x4xf32>
    %547 = math.exp %546 : vector<4x4xf32>
    %cst_148 = arith.constant dense<0.000000e+00> : vector<4xf32>
    %548 = vector.multi_reduction <add>, %547, %cst_148 [1] : vector<4x4xf32> to vector<4xf32>
    %549 = vector.shape_cast %548 : vector<4xf32> to vector<4x1xf32>
    %550 = tpu.reciprocal %549 {approx = true} : vector<4x1xf32> -> vector<4x1xf32>
    %551 = vector.broadcast %550 : vector<4x1xf32> to vector<4x4xf32>
    %552 = arith.mulf %547, %551 : vector<4x4xf32>
    %cst_149 = arith.constant dense<0.000000e+00> : vector<4x16xf32>
    %553 = tpu.matmul %552, %539, %cst_149 {dimension_numbers = #tpu.dot_dimension_numbers<[1], [0], [0], [1], [0, 0, 1, 1], [], []>} : vector<4x4xf32>, vector<4x16xf32>, vector<4x16xf32> -> vector<4x16xf32>
    %554 = vector.extract_strided_slice %14 {offsets = [0, 0, 0], sizes = [1, 16, 32], strides = [1, 1, 1]} : vector<2x16x32xf32> to vector<1x16x32xf32>
    %555 = vector.shape_cast %554 : vector<1x16x32xf32> to vector<16x32xf32>
    %cst_150 = arith.constant dense<0.000000e+00> : vector<4x32xf32>
    %556 = tpu.matmul %553, %555, %cst_150 {dimension_numbers = #tpu.dot_dimension_numbers<[1], [0], [0], [1], [0, 0, 1, 1], [], []>} : vector<4x16xf32>, vector<16x32xf32>, vector<4x32xf32> -> vector<4x32xf32>
    %557 = vector.broadcast %15 : vector<1x32xf32> to vector<4x32xf32>
    %558 = arith.addf %557, %556 : vector<4x32xf32>
    %559 = vector.extract_strided_slice %8 {offsets = [1, 0, 0], sizes = [1, 32, 16], strides = [1, 1, 1]} : vector<2x32x16xf32> to vector<1x32x16xf32>
    %560 = vector.shape_cast %559 : vector<1x32x16xf32> to vector<32x16xf32>
    %cst_151 = arith.constant dense<0.000000e+00> : vector<4x16xf32>
    %561 = tpu.matmul %468, %560, %cst_151 {dimension_numbers = #tpu.dot_dimension_numbers<[1], [0], [0], [1], [0, 0, 1, 1], [], []>} : vector<4x32xf32>, vector<32x16xf32>, vector<4x16xf32> -> vector<4x16xf32>
    %562 = vector.extract_strided_slice %9 {offsets = [1, 0, 0], sizes = [1, 1, 16], strides = [1, 1, 1]} : vector<2x1x16xf32> to vector<1x1x16xf32>
    %563 = vector.shape_cast %562 : vector<1x1x16xf32> to vector<1x16xf32>
    %564 = vector.broadcast %563 : vector<1x16xf32> to vector<4x16xf32>
    %565 = arith.addf %561, %564 : vector<4x16xf32>
    %566 = vector.extract_strided_slice %10 {offsets = [1, 0, 0], sizes = [1, 32, 16], strides = [1, 1, 1]} : vector<2x32x16xf32> to vector<1x32x16xf32>
    %567 = vector.shape_cast %566 : vector<1x32x16xf32> to vector<32x16xf32>
    %cst_152 = arith.constant dense<0.000000e+00> : vector<4x16xf32>
    %568 = tpu.matmul %518, %567, %cst_152 {dimension_numbers = #tpu.dot_dimension_numbers<[1], [0], [0], [1], [0, 0, 1, 1], [], []>} : vector<4x32xf32>, vector<32x16xf32>, vector<4x16xf32> -> vector<4x16xf32>
    %569 = vector.extract_strided_slice %11 {offsets = [1, 0, 0], sizes = [1, 1, 16], strides = [1, 1, 1]} : vector<2x1x16xf32> to vector<1x1x16xf32>
    %570 = vector.shape_cast %569 : vector<1x1x16xf32> to vector<1x16xf32>
    %571 = vector.broadcast %570 : vector<1x16xf32> to vector<4x16xf32>
    %572 = arith.addf %568, %571 : vector<4x16xf32>
    %573 = vector.extract_strided_slice %12 {offsets = [1, 0, 0], sizes = [1, 32, 16], strides = [1, 1, 1]} : vector<2x32x16xf32> to vector<1x32x16xf32>
    %574 = vector.shape_cast %573 : vector<1x32x16xf32> to vector<32x16xf32>
    %cst_153 = arith.constant dense<0.000000e+00> : vector<4x16xf32>
    %575 = tpu.matmul %518, %574, %cst_153 {dimension_numbers = #tpu.dot_dimension_numbers<[1], [0], [0], [1], [0, 0, 1, 1], [], []>} : vector<4x32xf32>, vector<32x16xf32>, vector<4x16xf32> -> vector<4x16xf32>
    %576 = vector.extract_strided_slice %13 {offsets = [1, 0, 0], sizes = [1, 1, 16], strides = [1, 1, 1]} : vector<2x1x16xf32> to vector<1x1x16xf32>
    %577 = vector.shape_cast %576 : vector<1x1x16xf32> to vector<1x16xf32>
    %578 = vector.broadcast %577 : vector<1x16xf32> to vector<4x16xf32>
    %579 = arith.addf %575, %578 : vector<4x16xf32>
    %cst_154 = arith.constant dense<0.000000e+00> : vector<4x4xf32>
    %580 = tpu.matmul %565, %572, %cst_154 {dimension_numbers = #tpu.dot_dimension_numbers<[1], [1], [0], [0], [0, 0, 1, 0], [], []>} : vector<4x16xf32>, vector<4x16xf32>, vector<4x4xf32> -> vector<4x4xf32>
    %cst_155 = arith.constant 2.500000e-01 : f32
    %581 = vector.broadcast %cst_155 : f32 to vector<4x4xf32>
    %582 = arith.mulf %580, %581 : vector<4x4xf32>
    %cst_156 = arith.constant dense<0xFF800000> : vector<4xf32>
    %583 = vector.multi_reduction <maximumf>, %582, %cst_156 [1] : vector<4x4xf32> to vector<4xf32>
    %584 = vector.shape_cast %583 : vector<4xf32> to vector<4x1xf32>
    %585 = vector.broadcast %584 : vector<4x1xf32> to vector<4x4xf32>
    %586 = arith.subf %582, %585 : vector<4x4xf32>
    %587 = math.exp %586 : vector<4x4xf32>
    %cst_157 = arith.constant dense<0.000000e+00> : vector<4xf32>
    %588 = vector.multi_reduction <add>, %587, %cst_157 [1] : vector<4x4xf32> to vector<4xf32>
    %589 = vector.shape_cast %588 : vector<4xf32> to vector<4x1xf32>
    %590 = tpu.reciprocal %589 {approx = true} : vector<4x1xf32> -> vector<4x1xf32>
    %591 = vector.broadcast %590 : vector<4x1xf32> to vector<4x4xf32>
    %592 = arith.mulf %587, %591 : vector<4x4xf32>
    %cst_158 = arith.constant dense<0.000000e+00> : vector<4x16xf32>
    %593 = tpu.matmul %592, %579, %cst_158 {dimension_numbers = #tpu.dot_dimension_numbers<[1], [0], [0], [1], [0, 0, 1, 1], [], []>} : vector<4x4xf32>, vector<4x16xf32>, vector<4x16xf32> -> vector<4x16xf32>
    %594 = vector.extract_strided_slice %14 {offsets = [1, 0, 0], sizes = [1, 16, 32], strides = [1, 1, 1]} : vector<2x16x32xf32> to vector<1x16x32xf32>
    %595 = vector.shape_cast %594 : vector<1x16x32xf32> to vector<16x32xf32>
    %cst_159 = arith.constant dense<0.000000e+00> : vector<4x32xf32>
    %596 = tpu.matmul %593, %595, %cst_159 {dimension_numbers = #tpu.dot_dimension_numbers<[1], [0], [0], [1], [0, 0, 1, 1], [], []>} : vector<4x16xf32>, vector<16x32xf32>, vector<4x32xf32> -> vector<4x32xf32>
    %597 = arith.addf %558, %596 : vector<4x32xf32>
    %598 = arith.addf %446, %597 : vector<4x32xf32>
    %cst_160 = arith.constant dense<0.000000e+00> : vector<4xf32>
    %599 = vector.multi_reduction <add>, %598, %cst_160 [1] : vector<4x32xf32> to vector<4xf32>
    %600 = vector.shape_cast %599 : vector<4xf32> to vector<4x1xf32>
    %cst_161 = arith.constant 3.200000e+01 : f32
    %601 = vector.broadcast %cst_161 : f32 to vector<4x1xf32>
    %602 = arith.divf %600, %601 : vector<4x1xf32>
    %603 = vector.broadcast %602 : vector<4x1xf32> to vector<4x32xf32>
    %604 = arith.subf %598, %603 : vector<4x32xf32>
    %605 = arith.mulf %604, %604 : vector<4x32xf32>
    %cst_162 = arith.constant dense<0.000000e+00> : vector<4xf32>
    %606 = vector.multi_reduction <add>, %605, %cst_162 [1] : vector<4x32xf32> to vector<4xf32>
    %607 = vector.shape_cast %606 : vector<4xf32> to vector<4x1xf32>
    %cst_163 = arith.constant 3.200000e+01 : f32
    %608 = vector.broadcast %cst_163 : f32 to vector<4x1xf32>
    %609 = arith.divf %607, %608 : vector<4x1xf32>
    %610 = vector.broadcast %602 : vector<4x1xf32> to vector<4x32xf32>
    %611 = arith.subf %598, %610 : vector<4x32xf32>
    %cst_164 = arith.constant 9.99999974E-6 : f32
    %612 = vector.broadcast %cst_164 : f32 to vector<4x1xf32>
    %613 = arith.addf %609, %612 : vector<4x1xf32>
    %614 = math.rsqrt %613 : vector<4x1xf32>
    %615 = vector.broadcast %614 : vector<4x1xf32> to vector<4x32xf32>
    %616 = arith.mulf %611, %615 : vector<4x32xf32>
    %617 = vector.broadcast %16 : vector<1x32xf32> to vector<4x32xf32>
    %618 = arith.mulf %616, %617 : vector<4x32xf32>
    %619 = vector.broadcast %17 : vector<1x32xf32> to vector<4x32xf32>
    %620 = arith.addf %618, %619 : vector<4x32xf32>
    %cst_165 = arith.constant dense<0.000000e+00> : vector<4x32xf32>
    %621 = tpu.matmul %620, %18, %cst_165 {dimension_numbers = #tpu.dot_dimension_numbers<[1], [0], [0], [1], [0, 0, 1, 1], [], []>} : vector<4x32xf32>, vector<32x32xf32>, vector<4x32xf32> -> vector<4x32xf32>
    %622 = vector.broadcast %19 : vector<1x32xf32> to vector<4x32xf32>
    %623 = arith.addf %621, %622 : vector<4x32xf32>
    %cst_166 = arith.constant 0.000000e+00 : f32
    %624 = vector.broadcast %cst_166 : f32 to vector<1x32xf32>
    %625 = vector.extract_strided_slice %623 {offsets = [0, 0], sizes = [2, 32], strides = [1, 1]} : vector<4x32xf32> to vector<2x32xf32>
    %626 = tpu.concatenate %624, %625, %624 in 0 : vector<1x32xf32>, vector<2x32xf32>, vector<1x32xf32> -> vector<4x32xf32>
    %627 = vector.extract_strided_slice %626 {offsets = [0, 0], sizes = [2, 32], strides = [1, 1]} : vector<4x32xf32> to vector<2x32xf32>
    %628 = vector.extract_strided_slice %626 {offsets = [1, 0], sizes = [2, 32], strides = [1, 1]} : vector<4x32xf32> to vector<2x32xf32>
    %629 = vector.extract_strided_slice %626 {offsets = [2, 0], sizes = [2, 32], strides = [1, 1]} : vector<4x32xf32> to vector<2x32xf32>
    %630 = vector.extract_strided_slice %623 {offsets = [2, 0], sizes = [2, 32], strides = [1, 1]} : vector<4x32xf32> to vector<2x32xf32>
    %631 = tpu.concatenate %624, %630, %624 in 0 : vector<1x32xf32>, vector<2x32xf32>, vector<1x32xf32> -> vector<4x32xf32>
    %632 = vector.extract_strided_slice %631 {offsets = [0, 0], sizes = [2, 32], strides = [1, 1]} : vector<4x32xf32> to vector<2x32xf32>
    %633 = vector.extract_strided_slice %631 {offsets = [1, 0], sizes = [2, 32], strides = [1, 1]} : vector<4x32xf32> to vector<2x32xf32>
    %634 = vector.extract_strided_slice %631 {offsets = [2, 0], sizes = [2, 32], strides = [1, 1]} : vector<4x32xf32> to vector<2x32xf32>
    %635 = vector.extract_strided_slice %20 {offsets = [0, 3, 0], sizes = [1, 1, 32], strides = [1, 1, 1]} : vector<2x9x32xf32> to vector<1x1x32xf32>
    %636 = vector.shape_cast %635 : vector<1x1x32xf32> to vector<32xf32>
    %637 = vector.shape_cast %636 : vector<32xf32> to vector<1x32xf32>
    %638 = vector.broadcast %637 : vector<1x32xf32> to vector<2x32xf32>
    %639 = arith.mulf %627, %638 : vector<2x32xf32>
    %640 = vector.extract_strided_slice %20 {offsets = [0, 4, 0], sizes = [1, 1, 32], strides = [1, 1, 1]} : vector<2x9x32xf32> to vector<1x1x32xf32>
    %641 = vector.shape_cast %640 : vector<1x1x32xf32> to vector<32xf32>
    %642 = vector.shape_cast %641 : vector<32xf32> to vector<1x32xf32>
    %643 = vector.broadcast %642 : vector<1x32xf32> to vector<2x32xf32>
    %644 = arith.mulf %628, %643 : vector<2x32xf32>
    %645 = arith.addf %639, %644 : vector<2x32xf32>
    %646 = vector.extract_strided_slice %20 {offsets = [0, 5, 0], sizes = [1, 1, 32], strides = [1, 1, 1]} : vector<2x9x32xf32> to vector<1x1x32xf32>
    %647 = vector.shape_cast %646 : vector<1x1x32xf32> to vector<32xf32>
    %648 = vector.shape_cast %647 : vector<32xf32> to vector<1x32xf32>
    %649 = vector.broadcast %648 : vector<1x32xf32> to vector<2x32xf32>
    %650 = arith.mulf %629, %649 : vector<2x32xf32>
    %651 = arith.addf %645, %650 : vector<2x32xf32>
    %652 = vector.extract_strided_slice %20 {offsets = [0, 6, 0], sizes = [1, 1, 32], strides = [1, 1, 1]} : vector<2x9x32xf32> to vector<1x1x32xf32>
    %653 = vector.shape_cast %652 : vector<1x1x32xf32> to vector<32xf32>
    %654 = vector.shape_cast %653 : vector<32xf32> to vector<1x32xf32>
    %655 = vector.broadcast %654 : vector<1x32xf32> to vector<2x32xf32>
    %656 = arith.mulf %632, %655 : vector<2x32xf32>
    %657 = arith.addf %651, %656 : vector<2x32xf32>
    %658 = vector.extract_strided_slice %20 {offsets = [0, 7, 0], sizes = [1, 1, 32], strides = [1, 1, 1]} : vector<2x9x32xf32> to vector<1x1x32xf32>
    %659 = vector.shape_cast %658 : vector<1x1x32xf32> to vector<32xf32>
    %660 = vector.shape_cast %659 : vector<32xf32> to vector<1x32xf32>
    %661 = vector.broadcast %660 : vector<1x32xf32> to vector<2x32xf32>
    %662 = arith.mulf %633, %661 : vector<2x32xf32>
    %663 = arith.addf %657, %662 : vector<2x32xf32>
    %664 = vector.extract_strided_slice %20 {offsets = [0, 8, 0], sizes = [1, 1, 32], strides = [1, 1, 1]} : vector<2x9x32xf32> to vector<1x1x32xf32>
    %665 = vector.shape_cast %664 : vector<1x1x32xf32> to vector<32xf32>
    %666 = vector.shape_cast %665 : vector<32xf32> to vector<1x32xf32>
    %667 = vector.broadcast %666 : vector<1x32xf32> to vector<2x32xf32>
    %668 = arith.mulf %634, %667 : vector<2x32xf32>
    %669 = arith.addf %663, %668 : vector<2x32xf32>
    %670 = vector.extract_strided_slice %21 {offsets = [0, 0, 0], sizes = [1, 1, 32], strides = [1, 1, 1]} : vector<2x1x32xf32> to vector<1x1x32xf32>
    %671 = vector.shape_cast %670 : vector<1x1x32xf32> to vector<1x32xf32>
    %672 = vector.broadcast %671 : vector<1x32xf32> to vector<2x32xf32>
    %673 = arith.addf %669, %672 : vector<2x32xf32>
    %cst_167 = arith.constant 5.000000e-01 : f32
    %674 = vector.broadcast %cst_167 : f32 to vector<2x32xf32>
    %675 = arith.mulf %674, %673 : vector<2x32xf32>
    %cst_168 = arith.constant 0.707106769 : f32
    %676 = vector.broadcast %cst_168 : f32 to vector<2x32xf32>
    %677 = arith.mulf %673, %676 : vector<2x32xf32>
    %678 = math.erf %677 : vector<2x32xf32>
    %cst_169 = arith.constant 1.000000e+00 : f32
    %679 = vector.broadcast %cst_169 : f32 to vector<2x32xf32>
    %680 = arith.addf %679, %678 : vector<2x32xf32>
    %681 = arith.mulf %675, %680 : vector<2x32xf32>
    %682 = vector.extract_strided_slice %22 {offsets = [0, 0, 0], sizes = [1, 32, 32], strides = [1, 1, 1]} : vector<2x32x32xf32> to vector<1x32x32xf32>
    %683 = vector.shape_cast %682 : vector<1x32x32xf32> to vector<32x32xf32>
    %cst_170 = arith.constant dense<0.000000e+00> : vector<2x32xf32>
    %684 = tpu.matmul %681, %683, %cst_170 {dimension_numbers = #tpu.dot_dimension_numbers<[1], [0], [0], [1], [0, 0, 1, 1], [], []>} : vector<2x32xf32>, vector<32x32xf32>, vector<2x32xf32> -> vector<2x32xf32>
    %685 = vector.broadcast %23 : vector<1x32xf32> to vector<2x32xf32>
    %686 = arith.addf %685, %684 : vector<2x32xf32>
    %687 = vector.extract_strided_slice %20 {offsets = [1, 3, 0], sizes = [1, 1, 32], strides = [1, 1, 1]} : vector<2x9x32xf32> to vector<1x1x32xf32>
    %688 = vector.shape_cast %687 : vector<1x1x32xf32> to vector<32xf32>
    %689 = vector.shape_cast %688 : vector<32xf32> to vector<1x32xf32>
    %690 = vector.broadcast %689 : vector<1x32xf32> to vector<2x32xf32>
    %691 = arith.mulf %627, %690 : vector<2x32xf32>
    %692 = vector.extract_strided_slice %20 {offsets = [1, 4, 0], sizes = [1, 1, 32], strides = [1, 1, 1]} : vector<2x9x32xf32> to vector<1x1x32xf32>
    %693 = vector.shape_cast %692 : vector<1x1x32xf32> to vector<32xf32>
    %694 = vector.shape_cast %693 : vector<32xf32> to vector<1x32xf32>
    %695 = vector.broadcast %694 : vector<1x32xf32> to vector<2x32xf32>
    %696 = arith.mulf %628, %695 : vector<2x32xf32>
    %697 = arith.addf %691, %696 : vector<2x32xf32>
    %698 = vector.extract_strided_slice %20 {offsets = [1, 5, 0], sizes = [1, 1, 32], strides = [1, 1, 1]} : vector<2x9x32xf32> to vector<1x1x32xf32>
    %699 = vector.shape_cast %698 : vector<1x1x32xf32> to vector<32xf32>
    %700 = vector.shape_cast %699 : vector<32xf32> to vector<1x32xf32>
    %701 = vector.broadcast %700 : vector<1x32xf32> to vector<2x32xf32>
    %702 = arith.mulf %629, %701 : vector<2x32xf32>
    %703 = arith.addf %697, %702 : vector<2x32xf32>
    %704 = vector.extract_strided_slice %20 {offsets = [1, 6, 0], sizes = [1, 1, 32], strides = [1, 1, 1]} : vector<2x9x32xf32> to vector<1x1x32xf32>
    %705 = vector.shape_cast %704 : vector<1x1x32xf32> to vector<32xf32>
    %706 = vector.shape_cast %705 : vector<32xf32> to vector<1x32xf32>
    %707 = vector.broadcast %706 : vector<1x32xf32> to vector<2x32xf32>
    %708 = arith.mulf %632, %707 : vector<2x32xf32>
    %709 = arith.addf %703, %708 : vector<2x32xf32>
    %710 = vector.extract_strided_slice %20 {offsets = [1, 7, 0], sizes = [1, 1, 32], strides = [1, 1, 1]} : vector<2x9x32xf32> to vector<1x1x32xf32>
    %711 = vector.shape_cast %710 : vector<1x1x32xf32> to vector<32xf32>
    %712 = vector.shape_cast %711 : vector<32xf32> to vector<1x32xf32>
    %713 = vector.broadcast %712 : vector<1x32xf32> to vector<2x32xf32>
    %714 = arith.mulf %633, %713 : vector<2x32xf32>
    %715 = arith.addf %709, %714 : vector<2x32xf32>
    %716 = vector.extract_strided_slice %20 {offsets = [1, 8, 0], sizes = [1, 1, 32], strides = [1, 1, 1]} : vector<2x9x32xf32> to vector<1x1x32xf32>
    %717 = vector.shape_cast %716 : vector<1x1x32xf32> to vector<32xf32>
    %718 = vector.shape_cast %717 : vector<32xf32> to vector<1x32xf32>
    %719 = vector.broadcast %718 : vector<1x32xf32> to vector<2x32xf32>
    %720 = arith.mulf %634, %719 : vector<2x32xf32>
    %721 = arith.addf %715, %720 : vector<2x32xf32>
    %722 = vector.extract_strided_slice %21 {offsets = [1, 0, 0], sizes = [1, 1, 32], strides = [1, 1, 1]} : vector<2x1x32xf32> to vector<1x1x32xf32>
    %723 = vector.shape_cast %722 : vector<1x1x32xf32> to vector<1x32xf32>
    %724 = vector.broadcast %723 : vector<1x32xf32> to vector<2x32xf32>
    %725 = arith.addf %721, %724 : vector<2x32xf32>
    %cst_171 = arith.constant 5.000000e-01 : f32
    %726 = vector.broadcast %cst_171 : f32 to vector<2x32xf32>
    %727 = arith.mulf %726, %725 : vector<2x32xf32>
    %cst_172 = arith.constant 0.707106769 : f32
    %728 = vector.broadcast %cst_172 : f32 to vector<2x32xf32>
    %729 = arith.mulf %725, %728 : vector<2x32xf32>
    %730 = math.erf %729 : vector<2x32xf32>
    %cst_173 = arith.constant 1.000000e+00 : f32
    %731 = vector.broadcast %cst_173 : f32 to vector<2x32xf32>
    %732 = arith.addf %731, %730 : vector<2x32xf32>
    %733 = arith.mulf %727, %732 : vector<2x32xf32>
    %734 = vector.extract_strided_slice %22 {offsets = [1, 0, 0], sizes = [1, 32, 32], strides = [1, 1, 1]} : vector<2x32x32xf32> to vector<1x32x32xf32>
    %735 = vector.shape_cast %734 : vector<1x32x32xf32> to vector<32x32xf32>
    %cst_174 = arith.constant dense<0.000000e+00> : vector<2x32xf32>
    %736 = tpu.matmul %733, %735, %cst_174 {dimension_numbers = #tpu.dot_dimension_numbers<[1], [0], [0], [1], [0, 0, 1, 1], [], []>} : vector<2x32xf32>, vector<32x32xf32>, vector<2x32xf32> -> vector<2x32xf32>
    %737 = arith.addf %686, %736 : vector<2x32xf32>
    %738 = vector.extract_strided_slice %20 {offsets = [0, 0, 0], sizes = [1, 1, 32], strides = [1, 1, 1]} : vector<2x9x32xf32> to vector<1x1x32xf32>
    %739 = vector.shape_cast %738 : vector<1x1x32xf32> to vector<32xf32>
    %740 = vector.shape_cast %739 : vector<32xf32> to vector<1x32xf32>
    %741 = vector.broadcast %740 : vector<1x32xf32> to vector<2x32xf32>
    %742 = arith.mulf %627, %741 : vector<2x32xf32>
    %743 = vector.extract_strided_slice %20 {offsets = [0, 1, 0], sizes = [1, 1, 32], strides = [1, 1, 1]} : vector<2x9x32xf32> to vector<1x1x32xf32>
    %744 = vector.shape_cast %743 : vector<1x1x32xf32> to vector<32xf32>
    %745 = vector.shape_cast %744 : vector<32xf32> to vector<1x32xf32>
    %746 = vector.broadcast %745 : vector<1x32xf32> to vector<2x32xf32>
    %747 = arith.mulf %628, %746 : vector<2x32xf32>
    %748 = arith.addf %742, %747 : vector<2x32xf32>
    %749 = vector.extract_strided_slice %20 {offsets = [0, 2, 0], sizes = [1, 1, 32], strides = [1, 1, 1]} : vector<2x9x32xf32> to vector<1x1x32xf32>
    %750 = vector.shape_cast %749 : vector<1x1x32xf32> to vector<32xf32>
    %751 = vector.shape_cast %750 : vector<32xf32> to vector<1x32xf32>
    %752 = vector.broadcast %751 : vector<1x32xf32> to vector<2x32xf32>
    %753 = arith.mulf %629, %752 : vector<2x32xf32>
    %754 = arith.addf %748, %753 : vector<2x32xf32>
    %755 = vector.extract_strided_slice %20 {offsets = [0, 3, 0], sizes = [1, 1, 32], strides = [1, 1, 1]} : vector<2x9x32xf32> to vector<1x1x32xf32>
    %756 = vector.shape_cast %755 : vector<1x1x32xf32> to vector<32xf32>
    %757 = vector.shape_cast %756 : vector<32xf32> to vector<1x32xf32>
    %758 = vector.broadcast %757 : vector<1x32xf32> to vector<2x32xf32>
    %759 = arith.mulf %632, %758 : vector<2x32xf32>
    %760 = arith.addf %754, %759 : vector<2x32xf32>
    %761 = vector.extract_strided_slice %20 {offsets = [0, 4, 0], sizes = [1, 1, 32], strides = [1, 1, 1]} : vector<2x9x32xf32> to vector<1x1x32xf32>
    %762 = vector.shape_cast %761 : vector<1x1x32xf32> to vector<32xf32>
    %763 = vector.shape_cast %762 : vector<32xf32> to vector<1x32xf32>
    %764 = vector.broadcast %763 : vector<1x32xf32> to vector<2x32xf32>
    %765 = arith.mulf %633, %764 : vector<2x32xf32>
    %766 = arith.addf %760, %765 : vector<2x32xf32>
    %767 = vector.extract_strided_slice %20 {offsets = [0, 5, 0], sizes = [1, 1, 32], strides = [1, 1, 1]} : vector<2x9x32xf32> to vector<1x1x32xf32>
    %768 = vector.shape_cast %767 : vector<1x1x32xf32> to vector<32xf32>
    %769 = vector.shape_cast %768 : vector<32xf32> to vector<1x32xf32>
    %770 = vector.broadcast %769 : vector<1x32xf32> to vector<2x32xf32>
    %771 = arith.mulf %634, %770 : vector<2x32xf32>
    %772 = arith.addf %766, %771 : vector<2x32xf32>
    %773 = vector.extract_strided_slice %21 {offsets = [0, 0, 0], sizes = [1, 1, 32], strides = [1, 1, 1]} : vector<2x1x32xf32> to vector<1x1x32xf32>
    %774 = vector.shape_cast %773 : vector<1x1x32xf32> to vector<1x32xf32>
    %775 = vector.broadcast %774 : vector<1x32xf32> to vector<2x32xf32>
    %776 = arith.addf %772, %775 : vector<2x32xf32>
    %cst_175 = arith.constant 5.000000e-01 : f32
    %777 = vector.broadcast %cst_175 : f32 to vector<2x32xf32>
    %778 = arith.mulf %777, %776 : vector<2x32xf32>
    %cst_176 = arith.constant 0.707106769 : f32
    %779 = vector.broadcast %cst_176 : f32 to vector<2x32xf32>
    %780 = arith.mulf %776, %779 : vector<2x32xf32>
    %781 = math.erf %780 : vector<2x32xf32>
    %cst_177 = arith.constant 1.000000e+00 : f32
    %782 = vector.broadcast %cst_177 : f32 to vector<2x32xf32>
    %783 = arith.addf %782, %781 : vector<2x32xf32>
    %784 = arith.mulf %778, %783 : vector<2x32xf32>
    %785 = vector.extract_strided_slice %22 {offsets = [0, 0, 0], sizes = [1, 32, 32], strides = [1, 1, 1]} : vector<2x32x32xf32> to vector<1x32x32xf32>
    %786 = vector.shape_cast %785 : vector<1x32x32xf32> to vector<32x32xf32>
    %cst_178 = arith.constant dense<0.000000e+00> : vector<2x32xf32>
    %787 = tpu.matmul %784, %786, %cst_178 {dimension_numbers = #tpu.dot_dimension_numbers<[1], [0], [0], [1], [0, 0, 1, 1], [], []>} : vector<2x32xf32>, vector<32x32xf32>, vector<2x32xf32> -> vector<2x32xf32>
    %788 = vector.broadcast %23 : vector<1x32xf32> to vector<2x32xf32>
    %789 = arith.addf %788, %787 : vector<2x32xf32>
    %790 = vector.extract_strided_slice %20 {offsets = [1, 0, 0], sizes = [1, 1, 32], strides = [1, 1, 1]} : vector<2x9x32xf32> to vector<1x1x32xf32>
    %791 = vector.shape_cast %790 : vector<1x1x32xf32> to vector<32xf32>
    %792 = vector.shape_cast %791 : vector<32xf32> to vector<1x32xf32>
    %793 = vector.broadcast %792 : vector<1x32xf32> to vector<2x32xf32>
    %794 = arith.mulf %627, %793 : vector<2x32xf32>
    %795 = vector.extract_strided_slice %20 {offsets = [1, 1, 0], sizes = [1, 1, 32], strides = [1, 1, 1]} : vector<2x9x32xf32> to vector<1x1x32xf32>
    %796 = vector.shape_cast %795 : vector<1x1x32xf32> to vector<32xf32>
    %797 = vector.shape_cast %796 : vector<32xf32> to vector<1x32xf32>
    %798 = vector.broadcast %797 : vector<1x32xf32> to vector<2x32xf32>
    %799 = arith.mulf %628, %798 : vector<2x32xf32>
    %800 = arith.addf %794, %799 : vector<2x32xf32>
    %801 = vector.extract_strided_slice %20 {offsets = [1, 2, 0], sizes = [1, 1, 32], strides = [1, 1, 1]} : vector<2x9x32xf32> to vector<1x1x32xf32>
    %802 = vector.shape_cast %801 : vector<1x1x32xf32> to vector<32xf32>
    %803 = vector.shape_cast %802 : vector<32xf32> to vector<1x32xf32>
    %804 = vector.broadcast %803 : vector<1x32xf32> to vector<2x32xf32>
    %805 = arith.mulf %629, %804 : vector<2x32xf32>
    %806 = arith.addf %800, %805 : vector<2x32xf32>
    %807 = vector.extract_strided_slice %20 {offsets = [1, 3, 0], sizes = [1, 1, 32], strides = [1, 1, 1]} : vector<2x9x32xf32> to vector<1x1x32xf32>
    %808 = vector.shape_cast %807 : vector<1x1x32xf32> to vector<32xf32>
    %809 = vector.shape_cast %808 : vector<32xf32> to vector<1x32xf32>
    %810 = vector.broadcast %809 : vector<1x32xf32> to vector<2x32xf32>
    %811 = arith.mulf %632, %810 : vector<2x32xf32>
    %812 = arith.addf %806, %811 : vector<2x32xf32>
    %813 = vector.extract_strided_slice %20 {offsets = [1, 4, 0], sizes = [1, 1, 32], strides = [1, 1, 1]} : vector<2x9x32xf32> to vector<1x1x32xf32>
    %814 = vector.shape_cast %813 : vector<1x1x32xf32> to vector<32xf32>
    %815 = vector.shape_cast %814 : vector<32xf32> to vector<1x32xf32>
    %816 = vector.broadcast %815 : vector<1x32xf32> to vector<2x32xf32>
    %817 = arith.mulf %633, %816 : vector<2x32xf32>
    %818 = arith.addf %812, %817 : vector<2x32xf32>
    %819 = vector.extract_strided_slice %20 {offsets = [1, 5, 0], sizes = [1, 1, 32], strides = [1, 1, 1]} : vector<2x9x32xf32> to vector<1x1x32xf32>
    %820 = vector.shape_cast %819 : vector<1x1x32xf32> to vector<32xf32>
    %821 = vector.shape_cast %820 : vector<32xf32> to vector<1x32xf32>
    %822 = vector.broadcast %821 : vector<1x32xf32> to vector<2x32xf32>
    %823 = arith.mulf %634, %822 : vector<2x32xf32>
    %824 = arith.addf %818, %823 : vector<2x32xf32>
    %825 = vector.extract_strided_slice %21 {offsets = [1, 0, 0], sizes = [1, 1, 32], strides = [1, 1, 1]} : vector<2x1x32xf32> to vector<1x1x32xf32>
    %826 = vector.shape_cast %825 : vector<1x1x32xf32> to vector<1x32xf32>
    %827 = vector.broadcast %826 : vector<1x32xf32> to vector<2x32xf32>
    %828 = arith.addf %824, %827 : vector<2x32xf32>
    %cst_179 = arith.constant 5.000000e-01 : f32
    %829 = vector.broadcast %cst_179 : f32 to vector<2x32xf32>
    %830 = arith.mulf %829, %828 : vector<2x32xf32>
    %cst_180 = arith.constant 0.707106769 : f32
    %831 = vector.broadcast %cst_180 : f32 to vector<2x32xf32>
    %832 = arith.mulf %828, %831 : vector<2x32xf32>
    %833 = math.erf %832 : vector<2x32xf32>
    %cst_181 = arith.constant 1.000000e+00 : f32
    %834 = vector.broadcast %cst_181 : f32 to vector<2x32xf32>
    %835 = arith.addf %834, %833 : vector<2x32xf32>
    %836 = arith.mulf %830, %835 : vector<2x32xf32>
    %837 = vector.extract_strided_slice %22 {offsets = [1, 0, 0], sizes = [1, 32, 32], strides = [1, 1, 1]} : vector<2x32x32xf32> to vector<1x32x32xf32>
    %838 = vector.shape_cast %837 : vector<1x32x32xf32> to vector<32x32xf32>
    %cst_182 = arith.constant dense<0.000000e+00> : vector<2x32xf32>
    %839 = tpu.matmul %836, %838, %cst_182 {dimension_numbers = #tpu.dot_dimension_numbers<[1], [0], [0], [1], [0, 0, 1, 1], [], []>} : vector<2x32xf32>, vector<32x32xf32>, vector<2x32xf32> -> vector<2x32xf32>
    %840 = arith.addf %789, %839 : vector<2x32xf32>
    %841 = tpu.concatenate %737, %840 in 0 : vector<2x32xf32>, vector<2x32xf32> -> vector<4x32xf32>
    %842 = arith.addf %598, %841 : vector<4x32xf32>
    %c0_183 = arith.constant 0 : index
    %c0_184 = arith.constant 0 : index
    %843 = vector.load %arg24[%c0_183, %c0_184] : memref<1x32xf32, #tpu.memory_space<vmem>>, vector<1x32xf32>
    %c0_185 = arith.constant 0 : index
    %c0_186 = arith.constant 0 : index
    %844 = vector.load %arg25[%c0_185, %c0_186] : memref<1x32xf32, #tpu.memory_space<vmem>>, vector<1x32xf32>
    %cst_187 = arith.constant dense<0.000000e+00> : vector<4xf32>
    %845 = vector.multi_reduction <add>, %842, %cst_187 [1] : vector<4x32xf32> to vector<4xf32>
    %846 = vector.shape_cast %845 : vector<4xf32> to vector<4x1xf32>
    %cst_188 = arith.constant 3.200000e+01 : f32
    %847 = vector.broadcast %cst_188 : f32 to vector<4x1xf32>
    %848 = arith.divf %846, %847 : vector<4x1xf32>
    %849 = vector.broadcast %848 : vector<4x1xf32> to vector<4x32xf32>
    %850 = arith.subf %842, %849 : vector<4x32xf32>
    %851 = arith.mulf %850, %850 : vector<4x32xf32>
    %cst_189 = arith.constant dense<0.000000e+00> : vector<4xf32>
    %852 = vector.multi_reduction <add>, %851, %cst_189 [1] : vector<4x32xf32> to vector<4xf32>
    %853 = vector.shape_cast %852 : vector<4xf32> to vector<4x1xf32>
    %cst_190 = arith.constant 3.200000e+01 : f32
    %854 = vector.broadcast %cst_190 : f32 to vector<4x1xf32>
    %855 = arith.divf %853, %854 : vector<4x1xf32>
    %856 = vector.broadcast %848 : vector<4x1xf32> to vector<4x32xf32>
    %857 = arith.subf %842, %856 : vector<4x32xf32>
    %cst_191 = arith.constant 9.99999974E-6 : f32
    %858 = vector.broadcast %cst_191 : f32 to vector<4x1xf32>
    %859 = arith.addf %855, %858 : vector<4x1xf32>
    %860 = math.rsqrt %859 : vector<4x1xf32>
    %861 = vector.broadcast %860 : vector<4x1xf32> to vector<4x32xf32>
    %862 = arith.mulf %857, %861 : vector<4x32xf32>
    %863 = vector.broadcast %843 : vector<1x32xf32> to vector<4x32xf32>
    %864 = arith.mulf %862, %863 : vector<4x32xf32>
    %865 = vector.broadcast %844 : vector<1x32xf32> to vector<4x32xf32>
    %866 = arith.addf %864, %865 : vector<4x32xf32>
    %c4 = arith.constant 4 : index
    %c0_192 = arith.constant 0 : index
    %867 = vector.load %arg26[%c4, %c0_192] : memref<8x32xf32, #tpu.memory_space<vmem>>, vector<4x32xf32>
    tpu.vector_store %arg26[%c4, %c0_192], %866 {strides = array<i32>} : memref<8x32xf32, #tpu.memory_space<vmem>>, vector<4x32xf32>,
    return
  }
}

module attributes {stable_mosaic.version = 11 : i64} {
  func.func @_head_kernel(%arg0: memref<32x32xf32, #tpu.memory_space<vmem>>, %arg1: memref<32x16xf32, #tpu.memory_space<vmem>>, %arg2: memref<32x32xf32, #tpu.memory_space<vmem>>, %arg3: memref<1x32xf32, #tpu.memory_space<vmem>>, %arg4: memref<32x32xf32, #tpu.memory_space<vmem>>, %arg5: memref<16x32xf32, #tpu.memory_space<vmem>>, %arg6: memref<1x32xf32, #tpu.memory_space<vmem>>, %arg7: memref<32x32xf32, #tpu.memory_space<vmem>>, %arg8: memref<1x32xf32, #tpu.memory_space<vmem>>, %arg9: memref<1x32xf32, #tpu.memory_space<vmem>>, %arg10: memref<32x3xf32, #tpu.memory_space<vmem>>, %arg11: memref<1x3xf32, #tpu.memory_space<vmem>>, %arg12: memref<32x3xf32, #tpu.memory_space<vmem>>) attributes {dimension_semantics = [], scalar_prefetch = 0 : i64, scratch_operands = 0 : i64, tpu.core_type = #tpu.core_type<tc>} {
    %c0 = arith.constant 0 : index
    %c0_0 = arith.constant 0 : index
    %0 = vector.load %arg0[%c0, %c0_0] : memref<32x32xf32, #tpu.memory_space<vmem>>, vector<32x32xf32>
    %c0_1 = arith.constant 0 : index
    %c0_2 = arith.constant 0 : index
    %1 = vector.load %arg2[%c0_1, %c0_2] : memref<32x32xf32, #tpu.memory_space<vmem>>, vector<32x32xf32>
    %c0_3 = arith.constant 0 : index
    %c0_4 = arith.constant 0 : index
    %2 = vector.load %arg3[%c0_3, %c0_4] : memref<1x32xf32, #tpu.memory_space<vmem>>, vector<1x32xf32>
    %c0_5 = arith.constant 0 : index
    %c0_6 = arith.constant 0 : index
    %3 = vector.load %arg4[%c0_5, %c0_6] : memref<32x32xf32, #tpu.memory_space<vmem>>, vector<32x32xf32>
    %cst = arith.constant dense<0.000000e+00> : vector<32x32xf32>
    %4 = tpu.matmul %0, %1, %cst {dimension_numbers = #tpu.dot_dimension_numbers<[1], [0], [0], [1], [0, 0, 1, 1], [], []>} : vector<32x32xf32>, vector<32x32xf32>, vector<32x32xf32> -> vector<32x32xf32>
    %5 = vector.broadcast %2 : vector<1x32xf32> to vector<32x32xf32>
    %6 = arith.addf %4, %5 : vector<32x32xf32>
    %cst_7 = arith.constant dense<0.000000e+00> : vector<32x32xf32>
    %7 = tpu.matmul %6, %3, %cst_7 {dimension_numbers = #tpu.dot_dimension_numbers<[1], [0], [0], [1], [0, 0, 1, 1], [], []>} : vector<32x32xf32>, vector<32x32xf32>, vector<32x32xf32> -> vector<32x32xf32>
    %c0_8 = arith.constant 0 : index
    %c0_9 = arith.constant 0 : index
    %8 = vector.load %arg1[%c0_8, %c0_9] : memref<32x16xf32, #tpu.memory_space<vmem>>, vector<32x16xf32>
    %c0_10 = arith.constant 0 : index
    %c0_11 = arith.constant 0 : index
    %9 = vector.load %arg5[%c0_10, %c0_11] : memref<16x32xf32, #tpu.memory_space<vmem>>, vector<16x32xf32>
    %c0_12 = arith.constant 0 : index
    %c0_13 = arith.constant 0 : index
    %10 = vector.load %arg6[%c0_12, %c0_13] : memref<1x32xf32, #tpu.memory_space<vmem>>, vector<1x32xf32>
    %c0_14 = arith.constant 0 : index
    %c0_15 = arith.constant 0 : index
    %11 = vector.load %arg7[%c0_14, %c0_15] : memref<32x32xf32, #tpu.memory_space<vmem>>, vector<32x32xf32>
    %cst_16 = arith.constant dense<0.000000e+00> : vector<32x32xf32>
    %12 = tpu.matmul %8, %9, %cst_16 {dimension_numbers = #tpu.dot_dimension_numbers<[1], [0], [0], [1], [0, 0, 1, 1], [], []>} : vector<32x16xf32>, vector<16x32xf32>, vector<32x32xf32> -> vector<32x32xf32>
    %13 = vector.broadcast %10 : vector<1x32xf32> to vector<32x32xf32>
    %14 = arith.addf %12, %13 : vector<32x32xf32>
    %cst_17 = arith.constant dense<0.000000e+00> : vector<32x32xf32>
    %15 = tpu.matmul %14, %11, %cst_17 {dimension_numbers = #tpu.dot_dimension_numbers<[1], [0], [0], [1], [0, 0, 1, 1], [], []>} : vector<32x32xf32>, vector<32x32xf32>, vector<32x32xf32> -> vector<32x32xf32>
    %16 = arith.addf %7, %15 : vector<32x32xf32>
    %c0_18 = arith.constant 0 : index
    %c0_19 = arith.constant 0 : index
    %17 = vector.load %arg8[%c0_18, %c0_19] : memref<1x32xf32, #tpu.memory_space<vmem>>, vector<1x32xf32>
    %c0_20 = arith.constant 0 : index
    %c0_21 = arith.constant 0 : index
    %18 = vector.load %arg9[%c0_20, %c0_21] : memref<1x32xf32, #tpu.memory_space<vmem>>, vector<1x32xf32>
    %c0_22 = arith.constant 0 : index
    %c0_23 = arith.constant 0 : index
    %19 = vector.load %arg10[%c0_22, %c0_23] : memref<32x3xf32, #tpu.memory_space<vmem>>, vector<32x3xf32>
    %c0_24 = arith.constant 0 : index
    %c0_25 = arith.constant 0 : index
    %20 = vector.load %arg11[%c0_24, %c0_25] : memref<1x3xf32, #tpu.memory_space<vmem>>, vector<1x3xf32>
    %cst_26 = arith.constant 0.000000e+00 : f32
    %21 = vector.broadcast %cst_26 : f32 to vector<32x32xf32>
    %22 = arith.maximumf %16, %21 : vector<32x32xf32>
    %cst_27 = arith.constant dense<0.000000e+00> : vector<32xf32>
    %23 = vector.multi_reduction <add>, %22, %cst_27 [0] : vector<32x32xf32> to vector<32xf32>
    %24 = vector.shape_cast %23 : vector<32xf32> to vector<1x32xf32>
    %cst_28 = arith.constant 3.200000e+01 : f32
    %25 = vector.broadcast %cst_28 : f32 to vector<1x32xf32>
    %26 = arith.divf %24, %25 : vector<1x32xf32>
    %27 = vector.broadcast %26 : vector<1x32xf32> to vector<32x32xf32>
    %28 = arith.subf %22, %27 : vector<32x32xf32>
    %29 = arith.mulf %28, %28 : vector<32x32xf32>
    %cst_29 = arith.constant dense<0.000000e+00> : vector<32xf32>
    %30 = vector.multi_reduction <add>, %29, %cst_29 [0] : vector<32x32xf32> to vector<32xf32>
    %31 = vector.shape_cast %30 : vector<32xf32> to vector<1x32xf32>
    %cst_30 = arith.constant 3.200000e+01 : f32
    %32 = vector.broadcast %cst_30 : f32 to vector<1x32xf32>
    %33 = arith.divf %31, %32 : vector<1x32xf32>
    %34 = vector.broadcast %26 : vector<1x32xf32> to vector<32x32xf32>
    %35 = arith.subf %22, %34 : vector<32x32xf32>
    %cst_31 = arith.constant 9.99999974E-6 : f32
    %36 = vector.broadcast %cst_31 : f32 to vector<1x32xf32>
    %37 = arith.addf %33, %36 : vector<1x32xf32>
    %38 = math.rsqrt %37 : vector<1x32xf32>
    %39 = vector.broadcast %38 : vector<1x32xf32> to vector<32x32xf32>
    %40 = arith.mulf %35, %39 : vector<32x32xf32>
    %41 = vector.broadcast %17 : vector<1x32xf32> to vector<32x32xf32>
    %42 = arith.mulf %40, %41 : vector<32x32xf32>
    %43 = vector.broadcast %18 : vector<1x32xf32> to vector<32x32xf32>
    %44 = arith.addf %42, %43 : vector<32x32xf32>
    %cst_32 = arith.constant dense<0.000000e+00> : vector<32x3xf32>
    %45 = tpu.matmul %44, %19, %cst_32 {dimension_numbers = #tpu.dot_dimension_numbers<[1], [0], [0], [1], [0, 0, 1, 1], [], []>} : vector<32x32xf32>, vector<32x3xf32>, vector<32x3xf32> -> vector<32x3xf32>
    %46 = vector.broadcast %20 : vector<1x3xf32> to vector<32x3xf32>
    %47 = arith.addf %45, %46 : vector<32x3xf32>
    %c0_33 = arith.constant 0 : index
    %c0_34 = arith.constant 0 : index
    %48 = vector.load %arg12[%c0_33, %c0_34] : memref<32x3xf32, #tpu.memory_space<vmem>>, vector<32x3xf32>
    tpu.vector_store %arg12[%c0_33, %c0_34], %47 {strides = array<i32>} : memref<32x3xf32, #tpu.memory_space<vmem>>, vector<32x3xf32>,
    return
  }
}

</mosaic_0001>

<bundles_post_ra>
// kernel: segformer_forward.5
= control target key start
LH: loop header
LB: loop body
LE: loop exit
PB: predicated region body
PF: predicated region fallthrough
CT: control target
= control target key end

     0   :  { %v302_v0 = vmov 0.0   ;;  %vm63_vm0 = vcmask 1043456   ;;  %vm50_vm1 = vcmask 556032   ;;  %vm154_vm2 = vcmask 130048   ;;  %s507_s1 = inlined_call_operand.vmem [shape: f32[196,16], index: 1, kind: input, shape index: {}]   ;;  %s508_s0 = inlined_call_operand.vmem [shape: f32[32,196], index: 0, kind: input, shape index: {}]   ;;  %s509_s2 = inlined_call_operand.vmem [shape: f32[1,16], index: 2, kind: input, shape index: {}]   ;;  %s510_s3 = inlined_call_operand.vmem [shape: f32[1,16], index: 3, kind: input, shape index: {}]   ;;  %s511_s4 = inlined_call_operand.vmem [shape: f32[32,16], index: 4, kind: output, shape index: {}]  }
   0x1   :  { %67 = vmatprep.subr.mxu0 %v302_v0  ;;  %243 = vmatprep.subr.mxu1 %v302_v0  ;;  %v40_v1 = vld [vmem:[%s507_s1 + $0x78] sm:$0xff]  ;;  %v39_v2 = vld [vmem:[%s507_s1 + $0x70] sm:$0xff]  ;;  %v38_v3 = vld [vmem:[%s507_s1 + $0x68] sm:$0xff] }
   0x2   :  { %68 = vmatpush1.msra.mxu0 %v40_v1  ;;  %268 = vmatpush1.msra.mxu1 %v40_v1  ;;  %v37_v4 = vld [vmem:[%s507_s1 + $0x60] sm:$0xff]  ;;  %v36_v5 = vld [vmem:[%s507_s1 + $0x58] sm:$0xff]  ;;  %v35_v6 = vld [vmem:[%s507_s1 + $0x50] sm:$0xff] }
   0x3   :  { %69 = vmatprep.subr.mxu0 %v302_v0  ;;  %244 = vmatprep.subr.mxu1 %v302_v0  ;;  %v34_v7 = vld [vmem:[%s507_s1 + $0x48] sm:$0xff]  ;;  %v33_v8 = vld [vmem:[%s507_s1 + $0x40] sm:$0xff]  ;;  %v32_v9 = vld [vmem:[%s507_s1 + $0x38] sm:$0xff] }
   0x4   :  { %70 = vmatpush1.msra.mxu0 %v39_v2  ;;  %269 = vmatpush1.msra.mxu1 %v39_v2  ;;  %v31_v10 = vld [vmem:[%s507_s1 + $0x30] sm:$0xff]  ;;  %v30_v11 = vld [vmem:[%s507_s1 + $0x28] sm:$0xff]  ;;  %v29_v12 = vld [vmem:[%s507_s1 + $0x20] sm:$0xff] }
   0x5   :  { %71 = vmatprep.subr.mxu0 %v302_v0  ;;  %245 = vmatprep.subr.mxu1 %v302_v0  ;;  %v28_v13 = vld [vmem:[%s507_s1 + $0x18] sm:$0xff]  ;;  %v27_v14 = vld [vmem:[%s507_s1 + $0x10] sm:$0xff]  ;;  %v26_v15 = vld [vmem:[%s507_s1 + $0x8] sm:$0xff] }
   0x6   :  { %72 = vmatpush1.msra.mxu0 %v38_v3  ;;  %270 = vmatpush1.msra.mxu1 %v38_v3  ;;  %v25_v16 = vld [vmem:[%s507_s1] sm:$0xff]  ;;  %v48_v18 = vld [vmem:[%s507_s1 + $0xb8] sm:$0xff]  ;;  %v47_v19 = vld [vmem:[%s507_s1 + $0xb0] sm:$0xff] }
   0x7   :  { %73 = vmatprep.subr.mxu0 %v302_v0  ;;  %246 = vmatprep.subr.mxu1 %v302_v0  ;;  %v49_v17 = vld [vmem:[%s507_s1 + $0xc0] sm:$0xf]  ;;  %v46_v20 = vld [vmem:[%s507_s1 + $0xa8] sm:$0xff]  ;;  %v44_v22 = vld [vmem:[%s507_s1 + $0x98] sm:$0xff] }
   0x8   :  { %74 = vmatpush1.msra.mxu0 %v37_v4  ;;  %271 = vmatpush1.msra.mxu1 %v37_v4  ;;  %v45_v21 = vld [vmem:[%s507_s1 + $0xa0] sm:$0xff]  ;;  %v43_v23 = vld [vmem:[%s507_s1 + $0x90] sm:$0xff]  ;;  %v42_v24 = vld [vmem:[%s507_s1 + $0x88] sm:$0xff] }
   0x9   :  { %75 = vmatprep.subr.mxu0 %v302_v0  ;;  %247 = vmatprep.subr.mxu1 %v302_v0  ;;  %v41_v25 = vld [vmem:[%s507_s1 + $0x80] sm:$0xff]  ;;  %v18_v26 = vld [vmem:[%s508_s0 + $0x8] sm:$0xff]  ;;  %v20_v30 = vld [vmem:[%s508_s0 + $0x18] sm:$0xff] }
   0xa   :  { %76 = vmatpush1.msra.mxu0 %v36_v5  ;;  %272 = vmatpush1.msra.mxu1 %v36_v5  ;;  %v22_v27 = vld [vmem:[%s508_s0 + $0x28] sm:$0xff]  ;;  %v17_v28 = vld [vmem:[%s508_s0] sm:$0xff]  ;;  %v24_v31 = vld [vmem:[%s508_s0 + $0x38] sm:$0xff] }
   0xb   :  { %77 = vmatprep.subr.mxu0 %v302_v0  ;;  %248 = vmatprep.subr.mxu1 %v302_v0  ;;  %v21_v29 = vld [vmem:[%s508_s0 + $0x20] sm:$0xff]  ;;  %v19_v32 = vld [vmem:[%s508_s0 + $0x10] sm:$0xff] }
   0xc   :  { %78 = vmatpush1.msra.mxu0 %v35_v6  ;;  %273 = vmatpush1.msra.mxu1 %v35_v6  ;;  %v23_v33 = vld [vmem:[%s508_s0 + $0x30] sm:$0xff] }
   0xd   :  { %79 = vmatprep.subr.mxu0 %v302_v0  ;;  %249 = vmatprep.subr.mxu1 %v302_v0 }
   0xe   :  { %80 = vmatpush1.msra.mxu0 %v34_v7  ;;  %274 = vmatpush1.msra.mxu1 %v34_v7 }
   0xf   :  { %81 = vmatprep.subr.mxu0 %v302_v0  ;;  %250 = vmatprep.subr.mxu1 %v302_v0 }
  0x10   :  { %82 = vmatpush1.msra.mxu0 %v33_v8  ;;  %275 = vmatpush1.msra.mxu1 %v33_v8 }
  0x11   :  { %83 = vmatprep.subr.mxu0 %v302_v0  ;;  %251 = vmatprep.subr.mxu1 %v302_v0 }
  0x12   :  { %84 = vmatpush1.msra.mxu0 %v32_v9  ;;  %276 = vmatpush1.msra.mxu1 %v32_v9 }
  0x13   :  { %85 = vmatprep.subr.mxu0 %v302_v0  ;;  %252 = vmatprep.subr.mxu1 %v302_v0 }
  0x14   :  { %86 = vmatpush1.msra.mxu0 %v31_v10  ;;  %277 = vmatpush1.msra.mxu1 %v31_v10 }
  0x15   :  { %87 = vmatprep.subr.mxu0 %v302_v0  ;;  %253 = vmatprep.subr.mxu1 %v302_v0 }
  0x16   :  { %88 = vmatpush1.msra.mxu0 %v30_v11  ;;  %278 = vmatpush1.msra.mxu1 %v30_v11 }
  0x17   :  { %89 = vmatprep.subr.mxu0 %v302_v0  ;;  %254 = vmatprep.subr.mxu1 %v302_v0 }
  0x18   :  { %90 = vmatpush1.msra.mxu0 %v29_v12  ;;  %279 = vmatpush1.msra.mxu1 %v29_v12 }
  0x19   :  { %91 = vmatprep.subr.mxu0 %v302_v0  ;;  %255 = vmatprep.subr.mxu1 %v302_v0 }
  0x1a   :  { %92 = vmatpush1.msra.mxu0 %v28_v13  ;;  %280 = vmatpush1.msra.mxu1 %v28_v13 }
  0x1b   :  { %93 = vmatprep.subr.mxu0 %v302_v0  ;;  %256 = vmatprep.subr.mxu1 %v302_v0 }
  0x1c   :  { %94 = vmatpush1.msra.mxu0 %v27_v14  ;;  %281 = vmatpush1.msra.mxu1 %v27_v14 }
  0x1d   :  { %95 = vmatprep.subr.mxu0 %v302_v0  ;;  %257 = vmatprep.subr.mxu1 %v302_v0 }
  0x1e   :  { %96 = vmatpush1.msra.mxu0 %v26_v15  ;;  %282 = vmatpush1.msra.mxu1 %v26_v15  ;;  %v241_v15 = vld [vmem:[%s509_s2] ss:$0 sm:$0xff] }
  0x1f   :  { %97 = vmatprep.subr.mxu0 %v302_v0  ;;  %258 = vmatprep.subr.mxu1 %v302_v0 }
  0x20   :  { %98 = vmatpush1.msra.mxu0 %v25_v16  ;;  %283 = vmatpush1.msra.mxu1 %v25_v16 }
  0x21   :  { %113 = vmatprep.subr.mxu0 %v302_v0  ;;  %259 = vmatprep.subr.mxu1 %v302_v0 }
  0x22   :  { %236 = vmatpush2.msk.msra.mxu0 %vm63_vm0, %v49_v17  ;;  %284 = vmatpush2.msk.msra.mxu1 %vm63_vm0, %v49_v17  ;;  %v242_v17 = vld [vmem:[%s510_s3] ss:$0 sm:$0xff] }
  0x23   :  { %115 = vmatprep.subr.mxu0 %v302_v0  ;;  %260 = vmatprep.subr.mxu1 %v302_v0 }
  0x24   :  { %116 = vmatpush2.msra.mxu0 %v48_v18  ;;  %285 = vmatpush2.msra.mxu1 %v48_v18 }
  0x25   :  { %117 = vmatprep.subr.mxu0 %v302_v0  ;;  %261 = vmatprep.subr.mxu1 %v302_v0 }
  0x26   :  { %118 = vmatpush2.msra.mxu0 %v47_v19  ;;  %286 = vmatpush2.msra.mxu1 %v47_v19 }
  0x27   :  { %119 = vmatprep.subr.mxu0 %v302_v0  ;;  %262 = vmatprep.subr.mxu1 %v302_v0 }
  0x28   :  { %120 = vmatpush2.msra.mxu0 %v46_v20  ;;  %287 = vmatpush2.msra.mxu1 %v46_v20 }
  0x29   :  { %121 = vmatprep.subr.mxu0 %v302_v0  ;;  %263 = vmatprep.subr.mxu1 %v302_v0 }
  0x2a   :  { %122 = vmatpush2.msra.mxu0 %v45_v21  ;;  %288 = vmatpush2.msra.mxu1 %v45_v21 }
  0x2b   :  { %123 = vmatprep.subr.mxu0 %v302_v0  ;;  %264 = vmatprep.subr.mxu1 %v302_v0 }
  0x2c   :  { %124 = vmatpush2.msra.mxu0 %v44_v22  ;;  %289 = vmatpush2.msra.mxu1 %v44_v22 }
  0x2d   :  { %125 = vmatprep.subr.mxu0 %v302_v0  ;;  %265 = vmatprep.subr.mxu1 %v302_v0 }
  0x2e   :  { %126 = vmatpush2.msra.mxu0 %v43_v23  ;;  %290 = vmatpush2.msra.mxu1 %v43_v23 }
  0x2f   :  { %127 = vmatprep.subr.mxu0 %v302_v0  ;;  %266 = vmatprep.subr.mxu1 %v302_v0 }
  0x30   :  { %128 = vmatpush2.msra.mxu0 %v42_v24  ;;  %291 = vmatpush2.msra.mxu1 %v42_v24 }
  0x31   :  { %129 = vmatprep.subr.mxu0 %v302_v0  ;;  %267 = vmatprep.subr.mxu1 %v302_v0 }
  0x32   :  { %130 = vmatpush2.msra.mxu0 %v41_v25  ;;  %292 = vmatpush2.msra.mxu1 %v41_v25 }
  0x33   :  { %237 = vmatprep.mubr.msk.f32.mxu0 %vm50_vm1, %v18_v26  ;;  %239 = vmatprep.mubr.msk.f32.mxu1 %vm50_vm1, %v22_v27 }
  0x34   :  { %132 = vmatmul.mubr.f32.vlgmr.msra.gmra.mxu0 %v17_v28  ;;  %142 = vmatmul.mubr.f32.vlgmr.msra.gmra.mxu1 %v21_v29 }
  0x35   :  { %238 = vmatprep.mubr.msk.f32.mxu0 %vm50_vm1, %v20_v30  ;;  %240 = vmatprep.mubr.msk.f32.mxu1 %vm50_vm1, %v24_v31 }
  0x38   :  { %137 = vmatmul.mubr.f32.gmra.mxu0 %v19_v32  ;;  %147 = vmatmul.mubr.f32.gmra.mxu1 %v23_v33 }
  0xf4   :  { %v133_v34 = vpop.f32.mrf.mxu0  ;;  %v143_v35 = vpop.f32.mrf.mxu1 }
  0xf5   :  { %v161_v36 = vsel %vm154_vm2, %v143_v35, 0.0  ;;  %v155_v37 = vsel %vm154_vm2, %v133_v34, 0.0 }
  0xf6   :  { %162 = vadd.xlane.f32.xlu1 %v161_v36  ;;  %v145_v38 = vpop.f32.mrf.mxu1  ;;  %156 = vadd.xlane.f32.xlu0 %v155_v37  ;;  %v135_v39 = vpop.f32.mrf.mxu0 }
  0xf8   :  { %v138_v40 = vpop.f32.mrf.mxu0  ;;  %v148_v41 = vpop.f32.mrf.mxu1 }
  0xf9   :  { %v164_v42 = vsel %vm154_vm2, %v148_v41, 0.0  ;;  %v158_v43 = vsel %vm154_vm2, %v138_v40, 0.0 }
  0xfa   :  { %165 = vadd.xlane.f32.xlu1 %v164_v42  ;;  %159 = vadd.xlane.f32.xlu0 %v158_v43  ;;  %v140_v44 = vpop.f32.mrf.mxu0  ;;  %v150_v45 = vpop.f32.mrf.mxu1 }
 0x17f   :  { %v163_v46 = vpop.xlane.xlu1 %162  ;;  %v157_v47 = vpop.xlane.xlu0 %156 }
 0x180   :  { %v170_v48 = vmul.f32 0.0625, %v163_v46  ;;  %v168_v49 = vmul.f32 0.0625, %v157_v47 }
 0x182   :  { %v174_v50 = vsub.f32 %v143_v35, %v170_v48  ;;  %v172_v51 = vsub.f32 %v133_v34, %v168_v49 }
 0x183   :  { %v166_v52 = vpop.xlane.xlu1 %165  ;;  %v160_v53 = vpop.xlane.xlu0 %159 }
 0x184   :  { %v171_v54 = vmul.f32 0.0625, %v166_v52  ;;  %v169_v55 = vmul.f32 0.0625, %v160_v53  ;;  %v176_v56 = vmul.f32 %v172_v51, %v172_v51  ;;  %v178_v60 = vmul.f32 %v174_v50, %v174_v50 }
 0x186   :  { %v175_v57 = vsub.f32 %v148_v41, %v171_v54  ;;  %v173_v58 = vsub.f32 %v138_v40, %v169_v55  ;;  %v180_v59 = vsel %vm154_vm2, %v176_v56, 0.0  ;;  %v186_v62 = vsel %vm154_vm2, %v178_v60, 0.0 }
 0x187   :  { %181 = vadd.xlane.f32.xlu0 %v180_v59 }
 0x188   :  { %v177_v61 = vmul.f32 %v173_v58, %v173_v58  ;;  %v179_v0 = vmul.f32 %v175_v57, %v175_v57 }
 0x18a   :  { %v183_v63 = vsel %vm154_vm2, %v177_v61, 0.0  ;;  %v189_v1 = vsel %vm154_vm2, %v179_v0, 0.0 }
 0x18b   :  { %187 = vadd.xlane.f32.xlu0 %v186_v62  ;;  %184 = vadd.xlane.f32.xlu1 %v183_v63 }
 0x18f   :  { %190 = vadd.xlane.f32.xlu1 %v189_v1 }
 0x210   :  { %v182_v2 = vpop.xlane.xlu0 %181 }
 0x211   :  { %v192_v3 = vmul.f32 0.0625, %v182_v2 }
 0x213   :  { %v196_v4 = vadd.f32 1e-05, %v192_v3 }
 0x214   :  { %v185_v5 = vpop.xlane.xlu1 %184  ;;  %v188_v6 = vpop.xlane.xlu0 %187 }
 0x215   :  { %294 = vrsqrt.f32 %v196_v4  ;;  %v193_v7 = vmul.f32 0.0625, %v185_v5  ;;  %v194_v8 = vmul.f32 0.0625, %v188_v6 }
 0x217   :  { %v197_v9 = vadd.f32 1e-05, %v193_v7  ;;  %v198_v10 = vadd.f32 1e-05, %v194_v8 }
 0x218   :  { %v191_v11 = vpop.xlane.xlu1 %190 }
 0x219   :  { %296 = vrsqrt.f32 %v197_v9  ;;  %v195_v12 = vmul.f32 0.0625, %v191_v11 }
 0x21a   :  { %298 = vrsqrt.f32 %v198_v10 }
 0x21b   :  { %v199_v13 = vadd.f32 1e-05, %v195_v12 }
 0x21d   :  { %300 = vrsqrt.f32 %v199_v13 }
 0x222   :  { %v295_v14 = vpop.eup %294 }
 0x223   :  { %v204_v16 = vmul.f32 %v295_v14, %v172_v51 }
 0x225   :  { %v214_v18 = vmul.f32 %v241_v15, %v204_v16 }
 0x226   :  { %v297_v19 = vpop.eup %296 }
 0x227   :  { %v299_v20 = vpop.eup %298  ;;  %v224_v21 = vadd.f32 %v242_v17, %v214_v18  ;;  %v205_v22 = vmul.f32 %v297_v19, %v173_v58 }
 0x228   :  { %v206_v23 = vmul.f32 %v299_v20, %v174_v50 }
 0x229   :  { %228 = vst.msk [vmem:[%s511_s4] sm:$0xff] %vm154_vm2, %v224_v21  ;;  %v215_v24 = vmul.f32 %v241_v15, %v205_v22 }
 0x22a   :  { %v301_v25 = vpop.eup %300  ;;  %v216_v26 = vmul.f32 %v241_v15, %v206_v23 }
 0x22b   :  { %v225_v27 = vadd.f32 %v242_v17, %v215_v24  ;;  %v207_v28 = vmul.f32 %v301_v25, %v175_v57 }
 0x22c   :  { %v226_v29 = vadd.f32 %v242_v17, %v216_v26 }
 0x22d   :  { %229 = vst.msk [vmem:[%s511_s4 + $0x8] sm:$0xff] %vm154_vm2, %v225_v27  ;;  %v217_v30 = vmul.f32 %v241_v15, %v207_v28 }
 0x22e   :  { %230 = vst.msk [vmem:[%s511_s4 + $0x10] sm:$0xff] %vm154_vm2, %v226_v29 }
 0x22f   :  { %v227_v31 = vadd.f32 %v242_v17, %v217_v30 }
 0x231   :  { %231 = vst.msk [vmem:[%s511_s4 + $0x18] sm:$0xff] %vm154_vm2, %v227_v31 }

// kernel: segformer_forward.7
= control target key start
LH: loop header
LB: loop body
LE: loop exit
PB: predicated region body
PF: predicated region fallthrough
CT: control target
= control target key end

     0   :  { %v153_v0 = vmov 0.0   ;;  %vm37_vm0 = vcmask 130048   ;;  %vm113_vm1 = vcmask 261120   ;;  %s251_s1 = inlined_call_operand.vmem [shape: f32[144,32], index: 1, kind: input, shape index: {}]   ;;  %s252_s0 = inlined_call_operand.vmem [shape: f32[8,144], index: 0, kind: input, shape index: {}]   ;;  %s253_s2 = inlined_call_operand.vmem [shape: f32[1,32], index: 2, kind: input, shape index: {}]   ;;  %s254_s3 = inlined_call_operand.vmem [shape: f32[1,32], index: 3, kind: input, shape index: {}]   ;;  %s255_s4 = inlined_call_operand.vmem [shape: f32[8,32], index: 4, kind: output, shape index: {}]  }
   0x1   :  { %41 = vmatprep.subr.mxu0 %v153_v0  ;;  %v34_v1 = vld [vmem:[%s251_s1 + $0x78] sm:$0xff]  ;;  %v33_v2 = vld [vmem:[%s251_s1 + $0x70] sm:$0xff]  ;;  %v32_v3 = vld [vmem:[%s251_s1 + $0x68] sm:$0xff] }
   0x2   :  { %42 = vmatpush1.msra.mxu0 %v34_v1  ;;  %v31_v4 = vld [vmem:[%s251_s1 + $0x60] sm:$0xff]  ;;  %v30_v5 = vld [vmem:[%s251_s1 + $0x58] sm:$0xff]  ;;  %v18_v6 = vld [vmem:[%s252_s0 + $0x8] sm:$0xff] }
   0x3   :  { %43 = vmatprep.subr.mxu0 %v153_v0  ;;  %147 = vmatprep.mubr.msk.f32.mxu0 %vm37_vm0, %v18_v6  ;;  %v29_v7 = vld [vmem:[%s251_s1 + $0x50] sm:$0xff]  ;;  %v28_v8 = vld [vmem:[%s251_s1 + $0x48] sm:$0xff]  ;;  %v27_v9 = vld [vmem:[%s251_s1 + $0x40] sm:$0xff] }
   0x4   :  { %44 = vmatpush1.msra.mxu0 %v33_v2  ;;  %v26_v10 = vld [vmem:[%s251_s1 + $0x38] sm:$0xff]  ;;  %v25_v11 = vld [vmem:[%s251_s1 + $0x30] sm:$0xff]  ;;  %v24_v12 = vld [vmem:[%s251_s1 + $0x28] sm:$0xff] }
   0x5   :  { %45 = vmatprep.subr.mxu0 %v153_v0  ;;  %v23_v13 = vld [vmem:[%s251_s1 + $0x20] sm:$0xff]  ;;  %v22_v14 = vld [vmem:[%s251_s1 + $0x18] sm:$0xff]  ;;  %v21_v15 = vld [vmem:[%s251_s1 + $0x10] sm:$0xff] }
   0x6   :  { %46 = vmatpush1.msra.mxu0 %v32_v3  ;;  %v20_v16 = vld [vmem:[%s251_s1 + $0x8] sm:$0xff]  ;;  %v19_v17 = vld [vmem:[%s251_s1] sm:$0xff] }
   0x7   :  { %47 = vmatprep.subr.mxu0 %v153_v0  ;;  %v36_v18 = vld [vmem:[%s251_s1 + $0x88] sm:$0xff]  ;;  %v35_v19 = vld [vmem:[%s251_s1 + $0x80] sm:$0xff] }
   0x8   :  { %48 = vmatpush1.msra.mxu0 %v31_v4  ;;  %v17_v20 = vld [vmem:[%s252_s0] sm:$0xff] }
   0x9   :  { %49 = vmatprep.subr.mxu0 %v153_v0  ;;  %v148_v33 = vld [vmem:[%s253_s2] ss:$0 sm:$0xff] }
   0xa   :  { %50 = vmatpush1.msra.mxu0 %v30_v5  ;;  %v149_v35 = vld [vmem:[%s254_s3] ss:$0 sm:$0xff] }
   0xb   :  { %51 = vmatprep.subr.mxu0 %v153_v0 }
   0xc   :  { %52 = vmatpush1.msra.mxu0 %v29_v7 }
   0xd   :  { %53 = vmatprep.subr.mxu0 %v153_v0 }
   0xe   :  { %54 = vmatpush1.msra.mxu0 %v28_v8 }
   0xf   :  { %55 = vmatprep.subr.mxu0 %v153_v0 }
  0x10   :  { %56 = vmatpush1.msra.mxu0 %v27_v9 }
  0x11   :  { %57 = vmatprep.subr.mxu0 %v153_v0 }
  0x12   :  { %58 = vmatpush1.msra.mxu0 %v26_v10 }
  0x13   :  { %59 = vmatprep.subr.mxu0 %v153_v0 }
  0x14   :  { %60 = vmatpush1.msra.mxu0 %v25_v11 }
  0x15   :  { %61 = vmatprep.subr.mxu0 %v153_v0 }
  0x16   :  { %62 = vmatpush1.msra.mxu0 %v24_v12 }
  0x17   :  { %63 = vmatprep.subr.mxu0 %v153_v0 }
  0x18   :  { %64 = vmatpush1.msra.mxu0 %v23_v13 }
  0x19   :  { %65 = vmatprep.subr.mxu0 %v153_v0 }
  0x1a   :  { %66 = vmatpush1.msra.mxu0 %v22_v14 }
  0x1b   :  { %67 = vmatprep.subr.mxu0 %v153_v0 }
  0x1c   :  { %68 = vmatpush1.msra.mxu0 %v21_v15 }
  0x1d   :  { %69 = vmatprep.subr.mxu0 %v153_v0 }
  0x1e   :  { %70 = vmatpush1.msra.mxu0 %v20_v16 }
  0x1f   :  { %71 = vmatprep.subr.mxu0 %v153_v0 }
  0x20   :  { %72 = vmatpush1.msra.mxu0 %v19_v17 }
  0x21   :  { %101 = vmatprep.subr.mxu0 %v153_v0 }
  0x22   :  { %102 = vmatpush2.msra.mxu0 %v36_v18 }
  0x23   :  { %103 = vmatprep.subr.mxu0 %v153_v0 }
  0x24   :  { %104 = vmatpush2.msra.mxu0 %v35_v19 }
  0x25   :  { %106 = vmatmul.mubr.f32.vlgmr.msra.gmra.mxu0 %v17_v20 }
  0xe5   :  { %v107_v21 = vpop.f32.mrf.mxu0 }
  0xe6   :  { %v114_v22 = vsel %vm113_vm1, %v107_v21, 0.0 }
  0xe7   :  { %115 = vadd.xlane.f32.xlu0 %v114_v22  ;;  %v109_v23 = vpop.f32.mrf.mxu0 }
 0x170   :  { %v116_v24 = vpop.xlane.xlu0 %115 }
 0x171   :  { %v118_v25 = vmul.f32 0.03125, %v116_v24 }
 0x173   :  { %v119_v26 = vsub.f32 %v107_v21, %v118_v25 }
 0x175   :  { %v120_v27 = vmul.f32 %v119_v26, %v119_v26 }
 0x177   :  { %v121_v28 = vsel %vm113_vm1, %v120_v27, 0.0 }
 0x178   :  { %122 = vadd.xlane.f32.xlu0 %v121_v28 }
 0x201   :  { %v123_v29 = vpop.xlane.xlu0 %122 }
 0x202   :  { %v124_v30 = vmul.f32 0.03125, %v123_v29 }
 0x204   :  { %v125_v31 = vadd.f32 1e-05, %v124_v30 }
 0x206   :  { %151 = vrsqrt.f32 %v125_v31 }
 0x213   :  { %v152_v32 = vpop.eup %151 }
 0x214   :  { %v127_v34 = vmul.f32 %v152_v32, %v119_v26 }
 0x216   :  { %v134_v36 = vmul.f32 %v148_v33, %v127_v34 }
 0x218   :  { %v141_v37 = vadd.f32 %v149_v35, %v134_v36 }
 0x21a   :  { %142 = vst.msk [vmem:[%s255_s4] sm:$0xff] %vm113_vm1, %v141_v37 }

// kernel: segformer_forward.6
= control target key start
LH: loop header
LB: loop body
LE: loop exit
PB: predicated region body
PF: predicated region fallthrough
CT: control target
= control target key end

     0   :  { %vm176_vm0 = vcmask 125952   ;;  %v6068_v28 = vmov 0.0   ;;  %vm4812_vm1 = vmmov 0   ;;  %vm132_vm2 = vcmask 130048   ;;  %s6029_s1 = inlined_call_operand.vmem [shape: f32[4,8,16], index: 1, kind: input, shape index: {}]   ;;  %s6030_s4 = inlined_call_operand.vmem [shape: f32[4,16,16], index: 4, kind: input, shape index: {}]   ;;  %s6031_s0 = inlined_call_operand.vmem [shape: f32[32,16], index: 0, kind: input, shape index: {}]   ;;  %s6032_s2 = inlined_call_operand.vmem [shape: f32[1,16], index: 2, kind: input, shape index: {}]   ;;  %s6033_s3 = inlined_call_operand.vmem [shape: f32[1,16], index: 3, kind: input, shape index: {}]   ;;  %s6034_s5 = inlined_call_operand.vmem [shape: f32[1,16], index: 5, kind: input, shape index: {}]   ;;  %s6035_s8 = inlined_call_operand.vmem [shape: f32[1,16,16], index: 8, kind: input, shape index: {}]   ;;  %s6036_s10 = inlined_call_operand.vmem [shape: f32[1,16,16], index: 10, kind: input, shape index: {}]   ;;  %s6037_s12 = inlined_call_operand.vmem [shape: f32[1,16,16], index: 12, kind: input, shape index: {}]   ;;  %s6038_s6 = inlined_call_operand.vmem [shape: f32[1,16], index: 6, kind: input, shape index: {}]   ;;  %s6039_s7 = inlined_call_operand.vmem [shape: f32[1,16], index: 7, kind: input, shape index: {}]   ;;  %s6040_s9 = inlined_call_operand.vmem [shape: f32[1,1,16], index: 9, kind: input, shape index: {}]   ;;  %s6041_s11 = inlined_call_operand.vmem [shape: f32[1,1,16], index: 11, kind: input, shape index: {}]   ;;  %s6042_s13 = inlined_call_operand.vmem [shape: f32[1,1,16], index: 13, kind: input, shape index: {}]   ;;  %s6043_s14 = inlined_call_operand.vmem [shape: f32[1,16,16], index: 14, kind: input, shape index: {}]   ;;  %s6044_s15 = inlined_call_operand.vmem [shape: f32[1,16], index: 15, kind: input, shape index: {}]   ;;  %s6045_s18 = inlined_call_operand.vmem [shape: f32[16,16], index: 18, kind: input, shape index: {}]   ;;  %s6046_s16 = inlined_call_operand.vmem [shape: f32[1,16], index: 16, kind: input, shape index: {}]   ;;  %s6047_s17 = inlined_call_operand.vmem [shape: f32[1,16], index: 17, kind: input, shape index: {}]   ;;  %s6048_s22 = inlined_call_operand.vmem [shape: f32[2,16,16], index: 22, kind: input, shape index: {}]   ;;  %s6049_s20 = inlined_call_operand.vmem [shape: f32[2,9,16], index: 20, kind: input, shape index: {}]   ;;  %s6050_s19 = inlined_call_operand.vmem [shape: f32[1,16], index: 19, kind: input, shape index: {}]   ;;  %s6051_s21 = inlined_call_operand.vmem [shape: f32[2,1,16], index: 21, kind: input, shape index: {}]   ;;  %s6052_s23 = inlined_call_operand.vmem [shape: f32[1,16], index: 23, kind: input, shape index: {}]   ;;  %s6053_s24 = inlined_call_operand.vmem [shape: f32[1,16], index: 24, kind: input, shape index: {}]   ;;  %s6054_s25 = inlined_call_operand.vmem [shape: f32[1,16], index: 25, kind: input, shape index: {}]   ;;  %s6055_s26 = inlined_call_operand.vmem [shape: f32[32,16], index: 26, kind: output, shape index: {}]  }
   0x1   :  { %6073 = sst [smem:[#allocation5_spill]] %s6029_s1  ;;  %4419 = vmatprep.subr.mxu0 %v6068_v28  ;;  %4426 = vmatprep.subr.mxu1 %v6068_v28  ;;  %vm922_vm3 = vcmask 1043456   ;;  %vm893_vm4 = vcmask 31744   ;;  %vm2289_vm5 = vcmask 130052   ;;  %vm1224_vm6 = vcmask 1040384  }
   0x2   :  { %6074 = sst [smem:[#allocation6_spill]] %s6030_s4  ;;  %4423 = vmatprep.mubr.msk.f32.mxu0 %vm4812_vm1, %v6068_v28  ;;  %4430 = vmatprep.mubr.msk.f32.mxu1 %vm4812_vm1, %v6068_v28  ;;  %vm1226_vm7 = vcmask 1044480  }
   0x3   :  { %6075 = sst [smem:[#allocation7_spill]] %s6031_s0 }
   0x4   :  { %6076 = sst [smem:[#allocation8_spill]] %s6032_s2 }
   0x5   :  { %6077 = sst [smem:[#allocation9_spill]] %s6033_s3 }
   0x6   :  { %6078 = sst [smem:[#allocation10_spill]] %s6034_s5 }
   0x7   :  { %6079 = sst [smem:[#allocation11_spill]] %s6035_s8 }
   0x8   :  { %6080 = sst [smem:[#allocation12_spill]] %s6036_s10 }
   0x9   :  { %6081 = sst [smem:[#allocation13_spill]] %s6037_s12 }
   0xa   :  { %6082 = sst [smem:[#allocation14_spill]] %s6038_s6 }
   0xb   :  { %6083 = sst [smem:[#allocation15_spill]] %s6039_s7 }
   0xc   :  { %6084 = sst [smem:[#allocation16_spill]] %s6053_s24 }
   0xd   :  { %6085 = sst [smem:[#allocation17_spill]] %s6054_s25 }
   0xe   :  { %6086 = sst [smem:[#allocation18_spill]] %s6055_s26 }
   0xf   :  { %s6087_s10 = sld [smem:[#allocation5_spill]] }
  0x10   :  { %s6088_s5 = sld [smem:[#allocation6_spill]] }
  0x11   :  { %s6089_s3 = sld [smem:[#allocation7_spill]] }
  0x12   :  { %s6090_s1 = sld [smem:[#allocation8_spill]] }
  0x13   :  { %s6091_s2 = sld [smem:[#allocation9_spill]] }
  0x14   :  { %s6092_s8 = sld [smem:[#allocation10_spill]] }
  0x15   :  { %v4951_v0 = vld [vmem:[%s6087_s10 + $0x8] sm:$0xff]  ;;  %v4956_v1 = vld [vmem:[%s6087_s10 + $0x10] sm:$0xff]  ;;  %v4961_v2 = vld [vmem:[%s6087_s10] sm:$0xff]  ;;  %s6094_s6 = sld [smem:[#allocation12_spill]] }
  0x16   :  { %v192_v3 = vsel %vm176_vm0, %v4951_v0, 0.0  ;;  %v353_v4 = vsel %vm176_vm0, %v4956_v1, 0.0  ;;  %v4970_v5 = vld [vmem:[%s6087_s10 + $0x18] sm:$0xff]  ;;  %v177_v6 = vsel %vm176_vm0, %v4961_v2, 0.0  ;;  %v95_v30 = vld [vmem:[%s6088_s5 + $0x10] sm:$0xff]  ;;  %v94_v31 = vld [vmem:[%s6088_s5 + $0x8] sm:$0xff] }
  0x17   :  { %193 = vadd.xlane.f32.xlu0 %v192_v3  ;;  %354 = vadd.xlane.f32.xlu1 %v353_v4  ;;  %v442_v7 = vsel %vm176_vm0, %v4970_v5, 0.0  ;;  %v96_v29 = vld [vmem:[%s6088_s5 + $0x18] sm:$0xff]  ;;  %v93_v32 = vld [vmem:[%s6088_s5] sm:$0xff]  ;;  %v5030_v34 = vld [vmem:[%s6089_s3 + $0x8] sm:$0xff]  ;;  %s6093_s10 = sld [smem:[#allocation11_spill]] }
  0x18   :  { %4420 = vmatpush3.msra.mxu0 %v96_v29  ;;  %4427 = vmatpush3.msra.mxu1 %v94_v31  ;;  %v5025_v33 = vld [vmem:[%s6089_s3] sm:$0xff]  ;;  %v136_v36 = vsel %vm132_vm2, %v5030_v34, 0.0  ;;  %v98_v57 = vld [vmem:[%s6088_s5 + $0x28] sm:$0xff]  ;;  %s6095_s27 = sld [smem:[#allocation13_spill]] }
  0x19   :  { %4421 = vmatprep.subr.mxu0 %v6068_v28  ;;  %4428 = vmatprep.subr.mxu1 %v6068_v28  ;;  %v133_v35 = vsel %vm132_vm2, %v5025_v33, 0.0  ;;  %v5039_v50 = vld [vmem:[%s6090_s1] ss:$0 sm:$0xff]  ;;  %s6096_s30 = sld [smem:[#allocation14_spill]] }
  0x1a   :  { %4422 = vmatpush3.msra.mxu0 %v95_v30  ;;  %4429 = vmatpush3.msra.mxu1 %v93_v32  ;;  %v5045_v52 = vld [vmem:[%s6091_s2] ss:$0 sm:$0xff]  ;;  %s6097_s26 = sld [smem:[#allocation15_spill]] }
  0x1b   :  { %178 = vadd.xlane.f32.xlu0 %v177_v6  ;;  %443 = vadd.xlane.f32.xlu1 %v442_v7  ;;  %v97_v60 = vld [vmem:[%s6088_s5 + $0x20] sm:$0xff]  ;;  %v100_v6 = vld [vmem:[%s6088_s5 + $0x38] sm:$0xff]  ;;  %s6107_s25 = sld [smem:[#allocation18_spill]] }
  0x1c   :  { %4433 = vmatprep.subr.mxu0 %v6068_v28  ;;  %4440 = vmatprep.subr.mxu1 %v6068_v28 }
  0xa0   :  { %v194_v8 = vpop.xlane.xlu0 %193  ;;  %v355_v9 = vpop.xlane.xlu1 %354 }
  0xa1   :  { %v195_v10 = vmul.f32 0.0625, %v194_v8  ;;  %v356_v11 = vmul.f32 0.0625, %v355_v9  ;;  %v99_v8 = vld [vmem:[%s6088_s5 + $0x30] sm:$0xff] }
  0xa3   :  { %v4977_v12 = vsub.f32 %v4951_v0, %v195_v10  ;;  %v4980_v13 = vsub.f32 %v4956_v1, %v356_v11 }
  0xa4   :  { %v179_v14 = vpop.xlane.xlu0 %178  ;;  %v444_v15 = vpop.xlane.xlu1 %443 }
  0xa5   :  { %v180_v16 = vmul.f32 0.0625, %v179_v14  ;;  %v445_v17 = vmul.f32 0.0625, %v444_v15  ;;  %v197_v18 = vmul.f32 %v4977_v12, %v4977_v12  ;;  %v358_v19 = vmul.f32 %v4980_v13, %v4980_v13 }
  0xa7   :  { %v4987_v20 = vsub.f32 %v4961_v2, %v180_v16  ;;  %v4990_v21 = vsub.f32 %v4970_v5, %v445_v17  ;;  %v198_v22 = vsel %vm176_vm0, %v197_v18, 0.0  ;;  %v359_v23 = vsel %vm176_vm0, %v358_v19, 0.0 }
  0xa8   :  { %199 = vadd.xlane.f32.xlu0 %v198_v22 }
  0xa9   :  { %v182_v24 = vmul.f32 %v4987_v20, %v4987_v20  ;;  %v447_v25 = vmul.f32 %v4990_v21, %v4990_v21 }
  0xab   :  { %v183_v26 = vsel %vm176_vm0, %v182_v24, 0.0  ;;  %v448_v27 = vsel %vm176_vm0, %v447_v25, 0.0  ;;  %v4232_v25 = vld [vmem:[%s6092_s8] ss:$0 sm:$0xff] }
  0xac   :  { %360 = vadd.xlane.f32.xlu0 %v359_v23  ;;  %184 = vadd.xlane.f32.xlu1 %v183_v26 }
  0xb0   :  { %449 = vadd.xlane.f32.xlu1 %v448_v27  ;;  %134 = vadd.xlane.f32.xlu0 %v133_v35 }
  0xb4   :  { %137 = vadd.xlane.f32.xlu0 %v136_v36 }
 0x131   :  { %v200_v37 = vpop.xlane.xlu0 %199 }
 0x132   :  { %v201_v38 = vmul.f32 0.0625, %v200_v37 }
 0x134   :  { %v202_v39 = vadd.f32 1e-05, %v201_v38  ;;  %v105_v38 = vld [vmem:[%s6093_s10 + $0x8] sm:$0xff] }
 0x135   :  { %v185_v40 = vpop.xlane.xlu1 %184  ;;  %v361_v41 = vpop.xlane.xlu0 %360 }
 0x136   :  { %4679 = vrsqrt.f32 %v202_v39  ;;  %v186_v42 = vmul.f32 0.0625, %v185_v40  ;;  %v362_v43 = vmul.f32 0.0625, %v361_v41  ;;  %v104_v39 = vld [vmem:[%s6093_s10] sm:$0xff] }
 0x138   :  { %v187_v44 = vadd.f32 1e-05, %v186_v42  ;;  %v363_v45 = vadd.f32 1e-05, %v362_v43 }
 0x139   :  { %v450_v46 = vpop.xlane.xlu1 %449  ;;  %v135_v11 = vpop.xlane.xlu0 %134 }
 0x13a   :  { %4681 = vrsqrt.f32 %v187_v44  ;;  %v451_v47 = vmul.f32 0.0625, %v450_v46  ;;  %v140_v14 = vmul.f32 0.0625, %v135_v11 }
 0x13b   :  { %4683 = vrsqrt.f32 %v363_v45 }
 0x13c   :  { %v452_v48 = vadd.f32 1e-05, %v451_v47  ;;  %v142_v22 = vsub.f32 %v5025_v33, %v140_v14 }
 0x13d   :  { %v138_v16 = vpop.xlane.xlu0 %137 }
 0x13e   :  { %4685 = vrsqrt.f32 %v452_v48  ;;  %v141_v23 = vmul.f32 0.0625, %v138_v16  ;;  %v144_v31 = vmul.f32 %v142_v22, %v142_v22  ;;  %v4238_v16 = vld [vmem:[%s6041_s11] ss:$0 sm:$0xff] }
 0x140   :  { %v143_v30 = vsub.f32 %v5030_v34, %v141_v23  ;;  %v146_v35 = vsel %vm132_vm2, %v144_v31, 0.0 }
 0x142   :  { %v145_v36 = vmul.f32 %v143_v30, %v143_v30 }
 0x143   :  { %v4680_v49 = vpop.eup %4679 }
 0x144   :  { %v204_v51 = vmul.f32 %v4680_v49, %v4977_v12  ;;  %v149_v37 = vsel %vm132_vm2, %v145_v36, 0.0 }
 0x146   :  { %v205_v53 = vmul.f32 %v5039_v50, %v204_v51 }
 0x147   :  { %v4682_v54 = vpop.eup %4681 }
 0x148   :  { %v4684_v55 = vpop.eup %4683  ;;  %v206_v56 = vadd.f32 %v5045_v52, %v205_v53  ;;  %v189_v58 = vmul.f32 %v4682_v54, %v4987_v20 }
 0x149   :  { %v365_v59 = vmul.f32 %v4684_v55, %v4980_v13 }
 0x14a   :  { %4424 = vmatmul.mubr.msk.f32.vlgmr.msra.gmra.mxu0 %vm132_vm2, %v206_v56  ;;  %v190_v61 = vmul.f32 %v5039_v50, %v189_v58 }
 0x14b   :  { %v4686_v62 = vpop.eup %4685  ;;  %4434 = vmatpush3.msra.mxu0 %v98_v57  ;;  %4437 = vmatprep.mubr.msk.f32.mxu0 %vm4812_vm1, %v6068_v28  ;;  %v366_v63 = vmul.f32 %v5039_v50, %v365_v59 }
 0x14c   :  { %v454_v3 = vmul.f32 %v4686_v62, %v4990_v21  ;;  %4435 = vmatprep.subr.mxu0 %v6068_v28  ;;  %v191_v4 = vadd.f32 %v5045_v52, %v190_v61  ;;  %v108_v61 = vld [vmem:[%s6094_s6 + $0x8] sm:$0xff] }
 0x14d   :  { %4436 = vmatpush3.msra.mxu0 %v97_v60  ;;  %v367_v7 = vadd.f32 %v5045_v52, %v366_v63  ;;  %v111_v62 = vld [vmem:[%s6095_s27 + $0x8] sm:$0xff]  ;;  %v107_v63 = vld [vmem:[%s6094_s6] sm:$0xff] }
 0x14e   :  { %4431 = vmatmul.mubr.msk.f32.vlgmr.msra.gmra.mxu1 %vm132_vm2, %v191_v4  ;;  %v455_v9 = vmul.f32 %v5039_v50, %v454_v3  ;;  %4447 = vmatprep.subr.mxu0 %v105_v38 }
 0x14f   :  { %4438 = vmatmul.mubr.msk.f32.vlgmr.msra.gmra.mxu0 %vm132_vm2, %v367_v7  ;;  %4441 = vmatpush3.msra.mxu1 %v100_v6  ;;  %v4233_v7 = vld [vmem:[%s6096_s30] ss:$0 sm:$0xff] }
 0x150   :  { %4442 = vmatprep.subr.mxu1 %v6068_v28  ;;  %4444 = vmatprep.mubr.msk.f32.mxu1 %vm4812_vm1, %v6068_v28  ;;  %v456_v10 = vadd.f32 %v5045_v52, %v455_v9  ;;  %v4234_v9 = vld [vmem:[%s6097_s26] ss:$0 sm:$0xff] }
 0x151   :  { %4443 = vmatpush3.msra.mxu1 %v99_v8  ;;  %4448 = vmatpush3.msra.mxu0 %v105_v38 }
 0x152   :  { %4445 = vmatmul.mubr.msk.f32.vlgmr.msra.gmra.mxu1 %vm132_vm2, %v456_v10  ;;  %4454 = vmatprep.subr.mxu1 %v6068_v28 }
 0x153   :  { %4458 = vmatprep.mubr.msk.f32.mxu1 %vm4812_vm1, %v6068_v28  ;;  %4449 = vmatprep.subr.mxu0 %v104_v39 }
 0x154   :  { %4450 = vmatpush3.msra.mxu0 %v104_v39  ;;  %4455 = vmatpush3.msra.mxu1 %v108_v61 }
 0x155   :  { %4461 = vmatprep.subr.mxu0 %v6068_v28  ;;  %4456 = vmatprep.subr.mxu1 %v6068_v28 }
 0x156   :  { %4457 = vmatpush3.msra.mxu1 %v107_v63 }
 0x20a   :  { %v276_v12 = vpop.f32.mrf.mxu0 }
 0x20c   :  { %v4425_v13 = vpop.f32.mrf.mxu0 }
 0x20d   :  { %v4235_v13 = vld [vmem:[%s6040_s9] ss:$0 sm:$0xff] }
 0x20e   :  { %v349_v15 = vpop.f32.mrf.mxu1 }
 0x20f   :  { %v350_v17 = vadd.f32 %v349_v15, %v276_v12  ;;  %v437_v18 = vpop.f32.mrf.mxu0 }
 0x210   :  { %v4432_v19 = vpop.f32.mrf.mxu1 }
 0x211   :  { %v441_v20 = vadd.f32 %v437_v18, %v350_v17  ;;  %v4439_v21 = vpop.f32.mrf.mxu0  ;;  %v4240_v17 = vld [vmem:[%s6042_s13] ss:$0 sm:$0xff] }
 0x212   :  { %v526_v24 = vpop.f32.mrf.mxu1 }
 0x213   :  { %v530_v26 = vadd.f32 %v526_v24, %v441_v20 }
 0x214   :  { %v4446_v27 = vpop.f32.mrf.mxu1 }
 0x215   :  { %v537_v29 = vadd.f32 %v4232_v25, %v530_v26 }
 0x217   :  { %v538_v32 = vsel %vm176_vm0, %v537_v29, 0.0 }
 0x218   :  { %539 = vadd.xlane.f32.xlu1 %v538_v32 }
 0x21c   :  { %147 = vadd.xlane.f32.xlu1 %v146_v35 }
 0x220   :  { %150 = vadd.xlane.f32.xlu1 %v149_v37 }
 0x2a1   :  { %v540_v40 = vpop.xlane.xlu1 %539 }
 0x2a2   :  { %v541_v41 = vmul.f32 0.0625, %v540_v40 }
 0x2a4   :  { %v542_v42 = vsub.f32 %v537_v29, %v541_v41 }
 0x2a5   :  { %v148_v43 = vpop.xlane.xlu1 %147 }
 0x2a6   :  { %v152_v44 = vmul.f32 0.0625, %v148_v43  ;;  %v543_v45 = vmul.f32 %v542_v42, %v542_v42 }
 0x2a8   :  { %v154_v46 = vadd.f32 1e-05, %v152_v44  ;;  %v544_v47 = vsel %vm176_vm0, %v543_v45, 0.0 }
 0x2a9   :  { %545 = vadd.xlane.f32.xlu0 %v544_v47  ;;  %v151_v48 = vpop.xlane.xlu1 %150 }
 0x2aa   :  { %4687 = vrsqrt.f32 %v154_v46  ;;  %v153_v49 = vmul.f32 0.0625, %v151_v48 }
 0x2ac   :  { %v155_v51 = vadd.f32 1e-05, %v153_v49 }
 0x2ae   :  { %4689 = vrsqrt.f32 %v155_v51  ;;  %v114_v51 = vld [vmem:[%s6043_s14 + $0x8] sm:$0xff] }
 0x2b7   :  { %v4688_v53 = vpop.eup %4687 }
 0x2b8   :  { %v158_v54 = vmul.f32 %v4688_v53, %v142_v22  ;;  %v113_v53 = vld [vmem:[%s6043_s14] sm:$0xff] }
 0x2ba   :  { %v166_v55 = vmul.f32 %v5039_v50, %v158_v54 }
 0x2bb   :  { %v4690_v56 = vpop.eup %4689 }
 0x2bc   :  { %v159_v57 = vmul.f32 %v4690_v56, %v143_v30  ;;  %v174_v58 = vadd.f32 %v5045_v52, %v166_v55  ;;  %v4250_v56 = vld [vmem:[%s6044_s15] ss:$0 sm:$0xff] }
 0x2be   :  { %4451 = vmatprep.mubr.msk.f32.mxu0 %vm132_vm2, %v174_v58  ;;  %v167_v59 = vmul.f32 %v5039_v50, %v159_v57  ;;  %v110_v50 = vld [vmem:[%s6095_s27] sm:$0xff] }
 0x2c0   :  { %v175_v60 = vadd.f32 %v5045_v52, %v167_v59 }
 0x2c2   :  { %4452 = vmatmul.mubr.msk.f32.vlgmr.msra.gmra.mxu0 %vm132_vm2, %v175_v60 }
 0x2c3   :  { %4465 = vmatprep.mubr.msk.f32.mxu0 %vm4812_vm1, %v6068_v28  ;;  %4462 = vmatpush3.msra.mxu0 %v111_v62 }
 0x2c4   :  { %4463 = vmatprep.subr.mxu0 %v6068_v28 }
 0x2c5   :  { %4464 = vmatpush3.msra.mxu0 %v110_v50 }
 0x332   :  { %v546_v52 = vpop.xlane.xlu0 %545 }
 0x333   :  { %v547_v3 = vmul.f32 0.0625, %v546_v52 }
 0x335   :  { %v548_v4 = vadd.f32 1e-05, %v547_v3 }
 0x337   :  { %4691 = vrsqrt.f32 %v548_v4 }
 0x344   :  { %v4692_v6 = vpop.eup %4691 }
 0x345   :  { %v550_v8 = vmul.f32 %v4692_v6, %v542_v42 }
 0x347   :  { %v557_v10 = vmul.f32 %v4233_v7, %v550_v8 }
 0x349   :  { %v564_v11 = vadd.f32 %v4234_v9, %v557_v10 }
 0x34b   :  { %4459 = vmatmul.mubr.msk.f32.vlgmr.msra.gmra.mxu1 %vm132_vm2, %v564_v11  ;;  %4466 = vmatmul.mubr.msk.f32.vlgmr.msra.gmra.mxu0 %vm132_vm2, %v564_v11  ;;  %v2290_v11 = vsel %vm2289_vm5, %v4961_v2, 0.0 }
 0x382   :  { %v4453_v12 = vpop.f32.mrf.mxu0 }
 0x383   :  { %v649_v24 = vadd.f32 %v4453_v12, %v4235_v13  ;;  %v2305_v12 = vsel %vm2289_vm5, %v4951_v0, 0.0 }
 0x384   :  { %v643_v14 = vpop.f32.mrf.mxu0 }
 0x385   :  { %v644_v15 = vadd.f32 %v4235_v13, %v643_v14  ;;  %v2558_v13 = vsel %vm2289_vm5, %v4970_v5, 0.0  ;;  %v2468_v14 = vsel %vm2289_vm5, %v4956_v1, 0.0 }
 0x387   :  { %4470 = vmatprep.mubr.msk.f32.mxu1 %vm132_vm2, %v644_v15  ;;  %v119_v15 = vld [vmem:[%s6045_s18 + $0x8] sm:$0xff] }
 0x40b   :  { %v727_v18 = vpop.f32.mrf.mxu1  ;;  %v803_v19 = vpop.f32.mrf.mxu0 }
 0x40c   :  { %v728_v20 = vadd.f32 %v4238_v16, %v727_v18  ;;  %v804_v21 = vadd.f32 %v4240_v17, %v803_v19  ;;  %v118_v16 = vld [vmem:[%s6045_s18] sm:$0xff] }
 0x40d   :  { %v4460_v22 = vpop.f32.mrf.mxu1  ;;  %v4467_v23 = vpop.f32.mrf.mxu0 }
 0x40e   :  { %4468 = vmatprep.subr.msk.mxu1 %vm132_vm2, %v728_v20  ;;  %4473 = vmatprep.subr.msk.mxu0 %vm922_vm3, %v804_v21 }
 0x40f   :  { %4469 = vmatpush3.xpose.msk.msra.mxu1 %vm132_vm2, %v728_v20  ;;  %4474 = vmatpush3.msk.msra.mxu0 %vm922_vm3, %v804_v21 }
 0x410   :  { %4478 = vmatprep.subr.mxu1 %v114_v51  ;;  %4485 = vmatprep.subr.mxu0 %v119_v15 }
 0x412   :  { %4471 = vmatmul.mubr.msk.f32.vlgmr.msra.gmra.mxu1 %vm132_vm2, %v649_v24 }
 0x413   :  { %4479 = vmatpush3.msra.mxu1 %v114_v51 }
 0x414   :  { %4480 = vmatprep.subr.mxu1 %v113_v53 }
 0x415   :  { %4481 = vmatpush3.msra.mxu1 %v113_v53 }
 0x416   :  { %4492 = vmatprep.subr.mxu1 %v6068_v28 }
 0x4d2   :  { %v4472_v25 = vpop.f32.mrf.mxu1 }
 0x4d3   :  { %v892_v26 = vmul.f32 0.25, %v4472_v25 }
 0x4d4   :  { %v882_v27 = vpop.f32.mrf.mxu1 }
 0x4d5   :  { %v891_v29 = vmul.f32 0.25, %v882_v27  ;;  %v897_v30 = vsel %vm893_vm4, %v892_v26, -inf }
 0x4d6   :  { %898 = vmax.xlane.f32.xlu1 %v897_v30 }
 0x4d7   :  { %v894_v31 = vsel %vm893_vm4, %v891_v29, -inf }
 0x4d8   :  { %895 = vmax.xlane.f32.xlu0 %v894_v31 }
 0x55f   :  { %v899_v32 = vpop.xlane.xlu1 %898 }
 0x560   :  { %v901_v35 = vsub.f32 %v892_v26, %v899_v32 }
 0x561   :  { %v896_v36 = vpop.xlane.xlu0 %895 }
 0x562   :  { %v904_v37 = vmul.f32 1.442695, %v901_v35  ;;  %v900_v38 = vsub.f32 %v891_v29, %v896_v36 }
 0x564   :  { %4693 = vpow2.f32 %v904_v37  ;;  %v902_v39 = vmul.f32 1.442695, %v900_v38 }
 0x566   :  { %4695 = vpow2.f32 %v902_v39 }
 0x571   :  { %v4694_v40 = vpop.eup %4693 }
 0x572   :  { %v909_v41 = vsel %vm893_vm4, %v4694_v40, 0.0 }
 0x573   :  { %v4696_v42 = vpop.eup %4695  ;;  %910 = vadd.xlane.f32.xlu1 %v909_v41 }
 0x574   :  { %v906_v43 = vsel %vm893_vm4, %v4696_v42, 0.0 }
 0x575   :  { %907 = vadd.xlane.f32.xlu0 %v906_v43 }
 0x5fc   :  { %v911_v44 = vpop.xlane.xlu1 %910 }
 0x5fd   :  { %4697 = vrcp.f32 %v911_v44 }
 0x5fe   :  { %v908_v45 = vpop.xlane.xlu0 %907 }
 0x5ff   :  { %4699 = vrcp.f32 %v908_v45 }
 0x60a   :  { %v4698_v46 = vpop.eup %4697 }
 0x60b   :  { %v915_v49 = vmul.f32 %v4698_v46, %v4694_v40 }
 0x60c   :  { %v4700_v47 = vpop.eup %4699 }
 0x60d   :  { %v914_v48 = vmul.f32 %v4700_v47, %v4696_v42 }
 0x60f   :  { %4475 = vmatprep.mubr.msk.f32.mxu0 %vm893_vm4, %v914_v48  ;;  %v4252_v48 = vld [vmem:[%s6047_s17] ss:$0 sm:$0xff] }
 0x610   :  { %4476 = vmatmul.mubr.msk.f32.vlgmr.msra.gmra.mxu0 %vm893_vm4, %v915_v49 }
 0x611   :  { %4486 = vmatpush3.msra.mxu0 %v119_v15 }
 0x612   :  { %4487 = vmatprep.subr.mxu0 %v118_v16 }
 0x613   :  { %4488 = vmatpush3.msra.mxu0 %v118_v16 }
 0x614   :  { %4499 = vmatprep.subr.mxu0 %v6068_v28 }
 0x6d0   :  { %v4477_v54 = vpop.f32.mrf.mxu0 }
 0x6d2   :  { %v992_v55 = vpop.f32.mrf.mxu0 }
 0x6d3   :  { %4482 = vmatprep.mubr.msk.f32.mxu1 %vm132_vm2, %v992_v55  ;;  %v5235_v55 = vld [vmem:[%s6048_s22 + $0x18] sm:$0xff] }
 0x6d4   :  { %4483 = vmatmul.mubr.msk.f32.vlgmr.msra.gmra.mxu1 %vm132_vm2, %v4477_v54  ;;  %v5230_v54 = vld [vmem:[%s6048_s22 + $0x8] sm:$0xff] }
 0x6d5   :  { %4496 = vmatprep.mubr.msk.f32.mxu1 %vm4812_vm1, %v6068_v28  ;;  %4493 = vmatpush3.msra.mxu1 %v5230_v54 }
 0x6d6   :  { %4494 = vmatprep.subr.mxu1 %v6068_v28 }
 0x794   :  { %v4484_v57 = vpop.f32.mrf.mxu1 }
 0x795   :  { %v1089_v58 = vadd.f32 %v4484_v57, %v4250_v56  ;;  %v5247_v57 = vld [vmem:[%s6048_s22 + $0x10] sm:$0xff] }
 0x796   :  { %v1073_v59 = vpop.f32.mrf.mxu1 }
 0x797   :  { %v5165_v60 = vadd.f32 %v1089_v58, %v5030_v34  ;;  %v1088_v61 = vadd.f32 %v4250_v56, %v1073_v59  ;;  %v5240_v56 = vld [vmem:[%s6048_s22] sm:$0xff]  ;;  %v5258_v58 = vld [vmem:[%s6089_s3 + $0x10] sm:$0xff]  ;;  %v5263_v59 = vld [vmem:[%s6089_s3 + $0x18] sm:$0xff] }
 0x798   :  { %4495 = vmatpush3.msra.mxu1 %v5240_v56  ;;  %6100 = vst [vmem:[#allocation4_spill] sm:$0xff] %v5263_v59 }
 0x799   :  { %6098 = vst [vmem:[#allocation2_spill] sm:$0xff] %v5165_v60  ;;  %v5168_v62 = vadd.f32 %v1088_v61, %v5025_v33  ;;  %v1095_v63 = vsel %vm132_vm2, %v5165_v60, 0.0  ;;  %4506 = vmatprep.subr.mxu1 %v6068_v28  ;;  %v2259_v61 = vsel %vm132_vm2, %v5258_v58, 0.0 }
 0x79a   :  { %1096 = vadd.xlane.f32.xlu1 %v1095_v63  ;;  %v2262_v63 = vsel %vm132_vm2, %v5263_v59, 0.0 }
 0x79b   :  { %6099 = vst [vmem:[#allocation3_spill] sm:$0xff] %v5168_v62  ;;  %v1092_v50 = vsel %vm132_vm2, %v5168_v62, 0.0 }
 0x79c   :  { %1093 = vadd.xlane.f32.xlu0 %v1092_v50  ;;  %v1241_v50 = vlaneseq }
 0x823   :  { %v1097_v52 = vpop.xlane.xlu1 %1096 }
 0x824   :  { %v1099_v3 = vmul.f32 0.0625, %v1097_v52  ;;  %v1242_v52 = vshrl.u32 %v1241_v50, 7 }
 0x825   :  { %v1094_v4 = vpop.xlane.xlu0 %1093 }
 0x826   :  { %v1101_v6 = vsub.f32 %v5165_v60, %v1099_v3  ;;  %v1098_v7 = vmul.f32 0.0625, %v1094_v4  ;;  %v1243_v3 = vsub.s32 3, %v1242_v52  ;;  %v1248_v4 = vsub.s32 4, %v1242_v52 }
 0x828   :  { %v1100_v34 = vsub.f32 %v5168_v62, %v1098_v7  ;;  %v1103_v8 = vmul.f32 %v1101_v6, %v1101_v6  ;;  %v1257_v7 = vsub.s32 5, %v1242_v52 }
 0x82a   :  { %v1107_v33 = vsel %vm132_vm2, %v1103_v8, 0.0  ;;  %v1102_v9 = vmul.f32 %v1100_v34, %v1100_v34  ;;  %v1272_v8 = vsub.s32 7, %v1242_v52 }
 0x82b   :  { %1108 = vadd.xlane.f32.xlu1 %v1107_v33  ;;  %v4253_v33 = vld [vmem:[%s6050_s19] ss:$0 sm:$0xff] }
 0x82c   :  { %v1104_v10 = vsel %vm132_vm2, %v1102_v9, 0.0  ;;  %v123_v9 = vld [vmem:[%s6049_s20 + $0x10] sm:$0xff] }
 0x82d   :  { %1105 = vadd.xlane.f32.xlu0 %v1104_v10 }
 0x82f   :  { %2291 = vadd.xlane.f32.xlu1 %v2290_v11 }
 0x831   :  { %2306 = vadd.xlane.f32.xlu0 %v2305_v12 }
 0x833   :  { %2559 = vadd.xlane.f32.xlu1 %v2558_v13  ;;  %v1515_v13 = vsub.s32 0, %v1242_v52 }
 0x835   :  { %2469 = vadd.xlane.f32.xlu0 %v2468_v14 }
 0x8b4   :  { %v1109_v17 = vpop.xlane.xlu1 %1108 }
 0x8b5   :  { %v1111_v18 = vmul.f32 0.0625, %v1109_v17 }
 0x8b6   :  { %v1106_v19 = vpop.xlane.xlu0 %1105 }
 0x8b7   :  { %v1113_v20 = vadd.f32 1e-05, %v1111_v18  ;;  %v1110_v21 = vmul.f32 0.0625, %v1106_v19 }
 0x8b8   :  { %v2292_v22 = vpop.xlane.xlu1 %2291 }
 0x8b9   :  { %4701 = vrsqrt.f32 %v1113_v20  ;;  %v1112_v23 = vadd.f32 1e-05, %v1110_v21  ;;  %v2293_v24 = vmul.f32 0.0625, %v2292_v22  ;;  %v5288_v21 = vrot.slane %v123_v9, %v1243_v3 }
 0x8ba   :  { %v2307_v25 = vpop.xlane.xlu0 %2306  ;;  %v5290_v22 = vrot.slane %v123_v9, %v1248_v4 }
 0x8bb   :  { %4703 = vrsqrt.f32 %v1112_v23  ;;  %v5194_v26 = vsub.f32 %v4961_v2, %v2293_v24  ;;  %v2308_v27 = vmul.f32 0.0625, %v2307_v25  ;;  %v1520_v23 = vsub.s32 1, %v1242_v52 }
 0x8bc   :  { %v2560_v29 = vpop.xlane.xlu1 %2559  ;;  %v1529_v24 = vsub.s32 2, %v1242_v52 }
 0x8bd   :  { %v5197_v30 = vsub.f32 %v4951_v0, %v2308_v27  ;;  %v2561_v31 = vmul.f32 0.0625, %v2560_v29  ;;  %v2295_v32 = vmul.f32 %v5194_v26, %v5194_v26 }
 0x8be   :  { %v2470_v35 = vpop.xlane.xlu0 %2469 }
 0x8bf   :  { %v5202_v36 = vsub.f32 %v4970_v5, %v2561_v31  ;;  %v2471_v37 = vmul.f32 0.0625, %v2470_v35  ;;  %v2296_v38 = vsel %vm2289_vm5, %v2295_v32, 0.0  ;;  %v2310_v2 = vmul.f32 %v5197_v30, %v5197_v30 }
 0x8c0   :  { %2297 = vadd.xlane.f32.xlu1 %v2296_v38  ;;  %v5292_v31 = vrot.slane %v123_v9, %v1257_v7 }
 0x8c1   :  { %v5208_v39 = vsub.f32 %v4956_v1, %v2471_v37  ;;  %v2311_v0 = vsel %vm2289_vm5, %v2310_v2, 0.0  ;;  %v2563_v40 = vmul.f32 %v5202_v36, %v5202_v36  ;;  %v4251_v1 = vld [vmem:[%s6046_s16] ss:$0 sm:$0xff]  ;;  %v5296_v37 = vrot.slane %v123_v9, %v1272_v8 }
 0x8c2   :  { %2312 = vadd.xlane.f32.xlu0 %v2311_v0 }
 0x8c3   :  { %v2564_v41 = vsel %vm2289_vm5, %v2563_v40, 0.0  ;;  %v2473_v5 = vmul.f32 %v5208_v39, %v5208_v39 }
 0x8c4   :  { %2565 = vadd.xlane.f32.xlu1 %v2564_v41 }
 0x8c5   :  { %v2474_v42 = vsel %vm2289_vm5, %v2473_v5, 0.0 }
 0x8c6   :  { %v4702_v43 = vpop.eup %4701  ;;  %2475 = vadd.xlane.f32.xlu0 %v2474_v42 }
 0x8c7   :  { %v1117_v44 = vmul.f32 %v4702_v43, %v1101_v6  ;;  %v121_v6 = vld [vmem:[%s6049_s20] sm:$0xff] }
 0x8c8   :  { %v4704_v45 = vpop.eup %4703  ;;  %v5278_v11 = vrot.slane %v121_v6, %v1243_v3  ;;  %v5280_v12 = vrot.slane %v121_v6, %v1248_v4  ;;  %v5282_v16 = vrot.slane %v121_v6, %v1257_v7  ;;  %v5286_v18 = vrot.slane %v121_v6, %v1272_v8 }
 0x8c9   :  { %v1116_v46 = vmul.f32 %v4704_v45, %v1100_v34  ;;  %v1125_v47 = vmul.f32 %v4251_v1, %v1117_v44  ;;  %v1266_v34 = vsub.s32 6, %v1242_v52  ;;  %v5298_v38 = vrot.slane %v121_v6, %v1515_v13 }
 0x8ca   :  { %2260 = vadd.xlane.f32.xlu0 %v2259_v61  ;;  %v5302_v42 = vrot.slane %v121_v6, %v1520_v23  ;;  %v5304_v43 = vrot.slane %v121_v6, %v1529_v24  ;;  %v5306_v44 = vrot.slane %v123_v9, %v1515_v13  ;;  %v5326_v61 = vrot.slane %v123_v9, %v1529_v24 }
 0x8cb   :  { %v1124_v49 = vmul.f32 %v4251_v1, %v1116_v46  ;;  %v1133_v53 = vadd.f32 %v4252_v48, %v1125_v47  ;;  %v5284_v17 = vrot.slane %v121_v6, %v1266_v34  ;;  %v5294_v35 = vrot.slane %v123_v9, %v1266_v34  ;;  %v5316_v47 = vld [vmem:[%s6049_s20 + $0x8] ss:$0 sm:$0xff] }
 0x8cd   :  { %v1132_v51 = vadd.f32 %v4252_v48, %v1124_v49  ;;  %v5318_v48 = vrot.slane %v123_v9, %v1520_v23 }
 0x8ce   :  { %2263 = vadd.xlane.f32.xlu0 %v2262_v63 }
 0x8cf   :  { %4489 = vmatprep.mubr.msk.f32.mxu0 %vm132_vm2, %v1132_v51 }
 0x8d0   :  { %4490 = vmatmul.mubr.msk.f32.vlgmr.msra.gmra.mxu0 %vm132_vm2, %v1133_v53 }
 0x8d1   :  { %4503 = vmatprep.mubr.msk.f32.mxu0 %vm4812_vm1, %v6068_v28  ;;  %4500 = vmatpush3.msra.mxu0 %v5235_v55 }
 0x8d2   :  { %4501 = vmatprep.subr.mxu0 %v6068_v28 }
 0x8d3   :  { %4502 = vmatpush3.msra.mxu0 %v5247_v57 }
 0x8d4   :  { %4513 = vmatprep.subr.mxu0 %v6068_v28 }
 0x949   :  { %v2298_v14 = vpop.xlane.xlu1 %2297 }
 0x94a   :  { %v2299_v32 = vmul.f32 0.0625, %v2298_v14  ;;  %v5357_v14 = vld [vmem:[%s6049_s20 + $0x18] ss:$0 sm:$0xff] }
 0x94b   :  { %v2313_v19 = vpop.xlane.xlu0 %2312 }
 0x94c   :  { %v2314_v2 = vmul.f32 0.0625, %v2313_v19  ;;  %v5320_v49 = vadd.f32 1e-05, %v2299_v32 }
 0x94e   :  { %v5328_v63 = vadd.f32 1e-05, %v2314_v2 }
 0x990   :  { %v4491_v10 = vpop.f32.mrf.mxu0 }
 0x991   :  { %v1218_v15 = vadd.f32 %v4491_v10, %v4253_v33 }
 0x992   :  { %v1212_v20 = vpop.f32.mrf.mxu0 }
 0x993   :  { %v1233_v25 = vrot.slane %v1218_v15, 7  ;;  %v1237_v27 = vrot.slane %v1218_v15, 3  ;;  %v1213_v29 = vadd.f32 %v4253_v33, %v1212_v20 }
 0x995   :  { %v1235_v0 = vsel %vm1224_vm6, 0.0, %v1233_v25  ;;  %v1222_v40 = vrot.slane %v1213_v29, 7  ;;  %v1228_v41 = vrot.slane %v1213_v29, 3  ;;  %v1239_v5 = vsel %vm1224_vm6, 0.0, %v1237_v27 }
 0x996   :  { %v5309_v1 = vsel %vm1226_vm7, %v1235_v0, 0.0  ;;  %v5331_v50 = vsel %vm1226_vm7, %v1239_v5, 0.0 }
 0x997   :  { %v1225_v45 = vsel %vm1224_vm6, 0.0, %v1222_v40  ;;  %v1230_v46 = vsel %vm1224_vm6, 0.0, %v1228_v41  ;;  %v5338_v6 = vmul.f32 %v5284_v17, %v5309_v1  ;;  %v5342_v7 = vmul.f32 %v5286_v18, %v5309_v1 }
 0x998   :  { %v1227_v51 = vsel %vm1226_vm7, %v1225_v45, 0.0  ;;  %v5324_v53 = vsel %vm1226_vm7, %v1230_v46, 0.0  ;;  %v5346_v34 = vmul.f32 %v5316_v47, %v5309_v1  ;;  %v5362_v20 = vmul.f32 %v5294_v35, %v5309_v1 }
 0x999   :  { %v1250_v52 = vmul.f32 %v5280_v12, %v1227_v51  ;;  %v1259_v3 = vmul.f32 %v5282_v16, %v1227_v51  ;;  %v1389_v4 = vmul.f32 %v5290_v22, %v1227_v51  ;;  %v1245_v8 = vmul.f32 %v5278_v11, %v1227_v51 }
 0x99a   :  { %v1274_v9 = vmul.f32 %v5286_v18, %v5324_v53  ;;  %v1398_v10 = vmul.f32 %v5292_v31, %v1227_v51  ;;  %v1283_v13 = vmul.f32 %v5316_v47, %v5324_v53  ;;  %v1384_v15 = vmul.f32 %v5288_v21, %v1227_v51 }
 0x99b   :  { %v1252_v33 = vrot.slane %v1250_v52, 1  ;;  %v1391_v19 = vrot.slane %v1389_v4, 1  ;;  %v1261_v24 = vrot.slane %v1259_v3, 2  ;;  %v1413_v25 = vmul.f32 %v5296_v37, %v5324_v53 }
 0x99c   :  { %v1422_v27 = vmul.f32 %v5357_v14, %v5324_v53  ;;  %v1400_v32 = vrot.slane %v1398_v10, 2  ;;  %v1522_v2 = vmul.f32 %v5302_v42, %v1227_v51  ;;  %v1531_v0 = vmul.f32 %v5304_v43, %v1227_v51 }
 0x99d   :  { %v1254_v23 = vadd.f32 %v1252_v33, %v1245_v8  ;;  %v1393_v29 = vadd.f32 %v1391_v19, %v1384_v15  ;;  %v1268_v41 = vmul.f32 %v5284_v17, %v5324_v53  ;;  %v1276_v5 = vrot.slane %v1274_v9, 1 }
 0x99e   :  { %v1407_v45 = vmul.f32 %v5294_v35, %v5324_v53  ;;  %v1517_v52 = vmul.f32 %v5298_v38, %v1227_v51  ;;  %v1524_v3 = vrot.slane %v1522_v2, 1  ;;  %v1538_v4 = vmul.f32 %v5280_v12, %v5324_v53 }
 0x99f   :  { %v1263_v40 = vadd.f32 %v1261_v24, %v1254_v23  ;;  %v1402_v46 = vadd.f32 %v1400_v32, %v1393_v29  ;;  %v1285_v33 = vrot.slane %v1283_v13, 2  ;;  %v1415_v10 = vrot.slane %v1413_v25, 1 }
 0x9a0   :  { %v1424_v15 = vrot.slane %v1422_v27, 2  ;;  %v1526_v23 = vadd.f32 %v1524_v3, %v1517_v52  ;;  %v1533_v24 = vrot.slane %v1531_v0, 2  ;;  %v1543_v9 = vmul.f32 %v5282_v16, %v5324_v53 }
 0x9a1   :  { %v1269_v8 = vadd.f32 %v1268_v41, %v1263_v40  ;;  %v1408_v19 = vadd.f32 %v1407_v45, %v1402_v46  ;;  %v1536_v29 = vmul.f32 %v5278_v11, %v5324_v53  ;;  %v1649_v32 = vmul.f32 %v5318_v48, %v1227_v51 }
 0x9a2   :  { %v1658_v2 = vmul.f32 %v5326_v61, %v1227_v51  ;;  %v1535_v60 = vadd.f32 %v1533_v24, %v1526_v23  ;;  %v1540_v40 = vrot.slane %v1538_v4, 1  ;;  %v1552_v13 = vrot.slane %v5342_v7, 1 }
 0x9a3   :  { %v1278_v28 = vadd.f32 %v1276_v5, %v1269_v8  ;;  %v1417_v62 = vadd.f32 %v1415_v10, %v1408_v19  ;;  %v1557_v27 = vrot.slane %v5346_v34, 2  ;;  %v1644_v0 = vmul.f32 %v5306_v44, %v1227_v51  ;;  %v5389_v5 = vld [vmem:[%s6051_s21] ss:$0 sm:$0xff] }
 0x9a4   :  { %v1651_v41 = vrot.slane %v1649_v32, 1  ;;  %v1537_v46 = vadd.f32 %v1536_v29, %v1535_v60  ;;  %v1545_v52 = vrot.slane %v1543_v9, 2  ;;  %v1663_v3 = vmul.f32 %v5288_v21, %v5324_v53 }
 0x9a5   :  { %v1287_v25 = vadd.f32 %v1285_v33, %v1278_v28  ;;  %v1426_v45 = vadd.f32 %v1424_v15, %v1417_v62  ;;  %v5397_v28 = vld [vmem:[%s6051_s21 + $0x1] ss:$0 sm:$0xff]  ;;  %v1660_v7 = vrot.slane %v1658_v2, 2  ;;  %v1665_v34 = vmul.f32 %v5290_v22, %v5324_v53 }
 0x9a6   :  { %v1653_v51 = vadd.f32 %v1651_v41, %v1644_v0  ;;  %v1542_v62 = vadd.f32 %v1540_v40, %v1537_v46  ;;  %v1670_v60 = vmul.f32 %v5292_v31, %v5324_v53  ;;  %v1768_v33 = vmul.f32 %v5302_v42, %v5324_v53 }
 0x9a7   :  { %v1294_v4 = vadd.f32 %v5389_v5, %v1287_v25  ;;  %v1433_v8 = vadd.f32 %v5397_v28, %v1426_v45  ;;  %v1677_v19 = vmul.f32 %v5296_v37, %v5309_v1  ;;  %v1682_v23 = vmul.f32 %v5357_v14, %v5309_v1 }
 0x9a8   :  { %v1662_v15 = vadd.f32 %v1660_v7, %v1653_v51  ;;  %v1547_v9 = vadd.f32 %v1545_v52, %v1542_v62  ;;  %v1767_v29 = vmul.f32 %v5298_v38, %v5324_v53  ;;  %v1770_v32 = vrot.slane %v1768_v33, 1 }
 0x9a9   :  { %v1296_v10 = vmul.f32 0.70710677, %v1294_v4  ;;  %v1435_v24 = vmul.f32 0.70710677, %v1433_v8  ;;  %v1667_v40 = vrot.slane %v1665_v34, 1  ;;  %v1773_v25 = vmul.f32 %v5304_v43, %v5324_v53 }
 0x9aa   :  { %v1664_v2 = vadd.f32 %v1663_v3, %v1662_v15  ;;  %v1549_v0 = vadd.f32 %v5338_v6, %v1547_v9  ;;  %v1772_v41 = vadd.f32 %v1770_v32, %v1767_v29  ;;  %v1780_v45 = vmul.f32 %v5280_v12, %v5309_v1 }
 0x9ab   :  { %4705 = verf.f32 %v1296_v10  ;;  %v1672_v51 = vrot.slane %v1670_v60, 2  ;;  %v1679_v52 = vrot.slane %v1677_v19, 1  ;;  %v1775_v7 = vrot.slane %v1773_v25, 2 }
 0x9ac   :  { %4707 = verf.f32 %v1435_v24  ;;  %v1669_v46 = vadd.f32 %v1667_v40, %v1664_v2  ;;  %v1295_v62 = vmul.f32 0.5, %v1294_v4  ;;  %v1434_v59 = vmul.f32 0.5, %v1433_v8 }
 0x9ad   :  { %v1554_v33 = vadd.f32 %v1552_v13, %v1549_v0  ;;  %v1684_v10 = vrot.slane %v1682_v23, 2  ;;  %v1777_v34 = vadd.f32 %v1775_v7, %v1772_v41  ;;  %v1778_v15 = vmul.f32 %v5278_v11, %v5309_v1 }
 0x9ae   :  { %v1674_v3 = vadd.f32 %v1672_v51, %v1669_v46  ;;  %v1785_v6 = vmul.f32 %v5282_v16, %v5309_v1  ;;  %v1782_v9 = vrot.slane %v1780_v45, 1  ;;  %v1792_v29 = vmul.f32 %v5286_v18, %v5331_v50 }
 0x9af   :  { %v1559_v24 = vadd.f32 %v1557_v27, %v1554_v33  ;;  %v1883_v60 = vmul.f32 %v5318_v48, %v5324_v53  ;;  %v1779_v13 = vadd.f32 %v1778_v15, %v1777_v34  ;;  %v1797_v8 = vmul.f32 %v5316_v47, %v5331_v50 }
 0x9b0   :  { %v1676_v4 = vadd.f32 %v5362_v20, %v1674_v3  ;;  %v1888_v19 = vmul.f32 %v5326_v61, %v5324_v53  ;;  %v1790_v27 = vmul.f32 %v5284_v17, %v5331_v50  ;;  %v1882_v32 = vmul.f32 %v5306_v44, %v5324_v53 }
 0x9b1   :  { %v5431_v23 = vadd.f32 %v5389_v5, %v1559_v24  ;;  %v1885_v2 = vrot.slane %v1883_v60, 1  ;;  %v1784_v25 = vadd.f32 %v1782_v9, %v1779_v13  ;;  %v1787_v20 = vrot.slane %v1785_v6, 2 }
 0x9b2   :  { %v1681_v40 = vadd.f32 %v1679_v52, %v1676_v4  ;;  %v1895_v0 = vmul.f32 %v5290_v22, %v5309_v1  ;;  %v1890_v45 = vrot.slane %v1888_v19, 2  ;;  %v1900_v46 = vmul.f32 %v5292_v31, %v5309_v1 }
 0x9b3   :  { %v1562_v47 = vmul.f32 0.70710677, %v5431_v23  ;;  %v1887_v41 = vadd.f32 %v1885_v2, %v1882_v32  ;;  %v1789_v7 = vadd.f32 %v1787_v20, %v1784_v25  ;;  %v1794_v33 = vrot.slane %v1792_v29, 1 }
 0x9b4   :  { %v1686_v51 = vadd.f32 %v1684_v10, %v1681_v40  ;;  %v1799_v3 = vrot.slane %v1797_v8, 2  ;;  %v1893_v52 = vmul.f32 %v5288_v21, %v5309_v1  ;;  %v1905_v34 = vmul.f32 %v5294_v35, %v5331_v50 }
 0x9b5   :  { %4709 = verf.f32 %v1562_v47  ;;  %v1892_v53 = vadd.f32 %v1890_v45, %v1887_v41  ;;  %v1791_v6 = vadd.f32 %v1790_v27, %v1789_v7  ;;  %v1897_v24 = vrot.slane %v1895_v0, 1 }
 0x9b6   :  { %v5447_v15 = vadd.f32 %v5397_v28, %v1686_v51  ;;  %v1998_v9 = vmul.f32 %v5302_v42, %v5309_v1  ;;  %v1902_v29 = vrot.slane %v1900_v46, 2  ;;  %v1907_v4 = vmul.f32 %v5296_v37, %v5331_v50  ;;  %v2476_v46 = vpop.xlane.xlu0 %2475 }
 0x9b7   :  { %v1894_v60 = vadd.f32 %v1893_v52, %v1892_v53  ;;  %v2003_v13 = vmul.f32 %v5304_v43, %v5309_v1  ;;  %v1796_v2 = vadd.f32 %v1794_v33, %v1791_v6  ;;  %v1912_v27 = vmul.f32 %v5357_v14, %v5331_v50 }
 0x9b8   :  { %v4706_v10 = vpop.eup %4705  ;;  %v1689_v32 = vmul.f32 0.70710677, %v5447_v15  ;;  %v1997_v20 = vmul.f32 %v5298_v38, %v5309_v1  ;;  %v2000_v0 = vrot.slane %v1998_v9, 1  ;;  %v2010_v33 = vmul.f32 %v5280_v12, %v5331_v50 }
 0x9b9   :  { %v4708_v8 = vpop.eup %4707  ;;  %v1298_v19 = vadd.f32 1.0, %v4706_v10  ;;  %v1899_v25 = vadd.f32 %v1897_v24, %v1894_v60  ;;  %v1801_v41 = vadd.f32 %v1799_v3, %v1796_v2  ;;  %v2005_v45 = vrot.slane %v2003_v13, 2 }
 0x9ba   :  { %v1437_v40 = vadd.f32 1.0, %v4708_v8  ;;  %4711 = verf.f32 %v1689_v32  ;;  %v2002_v53 = vadd.f32 %v2000_v0, %v1997_v20  ;;  %v2008_v52 = vmul.f32 %v5278_v11, %v5331_v50 }
 0x9bb   :  { %v1299_v47 = vmul.f32 %v1298_v19, %v1295_v62  ;;  %v1904_v7 = vadd.f32 %v1902_v29, %v1899_v25  ;;  %v5464_v14 = vadd.f32 %v5389_v5, %v1801_v41  ;;  %v2015_v62 = vmul.f32 %v5282_v16, %v5331_v50  ;;  %v2566_v19 = vpop.xlane.xlu1 %2565 }
 0x9bc   :  { %v1438_v51 = vmul.f32 %v1437_v40, %v1434_v59  ;;  %v2101_v3 = vmul.f32 %v5318_v48, %v5309_v1  ;;  %v1909_v6 = vrot.slane %v1907_v4, 1  ;;  %v2007_v24 = vadd.f32 %v2005_v45, %v2002_v53 }
 0x9bd   :  { %4497 = vmatmul.mubr.msk.f32.vlgmr.msra.gmra.mxu1 %vm132_vm2, %v1299_v47  ;;  %v1906_v59 = vadd.f32 %v1905_v34, %v1904_v7  ;;  %v2106_v9 = vmul.f32 %v5326_v61, %v5309_v1  ;;  %v2477_v10 = vmul.f32 0.0625, %v2476_v46  ;;  %v6101_v60 = vmov 0.0  }
 0x9be   :  { %4504 = vmatmul.mubr.msk.f32.vlgmr.msra.gmra.mxu0 %vm132_vm2, %v1438_v51  ;;  %4507 = vmatpush3.msra.mxu1 %v5230_v54  ;;  %v1804_v29 = vmul.f32 0.70710677, %v5464_v14  ;;  %v2100_v13 = vmul.f32 %v5306_v44, %v5309_v1  ;;  %v2103_v8 = vrot.slane %v2101_v3, 1  ;;  %v1914_v4 = vrot.slane %v1912_v27, 2 }
 0x9bf   :  { %4514 = vmatpush3.msra.mxu0 %v5235_v55  ;;  %4508 = vmatprep.subr.mxu1 %v6101_v60  ;;  %v1911_v34 = vadd.f32 %v1909_v6, %v1906_v59  ;;  %v2009_v32 = vadd.f32 %v2008_v52, %v2007_v24  ;;  %v2012_v2 = vrot.slane %v2010_v33, 1  ;;  %v2108_v25 = vrot.slane %v2106_v9, 2 }
 0x9c0   :  { %4515 = vmatprep.subr.mxu0 %v6101_v60  ;;  %4509 = vmatpush3.msra.mxu1 %v5240_v56  ;;  %4713 = verf.f32 %v1804_v29  ;;  %v2105_v40 = vadd.f32 %v2103_v8, %v2100_v13  ;;  %v2113_v1 = vmul.f32 %v5290_v22, %v5331_v50  ;;  %v2017_v0 = vrot.slane %v2015_v62, 2 }
 0x9c1   :  { %4510 = vmatprep.mubr.msk.f32.mxu1 %vm4812_vm1, %v6101_v60  ;;  %4516 = vmatpush3.msra.mxu0 %v5247_v57  ;;  %4715 = vrsqrt.f32 %v5328_v63  ;;  %v1916_v27 = vadd.f32 %v1914_v4, %v1911_v34  ;;  %v2014_v20 = vadd.f32 %v2012_v2, %v2009_v32  ;;  %v2567_v41 = vmul.f32 0.0625, %v2566_v19 }
 0x9c2   :  { %4517 = vmatprep.mubr.msk.f32.mxu0 %vm4812_vm1, %v6101_v60  ;;  %4520 = vmatprep.subr.mxu1 %v6101_v60  ;;  %v4710_v47 = vpop.eup %4709  ;;  %v2110_v45 = vadd.f32 %v2108_v25, %v2105_v40  ;;  %v2111_v46 = vmul.f32 %v5288_v21, %v5331_v50  ;;  %v2118_v51 = vmul.f32 %v5292_v31, %v5331_v50  ;;  %v1561_v63 = vmul.f32 0.5, %v5431_v23 }
 0x9c3   :  { %4527 = vmatprep.subr.mxu0 %v6101_v60  ;;  %v1564_v7 = vadd.f32 1.0, %v4710_v47  ;;  %v1917_v53 = vadd.f32 %v5397_v28, %v1916_v27  ;;  %v2019_v33 = vadd.f32 %v2017_v0, %v2014_v20  ;;  %v2478_v52 = vadd.f32 1e-05, %v2477_v10 }
 0x9c4   :  { %v2112_v3 = vadd.f32 %v2111_v46, %v2110_v45  ;;  %v2115_v62 = vrot.slane %v2113_v1, 1  ;;  %4717 = vrsqrt.f32 %v5320_v49  ;;  %v2568_v9 = vadd.f32 1e-05, %v2567_v41 }
 0x9c5   :  { %v1565_v59 = vmul.f32 %v1564_v7, %v1561_v63  ;;  %v1919_v6 = vmul.f32 0.70710677, %v1917_v53  ;;  %v2020_v24 = vadd.f32 %v5389_v5, %v2019_v33  ;;  %v2120_v13 = vrot.slane %v2118_v51, 2  ;;  %v5538_v7 = vld [vmem:[%s6091_s2] ss:$0 sm:$0xff] }
 0x9c6   :  { %v2117_v29 = vadd.f32 %v2115_v62, %v2112_v3  ;;  %v1688_v23 = vmul.f32 0.5, %v5447_v15  ;;  %v1803_v32 = vmul.f32 0.5, %v5464_v14  ;;  %v1918_v27 = vmul.f32 0.5, %v1917_v53 }
 0x9c7   :  { %v4712_v8 = vpop.eup %4711  ;;  %4511 = vmatmul.mubr.msk.f32.vlgmr.msra.gmra.mxu1 %vm132_vm2, %v1565_v59  ;;  %4719 = verf.f32 %v1919_v6  ;;  %v2022_v50 = vmul.f32 0.70710677, %v2020_v24  ;;  %v2021_v46 = vmul.f32 0.5, %v2020_v24  ;;  %v4774_v6 = vld [vmem:[%s6088_s5 + $0x10] sm:$0xff] }
 0x9c8   :  { %4721 = vrsqrt.f32 %v2478_v52  ;;  %v1691_v10 = vadd.f32 1.0, %v4712_v8  ;;  %4521 = vmatpush3.msra.mxu1 %v5230_v54  ;;  %4524 = vmatprep.mubr.msk.f32.mxu1 %vm4812_vm1, %v6101_v60  ;;  %v2122_v5 = vadd.f32 %v2120_v13, %v2117_v29  ;;  %v4776_v29 = vld [vmem:[%s6088_s5 + $0x8] sm:$0xff] }
 0x9c9   :  { %4522 = vmatprep.subr.mxu1 %v6101_v60  ;;  %4723 = verf.f32 %v2022_v50 }
 0x9ca   :  { %4725 = vrsqrt.f32 %v2568_v9  ;;  %v1692_v49 = vmul.f32 %v1691_v10, %v1688_v23  ;;  %4523 = vmatpush3.msra.mxu1 %v5240_v56  ;;  %v2123_v19 = vadd.f32 %v5397_v28, %v2122_v5  ;;  %v4775_v9 = vld [vmem:[%s6088_s5 + $0x28] sm:$0xff]  ;;  %v4777_v23 = vld [vmem:[%s6088_s5] sm:$0xff]  ;;  %v4779_v5 = vld [vmem:[%s6088_s5 + $0x38] sm:$0xff] }
 0x9cb   :  { %4534 = vmatprep.subr.mxu1 %v6101_v60  ;;  %v4778_v10 = vld [vmem:[%s6088_s5 + $0x20] sm:$0xff] }
 0x9cc   :  { %4518 = vmatmul.mubr.msk.f32.vlgmr.msra.gmra.mxu0 %vm132_vm2, %v1692_v49  ;;  %v2125_v15 = vmul.f32 0.70710677, %v2123_v19  ;;  %v2124_v52 = vmul.f32 0.5, %v2123_v19 }
 0x9cd   :  { %v4714_v34 = vpop.eup %4713  ;;  %4528 = vmatpush3.msra.mxu0 %v5235_v55  ;;  %4531 = vmatprep.mubr.msk.f32.mxu0 %vm4812_vm1, %v6101_v60 }
 0x9ce   :  { %v4716_v4 = vpop.eup %4715  ;;  %4529 = vmatprep.subr.mxu0 %v6101_v60  ;;  %v1806_v2 = vadd.f32 1.0, %v4714_v34  ;;  %4727 = verf.f32 %v2125_v15  ;;  %v4780_v15 = vld [vmem:[%s6088_s5 + $0x30] sm:$0xff]  ;;  %v4781_v34 = vld [vmem:[%s6093_s10 + $0x8] sm:$0xff] }
 0x9cf   :  { %4530 = vmatpush3.msra.mxu0 %v5247_v57  ;;  %v2317_v40 = vmul.f32 %v4716_v4, %v5197_v30  ;;  %v5528_v30 = vld [vmem:[%s6090_s1] ss:$0 sm:$0xff] }
 0x9d0   :  { %v1807_v28 = vmul.f32 %v1806_v2, %v1803_v32  ;;  %4541 = vmatprep.subr.mxu0 %v6101_v60  ;;  %v4782_v4 = vld [vmem:[%s6093_s10] sm:$0xff]  ;;  %v4783_v32 = vld [vmem:[%s6094_s6 + $0x8] sm:$0xff] }
 0x9d1   :  { %v4718_v25 = vpop.eup %4717  ;;  %v2318_v0 = vmul.f32 %v5528_v30, %v2317_v40  ;;  %v4784_v2 = vld [vmem:[%s6094_s6] sm:$0xff]  ;;  %s6105_s6 = sld [smem:[#allocation16_spill]] }
 0x9d2   :  { %4525 = vmatmul.mubr.msk.f32.vlgmr.msra.gmra.mxu1 %vm132_vm2, %v1807_v28  ;;  %v5618_v28 = vld [vmem:[%s6052_s23] ss:$0 sm:$0xff] }
 0x9d3   :  { %4535 = vmatpush3.msra.mxu1 %v5230_v54  ;;  %4538 = vmatprep.mubr.msk.f32.mxu1 %vm4812_vm1, %v6101_v60  ;;  %v2302_v54 = vmul.f32 %v4718_v25, %v5194_v26  ;;  %v2319_v53 = vadd.f32 %v5538_v7, %v2318_v0 }
 0x9d4   :  { %v4720_v1 = vpop.eup %4719  ;;  %4536 = vmatprep.subr.mxu1 %v6101_v60 }
 0x9d5   :  { %v4722_v14 = vpop.eup %4721  ;;  %v1921_v20 = vadd.f32 1.0, %v4720_v1  ;;  %4537 = vmatpush3.msra.mxu1 %v5240_v56  ;;  %v2303_v33 = vmul.f32 %v5528_v30, %v2302_v54 }
 0x9d6   :  { %v4724_v47 = vpop.eup %4723  ;;  %4548 = vmatprep.subr.mxu1 %v6101_v60  ;;  %v2480_v63 = vmul.f32 %v4722_v14, %v5208_v39 }
 0x9d7   :  { %v4726_v41 = vpop.eup %4725  ;;  %v1922_v45 = vmul.f32 %v1921_v20, %v1918_v27  ;;  %v2024_v51 = vadd.f32 1.0, %v4724_v47 }
 0x9d8   :  { %v2570_v26 = vmul.f32 %v4726_v41, %v5202_v36  ;;  %v4773_v36 = vld [vmem:[%s6088_s5 + $0x18] sm:$0xff]  ;;  %v2481_v62 = vmul.f32 %v5528_v30, %v2480_v63 }
 0x9d9   :  { %4532 = vmatmul.mubr.msk.f32.vlgmr.msra.gmra.mxu0 %vm132_vm2, %v1922_v45  ;;  %v2025_v56 = vmul.f32 %v2024_v51, %v2021_v46 }
 0x9da   :  { %4542 = vmatpush3.msra.mxu0 %v5235_v55  ;;  %4545 = vmatprep.mubr.msk.f32.mxu0 %vm4812_vm1, %v6101_v60  ;;  %v2321_v55 = vrot.slane %v2319_v53, 4  ;;  %v2571_v24 = vmul.f32 %v5528_v30, %v2570_v26  ;;  %v2482_v13 = vadd.f32 %v5538_v7, %v2481_v62 }
 0x9db   :  { %v4728_v39 = vpop.eup %4727  ;;  %4543 = vmatprep.subr.mxu0 %v6101_v60  ;;  %4539 = vmatmul.mubr.msk.f32.vlgmr.msra.gmra.mxu1 %vm132_vm2, %v2025_v56 }
 0x9dc   :  { %4544 = vmatpush3.msra.mxu0 %v5247_v57  ;;  %v2127_v3 = vadd.f32 1.0, %v4728_v39  ;;  %4549 = vmatpush3.msra.mxu1 %v4773_v36  ;;  %v2304_v57 = vadd.f32 %v5538_v7, %v2303_v33  ;;  %v2572_v50 = vadd.f32 %v5538_v7, %v2571_v24  ;;  %v2484_v49 = vrot.slane %v2482_v13, 4 }
 0x9dd   :  { %4555 = vmatprep.subr.mxu0 %v6101_v60  ;;  %4550 = vmatprep.subr.mxu1 %v6101_v60 }
 0x9de   :  { %v2128_v59 = vmul.f32 %v2127_v3, %v2124_v52  ;;  %4551 = vmatpush3.msra.mxu1 %v4774_v6  ;;  %4552 = vmatprep.mubr.msk.f32.mxu1 %vm4812_vm1, %v6101_v60  ;;  %v2395_v8 = vrot.slane %v2304_v57, 4  ;;  %v2574_v19 = vrot.slane %v2572_v50, 4 }
 0x9df   :  { %4553 = vmatmul.mubr.msk.f32.vlgmr.msra.gmra.mxu1 %vm132_vm2, %v2321_v55  ;;  %4562 = vmatprep.subr.mxu1 %v6101_v60 }
 0x9e0   :  { %4546 = vmatmul.mubr.msk.f32.vlgmr.msra.gmra.mxu0 %vm132_vm2, %v2128_v59  ;;  %4563 = vmatpush3.msra.mxu1 %v4775_v9  ;;  %v2261_v59 = vpop.xlane.xlu0 %2260 }
 0x9e1   :  { %4556 = vmatpush3.msra.mxu0 %v4776_v29  ;;  %4559 = vmatprep.mubr.msk.f32.mxu0 %vm4812_vm1, %v6101_v60 }
 0x9e2   :  { %4557 = vmatprep.subr.mxu0 %v6101_v60  ;;  %4564 = vmatprep.subr.mxu1 %v6101_v60 }
 0x9e3   :  { %4558 = vmatpush3.msra.mxu0 %v4777_v23  ;;  %4565 = vmatpush3.msra.mxu1 %v4778_v10 }
 0x9e4   :  { %4560 = vmatmul.mubr.msk.f32.vlgmr.msra.gmra.mxu0 %vm132_vm2, %v2395_v8  ;;  %4569 = vmatprep.subr.mxu0 %v6101_v60  ;;  %v2265_v8 = vmul.f32 0.0625, %v2261_v59  ;;  %v2264_v50 = vpop.xlane.xlu0 %2263 }
 0x9e5   :  { %4570 = vmatpush3.msra.mxu0 %v4779_v5  ;;  %4566 = vmatprep.mubr.msk.f32.mxu1 %vm4812_vm1, %v6101_v60 }
 0x9e6   :  { %4571 = vmatprep.subr.mxu0 %v6101_v60  ;;  %4573 = vmatprep.mubr.msk.f32.mxu0 %vm4812_vm1, %v6101_v60 }
 0x9e7   :  { %4572 = vmatpush3.msra.mxu0 %v4780_v15  ;;  %4567 = vmatmul.mubr.msk.f32.vlgmr.msra.gmra.mxu1 %vm132_vm2, %v2484_v49 }
 0x9e8   :  { %4574 = vmatmul.mubr.msk.f32.vlgmr.msra.gmra.mxu0 %vm132_vm2, %v2574_v19  ;;  %4576 = vmatprep.subr.mxu1 %v4781_v34 }
 0x9e9   :  { %4577 = vmatpush3.msra.mxu1 %v4781_v34  ;;  %4583 = vmatprep.subr.mxu0 %v6101_v60  ;;  %v2267_v34 = vsub.f32 %v5258_v58, %v2265_v8 }
 0x9ea   :  { %4578 = vmatprep.subr.mxu1 %v4782_v4  ;;  %4584 = vmatpush3.msra.mxu0 %v4783_v32 }
 0x9eb   :  { %4579 = vmatpush3.msra.mxu1 %v4782_v4  ;;  %4585 = vmatprep.subr.mxu0 %v6101_v60  ;;  %v2266_v4 = vmul.f32 0.0625, %v2264_v50 }
 0x9ec   :  { %4590 = vmatprep.subr.mxu1 %v6101_v60  ;;  %4586 = vmatpush3.msra.mxu0 %v4784_v2 }
 0x9ed   :  { %4587 = vmatprep.mubr.msk.f32.mxu0 %vm4812_vm1, %v6101_v60 }
 0xa7d   :  { %v1369_v40 = vpop.f32.mrf.mxu1 }
 0xa7e   :  { %v1379_v25 = vadd.f32 %v5618_v28, %v1369_v40  ;;  %v1508_v1 = vpop.f32.mrf.mxu0 }
 0xa7f   :  { %v4498_v14 = vpop.f32.mrf.mxu1 }
 0xa80   :  { %v1512_v27 = vadd.f32 %v1508_v1, %v1379_v25  ;;  %v4505_v20 = vpop.f32.mrf.mxu0  ;;  %v4785_v25 = vld [vmem:[%s6092_s8] ss:$0 sm:$0xff]  ;;  %v6102_v14 = vld [vmem:[#allocation4_spill] sm:$0xff] }
 0xa81   :  { %v2269_v20 = vmul.f32 %v2267_v34, %v2267_v34 }
 0xa87   :  { %v1635_v0 = vpop.f32.mrf.mxu1 }
 0xa88   :  { %v1639_v47 = vadd.f32 %v5618_v28, %v1635_v0 }
 0xa89   :  { %v4512_v54 = vpop.f32.mrf.mxu1 }
 0xa8c   :  { %v1762_v41 = vpop.f32.mrf.mxu0 }
 0xa8d   :  { %v1766_v45 = vadd.f32 %v1762_v41, %v1639_v47  ;;  %v2271_v47 = vsel %vm132_vm2, %v2269_v20, 0.0 }
 0xa8e   :  { %v4519_v46 = vpop.f32.mrf.mxu0 }
 0xa8f   :  { %v2204_v51 = vrot.slane %v1766_v45, 4 }
 0xa91   :  { %v5623_v63 = vsel %vm922_vm3, %v1512_v27, %v2204_v51  ;;  %v2268_v27 = vsub.f32 %v6102_v14, %v2266_v4 }
 0xa92   :  { %v1877_v56 = vpop.f32.mrf.mxu1 }
 0xa93   :  { %v1881_v26 = vadd.f32 %v5618_v28, %v1877_v56  ;;  %v2270_v54 = vmul.f32 %v2268_v27, %v2268_v27 }
 0xa94   :  { %v4526_v53 = vpop.f32.mrf.mxu1 }
 0xa95   :  { %v2274_v58 = vsel %vm132_vm2, %v2270_v54, 0.0 }
 0xa99   :  { %v1992_v33 = vpop.f32.mrf.mxu0 }
 0xa9a   :  { %v1996_v39 = vadd.f32 %v1992_v33, %v1881_v26 }
 0xa9b   :  { %v4533_v52 = vpop.f32.mrf.mxu0  ;;  %v2095_v3 = vpop.f32.mrf.mxu1 }
 0xa9c   :  { %v2099_v36 = vadd.f32 %v5618_v28, %v2095_v3 }
 0xa9d   :  { %v4540_v55 = vpop.f32.mrf.mxu1 }
 0xa9f   :  { %v2390_v62 = vpop.f32.mrf.mxu1 }
 0xaa0   :  { %v2198_v6 = vpop.f32.mrf.mxu0 }
 0xaa1   :  { %v2202_v57 = vadd.f32 %v2198_v6, %v2099_v36  ;;  %v4554_v24 = vpop.f32.mrf.mxu1 }
 0xaa2   :  { %v4547_v9 = vpop.f32.mrf.mxu0 }
 0xaa3   :  { %v2207_v29 = vrot.slane %v2202_v57, 4 }
 0xaa4   :  { %v2464_v13 = vpop.f32.mrf.mxu0 }
 0xaa5   :  { %v5628_v23 = vsel %vm922_vm3, %v1996_v39, %v2207_v29  ;;  %v2465_v10 = vadd.f32 %v2464_v13, %v2390_v62  ;;  %v4786_v29 = vld [vmem:[%s6095_s27 + $0x8] sm:$0xff]  ;;  %v4787_v13 = vld [vmem:[%s6095_s27] sm:$0xff] }
 0xaa6   :  { %v4561_v5 = vpop.f32.mrf.mxu0 }
 0xaa7   :  { %v2553_v49 = vpop.f32.mrf.mxu1  ;;  %v4788_v5 = vld [vmem:[%s6096_s30] ss:$0 sm:$0xff] }
 0xaa8   :  { %v2557_v19 = vadd.f32 %v2553_v49, %v2465_v10  ;;  %v2643_v15 = vpop.f32.mrf.mxu0 }
 0xaa9   :  { %v4568_v32 = vpop.f32.mrf.mxu1 }
 0xaaa   :  { %v2647_v2 = vadd.f32 %v2643_v15, %v2557_v19  ;;  %v4575_v40 = vpop.f32.mrf.mxu0  ;;  %v4789_v19 = vld [vmem:[%s6097_s26] ss:$0 sm:$0xff] }
 0xaab   :  { %v4790_v32 = vld [vmem:[%s6040_s9] ss:$0 sm:$0xff] }
 0xaac   :  { %v2648_v1 = vadd.f32 %v4785_v25, %v2647_v2 }
 0xaae   :  { %v2649_v0 = vsel %vm176_vm0, %v2648_v1, 0.0 }
 0xaaf   :  { %2650 = vadd.xlane.f32.xlu1 %v2649_v0 }
 0xab3   :  { %2272 = vadd.xlane.f32.xlu1 %v2271_v47 }
 0xab7   :  { %2275 = vadd.xlane.f32.xlu1 %v2274_v58  ;;  %v4793_v58 = vld [vmem:[%s6043_s14 + $0x8] sm:$0xff] }
 0xb38   :  { %v2651_v41 = vpop.xlane.xlu1 %2650 }
 0xb39   :  { %v2652_v45 = vmul.f32 0.0625, %v2651_v41  ;;  %v4794_v41 = vld [vmem:[%s6045_s18 + $0x8] sm:$0xff] }
 0xb3b   :  { %v2653_v46 = vsub.f32 %v2648_v1, %v2652_v45  ;;  %v4791_v1 = vld [vmem:[%s6041_s11] ss:$0 sm:$0xff] }
 0xb3c   :  { %v2273_v51 = vpop.xlane.xlu1 %2272  ;;  %v4795_v45 = vld [vmem:[%s6043_s14] sm:$0xff] }
 0xb3d   :  { %v2277_v56 = vmul.f32 0.0625, %v2273_v51  ;;  %v2654_v53 = vmul.f32 %v2653_v46, %v2653_v46 }
 0xb3f   :  { %v2279_v26 = vadd.f32 1e-05, %v2277_v56  ;;  %v2655_v33 = vsel %vm176_vm0, %v2654_v53, 0.0 }
 0xb40   :  { %2656 = vadd.xlane.f32.xlu0 %v2655_v33  ;;  %v2276_v39 = vpop.xlane.xlu1 %2275 }
 0xb41   :  { %4729 = vrsqrt.f32 %v2279_v26  ;;  %v2278_v52 = vmul.f32 0.0625, %v2276_v39 }
 0xb43   :  { %v2280_v3 = vadd.f32 1e-05, %v2278_v52 }
 0xb45   :  { %4731 = vrsqrt.f32 %v2280_v3 }
 0xb4e   :  { %v4730_v36 = vpop.eup %4729 }
 0xb4f   :  { %v2283_v55 = vmul.f32 %v4730_v36, %v2267_v34 }
 0xb51   :  { %v2285_v62 = vmul.f32 %v5528_v30, %v2283_v55 }
 0xb52   :  { %v4732_v59 = vpop.eup %4731 }
 0xb53   :  { %v2284_v6 = vmul.f32 %v4732_v59, %v2268_v27  ;;  %v2287_v57 = vadd.f32 %v5538_v7, %v2285_v62  ;;  %v4792_v27 = vld [vmem:[%s6042_s13] ss:$0 sm:$0xff] }
 0xb55   :  { %4580 = vmatprep.mubr.msk.f32.mxu1 %vm132_vm2, %v2287_v57  ;;  %v2286_v24 = vmul.f32 %v5528_v30, %v2284_v6 }
 0xb57   :  { %v2288_v9 = vadd.f32 %v5538_v7, %v2286_v24 }
 0xb59   :  { %4581 = vmatmul.mubr.msk.f32.vlgmr.msra.gmra.mxu1 %vm132_vm2, %v2288_v9 }
 0xb5a   :  { %4591 = vmatpush3.msra.mxu1 %v4786_v29  ;;  %4594 = vmatprep.mubr.msk.f32.mxu1 %vm4812_vm1, %v6101_v60 }
 0xb5b   :  { %4592 = vmatprep.subr.mxu1 %v6101_v60 }
 0xb5c   :  { %4593 = vmatpush3.msra.mxu1 %v4787_v13 }
 0xbc9   :  { %v2657_v30 = vpop.xlane.xlu0 %2656 }
 0xbca   :  { %v2658_v8 = vmul.f32 0.0625, %v2657_v30 }
 0xbcc   :  { %v2659_v7 = vadd.f32 1e-05, %v2658_v8 }
 0xbce   :  { %4733 = vrsqrt.f32 %v2659_v7 }
 0xbdb   :  { %v4734_v50 = vpop.eup %4733 }
 0xbdc   :  { %v2661_v10 = vmul.f32 %v4734_v50, %v2653_v46  ;;  %v4796_v50 = vld [vmem:[%s6045_s18] sm:$0xff]  ;;  %s6106_s18 = sld [smem:[#allocation17_spill]] }
 0xbde   :  { %v2662_v49 = vmul.f32 %v4788_v5, %v2661_v10 }
 0xbe0   :  { %v2663_v15 = vadd.f32 %v4789_v19, %v2662_v49  ;;  %v5702_v49 = vld [vmem:[%s6048_s22 + $0x8] sm:$0xff]  ;;  %v5711_v19 = vld [vmem:[%s6048_s22] sm:$0xff] }
 0xbe2   :  { %4588 = vmatmul.mubr.msk.f32.vlgmr.msra.gmra.mxu0 %vm132_vm2, %v2663_v15  ;;  %4595 = vmatmul.mubr.msk.f32.vlgmr.msra.gmra.mxu1 %vm132_vm2, %v2663_v15 }
 0xc19   :  { %v4582_v34 = vpop.f32.mrf.mxu1 }
 0xc1a   :  { %v2742_v54 = vadd.f32 %v4790_v32, %v4582_v34  ;;  %v4799_v34 = vld [vmem:[%s6044_s15] ss:$0 sm:$0xff] }
 0xc1b   :  { %v2736_v4 = vpop.f32.mrf.mxu1 }
 0xc1c   :  { %v2737_v2 = vadd.f32 %v4790_v32, %v2736_v4 }
 0xc1e   :  { %4599 = vmatprep.mubr.msk.f32.mxu0 %vm132_vm2, %v2737_v2  ;;  %v4800_v2 = vld [vmem:[%s6089_s3 + $0x18] sm:$0xff] }
 0xca2   :  { %v2814_v40 = vpop.f32.mrf.mxu0  ;;  %v2884_v25 = vpop.f32.mrf.mxu1 }
 0xca3   :  { %v2815_v14 = vadd.f32 %v4791_v1, %v2814_v40  ;;  %v2885_v20 = vadd.f32 %v4792_v27, %v2884_v25  ;;  %v4801_v1 = vld [vmem:[%s6089_s3 + $0x10] sm:$0xff] }
 0xca4   :  { %v4589_v0 = vpop.f32.mrf.mxu0  ;;  %v4596_v47 = vpop.f32.mrf.mxu1 }
 0xca5   :  { %4597 = vmatprep.subr.msk.mxu0 %vm132_vm2, %v2815_v14  ;;  %4602 = vmatprep.subr.msk.mxu1 %vm922_vm3, %v2885_v20 }
 0xca6   :  { %4598 = vmatpush3.xpose.msk.msra.mxu0 %vm132_vm2, %v2815_v14  ;;  %4603 = vmatpush3.msk.msra.mxu1 %vm922_vm3, %v2885_v20 }
 0xca7   :  { %4607 = vmatprep.subr.mxu0 %v4793_v58  ;;  %4614 = vmatprep.subr.mxu1 %v4794_v41 }
 0xca9   :  { %4600 = vmatmul.mubr.msk.f32.vlgmr.msra.gmra.mxu0 %vm132_vm2, %v2742_v54 }
 0xcaa   :  { %4608 = vmatpush3.msra.mxu0 %v4793_v58 }
 0xcab   :  { %4609 = vmatprep.subr.mxu0 %v4795_v45 }
 0xcac   :  { %4610 = vmatpush3.msra.mxu0 %v4795_v45 }
 0xcad   :  { %4621 = vmatprep.subr.mxu0 %v6101_v60 }
 0xd69   :  { %v4601_v46 = vpop.f32.mrf.mxu0 }
 0xd6a   :  { %v2973_v51 = vmul.f32 0.25, %v4601_v46 }
 0xd6b   :  { %v2963_v56 = vpop.f32.mrf.mxu0 }
 0xd6c   :  { %v2972_v53 = vmul.f32 0.25, %v2963_v56  ;;  %v2977_v26 = vsel %vm893_vm4, %v2973_v51, -inf }
 0xd6d   :  { %2978 = vmax.xlane.f32.xlu1 %v2977_v26 }
 0xd6e   :  { %v2974_v33 = vsel %vm893_vm4, %v2972_v53, -inf }
 0xd6f   :  { %2975 = vmax.xlane.f32.xlu0 %v2974_v33 }
 0xdf6   :  { %v2979_v39 = vpop.xlane.xlu1 %2978 }
 0xdf7   :  { %v2981_v52 = vsub.f32 %v2973_v51, %v2979_v39  ;;  %v6104_v39 = vld [vmem:[#allocation3_spill] sm:$0xff] }
 0xdf8   :  { %v2976_v3 = vpop.xlane.xlu0 %2975 }
 0xdf9   :  { %v2984_v36 = vmul.f32 1.442695, %v2981_v52  ;;  %v2980_v55 = vsub.f32 %v2972_v53, %v2976_v3  ;;  %v6103_v53 = vld [vmem:[#allocation2_spill] sm:$0xff]  ;;  %v5742_v52 = vadd.f32 %v5623_v63, %v6104_v39 }
 0xdfa   :  { %v5737_v26 = vadd.f32 %v5628_v23, %v6103_v53 }
 0xdfb   :  { %4735 = vpow2.f32 %v2984_v36  ;;  %v2982_v62 = vmul.f32 1.442695, %v2980_v55  ;;  %v2215_v36 = vsel %vm132_vm2, %v5742_v52, 0.0 }
 0xdfc   :  { %v2218_v3 = vsel %vm132_vm2, %v5737_v26, 0.0 }
 0xdfd   :  { %4737 = vpow2.f32 %v2982_v62 }
 0xe08   :  { %v4736_v59 = vpop.eup %4735 }
 0xe09   :  { %v2989_v6 = vsel %vm893_vm4, %v4736_v59, 0.0 }
 0xe0a   :  { %v4738_v57 = vpop.eup %4737  ;;  %2990 = vadd.xlane.f32.xlu1 %v2989_v6 }
 0xe0b   :  { %v2986_v24 = vsel %vm893_vm4, %v4738_v57, 0.0 }
 0xe0c   :  { %2987 = vadd.xlane.f32.xlu0 %v2986_v24 }
 0xe93   :  { %v2991_v9 = vpop.xlane.xlu1 %2990 }
 0xe94   :  { %4739 = vrcp.f32 %v2991_v9 }
 0xe95   :  { %v2988_v29 = vpop.xlane.xlu0 %2987 }
 0xe96   :  { %4741 = vrcp.f32 %v2988_v29 }
 0xea1   :  { %v4740_v13 = vpop.eup %4739 }
 0xea2   :  { %v2995_v7 = vmul.f32 %v4740_v13, %v4736_v59  ;;  %v4802_v13 = vld [vmem:[%s6046_s16] ss:$0 sm:$0xff] }
 0xea3   :  { %v4742_v30 = vpop.eup %4741 }
 0xea4   :  { %v2994_v8 = vmul.f32 %v4742_v30, %v4738_v57 }
 0xea6   :  { %4604 = vmatprep.mubr.msk.f32.mxu1 %vm893_vm4, %v2994_v8 }
 0xea7   :  { %4605 = vmatmul.mubr.msk.f32.vlgmr.msra.gmra.mxu1 %vm893_vm4, %v2995_v7  ;;  %v4803_v7 = vld [vmem:[%s6047_s17] ss:$0 sm:$0xff] }
 0xea8   :  { %4615 = vmatpush3.msra.mxu1 %v4794_v41 }
 0xea9   :  { %4616 = vmatprep.subr.mxu1 %v4796_v50 }
 0xeaa   :  { %4617 = vmatpush3.msra.mxu1 %v4796_v50 }
 0xeab   :  { %4628 = vmatprep.subr.mxu1 %v6101_v60 }
 0xf67   :  { %v4606_v10 = vpop.f32.mrf.mxu1 }
 0xf69   :  { %v3071_v5 = vpop.f32.mrf.mxu1 }
 0xf6a   :  { %4611 = vmatprep.mubr.msk.f32.mxu0 %vm132_vm2, %v3071_v5  ;;  %v5759_v5 = vld [vmem:[%s6048_s22 + $0x18] sm:$0xff] }
 0xf6b   :  { %4612 = vmatmul.mubr.msk.f32.vlgmr.msra.gmra.mxu0 %vm132_vm2, %v4606_v10 }
 0xf6c   :  { %4622 = vmatpush3.msra.mxu0 %v5702_v49  ;;  %4625 = vmatprep.mubr.msk.f32.mxu0 %vm4812_vm1, %v6101_v60 }
 0xf6d   :  { %4623 = vmatprep.subr.mxu0 %v6101_v60 }
 0xf6e   :  { %4624 = vmatpush3.msra.mxu0 %v5711_v19 }
 0xf6f   :  { %4635 = vmatprep.subr.mxu0 %v6101_v60 }
0x102b   :  { %v4613_v15 = vpop.f32.mrf.mxu0 }
0x102c   :  { %v3162_v4 = vadd.f32 %v4799_v34, %v4613_v15  ;;  %v5768_v15 = vld [vmem:[%s6048_s22 + $0x10] sm:$0xff] }
0x102d   :  { %v3152_v32 = vpop.f32.mrf.mxu0 }
0x102e   :  { %v5721_v40 = vadd.f32 %v4800_v2, %v3162_v4  ;;  %v3161_v25 = vadd.f32 %v4799_v34, %v3152_v32  ;;  %v4806_v4 = vld [vmem:[%s6050_s19] ss:$0 sm:$0xff] }
0x1030   :  { %v5726_v14 = vadd.f32 %v4801_v1, %v3161_v25  ;;  %v3168_v27 = vsel %vm132_vm2, %v5721_v40, 0.0 }
0x1031   :  { %3169 = vadd.xlane.f32.xlu1 %v3168_v27 }
0x1032   :  { %v3165_v20 = vsel %vm132_vm2, %v5726_v14, 0.0 }
0x1033   :  { %3166 = vadd.xlane.f32.xlu0 %v3165_v20 }
0x10ba   :  { %v3170_v0 = vpop.xlane.xlu1 %3169 }
0x10bb   :  { %v3172_v47 = vmul.f32 0.0625, %v3170_v0 }
0x10bc   :  { %v3167_v54 = vpop.xlane.xlu0 %3166 }
0x10bd   :  { %v3174_v58 = vsub.f32 %v5721_v40, %v3172_v47  ;;  %v3171_v41 = vmul.f32 0.0625, %v3167_v54 }
0x10bf   :  { %v3173_v45 = vsub.f32 %v5726_v14, %v3171_v41  ;;  %v3176_v46 = vmul.f32 %v3174_v58, %v3174_v58 }
0x10c1   :  { %v3180_v51 = vsel %vm132_vm2, %v3176_v46, 0.0  ;;  %v3175_v56 = vmul.f32 %v3173_v45, %v3173_v45 }
0x10c2   :  { %3181 = vadd.xlane.f32.xlu1 %v3180_v51 }
0x10c3   :  { %v3177_v33 = vsel %vm132_vm2, %v3175_v56, 0.0 }
0x10c4   :  { %3178 = vadd.xlane.f32.xlu0 %v3177_v33 }
0x10c6   :  { %2219 = vadd.xlane.f32.xlu1 %v2218_v3 }
0x10c8   :  { %2216 = vadd.xlane.f32.xlu0 %v2215_v36 }
0x114b   :  { %v3182_v55 = vpop.xlane.xlu1 %3181 }
0x114c   :  { %v3184_v62 = vmul.f32 0.0625, %v3182_v55  ;;  %v5803_v55 = vld [vmem:[%s6049_s20 + $0x8] ss:$0 sm:$0xff] }
0x114d   :  { %v3179_v23 = vpop.xlane.xlu0 %3178 }
0x114e   :  { %v3186_v59 = vadd.f32 1e-05, %v3184_v62  ;;  %v3183_v6 = vmul.f32 0.0625, %v3179_v23 }
0x1150   :  { %4743 = vrsqrt.f32 %v3186_v59  ;;  %v3185_v57 = vadd.f32 1e-05, %v3183_v6 }
0x1152   :  { %4745 = vrsqrt.f32 %v3185_v57 }
0x115d   :  { %v4744_v24 = vpop.eup %4743 }
0x115e   :  { %v3190_v63 = vmul.f32 %v4744_v24, %v3174_v58 }
0x115f   :  { %v4746_v9 = vpop.eup %4745 }
0x1160   :  { %v3189_v29 = vmul.f32 %v4746_v9, %v3173_v45  ;;  %v3192_v30 = vmul.f32 %v4802_v13, %v3190_v63 }
0x1162   :  { %v3191_v8 = vmul.f32 %v4802_v13, %v3189_v29  ;;  %v3194_v10 = vadd.f32 %v4803_v7, %v3192_v30 }
0x1164   :  { %v3193_v50 = vadd.f32 %v4803_v7, %v3191_v8  ;;  %v5825_v7 = vld [vmem:[%s6049_s20 + $0x18] ss:$0 sm:$0xff] }
0x1166   :  { %4618 = vmatprep.mubr.msk.f32.mxu1 %vm132_vm2, %v3193_v50 }
0x1167   :  { %4619 = vmatmul.mubr.msk.f32.vlgmr.msra.gmra.mxu1 %vm132_vm2, %v3194_v10 }
0x1168   :  { %4629 = vmatpush3.msra.mxu1 %v5759_v5  ;;  %4632 = vmatprep.mubr.msk.f32.mxu1 %vm4812_vm1, %v6101_v60 }
0x1169   :  { %4630 = vmatprep.subr.mxu1 %v6101_v60 }
0x116a   :  { %4631 = vmatpush3.msra.mxu1 %v5768_v15 }
0x116b   :  { %4642 = vmatprep.subr.mxu1 %v6101_v60 }
0x1227   :  { %v4620_v34 = vpop.f32.mrf.mxu1 }
0x1228   :  { %v3273_v32 = vadd.f32 %v4806_v4, %v4620_v34 }
0x1229   :  { %v3267_v2 = vpop.f32.mrf.mxu1 }
0x122a   :  { %v3286_v25 = vrot.slane %v3273_v32, 7  ;;  %v3290_v1 = vrot.slane %v3273_v32, 3  ;;  %v3268_v27 = vadd.f32 %v4806_v4, %v3267_v2 }
0x122c   :  { %v3288_v20 = vsel %vm1224_vm6, 0.0, %v3286_v25  ;;  %v3277_v0 = vrot.slane %v3268_v27, 7  ;;  %v3281_v47 = vrot.slane %v3268_v27, 3  ;;  %v3292_v54 = vsel %vm1224_vm6, 0.0, %v3290_v1 }
0x122d   :  { %v5778_v58 = vsel %vm1226_vm7, %v3288_v20, 0.0  ;;  %v5787_v56 = vsel %vm1226_vm7, %v3292_v54, 0.0 }
0x122e   :  { %v3279_v41 = vsel %vm1224_vm6, 0.0, %v3277_v0  ;;  %v3283_v45 = vsel %vm1224_vm6, 0.0, %v3281_v47  ;;  %v5794_v3 = vmul.f32 %v5778_v58, %v5284_v17  ;;  %v5798_v36 = vmul.f32 %v5778_v58, %v5286_v18 }
0x122f   :  { %v3280_v46 = vsel %vm1226_vm7, %v3279_v41, 0.0  ;;  %v5784_v51 = vsel %vm1226_vm7, %v3283_v45, 0.0  ;;  %v5807_v62 = vmul.f32 %v5803_v55, %v5778_v58  ;;  %v5818_v29 = vmul.f32 %v5778_v58, %v5294_v35 }
0x1230   :  { %v3295_v53 = vmul.f32 %v3280_v46, %v5280_v12  ;;  %v3300_v33 = vmul.f32 %v3280_v46, %v5282_v16  ;;  %v3398_v39 = vmul.f32 %v3280_v46, %v5290_v22  ;;  %v3294_v23 = vmul.f32 %v3280_v46, %v5278_v11 }
0x1231   :  { %v3307_v6 = vmul.f32 %v5784_v51, %v5286_v18  ;;  %v3403_v57 = vmul.f32 %v3280_v46, %v5292_v31  ;;  %v3312_v24 = vmul.f32 %v5803_v55, %v5784_v51  ;;  %v3397_v63 = vmul.f32 %v3280_v46, %v5288_v21 }
0x1232   :  { %v3297_v59 = vrot.slane %v3295_v53, 1  ;;  %v3400_v9 = vrot.slane %v3398_v39, 1  ;;  %v3302_v30 = vrot.slane %v3300_v33, 2  ;;  %v3410_v8 = vmul.f32 %v5784_v51, %v5296_v37 }
0x1233   :  { %v3415_v50 = vmul.f32 %v5825_v7, %v5784_v51  ;;  %v3405_v34 = vrot.slane %v3403_v57, 2  ;;  %v3501_v4 = vmul.f32 %v3280_v46, %v5302_v42  ;;  %v3506_v32 = vmul.f32 %v3280_v46, %v5304_v43 }
0x1234   :  { %v3299_v13 = vadd.f32 %v3297_v59, %v3294_v23  ;;  %v3402_v10 = vadd.f32 %v3400_v9, %v3397_v63  ;;  %v3305_v25 = vmul.f32 %v5784_v51, %v5284_v17  ;;  %v3309_v1 = vrot.slane %v3307_v6, 1 }
0x1235   :  { %v3408_v27 = vmul.f32 %v5784_v51, %v5294_v35  ;;  %v3500_v0 = vmul.f32 %v3280_v46, %v5298_v38  ;;  %v3503_v47 = vrot.slane %v3501_v4, 1  ;;  %v3513_v54 = vmul.f32 %v5784_v51, %v5280_v12 }
0x1236   :  { %v3304_v2 = vadd.f32 %v3302_v30, %v3299_v13  ;;  %v3407_v20 = vadd.f32 %v3405_v34, %v3402_v10  ;;  %v3314_v45 = vrot.slane %v3312_v24, 2  ;;  %v3412_v53 = vrot.slane %v3410_v8, 1 }
0x1237   :  { %v3417_v33 = vrot.slane %v3415_v50, 2  ;;  %v3505_v23 = vadd.f32 %v3503_v47, %v3500_v0  ;;  %v3508_v59 = vrot.slane %v3506_v32, 2  ;;  %v3518_v6 = vmul.f32 %v5784_v51, %v5282_v16 }
0x1238   :  { %v3306_v41 = vadd.f32 %v3305_v25, %v3304_v2  ;;  %v3409_v39 = vadd.f32 %v3408_v27, %v3407_v20  ;;  %v3511_v63 = vmul.f32 %v5784_v51, %v5278_v11  ;;  %v3616_v9 = vmul.f32 %v3280_v46, %v5318_v48  ;;  %v5852_v20 = vld [vmem:[%s6051_s21] ss:$0 sm:$0xff] }
0x1239   :  { %v3621_v13 = vmul.f32 %v3280_v46, %v5326_v61  ;;  %v3510_v10 = vadd.f32 %v3508_v59, %v3505_v23  ;;  %v3515_v34 = vrot.slane %v3513_v54, 1  ;;  %v3527_v24 = vrot.slane %v5798_v36, 1 }
0x123a   :  { %v3311_v57 = vadd.f32 %v3309_v1, %v3306_v41  ;;  %v3414_v30 = vadd.f32 %v3412_v53, %v3409_v39  ;;  %v3532_v50 = vrot.slane %v5807_v62, 2  ;;  %v3615_v4 = vmul.f32 %v3280_v46, %v5306_v44  ;;  %v5860_v46 = vld [vmem:[%s6051_s21 + $0x1] ss:$0 sm:$0xff] }
0x123b   :  { %v3618_v32 = vrot.slane %v3616_v9, 1  ;;  %v3512_v25 = vadd.f32 %v3511_v63, %v3510_v10  ;;  %v3520_v1 = vrot.slane %v3518_v6, 2  ;;  %v3626_v27 = vmul.f32 %v5784_v51, %v5288_v21 }
0x123c   :  { %v3316_v8 = vadd.f32 %v3314_v45, %v3311_v57  ;;  %v3419_v2 = vadd.f32 %v3417_v33, %v3414_v30  ;;  %v3623_v47 = vrot.slane %v3621_v13, 2  ;;  %v3628_v62 = vmul.f32 %v5784_v51, %v5290_v22 }
0x123d   :  { %v3620_v36 = vadd.f32 %v3618_v32, %v3615_v4  ;;  %v3517_v41 = vadd.f32 %v3515_v34, %v3512_v25  ;;  %v3633_v45 = vmul.f32 %v5784_v51, %v5292_v31  ;;  %v3731_v53 = vmul.f32 %v5784_v51, %v5302_v42 }
0x123e   :  { %v3317_v0 = vadd.f32 %v5852_v20, %v3316_v8  ;;  %v3420_v54 = vadd.f32 %v5860_v46, %v3419_v2  ;;  %v3640_v23 = vmul.f32 %v5778_v58, %v5296_v37  ;;  %v3645_v59 = vmul.f32 %v5825_v7, %v5778_v58 }
0x123f   :  { %v3625_v39 = vadd.f32 %v3623_v47, %v3620_v36  ;;  %v3522_v57 = vadd.f32 %v3520_v1, %v3517_v41  ;;  %v3730_v63 = vmul.f32 %v5784_v51, %v5298_v38  ;;  %v3733_v9 = vrot.slane %v3731_v53, 1 }
0x1240   :  { %v3319_v33 = vmul.f32 0.70710677, %v3317_v0  ;;  %v3422_v6 = vmul.f32 0.70710677, %v3420_v54  ;;  %v3630_v30 = vrot.slane %v3628_v62, 1  ;;  %v3736_v10 = vmul.f32 %v5784_v51, %v5304_v43 }
0x1241   :  { %v3627_v13 = vadd.f32 %v3626_v27, %v3625_v39  ;;  %v3524_v34 = vadd.f32 %v5794_v3, %v3522_v57  ;;  %v3735_v8 = vadd.f32 %v3733_v9, %v3730_v63  ;;  %v3743_v4 = vmul.f32 %v5778_v58, %v5280_v12 }
0x1242   :  { %4747 = verf.f32 %v3319_v33  ;;  %v3635_v2 = vrot.slane %v3633_v45, 2  ;;  %v3642_v25 = vrot.slane %v3640_v23, 1  ;;  %v3738_v1 = vrot.slane %v3736_v10, 2 }
0x1243   :  { %4749 = verf.f32 %v3422_v6  ;;  %v3632_v32 = vadd.f32 %v3630_v30, %v3627_v13  ;;  %v3318_v36 = vmul.f32 0.5, %v3317_v0  ;;  %v3421_v47 = vmul.f32 0.5, %v3420_v54 }
0x1244   :  { %v3529_v41 = vadd.f32 %v3527_v24, %v3524_v34  ;;  %v3647_v53 = vrot.slane %v3645_v59, 2  ;;  %v3740_v62 = vadd.f32 %v3738_v1, %v3735_v8  ;;  %v3741_v33 = vmul.f32 %v5778_v58, %v5278_v11 }
0x1245   :  { %v3637_v27 = vadd.f32 %v3635_v2, %v3632_v32  ;;  %v3748_v3 = vmul.f32 %v5778_v58, %v5282_v16  ;;  %v3745_v6 = vrot.slane %v3743_v4, 1  ;;  %v3755_v57 = vmul.f32 %v5787_v56, %v5286_v18 }
0x1246   :  { %v3534_v39 = vadd.f32 %v3532_v50, %v3529_v41  ;;  %v3846_v45 = vmul.f32 %v5784_v51, %v5318_v48  ;;  %v3742_v24 = vadd.f32 %v3741_v33, %v3740_v62  ;;  %v3760_v54 = vmul.f32 %v5803_v55, %v5787_v56 }
0x1247   :  { %v3639_v0 = vadd.f32 %v5818_v29, %v3637_v27  ;;  %v3851_v23 = vmul.f32 %v5784_v51, %v5326_v61  ;;  %v3753_v50 = vmul.f32 %v5787_v56, %v5284_v17  ;;  %v3845_v18 = vmul.f32 %v5784_v51, %v5306_v44 }
0x1248   :  { %v5892_v59 = vadd.f32 %v5852_v20, %v3534_v39  ;;  %v3848_v63 = vrot.slane %v3846_v45, 1  ;;  %v3747_v13 = vadd.f32 %v3745_v6, %v3742_v24  ;;  %v3750_v29 = vrot.slane %v3748_v3, 2 }
0x1249   :  { %v3644_v9 = vadd.f32 %v3642_v25, %v3639_v0  ;;  %v3858_v30 = vmul.f32 %v5778_v58, %v5290_v22  ;;  %v3853_v34 = vrot.slane %v3851_v23, 2  ;;  %v3863_v8 = vmul.f32 %v5778_v58, %v5292_v31 }
0x124a   :  { %v3537_v55 = vmul.f32 0.70710677, %v5892_v59  ;;  %v3850_v10 = vadd.f32 %v3848_v63, %v3845_v18  ;;  %v3752_v32 = vadd.f32 %v3750_v29, %v3747_v13  ;;  %v3757_v17 = vrot.slane %v3755_v57, 1 }
0x124b   :  { %v3649_v4 = vadd.f32 %v3647_v53, %v3644_v9  ;;  %v3762_v2 = vrot.slane %v3760_v54, 2  ;;  %v3856_v25 = vmul.f32 %v5778_v58, %v5288_v21  ;;  %v3868_v1 = vmul.f32 %v5787_v56, %v5294_v35 }
0x124c   :  { %4751 = verf.f32 %v3537_v55  ;;  %v3855_v51 = vadd.f32 %v3853_v34, %v3850_v10  ;;  %v3754_v27 = vadd.f32 %v3753_v50, %v3752_v32  ;;  %v3860_v62 = vrot.slane %v3858_v30, 1 }
0x124d   :  { %v5908_v41 = vadd.f32 %v5860_v46, %v3649_v4  ;;  %v3961_v33 = vmul.f32 %v5778_v58, %v5302_v42  ;;  %v3865_v39 = vrot.slane %v3863_v8, 2  ;;  %v3870_v6 = vmul.f32 %v5787_v56, %v5296_v37 }
0x124e   :  { %v3857_v3 = vadd.f32 %v3856_v25, %v3855_v51  ;;  %v3966_v57 = vmul.f32 %v5778_v58, %v5304_v43  ;;  %v3759_v24 = vadd.f32 %v3757_v17, %v3754_v27  ;;  %v3875_v54 = vmul.f32 %v5825_v7, %v5787_v56 }
0x124f   :  { %v4748_v53 = vpop.eup %4747  ;;  %v3652_v35 = vmul.f32 0.70710677, %v5908_v41  ;;  %v3960_v42 = vmul.f32 %v5778_v58, %v5298_v38  ;;  %v3963_v18 = vrot.slane %v3961_v33, 1  ;;  %v3973_v30 = vmul.f32 %v5787_v56, %v5280_v12 }
0x1250   :  { %v4750_v45 = vpop.eup %4749  ;;  %v3321_v0 = vadd.f32 1.0, %v4748_v53  ;;  %v3862_v50 = vadd.f32 %v3860_v62, %v3857_v3  ;;  %v3764_v37 = vadd.f32 %v3762_v2, %v3759_v24  ;;  %v3968_v9 = vrot.slane %v3966_v57, 2 }
0x1251   :  { %v3424_v23 = vadd.f32 1.0, %v4750_v45  ;;  %4753 = verf.f32 %v3652_v35  ;;  %v3965_v29 = vadd.f32 %v3963_v18, %v3960_v42  ;;  %v3971_v55 = vmul.f32 %v5787_v56, %v5278_v11 }
0x1252   :  { %v3322_v63 = vmul.f32 %v3321_v0, %v3318_v36  ;;  %v3867_v43 = vadd.f32 %v3865_v39, %v3862_v50  ;;  %v5925_v7 = vadd.f32 %v5852_v20, %v3764_v37  ;;  %v3978_v38 = vmul.f32 %v5787_v56, %v5282_v16 }
0x1253   :  { %v3425_v13 = vmul.f32 %v3424_v23, %v3421_v47  ;;  %v4064_v36 = vmul.f32 %v5778_v58, %v5318_v48  ;;  %v3872_v12 = vrot.slane %v3870_v6, 1  ;;  %v3970_v10 = vadd.f32 %v3968_v9, %v3965_v29 }
0x1254   :  { %4626 = vmatmul.mubr.msk.f32.vlgmr.msra.gmra.mxu0 %vm132_vm2, %v3322_v63  ;;  %v3869_v47 = vadd.f32 %v3868_v1, %v3867_v43  ;;  %v4069_v34 = vmul.f32 %v5778_v58, %v5326_v61  ;;  %v3767_v11 = vmul.f32 0.70710677, %v5925_v7  ;;  %v4063_v16 = vmul.f32 %v5778_v58, %v5306_v44 }
0x1255   :  { %4633 = vmatmul.mubr.msk.f32.vlgmr.msra.gmra.mxu1 %vm132_vm2, %v3425_v13  ;;  %4636 = vmatpush3.msra.mxu0 %v5702_v49  ;;  %v4066_v48 = vrot.slane %v4064_v36, 1  ;;  %v3877_v4 = vrot.slane %v3875_v54, 2  ;;  %v3972_v32 = vadd.f32 %v3971_v55, %v3970_v10  ;;  %v3975_v17 = vrot.slane %v3973_v30, 1 }
0x1256   :  { %4643 = vmatpush3.msra.mxu1 %v5759_v5  ;;  %4637 = vmatprep.subr.mxu0 %v6101_v60  ;;  %v3874_v8 = vadd.f32 %v3872_v12, %v3869_v47  ;;  %4755 = verf.f32 %v3767_v11  ;;  %v4071_v2 = vrot.slane %v4069_v34, 2  ;;  %v4076_v44 = vmul.f32 %v5787_v56, %v5290_v22  ;;  %v2217_v11 = vpop.xlane.xlu0 %2216 }
0x1257   :  { %4644 = vmatprep.subr.mxu1 %v6101_v60  ;;  %4638 = vmatpush3.msra.mxu0 %v5711_v19  ;;  %v4068_v61 = vadd.f32 %v4066_v48, %v4063_v16  ;;  %v3977_v51 = vadd.f32 %v3975_v17, %v3972_v32  ;;  %v3980_v25 = vrot.slane %v3978_v38, 2  ;;  %v4074_v62 = vmul.f32 %v5787_v56, %v5288_v21 }
0x1258   :  { %4639 = vmatprep.mubr.msk.f32.mxu0 %vm4812_vm1, %v6101_v60  ;;  %4645 = vmatpush3.msra.mxu1 %v5768_v15  ;;  %v3879_v58 = vadd.f32 %v3877_v4, %v3874_v8  ;;  %v4081_v33 = vmul.f32 %v5787_v56, %v5292_v31  ;;  %v3536_v22 = vmul.f32 0.5, %v5892_v59  ;;  %v4078_v57 = vrot.slane %v4076_v44, 1 }
0x1259   :  { %4646 = vmatprep.mubr.msk.f32.mxu1 %vm4812_vm1, %v6101_v60  ;;  %4649 = vmatprep.subr.mxu0 %v6101_v60  ;;  %v4752_v1 = vpop.eup %4751  ;;  %v4073_v27 = vadd.f32 %v4071_v2, %v4068_v61  ;;  %v3982_v39 = vadd.f32 %v3980_v25, %v3977_v51  ;;  %v3651_v31 = vmul.f32 0.5, %v5908_v41  ;;  %v3766_v18 = vmul.f32 0.5, %v5925_v7 }
0x125a   :  { %4656 = vmatprep.subr.mxu1 %v6101_v60  ;;  %v3539_v53 = vadd.f32 1.0, %v4752_v1  ;;  %v3880_v3 = vadd.f32 %v5860_v46, %v3879_v58  ;;  %v4083_v54 = vrot.slane %v4081_v33, 2  ;;  %v2221_v8 = vmul.f32 0.0625, %v2217_v11 }
0x125b   :  { %v4075_v6 = vadd.f32 %v4074_v62, %v4073_v27  ;;  %v3983_v35 = vadd.f32 %v5852_v20, %v3982_v39 }
0x125c   :  { %v3540_v45 = vmul.f32 %v3539_v53, %v3536_v22  ;;  %v3882_v0 = vmul.f32 0.70710677, %v3880_v3  ;;  %v3881_v9 = vmul.f32 0.5, %v3880_v3  ;;  %v2223_v2 = vsub.f32 %v5742_v52, %v2221_v8  ;;  %v2220_v3 = vpop.xlane.xlu1 %2219 }
0x125d   :  { %v4080_v24 = vadd.f32 %v4078_v57, %v4075_v6  ;;  %v3985_v21 = vmul.f32 0.70710677, %v3983_v35  ;;  %v3984_v30 = vmul.f32 0.5, %v3983_v35  ;;  %v2222_v57 = vmul.f32 0.0625, %v2220_v3 }
0x125e   :  { %v4754_v23 = vpop.eup %4753  ;;  %4640 = vmatmul.mubr.msk.f32.vlgmr.msra.gmra.mxu0 %vm132_vm2, %v3540_v45  ;;  %4757 = verf.f32 %v3882_v0  ;;  %v2225_v27 = vmul.f32 %v2223_v2, %v2223_v2 }
0x125f   :  { %v3654_v56 = vadd.f32 1.0, %v4754_v23  ;;  %4650 = vmatpush3.msra.mxu0 %v5702_v49  ;;  %4653 = vmatprep.mubr.msk.f32.mxu0 %vm4812_vm1, %v6101_v60  ;;  %v4085_v59 = vadd.f32 %v4083_v54, %v4080_v24  ;;  %4759 = verf.f32 %v3985_v21  ;;  %v2224_v54 = vsub.f32 %v5737_v26, %v2222_v57 }
0x1260   :  { %4651 = vmatprep.subr.mxu0 %v6101_v60  ;;  %v2227_v62 = vsel %vm132_vm2, %v2225_v27, 0.0 }
0x1261   :  { %v3655_v20 = vmul.f32 %v3654_v56, %v3651_v31  ;;  %4652 = vmatpush3.msra.mxu0 %v5711_v19  ;;  %v4086_v50 = vadd.f32 %v5860_v46, %v4085_v59  ;;  %v2226_v56 = vmul.f32 %v2224_v54, %v2224_v54 }
0x1262   :  { %4663 = vmatprep.subr.mxu0 %v6101_v60 }
0x1263   :  { %4647 = vmatmul.mubr.msk.f32.vlgmr.msra.gmra.mxu1 %vm132_vm2, %v3655_v20  ;;  %v4088_v41 = vmul.f32 0.70710677, %v4086_v50  ;;  %v4756_v42 = vpop.eup %4755  ;;  %v2230_v59 = vsel %vm132_vm2, %v2226_v56, 0.0 }
0x1264   :  { %4657 = vmatpush3.msra.mxu1 %v5759_v5  ;;  %4660 = vmatprep.mubr.msk.f32.mxu1 %vm4812_vm1, %v6101_v60  ;;  %v3769_v63 = vadd.f32 1.0, %v4756_v42 }
0x1265   :  { %4658 = vmatprep.subr.mxu1 %v6101_v60  ;;  %4761 = verf.f32 %v4088_v41 }
0x1266   :  { %4659 = vmatpush3.msra.mxu1 %v5768_v15  ;;  %v3770_v46 = vmul.f32 %v3769_v63, %v3766_v18 }
0x1267   :  { %4670 = vmatprep.subr.mxu1 %v6101_v60 }
0x1268   :  { %4654 = vmatmul.mubr.msk.f32.vlgmr.msra.gmra.mxu0 %vm132_vm2, %v3770_v46 }
0x1269   :  { %4664 = vmatpush3.msra.mxu0 %v5702_v49  ;;  %4667 = vmatprep.mubr.msk.f32.mxu0 %vm4812_vm1, %v6101_v60 }
0x126a   :  { %4665 = vmatprep.subr.mxu0 %v6101_v60 }
0x126b   :  { %v4758_v37 = vpop.eup %4757  ;;  %4666 = vmatpush3.msra.mxu0 %v5711_v19  ;;  %v4087_v19 = vmul.f32 0.5, %v4086_v50 }
0x126c   :  { %v3884_v13 = vadd.f32 1.0, %v4758_v37  ;;  %v4760_v43 = vpop.eup %4759 }
0x126d   :  { %v3987_v7 = vadd.f32 1.0, %v4760_v43 }
0x126e   :  { %v3885_v29 = vmul.f32 %v3884_v13, %v3881_v9  ;;  %v4269_v9 = vld [vmem:[%s6105_s6] ss:$0 sm:$0xff] }
0x126f   :  { %v3988_v55 = vmul.f32 %v3987_v7, %v3984_v30 }
0x1270   :  { %4661 = vmatmul.mubr.msk.f32.vlgmr.msra.gmra.mxu1 %vm132_vm2, %v3885_v29  ;;  %v4270_v29 = vld [vmem:[%s6106_s18] ss:$0 sm:$0xff] }
0x1271   :  { %4671 = vmatpush3.msra.mxu1 %v5759_v5  ;;  %4674 = vmatprep.mubr.msk.f32.mxu1 %vm4812_vm1, %v6101_v60 }
0x1272   :  { %v4762_v49 = vpop.eup %4761  ;;  %4672 = vmatprep.subr.mxu1 %v6101_v60  ;;  %4668 = vmatmul.mubr.msk.f32.vlgmr.msra.gmra.mxu0 %vm132_vm2, %v3988_v55 }
0x1273   :  { %4673 = vmatpush3.msra.mxu1 %v5768_v15  ;;  %v4090_v38 = vadd.f32 1.0, %v4762_v49 }
0x1275   :  { %v4091_v36 = vmul.f32 %v4090_v38, %v4087_v19 }
0x1277   :  { %4675 = vmatmul.mubr.msk.f32.vlgmr.msra.gmra.mxu1 %vm132_vm2, %v4091_v36 }
0x1314   :  { %v3392_v47 = vpop.f32.mrf.mxu0 }
0x1315   :  { %v3495_v12 = vpop.f32.mrf.mxu1  ;;  %v3396_v60 = vadd.f32 %v5618_v28, %v3392_v47 }
0x1316   :  { %v4627_v10 = vpop.f32.mrf.mxu0 }
0x1317   :  { %v4634_v34 = vpop.f32.mrf.mxu1  ;;  %v3499_v17 = vadd.f32 %v3495_v12, %v3396_v60 }
0x131e   :  { %v3610_v5 = vpop.f32.mrf.mxu0 }
0x131f   :  { %v3614_v16 = vadd.f32 %v5618_v28, %v3610_v5 }
0x1320   :  { %v4641_v48 = vpop.f32.mrf.mxu0 }
0x1323   :  { %v3725_v4 = vpop.f32.mrf.mxu1 }
0x1324   :  { %v3729_v32 = vadd.f32 %v3725_v4, %v3614_v16 }
0x1325   :  { %v4648_v15 = vpop.f32.mrf.mxu1 }
0x1326   :  { %v4167_v61 = vrot.slane %v3729_v32, 4 }
0x1328   :  { %v4172_v44 = vsel %vm922_vm3, %v3499_v17, %v4167_v61  ;;  %v3840_v58 = vpop.f32.mrf.mxu0 }
0x1329   :  { %v4174_v51 = vadd.f32 %v4172_v44, %v5726_v14  ;;  %v3844_v6 = vadd.f32 %v5618_v28, %v3840_v58 }
0x132a   :  { %v4655_v25 = vpop.f32.mrf.mxu0 }
0x132b   :  { %v4178_v1 = vsel %vm132_vm2, %v4174_v51, 0.0 }
0x132c   :  { %4179 = vadd.xlane.f32.xlu0 %v4178_v1 }
0x1330   :  { %v3955_v33 = vpop.f32.mrf.mxu1  ;;  %2228 = vadd.xlane.f32.xlu0 %v2227_v62 }
0x1331   :  { %v3959_v35 = vadd.f32 %v3955_v33, %v3844_v6 }
0x1332   :  { %v4662_v22 = vpop.f32.mrf.mxu1  ;;  %v4058_v53 = vpop.f32.mrf.mxu0 }
0x1333   :  { %v4062_v39 = vadd.f32 %v5618_v28, %v4058_v53 }
0x1334   :  { %v4669_v52 = vpop.f32.mrf.mxu0 }
0x1337   :  { %v4161_v45 = vpop.f32.mrf.mxu1 }
0x1338   :  { %v4165_v14 = vadd.f32 %v4161_v45, %v4062_v39 }
0x1339   :  { %v4676_v0 = vpop.f32.mrf.mxu1 }
0x133a   :  { %v4170_v24 = vrot.slane %v4165_v14, 4 }
0x133c   :  { %v4173_v23 = vsel %vm922_vm3, %v3959_v35, %v4170_v24 }
0x133d   :  { %v4175_v21 = vadd.f32 %v4173_v23, %v5721_v40 }
0x133f   :  { %v4181_v31 = vsel %vm132_vm2, %v4175_v21, 0.0 }
0x1340   :  { %4182 = vadd.xlane.f32.xlu1 %v4181_v31 }
0x1344   :  { %2231 = vadd.xlane.f32.xlu1 %v2230_v59 }
0x13b5   :  { %v4180_v28 = vpop.xlane.xlu0 %4179 }
0x13b6   :  { %v4184_v20 = vmul.f32 0.0625, %v4180_v28 }
0x13b8   :  { %v4186_v50 = vsub.f32 %v4174_v51, %v4184_v20 }
0x13b9   :  { %v2229_v41 = vpop.xlane.xlu0 %2228 }
0x13ba   :  { %v2233_v42 = vmul.f32 0.0625, %v2229_v41  ;;  %v4188_v18 = vmul.f32 %v4186_v50, %v4186_v50 }
0x13bc   :  { %v2235_v63 = vadd.f32 1e-05, %v2233_v42  ;;  %v4190_v26 = vsel %vm132_vm2, %v4188_v18, 0.0 }
0x13bd   :  { %4191 = vadd.xlane.f32.xlu0 %v4190_v26 }
0x13be   :  { %4763 = vrsqrt.f32 %v2235_v63 }
0x13c9   :  { %v4183_v46 = vpop.xlane.xlu1 %4182 }
0x13ca   :  { %v4185_v40 = vmul.f32 0.0625, %v4183_v46 }
0x13cb   :  { %v4764_v37 = vpop.eup %4763 }
0x13cc   :  { %v2239_v13 = vmul.f32 %v4764_v37, %v2223_v2  ;;  %v4187_v43 = vsub.f32 %v4175_v21, %v4185_v40 }
0x13cd   :  { %v2232_v30 = vpop.xlane.xlu1 %2231 }
0x13ce   :  { %v2247_v7 = vmul.f32 %v4269_v9, %v2239_v13  ;;  %v2234_v55 = vmul.f32 0.0625, %v2232_v30  ;;  %v4189_v49 = vmul.f32 %v4187_v43, %v4187_v43 }
0x13d0   :  { %v2255_v19 = vadd.f32 %v4270_v29, %v2247_v7  ;;  %v2236_v38 = vadd.f32 1e-05, %v2234_v55  ;;  %v4193_v36 = vsel %vm132_vm2, %v4189_v49, 0.0 }
0x13d1   :  { %4194 = vadd.xlane.f32.xlu1 %v4193_v36 }
0x13d2   :  { %2257 = vst.msk [vmem:[%s6107_s25] sm:$0xff] %vm132_vm2, %v2255_v19  ;;  %4765 = vrsqrt.f32 %v2236_v38 }
0x13df   :  { %v4766_v47 = vpop.eup %4765 }
0x13e0   :  { %v2240_v12 = vmul.f32 %v4766_v47, %v2224_v54 }
0x13e2   :  { %v2248_v10 = vmul.f32 %v4269_v9, %v2240_v12 }
0x13e4   :  { %v2256_v34 = vadd.f32 %v4270_v29, %v2248_v10 }
0x13e6   :  { %2258 = vst.msk [vmem:[%s6107_s25 + $0x8] sm:$0xff] %vm132_vm2, %v2256_v34 }
0x1446   :  { %v4192_v5 = vpop.xlane.xlu0 %4191 }
0x1447   :  { %v4196_v11 = vmul.f32 0.0625, %v4192_v5 }
0x1449   :  { %v4198_v16 = vadd.f32 1e-05, %v4196_v11 }
0x144b   :  { %4767 = vrsqrt.f32 %v4198_v16 }
0x1458   :  { %v4768_v48 = vpop.eup %4767 }
0x1459   :  { %v4202_v60 = vmul.f32 %v4768_v48, %v4186_v50 }
0x145a   :  { %v4195_v8 = vpop.xlane.xlu1 %4194 }
0x145b   :  { %v4210_v4 = vmul.f32 %v4269_v9, %v4202_v60  ;;  %v4197_v32 = vmul.f32 0.0625, %v4195_v8 }
0x145d   :  { %v4218_v15 = vadd.f32 %v4270_v29, %v4210_v4  ;;  %v4199_v17 = vadd.f32 1e-05, %v4197_v32 }
0x145f   :  { %4220 = vst.msk [vmem:[%s6107_s25 + $0x10] sm:$0xff] %vm132_vm2, %v4218_v15  ;;  %4769 = vrsqrt.f32 %v4199_v17 }
0x146c   :  { %v4770_v61 = vpop.eup %4769 }
0x146d   :  { %v4203_v2 = vmul.f32 %v4770_v61, %v4187_v43 }
0x146f   :  { %v4211_v44 = vmul.f32 %v4269_v9, %v4203_v2 }
0x1471   :  { %v4219_v58 = vadd.f32 %v4270_v29, %v4211_v44 }
0x1473   :  { %4221 = vst.msk [vmem:[%s6107_s25 + $0x18] sm:$0xff] %vm132_vm2, %v4219_v58 }

// kernel: segformer_forward.9
= control target key start
LH: loop header
LB: loop body
LE: loop exit
PB: predicated region body
PF: predicated region fallthrough
CT: control target
= control target key end

     0   :  { %vm175_vm0 = vcmask 130048   ;;  %vm60_vm1 = vcmask 261120   ;;  %vm644_vm2 = vcmask 23552   ;;  %s982_s2 = inlined_call_operand.vmem [shape: f32[32,32], index: 2, kind: input, shape index: {}]   ;;  %s983_s5 = inlined_call_operand.vmem [shape: f32[16,32], index: 5, kind: input, shape index: {}]   ;;  %s984_s1 = inlined_call_operand.vmem [shape: f32[32,16], index: 1, kind: input, shape index: {}]   ;;  %s985_s0 = inlined_call_operand.vmem [shape: f32[32,32], index: 0, kind: input, shape index: {}]   ;;  %s986_s7 = inlined_call_operand.vmem [shape: f32[32,32], index: 7, kind: input, shape index: {}]   ;;  %s987_s4 = inlined_call_operand.vmem [shape: f32[32,32], index: 4, kind: input, shape index: {}]   ;;  %s988_s6 = inlined_call_operand.vmem [shape: f32[1,32], index: 6, kind: input, shape index: {}]   ;;  %s989_s3 = inlined_call_operand.vmem [shape: f32[1,32], index: 3, kind: input, shape index: {}]   ;;  %s990_s10 = inlined_call_operand.vmem [shape: f32[32,3], index: 10, kind: input, shape index: {}]   ;;  %s991_s8 = inlined_call_operand.vmem [shape: f32[1,32], index: 8, kind: input, shape index: {}]   ;;  %s992_s9 = inlined_call_operand.vmem [shape: f32[1,32], index: 9, kind: input, shape index: {}]   ;;  %s993_s11 = inlined_call_operand.vmem [shape: f32[1,3], index: 11, kind: input, shape index: {}]   ;;  %s994_s12 = inlined_call_operand.vmem [shape: f32[32,3], index: 12, kind: output, shape index: {}]  }
   0x1   :  { %v48_v0 = vld [vmem:[%s982_s2 + $0x18] sm:$0xff]  ;;  %v163_v1 = vld [vmem:[%s983_s5 + $0x8] sm:$0xff]  ;;  %v47_v2 = vld [vmem:[%s982_s2 + $0x10] sm:$0xff] }
   0x2   :  { %716 = vmatprep.subr.mxu0 %v48_v0  ;;  %730 = vmatprep.subr.mxu1 %v163_v1  ;;  %v162_v3 = vld [vmem:[%s983_s5] sm:$0xff]  ;;  %v46_v5 = vld [vmem:[%s982_s2 + $0x8] sm:$0xff]  ;;  %v160_v9 = vld [vmem:[%s984_s1 + $0x10] sm:$0xff] }
   0x3   :  { %717 = vmatpush3.msra.mxu0 %v48_v0  ;;  %731 = vmatpush3.msra.mxu1 %v163_v1  ;;  %v158_v4 = vld [vmem:[%s984_s1] sm:$0xff]  ;;  %v159_v6 = vld [vmem:[%s984_s1 + $0x8] sm:$0xff]  ;;  %v168_v11 = vld [vmem:[%s986_s7 + $0x18] sm:$0xff] }
   0x4   :  { %718 = vmatprep.subr.mxu0 %v47_v2  ;;  %732 = vmatprep.subr.mxu1 %v162_v3  ;;  %v45_v7 = vld [vmem:[%s982_s2] sm:$0xff]  ;;  %v42_v10 = vld [vmem:[%s985_s0 + $0x8] sm:$0xff]  ;;  %v161_v12 = vld [vmem:[%s984_s1 + $0x18] sm:$0xff] }
   0x5   :  { %719 = vmatpush3.msra.mxu0 %v47_v2  ;;  %733 = vmatpush3.msra.mxu1 %v162_v3  ;;  %v41_v8 = vld [vmem:[%s985_s0] sm:$0xff]  ;;  %v43_v13 = vld [vmem:[%s985_s0 + $0x10] sm:$0xff]  ;;  %v44_v14 = vld [vmem:[%s985_s0 + $0x18] sm:$0xff] }
   0x6   :  { %734 = vmatprep.mubr.msk.f32.mxu1 %vm175_vm0, %v158_v4  ;;  %720 = vmatprep.subr.mxu0 %v46_v5  ;;  %v167_v15 = vld [vmem:[%s986_s7 + $0x10] sm:$0xff]  ;;  %v53_v16 = vld [vmem:[%s987_s4 + $0x18] sm:$0xff]  ;;  %v166_v17 = vld [vmem:[%s986_s7 + $0x8] sm:$0xff] }
   0x7   :  { %735 = vmatmul.mubr.msk.f32.vlgmr.msra.gmra.mxu1 %vm175_vm0, %v159_v6  ;;  %721 = vmatpush3.msra.mxu0 %v46_v5  ;;  %v52_v18 = vld [vmem:[%s987_s4 + $0x10] sm:$0xff]  ;;  %v165_v19 = vld [vmem:[%s986_s7] sm:$0xff]  ;;  %v51_v20 = vld [vmem:[%s987_s4 + $0x8] sm:$0xff] }
   0x8   :  { %722 = vmatprep.subr.mxu0 %v45_v7  ;;  %724 = vmatprep.mubr.msk.f32.mxu0 %vm60_vm1, %v41_v8  ;;  %v50_v21 = vld [vmem:[%s987_s4] sm:$0xff]  ;;  %v472_v40 = vld [vmem:[%s990_s10 + $0x18] sm:$0xff]  ;;  %v471_v41 = vld [vmem:[%s990_s10 + $0x10] sm:$0xff] }
   0x9   :  { %723 = vmatpush3.msra.mxu0 %v45_v7  ;;  %737 = vmatprep.mubr.msk.f32.mxu1 %vm175_vm0, %v160_v9  ;;  %v658_v22 = vld [vmem:[%s988_s6] ss:$0 sm:$0xff]  ;;  %v470_v42 = vld [vmem:[%s990_s10 + $0x8] sm:$0xff] }
   0xa   :  { %725 = vmatmul.mubr.msk.f32.vlgmr.msra.gmra.mxu0 %vm60_vm1, %v42_v10  ;;  %740 = vmatprep.subr.mxu1 %v168_v11  ;;  %v653_v28 = vld [vmem:[%s989_s3] ss:$0 sm:$0xff] }
   0xb   :  { %738 = vmatmul.mubr.msk.f32.gmra.mxu1 %vm175_vm0, %v161_v12  ;;  %727 = vmatprep.mubr.msk.f32.mxu0 %vm60_vm1, %v43_v13  ;;  %v469_v43 = vld [vmem:[%s990_s10] sm:$0xff] }
   0xc   :  { %741 = vmatpush3.msra.mxu1 %v168_v11  ;;  %754 = vmatprep.subr.mxu0 %v53_v16 }
   0xd   :  { %742 = vmatprep.subr.mxu1 %v167_v15  ;;  %755 = vmatpush3.msra.mxu0 %v53_v16 }
   0xe   :  { %728 = vmatmul.mubr.msk.f32.gmra.mxu0 %vm60_vm1, %v44_v14  ;;  %743 = vmatpush3.msra.mxu1 %v167_v15 }
   0xf   :  { %744 = vmatprep.subr.mxu1 %v166_v17  ;;  %756 = vmatprep.subr.mxu0 %v52_v18 }
  0x10   :  { %745 = vmatpush3.msra.mxu1 %v166_v17  ;;  %757 = vmatpush3.msra.mxu0 %v52_v18 }
  0x11   :  { %746 = vmatprep.subr.mxu1 %v165_v19  ;;  %758 = vmatprep.subr.mxu0 %v51_v20 }
  0x12   :  { %747 = vmatpush3.msra.mxu1 %v165_v19  ;;  %759 = vmatpush3.msra.mxu0 %v51_v20 }
  0x13   :  { %760 = vmatprep.subr.mxu0 %v50_v21  ;;  %768 = vmatprep.subr.mxu1 %v472_v40 }
  0x14   :  { %761 = vmatpush3.msra.mxu0 %v50_v21 }
  0xc7   :  { %v736_v23 = vpop.f32.mrf.mxu1 }
  0xc8   :  { %v260_v24 = vadd.f32 %v736_v23, %v658_v22 }
  0xc9   :  { %v254_v25 = vpop.f32.mrf.mxu1 }
  0xca   :  { %v255_v26 = vadd.f32 %v658_v22, %v254_v25  ;;  %v726_v27 = vpop.f32.mrf.mxu0 }
  0xcb   :  { %v739_v29 = vpop.f32.mrf.mxu1  ;;  %v145_v34 = vadd.f32 %v726_v27, %v653_v28 }
  0xcc   :  { %748 = vmatprep.mubr.msk.f32.mxu1 %vm60_vm1, %v255_v26  ;;  %v139_v30 = vpop.f32.mrf.mxu0  ;;  %v270_v31 = vadd.f32 %v739_v29, %v658_v22 }
  0xcd   :  { %v140_v32 = vadd.f32 %v653_v28, %v139_v30  ;;  %v264_v33 = vpop.f32.mrf.mxu1  ;;  %749 = vmatmul.mubr.msk.f32.vlgmr.msra.gmra.mxu1 %vm60_vm1, %v260_v24 }
  0xce   :  { %v265_v35 = vadd.f32 %v658_v22, %v264_v33  ;;  %v729_v36 = vpop.f32.mrf.mxu0  ;;  %769 = vmatpush3.msra.mxu1 %v472_v40 }
  0xcf   :  { %762 = vmatprep.mubr.msk.f32.mxu0 %vm60_vm1, %v140_v32  ;;  %v155_v39 = vadd.f32 %v729_v36, %v653_v28  ;;  %770 = vmatprep.subr.mxu1 %v471_v41 }
  0xd0   :  { %751 = vmatprep.mubr.msk.f32.mxu1 %vm60_vm1, %v265_v35  ;;  %v149_v37 = vpop.f32.mrf.mxu0  ;;  %763 = vmatmul.mubr.msk.f32.vlgmr.msra.gmra.mxu0 %vm60_vm1, %v145_v34  ;;  %v671_v34 = vld [vmem:[%s991_s8] ss:$0 sm:$0xff] }
  0xd1   :  { %v150_v38 = vadd.f32 %v653_v28, %v149_v37  ;;  %752 = vmatmul.mubr.msk.f32.gmra.mxu1 %vm60_vm1, %v270_v31 }
  0xd2   :  { %771 = vmatpush3.msra.mxu1 %v471_v41 }
  0xd3   :  { %765 = vmatprep.mubr.msk.f32.mxu0 %vm60_vm1, %v150_v38  ;;  %772 = vmatprep.subr.mxu1 %v470_v42  ;;  %v672_v38 = vld [vmem:[%s992_s9] ss:$0 sm:$0xff] }
  0xd4   :  { %766 = vmatmul.mubr.msk.f32.gmra.mxu0 %vm60_vm1, %v155_v39  ;;  %773 = vmatpush3.msra.mxu1 %v470_v42 }
  0xd5   :  { %774 = vmatprep.subr.mxu1 %v469_v43 }
  0xd6   :  { %775 = vmatpush3.msra.mxu1 %v469_v43 }
 0x18d   :  { %v750_v44 = vpop.f32.mrf.mxu1 }
 0x18f   :  { %v351_v45 = vpop.f32.mrf.mxu1 }
 0x190   :  { %v764_v46 = vpop.f32.mrf.mxu0 }
 0x191   :  { %v454_v47 = vadd.f32 %v764_v46, %v750_v44  ;;  %v753_v48 = vpop.f32.mrf.mxu1 }
 0x192   :  { %v448_v49 = vpop.f32.mrf.mxu0 }
 0x193   :  { %v449_v50 = vadd.f32 %v448_v49, %v351_v45  ;;  %v475_v52 = vmax.f32 %v454_v47, 0.0  ;;  %v361_v55 = vpop.f32.mrf.mxu1 }
 0x194   :  { %v767_v51 = vpop.f32.mrf.mxu0 }
 0x195   :  { %v474_v53 = vmax.f32 %v449_v50, 0.0  ;;  %v464_v54 = vadd.f32 %v767_v51, %v753_v48  ;;  %v479_v59 = vsel %vm60_vm1, %v475_v52, 0.0  ;;  %v673_v48 = vld [vmem:[%s993_s11] ss:$0 sm:$0xff] }
 0x196   :  { %v458_v56 = vpop.f32.mrf.mxu0 }
 0x197   :  { %v478_v57 = vsel %vm60_vm1, %v474_v53, 0.0  ;;  %v459_v58 = vadd.f32 %v458_v56, %v361_v55  ;;  %v477_v60 = vmax.f32 %v464_v54, 0.0 }
 0x198   :  { %v480_v62 = vadd.f32 %v479_v59, %v478_v57 }
 0x199   :  { %v476_v61 = vmax.f32 %v459_v58, 0.0  ;;  %v483_v1 = vsel %vm60_vm1, %v477_v60, 0.0 }
 0x19b   :  { %v481_v63 = vsel %vm60_vm1, %v476_v61, 0.0 }
 0x19c   :  { %v482_v0 = vadd.f32 %v481_v63, %v480_v62 }
 0x19e   :  { %v484_v2 = vadd.f32 %v483_v1, %v482_v0 }
 0x1a0   :  { %v485_v3 = vrot.slane %v484_v2, 4 }
 0x1a2   :  { %v486_v4 = vadd.f32 %v485_v3, %v484_v2 }
 0x1a4   :  { %v487_v5 = vrot.slane %v486_v4, 2 }
 0x1a6   :  { %v488_v6 = vadd.f32 %v487_v5, %v486_v4 }
 0x1a8   :  { %v489_v7 = vrot.slane %v488_v6, 1 }
 0x1aa   :  { %v490_v8 = vadd.f32 %v489_v7, %v488_v6 }
 0x1ac   :  { %v492_v9 = vmul.f32 0.03125, %v490_v8 }
 0x1ae   :  { %v493_v10 = vsub.f32 %v474_v53, %v492_v9  ;;  %v494_v11 = vsub.f32 %v475_v52, %v492_v9  ;;  %v495_v12 = vsub.f32 %v476_v61, %v492_v9  ;;  %v496_v13 = vsub.f32 %v477_v60, %v492_v9 }
 0x1b0   :  { %v497_v14 = vmul.f32 %v493_v10, %v493_v10  ;;  %v498_v15 = vmul.f32 %v494_v11, %v494_v11  ;;  %v499_v16 = vmul.f32 %v495_v12, %v495_v12  ;;  %v500_v17 = vmul.f32 %v496_v13, %v496_v13 }
 0x1b2   :  { %v501_v18 = vsel %vm60_vm1, %v497_v14, 0.0  ;;  %v502_v19 = vsel %vm60_vm1, %v498_v15, 0.0  ;;  %v504_v21 = vsel %vm60_vm1, %v499_v16, 0.0  ;;  %v506_v23 = vsel %vm60_vm1, %v500_v17, 0.0 }
 0x1b3   :  { %v503_v20 = vadd.f32 %v502_v19, %v501_v18 }
 0x1b5   :  { %v505_v22 = vadd.f32 %v504_v21, %v503_v20 }
 0x1b7   :  { %v507_v24 = vadd.f32 %v506_v23, %v505_v22 }
 0x1b9   :  { %v508_v25 = vrot.slane %v507_v24, 4 }
 0x1bb   :  { %v509_v26 = vadd.f32 %v508_v25, %v507_v24 }
 0x1bd   :  { %v510_v27 = vrot.slane %v509_v26, 2 }
 0x1bf   :  { %v511_v28 = vadd.f32 %v510_v27, %v509_v26 }
 0x1c1   :  { %v512_v29 = vrot.slane %v511_v28, 1 }
 0x1c3   :  { %v513_v30 = vadd.f32 %v512_v29, %v511_v28 }
 0x1c5   :  { %v514_v31 = vmul.f32 0.03125, %v513_v30 }
 0x1c7   :  { %v515_v32 = vadd.f32 1e-05, %v514_v31 }
 0x1c9   :  { %782 = vrsqrt.f32 %v515_v32 }
 0x1d6   :  { %v783_v33 = vpop.eup %782 }
 0x1d7   :  { %v518_v35 = vmul.f32 %v783_v33, %v494_v11  ;;  %v519_v36 = vmul.f32 %v783_v33, %v495_v12  ;;  %v517_v37 = vmul.f32 %v783_v33, %v493_v10  ;;  %v520_v39 = vmul.f32 %v783_v33, %v496_v13 }
 0x1d9   :  { %v528_v40 = vmul.f32 %v671_v34, %v518_v35  ;;  %v529_v41 = vmul.f32 %v671_v34, %v519_v36  ;;  %v527_v42 = vmul.f32 %v671_v34, %v517_v37  ;;  %v530_v45 = vmul.f32 %v671_v34, %v520_v39 }
 0x1db   :  { %v537_v43 = vadd.f32 %v672_v38, %v527_v42  ;;  %v538_v44 = vadd.f32 %v672_v38, %v528_v40  ;;  %v539_v46 = vadd.f32 %v672_v38, %v529_v41  ;;  %v540_v47 = vadd.f32 %v672_v38, %v530_v45 }
 0x1dd   :  { %776 = vmatprep.mubr.msk.f32.mxu1 %vm60_vm1, %v537_v43 }
 0x1de   :  { %777 = vmatmul.mubr.msk.f32.vlgmr.msra.gmra.mxu1 %vm60_vm1, %v538_v44 }
 0x1df   :  { %779 = vmatprep.mubr.msk.f32.mxu1 %vm60_vm1, %v539_v46 }
 0x1e2   :  { %780 = vmatmul.mubr.msk.f32.gmra.mxu1 %vm60_vm1, %v540_v47 }
 0x29e   :  { %v778_v49 = vpop.f32.mrf.mxu1 }
 0x29f   :  { %v631_v50 = vadd.f32 %v778_v49, %v673_v48 }
 0x2a0   :  { %v625_v51 = vpop.f32.mrf.mxu1 }
 0x2a1   :  { %646 = vst.msk [vmem:[%s994_s12 + $0x8] sm:$0xff] %vm644_vm2, %v631_v50  ;;  %v626_v52 = vadd.f32 %v673_v48, %v625_v51 }
 0x2a2   :  { %v781_v53 = vpop.f32.mrf.mxu1 }
 0x2a3   :  { %645 = vst.msk [vmem:[%s994_s12] sm:$0xff] %vm644_vm2, %v626_v52  ;;  %v641_v54 = vadd.f32 %v781_v53, %v673_v48 }
 0x2a4   :  { %v635_v55 = vpop.f32.mrf.mxu1 }
 0x2a5   :  { %648 = vst.msk [vmem:[%s994_s12 + $0x18] sm:$0xff] %vm644_vm2, %v641_v54  ;;  %v636_v56 = vadd.f32 %v673_v48, %v635_v55 }
 0x2a7   :  { %647 = vst.msk [vmem:[%s994_s12 + $0x10] sm:$0xff] %vm644_vm2, %v636_v56 }

// kernel: segformer_forward.8
= control target key start
LH: loop header
LB: loop body
LE: loop exit
PB: predicated region body
PF: predicated region fallthrough
CT: control target
= control target key end

     0   :  { %vm151_vm0 = vcmask 257024   ;;  %v5217_v7 = vmov 0.0   ;;  %vm4100_vm1 = vmmov 0   ;;  %vm201_vm2 = vcmask 261120   ;;  %s5176_s1 = inlined_call_operand.vmem [shape: f32[1,8,32], index: 1, kind: input, shape index: {}, may-alias: {0,1}]   ;;  %s5177_s4 = inlined_call_operand.vmem [shape: f32[1,32,32], index: 4, kind: input, shape index: {}]   ;;  %s5178_s2 = inlined_call_operand.vmem [shape: f32[1,32], index: 2, kind: input, shape index: {}]   ;;  %s5179_s3 = inlined_call_operand.vmem [shape: f32[1,32], index: 3, kind: input, shape index: {}]   ;;  %s5180_s5 = inlined_call_operand.vmem [shape: f32[1,32], index: 5, kind: input, shape index: {}]   ;;  %s5181_s0 = inlined_call_operand.vmem [shape: f32[8,32], index: 0, kind: input, shape index: {}, may-alias: {0,1}]   ;;  %s5182_s10 = inlined_call_operand.vmem [shape: f32[2,32,16], index: 10, kind: input, shape index: {}]   ;;  %s5183_s8 = inlined_call_operand.vmem [shape: f32[2,32,16], index: 8, kind: input, shape index: {}]   ;;  %s5184_s6 = inlined_call_operand.vmem [shape: f32[1,32], index: 6, kind: input, shape index: {}]   ;;  %s5185_s7 = inlined_call_operand.vmem [shape: f32[1,32], index: 7, kind: input, shape index: {}]   ;;  %s5186_s12 = inlined_call_operand.vmem [shape: f32[2,32,16], index: 12, kind: input, shape index: {}]   ;;  %s5187_s11 = inlined_call_operand.vmem [shape: f32[2,1,16], index: 11, kind: input, shape index: {}]   ;;  %s5188_s9 = inlined_call_operand.vmem [shape: f32[2,1,16], index: 9, kind: input, shape index: {}]   ;;  %s5189_s13 = inlined_call_operand.vmem [shape: f32[2,1,16], index: 13, kind: input, shape index: {}]   ;;  %s5190_s14 = inlined_call_operand.vmem [shape: f32[2,16,32], index: 14, kind: input, shape index: {}]   ;;  %s5191_s15 = inlined_call_operand.vmem [shape: f32[1,32], index: 15, kind: input, shape index: {}]   ;;  %s5192_s18 = inlined_call_operand.vmem [shape: f32[32,32], index: 18, kind: input, shape index: {}]   ;;  %s5193_s16 = inlined_call_operand.vmem [shape: f32[1,32], index: 16, kind: input, shape index: {}]   ;;  %s5194_s17 = inlined_call_operand.vmem [shape: f32[1,32], index: 17, kind: input, shape index: {}]   ;;  %s5195_s22 = inlined_call_operand.vmem [shape: f32[2,32,32], index: 22, kind: input, shape index: {}]   ;;  %s5196_s19 = inlined_call_operand.vmem [shape: f32[1,32], index: 19, kind: input, shape index: {}]   ;;  %s5197_s20 = inlined_call_operand.vmem [shape: f32[2,9,32], index: 20, kind: input, shape index: {}]   ;;  %s5198_s21 = inlined_call_operand.vmem [shape: f32[2,1,32], index: 21, kind: input, shape index: {}]   ;;  %s5199_s23 = inlined_call_operand.vmem [shape: f32[1,32], index: 23, kind: input, shape index: {}]   ;;  %s5200_s24 = inlined_call_operand.vmem [shape: f32[1,32], index: 24, kind: input, shape index: {}]   ;;  %s5201_s25 = inlined_call_operand.vmem [shape: f32[1,32], index: 25, kind: input, shape index: {}]   ;;  %s5202_s26 = inlined_call_operand.vmem [shape: f32[8,32], index: 26, kind: output, shape index: {}]  }
   0x1   :  { %5256 = sst [smem:[#allocation45_spill]] %s5176_s1  ;;  %3701 = vmatprep.subr.mxu0 %v5217_v7  ;;  %3709 = vmatprep.mubr.msk.f32.mxu0 %vm4100_vm1, %v5217_v7  ;;  %vm536_vm3 = vcmask 130048   ;;  %vm630_vm4 = vcmask 1043456   ;;  %vm614_vm5 = vcmask 27648   ;;  %vm626_vm6 = vcmask 31744  }
   0x2   :  { %5257 = sst [smem:[#allocation46_spill]] %s5177_s4  ;;  %3712 = vmatprep.subr.mxu1 %v5217_v7  ;;  %3720 = vmatprep.mubr.msk.f32.mxu1 %vm4100_vm1, %v5217_v7  ;;  %vm1906_vm7 = vcmask 261124   ;;  %vm1360_vm8 = vcmask 1040384   ;;  %vm1362_vm9 = vcmask 1042432   ;;  %vm1873_vm10 = vcmask 1041408  }
   0x3   :  { %5258 = sst [smem:[#allocation47_spill]] %s5178_s2 }
   0x4   :  { %5259 = sst [smem:[#allocation48_spill]] %s5179_s3 }
   0x5   :  { %5260 = sst [smem:[#allocation49_spill]] %s5180_s5 }
   0x6   :  { %5261 = sst [smem:[#allocation50_spill]] %s5181_s0 }
   0x7   :  { %5262 = sst [smem:[#allocation51_spill]] %s5182_s10 }
   0x8   :  { %5263 = sst [smem:[#allocation52_spill]] %s5183_s8 }
   0x9   :  { %5264 = sst [smem:[#allocation53_spill]] %s5184_s6 }
   0xa   :  { %5265 = sst [smem:[#allocation54_spill]] %s5185_s7 }
   0xb   :  { %5266 = sst [smem:[#allocation55_spill]] %s5186_s12 }
   0xc   :  { %s5267_s8 = sld [smem:[#allocation45_spill]] }
   0xd   :  { %s5268_s5 = sld [smem:[#allocation46_spill]] }
   0xe   :  { %s5269_s3 = sld [smem:[#allocation47_spill]] }
   0xf   :  { %s5272_s7 = sld [smem:[#allocation50_spill]] }
  0x10   :  { %s5273_s2 = sld [smem:[#allocation51_spill]] }
  0x11   :  { %s5274_s29 = sld [smem:[#allocation52_spill]] }
  0x12   :  { %v4239_v0 = vld [vmem:[%s5267_s8] sm:$0xff]  ;;  %s5270_s8 = sld [smem:[#allocation48_spill]] }
  0x13   :  { %v180_v1 = vsel %vm151_vm0, %v4239_v0, 0.0  ;;  %v4249_v8 = vld [vmem:[%s5268_s5 + $0x18] sm:$0xff]  ;;  %v4254_v9 = vld [vmem:[%s5268_s5 + $0x10] sm:$0xff]  ;;  %v4264_v10 = vld [vmem:[%s5268_s5 + $0x8] sm:$0xff]  ;;  %s5275_s30 = sld [smem:[#allocation53_spill]] }
  0x14   :  { %181 = vadd.xlane.f32.xlu0 %v180_v1  ;;  %3702 = vmatpush3.msra.mxu0 %v4249_v8  ;;  %v4273_v11 = vld [vmem:[%s5268_s5] sm:$0xff]  ;;  %s5271_s5 = sld [smem:[#allocation49_spill]] }
  0x15   :  { %3703 = vmatprep.subr.mxu0 %v5217_v7  ;;  %v4282_v16 = vld [vmem:[%s5269_s3] ss:$0 sm:$0xff]  ;;  %s5277_s10 = sld [smem:[#allocation54_spill]] }
  0x16   :  { %3704 = vmatpush3.msra.mxu0 %v4254_v9  ;;  %v4300_v25 = vld [vmem:[%s5272_s7] sm:$0xff]  ;;  %v4311_v38 = vld [vmem:[%s5273_s2 + $0x18] sm:$0xff]  ;;  %v4318_v39 = vld [vmem:[%s5273_s2 + $0x10] sm:$0xff]  ;;  %s5279_s28 = sld [smem:[#allocation55_spill]] }
  0x17   :  { %3705 = vmatprep.subr.mxu0 %v5217_v7  ;;  %v152_v27 = vsel %vm151_vm0, %v4300_v25, 0.0  ;;  %v4323_v40 = vld [vmem:[%s5273_s2 + $0x8] sm:$0xff]  ;;  %v4329_v41 = vld [vmem:[%s5274_s29 + $0x18] sm:$0xff]  ;;  %v4334_v42 = vld [vmem:[%s5274_s29 + $0x10] sm:$0xff] }
  0x18   :  { %3706 = vmatpush3.msra.mxu0 %v4264_v10  ;;  %v4287_v18 = vld [vmem:[%s5270_s8] ss:$0 sm:$0xff]  ;;  %3713 = vmatpush3.msra.mxu1 %v4329_v41  ;;  %v4348_v44 = vld [vmem:[%s5274_s29 + $0x8] sm:$0xff] }
  0x19   :  { %3707 = vmatprep.subr.mxu0 %v5217_v7  ;;  %v4341_v43 = vld [vmem:[%s5273_s2] sm:$0xff]  ;;  %3714 = vmatprep.subr.mxu1 %v5217_v7 }
  0x1a   :  { %3708 = vmatpush3.msra.mxu0 %v4273_v11  ;;  %v3487_v21 = vld [vmem:[%s5271_s5] ss:$0 sm:$0xff]  ;;  %3715 = vmatpush3.msra.mxu1 %v4334_v42 }
  0x1b   :  { %3723 = vmatprep.subr.mxu0 %v5217_v7  ;;  %3716 = vmatprep.subr.mxu1 %v5217_v7  ;;  %v4358_v45 = vld [vmem:[%s5274_s29] sm:$0xff] }
  0x1c   :  { %3717 = vmatpush3.msra.mxu1 %v4348_v44  ;;  %v4367_v53 = vld [vmem:[%s5275_s30] ss:$0 sm:$0xff]  ;;  %v4389_v62 = vld [vmem:[%s5279_s28 + $0x18] sm:$0xff]  ;;  %v4396_v63 = vld [vmem:[%s5279_s28 + $0x10] sm:$0xff] }
  0x1d   :  { %3718 = vmatprep.subr.mxu1 %v5217_v7  ;;  %5276 = vst [vmem:[#allocation2_spill] sm:$0xff] %v4367_v53  ;;  %v4372_v55 = vld [vmem:[%s5277_s10] ss:$0 sm:$0xff]  ;;  %5280 = vst [vmem:[#allocation4_spill] sm:$0xff] %v4396_v63  ;;  %v4405_v1 = vld [vmem:[%s5279_s28 + $0x8] sm:$0xff] }
  0x1e   :  { %3719 = vmatpush3.msra.mxu1 %v4358_v45  ;;  %5278 = vst [vmem:[#allocation3_spill] sm:$0xff] %v4372_v55  ;;  %5281 = vst [vmem:[#allocation5_spill] sm:$0xff] %v4405_v1 }
  0x1f   :  { %3734 = vmatprep.subr.mxu1 %v5217_v7 }
  0x9d   :  { %v182_v2 = vpop.xlane.xlu0 %181 }
  0x9e   :  { %v183_v3 = vmul.f32 0.03125, %v182_v2  ;;  %v4412_v2 = vld [vmem:[%s5279_s28] sm:$0xff] }
  0x9f   :  { %5282 = vst [vmem:[#allocation6_spill] sm:$0xff] %v4412_v2 }
  0xa0   :  { %v184_v4 = vsub.f32 %v4239_v0, %v183_v3  ;;  %v4425_v3 = vld [vmem:[%s5187_s11] ss:$0 sm:$0xff] }
  0xa1   :  { %5283 = vst [vmem:[#allocation7_spill] sm:$0xff] %v4425_v3 }
  0xa2   :  { %v185_v5 = vmul.f32 %v184_v4, %v184_v4 }
  0xa4   :  { %v186_v6 = vsel %vm151_vm0, %v185_v5, 0.0 }
  0xa5   :  { %187 = vadd.xlane.f32.xlu0 %v186_v6 }
 0x12e   :  { %v188_v12 = vpop.xlane.xlu0 %187 }
 0x12f   :  { %v189_v13 = vmul.f32 0.03125, %v188_v12  ;;  %v4431_v12 = vld [vmem:[%s5188_s9] ss:$0 sm:$0xff] }
 0x130   :  { %5284 = vst [vmem:[#allocation8_spill] sm:$0xff] %v4431_v12 }
 0x131   :  { %v190_v14 = vadd.f32 1e-05, %v189_v13 }
 0x133   :  { %4035 = vrsqrt.f32 %v190_v14 }
 0x140   :  { %v4036_v15 = vpop.eup %4035 }
 0x141   :  { %v192_v17 = vmul.f32 %v4036_v15, %v184_v4 }
 0x143   :  { %v193_v19 = vmul.f32 %v4282_v16, %v192_v17  ;;  %v4442_v17 = vld [vmem:[%s5189_s13] ss:$0 sm:$0xff] }
 0x144   :  { %5285 = vst [vmem:[#allocation9_spill] sm:$0xff] %v4442_v17 }
 0x145   :  { %v194_v20 = vadd.f32 %v4287_v18, %v193_v19 }
 0x147   :  { %3710 = vmatmul.mubr.msk.f32.vlgmr.msra.gmra.mxu0 %vm201_vm2, %v194_v20 }
 0x148   :  { %3731 = vmatprep.mubr.msk.f32.mxu0 %vm4100_vm1, %v5217_v7  ;;  %3724 = vmatpush3.msra.mxu0 %v4311_v38 }
 0x149   :  { %3725 = vmatprep.subr.mxu0 %v5217_v7 }
 0x14a   :  { %3726 = vmatpush3.msra.mxu0 %v4318_v39 }
 0x14b   :  { %3727 = vmatprep.subr.mxu0 %v5217_v7 }
 0x14c   :  { %3728 = vmatpush3.msra.mxu0 %v4323_v40 }
 0x14d   :  { %3729 = vmatprep.subr.mxu0 %v5217_v7 }
 0x14e   :  { %3730 = vmatpush3.msra.mxu0 %v4341_v43 }
 0x14f   :  { %3755 = vmatprep.subr.mxu0 %v5217_v7 }
 0x207   :  { %v271_v22 = vpop.f32.mrf.mxu0 }
 0x208   :  { %v272_v23 = vadd.f32 %v3487_v21, %v271_v22 }
 0x209   :  { %v3711_v24 = vpop.f32.mrf.mxu0 }
 0x20a   :  { %v275_v26 = vsel %vm151_vm0, %v272_v23, 0.0 }
 0x20b   :  { %276 = vadd.xlane.f32.xlu1 %v275_v26 }
 0x20f   :  { %153 = vadd.xlane.f32.xlu1 %v152_v27 }
 0x294   :  { %v277_v28 = vpop.xlane.xlu1 %276 }
 0x295   :  { %v278_v29 = vmul.f32 0.03125, %v277_v28 }
 0x297   :  { %v279_v30 = vsub.f32 %v272_v23, %v278_v29 }
 0x298   :  { %v154_v31 = vpop.xlane.xlu1 %153 }
 0x299   :  { %v156_v32 = vmul.f32 0.03125, %v154_v31  ;;  %v280_v33 = vmul.f32 %v279_v30, %v279_v30 }
 0x29b   :  { %v157_v34 = vsub.f32 %v4300_v25, %v156_v32  ;;  %v281_v35 = vsel %vm151_vm0, %v280_v33, 0.0  ;;  %v4452_v32 = vld [vmem:[%s5190_s14 + $0x8] sm:$0xff]  ;;  %v4457_v33 = vld [vmem:[%s5190_s14] sm:$0xff] }
 0x29c   :  { %282 = vadd.xlane.f32.xlu0 %v281_v35  ;;  %5286 = vst [vmem:[#allocation10_spill] sm:$0xff] %v4452_v32  ;;  %5287 = vst [vmem:[#allocation11_spill] sm:$0xff] %v4457_v33 }
 0x29d   :  { %v158_v36 = vmul.f32 %v157_v34, %v157_v34 }
 0x29f   :  { %v159_v37 = vsel %vm151_vm0, %v158_v36, 0.0 }
 0x2a0   :  { %160 = vadd.xlane.f32.xlu1 %v159_v37  ;;  %v4466_v37 = vld [vmem:[%s5274_s29 + $0x38] sm:$0xff] }
 0x2a1   :  { %5288 = vst [vmem:[#allocation12_spill] sm:$0xff] %v4466_v37 }
 0x325   :  { %v283_v46 = vpop.xlane.xlu0 %282 }
 0x326   :  { %v284_v47 = vmul.f32 0.03125, %v283_v46  ;;  %v4472_v46 = vld [vmem:[%s5274_s29 + $0x30] sm:$0xff] }
 0x327   :  { %5289 = vst [vmem:[#allocation13_spill] sm:$0xff] %v4472_v46 }
 0x328   :  { %v285_v48 = vadd.f32 1e-05, %v284_v47  ;;  %v4481_v47 = vld [vmem:[%s5274_s29 + $0x28] sm:$0xff] }
 0x329   :  { %v161_v49 = vpop.xlane.xlu1 %160  ;;  %5290 = vst [vmem:[#allocation14_spill] sm:$0xff] %v4481_v47 }
 0x32a   :  { %4037 = vrsqrt.f32 %v285_v48  ;;  %v162_v50 = vmul.f32 0.03125, %v161_v49  ;;  %v4488_v48 = vld [vmem:[%s5274_s29 + $0x20] sm:$0xff]  ;;  %v4495_v49 = vld [vmem:[%s5279_s28 + $0x38] sm:$0xff] }
 0x32b   :  { %5291 = vst [vmem:[#allocation15_spill] sm:$0xff] %v4488_v48  ;;  %5292 = vst [vmem:[#allocation16_spill] sm:$0xff] %v4495_v49 }
 0x32c   :  { %v163_v51 = vadd.f32 1e-05, %v162_v50  ;;  %v4504_v50 = vld [vmem:[%s5279_s28 + $0x30] sm:$0xff] }
 0x32d   :  { %5293 = vst [vmem:[#allocation17_spill] sm:$0xff] %v4504_v50 }
 0x32e   :  { %4039 = vrsqrt.f32 %v163_v51  ;;  %v4513_v51 = vld [vmem:[%s5279_s28 + $0x28] sm:$0xff] }
 0x32f   :  { %5294 = vst [vmem:[#allocation18_spill] sm:$0xff] %v4513_v51 }
 0x337   :  { %v4038_v52 = vpop.eup %4037 }
 0x338   :  { %v287_v54 = vmul.f32 %v4038_v52, %v279_v30  ;;  %v4520_v52 = vld [vmem:[%s5279_s28 + $0x20] sm:$0xff] }
 0x339   :  { %5295 = vst [vmem:[#allocation19_spill] sm:$0xff] %v4520_v52 }
 0x33a   :  { %v294_v56 = vmul.f32 %v4367_v53, %v287_v54  ;;  %v4533_v54 = vld [vmem:[%s5273_s2 + $0x38] sm:$0xff] }
 0x33b   :  { %v4040_v57 = vpop.eup %4039  ;;  %5296 = vst [vmem:[#allocation20_spill] sm:$0xff] %v4533_v54 }
 0x33c   :  { %v4376_v58 = vadd.f32 %v4372_v55, %v294_v56  ;;  %v165_v59 = vmul.f32 %v4040_v57, %v157_v34  ;;  %v4539_v57 = vld [vmem:[%s5273_s2 + $0x30] sm:$0xff] }
 0x33d   :  { %5297 = vst [vmem:[#allocation21_spill] sm:$0xff] %v4539_v57 }
 0x33e   :  { %3732 = vmatmul.mubr.msk.f32.vlgmr.msra.gmra.mxu0 %vm201_vm2, %v4376_v58  ;;  %v172_v60 = vmul.f32 %v4282_v16, %v165_v59 }
 0x33f   :  { %3759 = vmatprep.mubr.msk.f32.mxu0 %vm4100_vm1, %v5217_v7  ;;  %3756 = vmatpush3.msra.mxu0 %v4452_v32 }
 0x340   :  { %v4384_v61 = vadd.f32 %v4287_v18, %v172_v60  ;;  %3757 = vmatprep.subr.mxu0 %v5217_v7  ;;  %v4548_v60 = vld [vmem:[%s5273_s2 + $0x28] sm:$0xff] }
 0x341   :  { %3758 = vmatpush3.msra.mxu0 %v4457_v33  ;;  %5298 = vst [vmem:[#allocation22_spill] sm:$0xff] %v4548_v60 }
 0x342   :  { %3721 = vmatmul.mubr.msk.f32.vlgmr.msra.gmra.mxu1 %vm201_vm2, %v4384_v61  ;;  %3773 = vmatprep.subr.mxu0 %v5217_v7 }
 0x343   :  { %3735 = vmatpush3.msra.mxu1 %v4389_v62  ;;  %3742 = vmatprep.mubr.msk.f32.mxu1 %vm4100_vm1, %v5217_v7 }
 0x344   :  { %3736 = vmatprep.subr.mxu1 %v5217_v7 }
 0x345   :  { %3737 = vmatpush3.msra.mxu1 %v4396_v63 }
 0x346   :  { %3738 = vmatprep.subr.mxu1 %v5217_v7 }
 0x347   :  { %3739 = vmatpush3.msra.mxu1 %v4405_v1 }
 0x348   :  { %3740 = vmatprep.subr.mxu1 %v5217_v7 }
 0x349   :  { %3741 = vmatpush3.msra.mxu1 %v4412_v2 }
 0x34a   :  { %3743 = vmatmul.mubr.msk.f32.vlgmr.msra.gmra.mxu1 %vm201_vm2, %v4376_v58  ;;  %3745 = vmatprep.subr.mxu1 %v5217_v7 }
 0x34b   :  { %3747 = vmatprep.mubr.msk.f32.mxu1 %vm4100_vm1, %v5217_v7 }
 0x3fe   :  { %v456_v4 = vpop.f32.mrf.mxu0 }
 0x3ff   :  { %v457_v5 = vadd.f32 %v4425_v3, %v456_v4 }
 0x400   :  { %v3733_v6 = vpop.f32.mrf.mxu0 }
 0x401   :  { %3746 = vmatpush3.xpose.msk.msra.mxu1 %vm536_vm3, %v457_v5 }
 0x402   :  { %v377_v13 = vpop.f32.mrf.mxu1  ;;  %3750 = vmatprep.subr.mxu1 %v5217_v7 }
 0x403   :  { %v378_v14 = vadd.f32 %v4431_v12, %v377_v13 }
 0x404   :  { %v3722_v15 = vpop.f32.mrf.mxu1 }
 0x405   :  { %3748 = vmatmul.mubr.msk.f32.vlgmr.msra.gmra.mxu1 %vm536_vm3, %v378_v14 }
 0x406   :  { %3752 = vmatprep.mubr.msk.f32.mxu1 %vm4100_vm1, %v5217_v7 }
 0x40a   :  { %v532_v19 = vpop.f32.mrf.mxu1 }
 0x40b   :  { %v533_v20 = vadd.f32 %v4442_v17, %v532_v19  ;;  %v4568_v19 = vld [vmem:[%s5187_s11 + $0x1] ss:$0 sm:$0xff] }
 0x40c   :  { %v3744_v21 = vpop.f32.mrf.mxu1  ;;  %5300 = vst [vmem:[#allocation24_spill] sm:$0xff] %v4568_v19 }
 0x40d   :  { %3751 = vmatpush3.msk.msra.mxu1 %vm630_vm4, %v533_v20 }
 0x40e   :  { %3762 = vmatprep.subr.mxu1 %v5217_v7 }
 0x4c5   :  { %v609_v22 = vpop.f32.mrf.mxu1 }
 0x4c6   :  { %v613_v23 = vmul.f32 0.25, %v609_v22  ;;  %v4579_v22 = vld [vmem:[%s5189_s13 + $0x1] ss:$0 sm:$0xff] }
 0x4c7   :  { %v3749_v24 = vpop.f32.mrf.mxu1  ;;  %5302 = vst [vmem:[#allocation26_spill] sm:$0xff] %v4579_v22 }
 0x4c8   :  { %v615_v26 = vsel %vm614_vm5, %v613_v23, -inf }
 0x4c9   :  { %616 = vmax.xlane.f32.xlu0 %v615_v26 }
 0x552   :  { %v617_v27 = vpop.xlane.xlu0 %616 }
 0x553   :  { %v618_v28 = vsub.f32 %v613_v23, %v617_v27 }
 0x555   :  { %v619_v29 = vmul.f32 1.442695, %v618_v28 }
 0x557   :  { %4041 = vpow2.f32 %v619_v29 }
 0x564   :  { %v4042_v30 = vpop.eup %4041 }
 0x565   :  { %v621_v31 = vsel %vm614_vm5, %v4042_v30, 0.0 }
 0x566   :  { %622 = vadd.xlane.f32.xlu1 %v621_v31 }
 0x5ef   :  { %v623_v34 = vpop.xlane.xlu1 %622 }
 0x5f0   :  { %4043 = vrcp.f32 %v623_v34 }
 0x5fd   :  { %v4044_v35 = vpop.eup %4043 }
 0x5fe   :  { %v625_v36 = vmul.f32 %v4044_v35, %v4042_v30 }
 0x600   :  { %3753 = vmatmul.mubr.msk.f32.vlgmr.msra.gmra.mxu1 %vm626_vm6, %v625_v36 }
 0x601   :  { %3763 = vmatpush3.msra.mxu1 %v4466_v37  ;;  %3770 = vmatprep.mubr.msk.f32.mxu1 %vm4100_vm1, %v5217_v7 }
 0x602   :  { %3764 = vmatprep.subr.mxu1 %v5217_v7 }
 0x603   :  { %3765 = vmatpush3.msra.mxu1 %v4472_v46 }
 0x604   :  { %3766 = vmatprep.subr.mxu1 %v5217_v7 }
 0x605   :  { %3767 = vmatpush3.msra.mxu1 %v4481_v47 }
 0x606   :  { %3768 = vmatprep.subr.mxu1 %v5217_v7 }
 0x607   :  { %3769 = vmatpush3.msra.mxu1 %v4488_v48 }
 0x608   :  { %3771 = vmatmul.mubr.msk.f32.vlgmr.msra.gmra.mxu1 %vm201_vm2, %v4384_v61  ;;  %3784 = vmatprep.subr.mxu1 %v5217_v7  ;;  %v4555_v61 = vld [vmem:[%s5273_s2 + $0x20] sm:$0xff] }
 0x609   :  { %3785 = vmatpush3.msra.mxu1 %v4495_v49  ;;  %3792 = vmatprep.mubr.msk.f32.mxu1 %vm4100_vm1, %v5217_v7  ;;  %5299 = vst [vmem:[#allocation23_spill] sm:$0xff] %v4555_v61 }
 0x60a   :  { %3786 = vmatprep.subr.mxu1 %v5217_v7 }
 0x60b   :  { %3787 = vmatpush3.msra.mxu1 %v4504_v50 }
 0x60c   :  { %3788 = vmatprep.subr.mxu1 %v5217_v7 }
 0x60d   :  { %3789 = vmatpush3.msra.mxu1 %v4513_v51 }
 0x60e   :  { %3790 = vmatprep.subr.mxu1 %v5217_v7 }
 0x60f   :  { %3791 = vmatpush3.msra.mxu1 %v4520_v52 }
 0x610   :  { %3793 = vmatmul.mubr.msk.f32.vlgmr.msra.gmra.mxu1 %vm201_vm2, %v4376_v58  ;;  %3805 = vmatprep.subr.mxu1 %v5217_v7 }
 0x611   :  { %3809 = vmatprep.mubr.msk.f32.mxu1 %vm4100_vm1, %v5217_v7 }
 0x6c0   :  { %v700_v56 = vpop.f32.mrf.mxu1 }
 0x6c1   :  { %3760 = vmatmul.mubr.msk.f32.vlgmr.msra.gmra.mxu0 %vm536_vm3, %v700_v56 }
 0x6c2   :  { %3774 = vmatpush3.msra.mxu0 %v4533_v54  ;;  %v3754_v59 = vpop.f32.mrf.mxu1  ;;  %3781 = vmatprep.mubr.msk.f32.mxu0 %vm4100_vm1, %v5217_v7 }
 0x6c3   :  { %3775 = vmatprep.subr.mxu0 %v5217_v7  ;;  %v4595_v59 = vld [vmem:[%s5190_s14 + $0x18] sm:$0xff] }
 0x6c4   :  { %3776 = vmatpush3.msra.mxu0 %v4539_v57  ;;  %5303 = vst [vmem:[#allocation27_spill] sm:$0xff] %v4595_v59  ;;  %3806 = vmatpush3.msra.mxu1 %v4595_v59 }
 0x6c5   :  { %3777 = vmatprep.subr.mxu0 %v5217_v7  ;;  %3807 = vmatprep.subr.mxu1 %v5217_v7 }
 0x6c6   :  { %3778 = vmatpush3.msra.mxu0 %v4548_v60 }
 0x6c7   :  { %3779 = vmatprep.subr.mxu0 %v5217_v7 }
 0x6c8   :  { %v856_v4 = vpop.f32.mrf.mxu1  ;;  %3780 = vmatpush3.msra.mxu0 %v4555_v61 }
 0x6c9   :  { %3782 = vmatmul.mubr.msk.f32.vlgmr.msra.gmra.mxu0 %vm201_vm2, %v4376_v58  ;;  %3795 = vmatprep.subr.mxu0 %v5217_v7  ;;  %v4573_v58 = vld [vmem:[%s5188_s9 + $0x1] ss:$0 sm:$0xff] }
 0x6ca   :  { %v3772_v5 = vpop.f32.mrf.mxu1  ;;  %3797 = vmatprep.mubr.msk.f32.mxu0 %vm4100_vm1, %v5217_v7  ;;  %5301 = vst [vmem:[#allocation25_spill] sm:$0xff] %v4573_v58  ;;  %v857_v24 = vadd.f32 %v4573_v58, %v856_v4 }
 0x6d0   :  { %v1008_v6 = vpop.f32.mrf.mxu1 }
 0x6d1   :  { %v1009_v26 = vadd.f32 %v4579_v22, %v1008_v6 }
 0x6d2   :  { %v3794_v13 = vpop.f32.mrf.mxu1 }
 0x6d3   :  { %v4605_v13 = vld [vmem:[%s5190_s14 + $0x10] sm:$0xff] }
 0x6d4   :  { %5304 = vst [vmem:[#allocation28_spill] sm:$0xff] %v4605_v13  ;;  %3808 = vmatpush3.msra.mxu1 %v4605_v13 }
 0x6d5   :  { %3823 = vmatprep.subr.mxu1 %v5217_v7 }
 0x781   :  { %v773_v14 = vpop.f32.mrf.mxu0 }
 0x783   :  { %v3761_v15 = vpop.f32.mrf.mxu0 }
 0x789   :  { %v932_v20 = vpop.f32.mrf.mxu0 }
 0x78a   :  { %v933_v21 = vadd.f32 %v4568_v19, %v932_v20 }
 0x78b   :  { %v3783_v23 = vpop.f32.mrf.mxu0 }
 0x78c   :  { %3796 = vmatpush3.xpose.msk.msra.mxu0 %vm536_vm3, %v933_v21  ;;  %v4615_v21 = vld [vmem:[%s5191_s15] ss:$0 sm:$0xff] }
 0x78d   :  { %3800 = vmatprep.subr.mxu0 %v5217_v7  ;;  %5305 = vst [vmem:[#allocation29_spill] sm:$0xff] %v4615_v21  ;;  %v783_v23 = vadd.f32 %v4615_v21, %v773_v14 }
 0x78f   :  { %3798 = vmatmul.mubr.msk.f32.vlgmr.msra.gmra.mxu0 %vm536_vm3, %v857_v24 }
 0x790   :  { %3801 = vmatpush3.msk.msra.mxu0 %vm630_vm4, %v1009_v26  ;;  %3802 = vmatprep.mubr.msk.f32.mxu0 %vm4100_vm1, %v5217_v7 }
 0x791   :  { %3812 = vmatprep.subr.mxu0 %v5217_v7 }
 0x84f   :  { %v1084_v27 = vpop.f32.mrf.mxu0 }
 0x850   :  { %v1088_v28 = vmul.f32 0.25, %v1084_v27 }
 0x851   :  { %v3799_v29 = vpop.f32.mrf.mxu0 }
 0x852   :  { %v1089_v30 = vsel %vm614_vm5, %v1088_v28, -inf }
 0x853   :  { %1090 = vmax.xlane.f32.xlu0 %v1089_v30  ;;  %v1922_v30 = vsel %vm1906_vm7, %v4239_v0, 0.0 }
 0x8dc   :  { %v1091_v31 = vpop.xlane.xlu0 %1090 }
 0x8dd   :  { %v1092_v34 = vsub.f32 %v1088_v28, %v1091_v31 }
 0x8df   :  { %v1093_v35 = vmul.f32 1.442695, %v1092_v34 }
 0x8e1   :  { %4045 = vpow2.f32 %v1093_v35 }
 0x8ee   :  { %v4046_v36 = vpop.eup %4045 }
 0x8ef   :  { %v1095_v56 = vsel %vm614_vm5, %v4046_v36, 0.0 }
 0x8f0   :  { %1096 = vadd.xlane.f32.xlu1 %v1095_v56 }
 0x979   :  { %v1097_v4 = vpop.xlane.xlu1 %1096 }
 0x97a   :  { %4047 = vrcp.f32 %v1097_v4 }
 0x987   :  { %v4048_v5 = vpop.eup %4047 }
 0x988   :  { %v1099_v6 = vmul.f32 %v4048_v5, %v4046_v36 }
 0x98a   :  { %3803 = vmatmul.mubr.msk.f32.vlgmr.msra.gmra.mxu0 %vm626_vm6, %v1099_v6 }
 0x98b   :  { %3820 = vmatprep.mubr.msk.f32.mxu0 %vm4100_vm1, %v5217_v7 }
 0xa4a   :  { %v1172_v15 = vpop.f32.mrf.mxu0 }
 0xa4b   :  { %3810 = vmatmul.mubr.msk.f32.vlgmr.msra.gmra.mxu1 %vm536_vm3, %v1172_v15 }
 0xa4c   :  { %v3804_v20 = vpop.f32.mrf.mxu0  ;;  %3831 = vmatprep.mubr.msk.f32.mxu1 %vm4100_vm1, %v5217_v7 }
 0xa4d   :  { %v4636_v20 = vld [vmem:[%s5192_s18 + $0x18] sm:$0xff] }
 0xa4e   :  { %5307 = vst [vmem:[#allocation31_spill] sm:$0xff] %v4636_v20  ;;  %3813 = vmatpush3.msra.mxu0 %v4636_v20 }
 0xa4f   :  { %3814 = vmatprep.subr.mxu0 %v5217_v7 }
 0xb0b   :  { %v1245_v24 = vpop.f32.mrf.mxu1 }
 0xb0c   :  { %v1249_v26 = vadd.f32 %v1245_v24, %v783_v23  ;;  %v4648_v23 = vld [vmem:[%s5192_s18 + $0x8] sm:$0xff]  ;;  %v4655_v24 = vld [vmem:[%s5192_s18] sm:$0xff] }
 0xb0d   :  { %v3811_v27 = vpop.f32.mrf.mxu1  ;;  %5309 = vst [vmem:[#allocation33_spill] sm:$0xff] %v4648_v23  ;;  %5310 = vst [vmem:[#allocation34_spill] sm:$0xff] %v4655_v24 }
 0xb0e   :  { %v4619_v28 = vadd.f32 %v1249_v26, %v4300_v25 }
 0xb10   :  { %5306 = vst [vmem:[#allocation30_spill] sm:$0xff] %v4619_v28  ;;  %v1251_v29 = vsel %vm151_vm0, %v4619_v28, 0.0 }
 0xb11   :  { %1252 = vadd.xlane.f32.xlu0 %v1251_v29 }
 0xb15   :  { %1923 = vadd.xlane.f32.xlu0 %v1922_v30 }
 0xb9a   :  { %v1253_v31 = vpop.xlane.xlu0 %1252 }
 0xb9b   :  { %v1254_v34 = vmul.f32 0.03125, %v1253_v31  ;;  %v4664_v31 = vld [vmem:[%s5193_s16] ss:$0 sm:$0xff] }
 0xb9c   :  { %5311 = vst [vmem:[#allocation35_spill] sm:$0xff] %v4664_v31 }
 0xb9d   :  { %v1255_v35 = vsub.f32 %v4619_v28, %v1254_v34 }
 0xb9e   :  { %v1924_v14 = vpop.xlane.xlu0 %1923 }
 0xb9f   :  { %v1256_v36 = vmul.f32 %v1255_v35, %v1255_v35  ;;  %v1925_v56 = vmul.f32 0.03125, %v1924_v14  ;;  %v4669_v14 = vld [vmem:[%s5194_s17] ss:$0 sm:$0xff] }
 0xba0   :  { %5312 = vst [vmem:[#allocation36_spill] sm:$0xff] %v4669_v14 }
 0xba1   :  { %v1257_v4 = vsel %vm151_vm0, %v1256_v36, 0.0  ;;  %v4628_v5 = vsub.f32 %v4239_v0, %v1925_v56  ;;  %v4643_v0 = vld [vmem:[%s5192_s18 + $0x10] sm:$0xff] }
 0xba2   :  { %1258 = vadd.xlane.f32.xlu1 %v1257_v4  ;;  %5308 = vst [vmem:[#allocation32_spill] sm:$0xff] %v4643_v0  ;;  %3815 = vmatpush3.msra.mxu0 %v4643_v0  ;;  %v4679_v4 = vld [vmem:[%s5195_s22 + $0x18] sm:$0xff] }
 0xba3   :  { %v1927_v6 = vmul.f32 %v4628_v5, %v4628_v5  ;;  %3816 = vmatprep.subr.mxu0 %v5217_v7  ;;  %3824 = vmatpush3.msra.mxu1 %v4679_v4 }
 0xba4   :  { %3817 = vmatpush3.msra.mxu0 %v4648_v23  ;;  %3825 = vmatprep.subr.mxu1 %v5217_v7 }
 0xba5   :  { %v1928_v15 = vsel %vm1906_vm7, %v1927_v6, 0.0  ;;  %3818 = vmatprep.subr.mxu0 %v5217_v7  ;;  %v4689_v6 = vld [vmem:[%s5195_s22 + $0x10] sm:$0xff] }
 0xba6   :  { %1929 = vadd.xlane.f32.xlu1 %v1928_v15  ;;  %3819 = vmatpush3.msra.mxu0 %v4655_v24  ;;  %v4696_v15 = vld [vmem:[%s5195_s22 + $0x30] sm:$0xff]  ;;  %v136_v24 = vld [vmem:[%s5197_s20] sm:$0xff] }
 0xba7   :  { %3834 = vmatprep.subr.mxu0 %v5217_v7  ;;  %3826 = vmatpush3.msra.mxu1 %v4689_v6 }
 0xba8   :  { %3827 = vmatprep.subr.mxu1 %v5217_v7 }
 0xc2b   :  { %v1259_v26 = vpop.xlane.xlu1 %1258 }
 0xc2c   :  { %v1260_v27 = vmul.f32 0.03125, %v1259_v26  ;;  %v4703_v26 = vld [vmem:[%s5195_s22 + $0x8] sm:$0xff] }
 0xc2d   :  { %3828 = vmatpush3.msra.mxu1 %v4703_v26 }
 0xc2e   :  { %v1261_v29 = vadd.f32 1e-05, %v1260_v27  ;;  %v4708_v27 = vld [vmem:[%s5195_s22 + $0x28] sm:$0xff]  ;;  %3829 = vmatprep.subr.mxu1 %v5217_v7 }
 0xc30   :  { %4049 = vrsqrt.f32 %v1261_v29  ;;  %v4717_v29 = vld [vmem:[%s5195_s22] sm:$0xff] }
 0xc31   :  { %3830 = vmatpush3.msra.mxu1 %v4717_v29 }
 0xc32   :  { %3845 = vmatprep.subr.mxu1 %v5217_v7 }
 0xc3d   :  { %v4050_v30 = vpop.eup %4049 }
 0xc3e   :  { %v1263_v34 = vmul.f32 %v4050_v30, %v1255_v35  ;;  %v4684_v35 = vld [vmem:[%s5195_s22 + $0x38] sm:$0xff]  ;;  %v4722_v30 = vld [vmem:[%s5195_s22 + $0x20] sm:$0xff] }
 0xc40   :  { %v1270_v36 = vmul.f32 %v4664_v31, %v1263_v34  ;;  %v1907_v34 = vsel %vm1906_vm7, %v4300_v25, 0.0 }
 0xc41   :  { %1908 = vadd.xlane.f32.xlu1 %v1907_v34  ;;  %v138_v34 = vld [vmem:[%s5197_s20 + $0x10] sm:$0xff] }
 0xc42   :  { %v1277_v56 = vadd.f32 %v4669_v14, %v1270_v36  ;;  %v1368_v36 = vlaneseq  ;;  %v4737_v14 = vld [vmem:[%s5196_s19] ss:$0 sm:$0xff] }
 0xc43   :  { %5313 = vst [vmem:[#allocation37_spill] sm:$0xff] %v4737_v14 }
 0xc44   :  { %3821 = vmatmul.mubr.msk.f32.vlgmr.msra.gmra.mxu0 %vm201_vm2, %v1277_v56  ;;  %v1369_v56 = vshrl.u32 %v1368_v36, 7 }
 0xc45   :  { %3842 = vmatprep.mubr.msk.f32.mxu0 %vm4100_vm1, %v5217_v7  ;;  %3835 = vmatpush3.msra.mxu0 %v4684_v35 }
 0xc46   :  { %3836 = vmatprep.subr.mxu0 %v5217_v7  ;;  %v1370_v31 = vsub.s32 3, %v1369_v56  ;;  %v1375_v28 = vsub.s32 4, %v1369_v56  ;;  %v1384_v21 = vsub.s32 5, %v1369_v56  ;;  %v1399_v0 = vsub.s32 7, %v1369_v56 }
 0xc47   :  { %3837 = vmatpush3.msra.mxu0 %v4696_v15  ;;  %v1642_v57 = vsub.s32 0, %v1369_v56  ;;  %v1647_v54 = vsub.s32 1, %v1369_v56  ;;  %v1656_v59 = vsub.s32 2, %v1369_v56 }
 0xc48   :  { %3838 = vmatprep.subr.mxu0 %v5217_v7  ;;  %v4746_v22 = vrot.slane %v136_v24, %v1370_v31  ;;  %v4748_v58 = vrot.slane %v136_v24, %v1375_v28  ;;  %v4750_v19 = vrot.slane %v136_v24, %v1384_v21  ;;  %v4760_v51 = vrot.slane %v138_v34, %v1370_v31 }
 0xc49   :  { %3839 = vmatpush3.msra.mxu0 %v4708_v27  ;;  %v4762_v50 = vrot.slane %v138_v34, %v1384_v21  ;;  %v4770_v47 = vrot.slane %v138_v34, %v1399_v0  ;;  %v4779_v21 = vrot.slane %v136_v24, %v1642_v57  ;;  %v4781_v31 = vrot.slane %v136_v24, %v1647_v54 }
 0xc4a   :  { %3840 = vmatprep.subr.mxu0 %v5217_v7  ;;  %v4802_v3 = vrot.slane %v138_v34, %v1656_v59 }
 0xc4b   :  { %3841 = vmatpush3.msra.mxu0 %v4722_v30  ;;  %5316 = vst [vmem:[#allocation40_spill] sm:$0xff] %v4770_v47  ;;  %5318 = vst [vmem:[#allocation42_spill] sm:$0xff] %v4781_v31 }
 0xc4c   :  { %3856 = vmatprep.subr.mxu0 %v5217_v7  ;;  %v1393_v7 = vsub.s32 6, %v1369_v56  ;;  %v4784_v56 = vrot.slane %v136_v24, %v1656_v59 }
 0xc4e   :  { %v4752_v13 = vrot.slane %v136_v24, %v1393_v7  ;;  %v4768_v48 = vrot.slane %v138_v34, %v1393_v7  ;;  %5319 = vst [vmem:[#allocation43_spill] sm:$0xff] %v4784_v56  ;;  %v4786_v7 = vrot.slane %v138_v34, %v1642_v57 }
 0xc50   :  { %5315 = vst [vmem:[#allocation39_spill] sm:$0xff] %v4768_v48  ;;  %5320 = vst [vmem:[#allocation44_spill] sm:$0xff] %v4786_v7 }
 0xd04   :  { %v1353_v23 = vpop.f32.mrf.mxu0 }
 0xd05   :  { %v1354_v20 = vadd.f32 %v4737_v14, %v1353_v23  ;;  %v4754_v23 = vrot.slane %v136_v24, %v1399_v0  ;;  %v4756_v14 = vrot.slane %v138_v34, %v1375_v28  ;;  %v4775_v28 = vld [vmem:[%s5197_s20 + $0x8] ss:$0 sm:$0xff]  ;;  %v4788_v0 = vrot.slane %v138_v34, %v1647_v54  ;;  %v4799_v24 = vld [vmem:[%s5197_s20 + $0x18] ss:$0 sm:$0xff] }
 0xd06   :  { %v3822_v36 = vpop.f32.mrf.mxu0  ;;  %5317 = vst [vmem:[#allocation41_spill] sm:$0xff] %v4775_v28 }
 0xd07   :  { %v1358_v61 = vrot.slane %v1354_v20, 7  ;;  %v1364_v60 = vrot.slane %v1354_v20, 1  ;;  %5314 = vst [vmem:[#allocation38_spill] sm:$0xff] %v4754_v23 }
 0xd09   :  { %v1361_v52 = vsel %vm1360_vm8, 0.0, %v1358_v61  ;;  %v1366_v36 = vsel %vm1360_vm8, 0.0, %v1364_v60 }
 0xd0a   :  { %v1363_v49 = vsel %vm1362_vm9, %v1361_v52, 0.0  ;;  %v4766_v20 = vsel %vm1362_vm9, %v1366_v36, 0.0 }
 0xd0b   :  { %v1377_v60 = vmul.f32 %v4748_v58, %v1363_v49  ;;  %v1386_v61 = vmul.f32 %v4750_v19, %v1363_v49  ;;  %v1516_v52 = vmul.f32 %v4756_v14, %v1363_v49  ;;  %v1372_v36 = vmul.f32 %v4746_v22, %v1363_v49 }
 0xd0c   :  { %v1401_v37 = vmul.f32 %v4754_v23, %v4766_v20  ;;  %v1525_v17 = vmul.f32 %v4762_v50, %v1363_v49  ;;  %v1410_v12 = vmul.f32 %v4775_v28, %v4766_v20  ;;  %v1511_v57 = vmul.f32 %v4760_v51, %v1363_v49 }
 0xd0d   :  { %v1379_v46 = vrot.slane %v1377_v60, 1  ;;  %v1518_v54 = vrot.slane %v1516_v52, 1  ;;  %v1388_v60 = vrot.slane %v1386_v61, 2  ;;  %v1395_v23 = vmul.f32 %v4752_v13, %v4766_v20 }
 0xd0e   :  { %v1540_v32 = vmul.f32 %v4770_v47, %v4766_v20  ;;  %v1527_v28 = vrot.slane %v1525_v17, 2  ;;  %v1649_v53 = vmul.f32 %v4781_v31, %v1363_v49  ;;  %v1658_v2 = vmul.f32 %v4784_v56, %v1363_v49 }
 0xd0f   :  { %v1381_v33 = vadd.f32 %v1379_v46, %v1372_v36  ;;  %v1520_v55 = vadd.f32 %v1518_v54, %v1511_v57  ;;  %v1403_v63 = vrot.slane %v1401_v37, 1  ;;  %v1534_v59 = vmul.f32 %v4768_v48, %v4766_v20 }
 0xd10   :  { %v1549_v46 = vmul.f32 %v4799_v24, %v4766_v20  ;;  %v1412_v34 = vrot.slane %v1410_v12, 2  ;;  %v1644_v52 = vmul.f32 %v4779_v21, %v1363_v49  ;;  %v1651_v36 = vrot.slane %v1649_v53, 1  ;;  %v4823_v53 = vld [vmem:[%s5198_s21] ss:$0 sm:$0xff] }
 0xd11   :  { %v1390_v1 = vadd.f32 %v1388_v60, %v1381_v33  ;;  %v1529_v61 = vadd.f32 %v1527_v28, %v1520_v55  ;;  %v1542_v57 = vrot.slane %v1540_v32, 1  ;;  %v1665_v17 = vmul.f32 %v4748_v58, %v4766_v20 }
 0xd12   :  { %v1764_v54 = vmul.f32 %v4788_v0, %v1363_v49  ;;  %v1653_v37 = vadd.f32 %v1651_v36, %v1644_v52  ;;  %v1660_v60 = vrot.slane %v1658_v2, 2  ;;  %v1773_v48 = vmul.f32 %v4802_v3, %v1363_v49 }
 0xd13   :  { %v1396_v47 = vadd.f32 %v1395_v23, %v1390_v1  ;;  %v1535_v33 = vadd.f32 %v1534_v59, %v1529_v61  ;;  %v1551_v31 = vrot.slane %v1549_v46, 2  ;;  %v1759_v12 = vmul.f32 %v4786_v7, %v1363_v49  ;;  %v1930_v46 = vpop.xlane.xlu1 %1929 }
 0xd14   :  { %v1766_v55 = vrot.slane %v1764_v54, 1  ;;  %v1662_v32 = vadd.f32 %v1660_v60, %v1653_v37  ;;  %v1663_v23 = vmul.f32 %v4746_v22, %v4766_v20  ;;  %v1670_v2 = vmul.f32 %v4750_v19, %v4766_v20 }
 0xd15   :  { %v1405_v56 = vadd.f32 %v1403_v63, %v1396_v47  ;;  %v1544_v1 = vadd.f32 %v1542_v57, %v1535_v33  ;;  %v4832_v63 = vld [vmem:[%s5198_s21 + $0x1] ss:$0 sm:$0xff]  ;;  %v1775_v49 = vrot.slane %v1773_v48, 2  ;;  %v1780_v59 = vmul.f32 %v4756_v14, %v4766_v20 }
 0xd16   :  { %v1768_v47 = vadd.f32 %v1766_v55, %v1759_v12  ;;  %v1664_v52 = vadd.f32 %v1663_v23, %v1662_v32  ;;  %v1667_v36 = vrot.slane %v1665_v17, 1  ;;  %v1672_v48 = vrot.slane %v1670_v2, 2 }
 0xd17   :  { %v1414_v28 = vadd.f32 %v1412_v34, %v1405_v56  ;;  %v1553_v61 = vadd.f32 %v1551_v31, %v1544_v1  ;;  %v1778_v56 = vmul.f32 %v4760_v51, %v4766_v20  ;;  %v1785_v34 = vmul.f32 %v4762_v50, %v4766_v20 }
 0xd18   :  { %v1777_v54 = vadd.f32 %v1775_v49, %v1768_v47  ;;  %v1669_v37 = vadd.f32 %v1667_v36, %v1664_v52  ;;  %v1931_v60 = vmul.f32 0.03125, %v1930_v46  ;;  %v1782_v7 = vrot.slane %v1780_v59, 1 }
 0xd19   :  { %v1421_v57 = vadd.f32 %v4823_v53, %v1414_v28  ;;  %v1560_v33 = vadd.f32 %v4832_v63, %v1553_v61  ;;  %v1787_v32 = vrot.slane %v1785_v34, 2 }
 0xd1a   :  { %v1779_v55 = vadd.f32 %v1778_v56, %v1777_v54  ;;  %v1674_v1 = vadd.f32 %v1672_v48, %v1669_v37  ;;  %v1932_v28 = vadd.f32 1e-05, %v1931_v60  ;;  %v5321_v48 = vmov 0.0  }
 0xd1b   :  { %v1423_v12 = vmul.f32 0.70710677, %v1421_v57  ;;  %v1562_v31 = vmul.f32 0.70710677, %v1560_v33  ;;  %v1422_v59 = vmul.f32 0.5, %v1421_v57  ;;  %v1561_v36 = vmul.f32 0.5, %v1560_v33 }
 0xd1c   :  { %v1784_v17 = vadd.f32 %v1782_v7, %v1779_v55  ;;  %v1675_v23 = vadd.f32 %v4823_v53, %v1674_v1 }
 0xd1d   :  { %4051 = verf.f32 %v1423_v12 }
 0xd1e   :  { %4053 = verf.f32 %v1562_v31  ;;  %v1789_v47 = vadd.f32 %v1787_v32, %v1784_v17  ;;  %v1677_v49 = vmul.f32 0.70710677, %v1675_v23  ;;  %v1676_v55 = vmul.f32 0.5, %v1675_v23 }
 0xd20   :  { %v1790_v20 = vadd.f32 %v4832_v63, %v1789_v47  ;;  %4055 = verf.f32 %v1677_v49 }
 0xd21   :  { %4057 = vrsqrt.f32 %v1932_v28 }
 0xd22   :  { %v1792_v2 = vmul.f32 0.70710677, %v1790_v20  ;;  %v1791_v31 = vmul.f32 0.5, %v1790_v20 }
 0xd24   :  { %4059 = verf.f32 %v1792_v2 }
 0xd2a   :  { %v4052_v46 = vpop.eup %4051 }
 0xd2b   :  { %v4054_v61 = vpop.eup %4053  ;;  %v1425_v52 = vadd.f32 1.0, %v4052_v46 }
 0xd2c   :  { %v1564_v54 = vadd.f32 1.0, %v4054_v61 }
 0xd2d   :  { %v1426_v7 = vmul.f32 %v1425_v52, %v1422_v59  ;;  %v4056_v34 = vpop.eup %4055 }
 0xd2e   :  { %v1565_v56 = vmul.f32 %v1564_v54, %v1561_v36  ;;  %v4058_v37 = vpop.eup %4057  ;;  %v1679_v57 = vadd.f32 1.0, %v4056_v34  ;;  %v4087_v36 = vld [vmem:[%s5271_s5] ss:$0 sm:$0xff] }
 0xd2f   :  { %3832 = vmatmul.mubr.msk.f32.vlgmr.msra.gmra.mxu1 %vm201_vm2, %v1426_v7  ;;  %v1934_v33 = vmul.f32 %v4058_v37, %v4628_v5 }
 0xd30   :  { %3843 = vmatmul.mubr.msk.f32.vlgmr.msra.gmra.mxu0 %vm201_vm2, %v1565_v56  ;;  %3846 = vmatpush3.msra.mxu1 %v4679_v4  ;;  %v1680_v5 = vmul.f32 %v1679_v57, %v1676_v55 }
 0xd31   :  { %3857 = vmatpush3.msra.mxu0 %v4684_v35  ;;  %3847 = vmatprep.subr.mxu1 %v5321_v48  ;;  %v4060_v60 = vpop.eup %4059  ;;  %v1935_v17 = vmul.f32 %v4282_v16, %v1934_v33  ;;  %v4089_v33 = vld [vmem:[%s5270_s8] ss:$0 sm:$0xff] }
 0xd32   :  { %3858 = vmatprep.subr.mxu0 %v5321_v48  ;;  %3848 = vmatpush3.msra.mxu1 %v4689_v6  ;;  %v1794_v12 = vadd.f32 1.0, %v4060_v60  ;;  %v4088_v60 = vld [vmem:[%s5269_s3] ss:$0 sm:$0xff] }
 0xd33   :  { %3859 = vmatpush3.msra.mxu0 %v4696_v15  ;;  %3849 = vmatprep.subr.mxu1 %v5321_v48  ;;  %v1936_v32 = vadd.f32 %v4287_v18, %v1935_v17 }
 0xd34   :  { %3860 = vmatprep.subr.mxu0 %v5321_v48  ;;  %3850 = vmatpush3.msra.mxu1 %v4703_v26  ;;  %v1795_v1 = vmul.f32 %v1794_v12, %v1791_v31  ;;  %v5322_v31 = vld [vmem:[#allocation4_spill] sm:$0xff] }
 0xd35   :  { %3861 = vmatpush3.msra.mxu0 %v4708_v27  ;;  %3851 = vmatprep.subr.mxu1 %v5321_v48 }
 0xd36   :  { %3862 = vmatprep.subr.mxu0 %v5321_v48  ;;  %3852 = vmatpush3.msra.mxu1 %v4717_v29 }
 0xd37   :  { %3853 = vmatprep.mubr.msk.f32.mxu1 %vm4100_vm1, %v5321_v48  ;;  %3863 = vmatpush3.msra.mxu0 %v4722_v30 }
 0xd38   :  { %3864 = vmatprep.mubr.msk.f32.mxu0 %vm4100_vm1, %v5321_v48  ;;  %3854 = vmatmul.mubr.msk.f32.vlgmr.msra.gmra.mxu1 %vm201_vm2, %v1680_v5  ;;  %v5323_v5 = vld [vmem:[#allocation5_spill] sm:$0xff] }
 0xd39   :  { %3865 = vmatmul.mubr.msk.f32.vlgmr.msra.gmra.mxu0 %vm201_vm2, %v1795_v1  ;;  %3867 = vmatprep.subr.mxu1 %v5321_v48  ;;  %v5324_v1 = vld [vmem:[#allocation6_spill] sm:$0xff] }
 0xd3a   :  { %3868 = vmatpush3.msra.mxu1 %v4249_v8  ;;  %3875 = vmatprep.mubr.msk.f32.mxu1 %vm4100_vm1, %v5321_v48  ;;  %v1938_v8 = vrot.slane %v1936_v32, 4 }
 0xd3b   :  { %3869 = vmatprep.subr.mxu1 %v5321_v48  ;;  %3878 = vmatprep.subr.mxu0 %v5321_v48 }
 0xd3c   :  { %3870 = vmatpush3.msra.mxu1 %v4254_v9  ;;  %3879 = vmatpush3.msra.mxu0 %v4329_v41  ;;  %v1909_v9 = vpop.xlane.xlu1 %1908 }
 0xd3d   :  { %3871 = vmatprep.subr.mxu1 %v5321_v48  ;;  %3880 = vmatprep.subr.mxu0 %v5321_v48 }
 0xd3e   :  { %3872 = vmatpush3.msra.mxu1 %v4264_v10  ;;  %3881 = vmatpush3.msra.mxu0 %v4334_v42  ;;  %v1910_v10 = vmul.f32 0.03125, %v1909_v9 }
 0xd3f   :  { %3873 = vmatprep.subr.mxu1 %v5321_v48  ;;  %3882 = vmatprep.subr.mxu0 %v5321_v48 }
 0xd40   :  { %3874 = vmatpush3.msra.mxu1 %v4273_v11  ;;  %3883 = vmatpush3.msra.mxu0 %v4348_v44  ;;  %v1911_v11 = vsub.f32 %v4300_v25, %v1910_v10 }
 0xd41   :  { %3876 = vmatmul.mubr.msk.f32.vlgmr.msra.gmra.mxu1 %vm201_vm2, %v1938_v8  ;;  %3884 = vmatprep.subr.mxu0 %v5321_v48 }
 0xd42   :  { %3885 = vmatpush3.msra.mxu0 %v4358_v45  ;;  %3886 = vmatprep.mubr.msk.f32.mxu0 %vm4100_vm1, %v5321_v48  ;;  %v1912_v16 = vmul.f32 %v1911_v11, %v1911_v11 }
 0xd43   :  { %3889 = vmatprep.subr.mxu1 %v5321_v48  ;;  %3900 = vmatprep.subr.mxu0 %v5321_v48 }
 0xd44   :  { %3890 = vmatpush3.msra.mxu1 %v4311_v38  ;;  %3897 = vmatprep.mubr.msk.f32.mxu1 %vm4100_vm1, %v5321_v48  ;;  %v1913_v18 = vsel %vm1906_vm7, %v1912_v16, 0.0  ;;  %v4907_v38 = vld [vmem:[%s5199_s23] ss:$0 sm:$0xff] }
 0xd45   :  { %3891 = vmatprep.subr.mxu1 %v5321_v48  ;;  %1914 = vadd.xlane.f32.xlu1 %v1913_v18 }
 0xd46   :  { %3892 = vmatpush3.msra.mxu1 %v4318_v39 }
 0xd47   :  { %3893 = vmatprep.subr.mxu1 %v5321_v48 }
 0xd48   :  { %3894 = vmatpush3.msra.mxu1 %v4323_v40 }
 0xd49   :  { %3895 = vmatprep.subr.mxu1 %v5321_v48 }
 0xd4a   :  { %3896 = vmatpush3.msra.mxu1 %v4341_v43 }
 0xd4b   :  { %3911 = vmatprep.subr.mxu1 %v5321_v48 }
 0xdce   :  { %v1915_v2 = vpop.xlane.xlu1 %1914 }
 0xdcf   :  { %v1916_v46 = vmul.f32 0.03125, %v1915_v2 }
 0xdd1   :  { %v1917_v52 = vadd.f32 1e-05, %v1916_v46 }
 0xdd3   :  { %4061 = vrsqrt.f32 %v1917_v52 }
 0xde0   :  { %v4062_v34 = vpop.eup %4061 }
 0xde1   :  { %v1919_v37 = vmul.f32 %v4062_v34, %v1911_v11 }
 0xde3   :  { %v1920_v57 = vmul.f32 %v4088_v60, %v1919_v37 }
 0xde5   :  { %v4924_v12 = vadd.f32 %v4089_v33, %v1920_v57 }
 0xde7   :  { %v2027_v55 = vrot.slane %v4924_v12, 4  ;;  %v5339_v12 = vld [vmem:[#allocation19_spill] sm:$0xff] }
 0xde9   :  { %3887 = vmatmul.mubr.msk.f32.vlgmr.msra.gmra.mxu0 %vm201_vm2, %v2027_v55 }
 0xdea   :  { %3901 = vmatpush3.msra.mxu0 %v4389_v62  ;;  %3908 = vmatprep.mubr.msk.f32.mxu0 %vm4100_vm1, %v5321_v48 }
 0xdeb   :  { %3902 = vmatprep.subr.mxu0 %v5321_v48 }
 0xdec   :  { %3903 = vmatpush3.msra.mxu0 %v5322_v31 }
 0xded   :  { %3904 = vmatprep.subr.mxu0 %v5321_v48 }
 0xdee   :  { %3905 = vmatpush3.msra.mxu0 %v5323_v5 }
 0xdef   :  { %v1496_v39 = vpop.f32.mrf.mxu1  ;;  %3906 = vmatprep.subr.mxu0 %v5321_v48 }
 0xdf0   :  { %v1506_v40 = vadd.f32 %v4907_v38, %v1496_v39  ;;  %v1635_v41 = vpop.f32.mrf.mxu0  ;;  %3907 = vmatpush3.msra.mxu0 %v5324_v1 }
 0xdf1   :  { %v3833_v42 = vpop.f32.mrf.mxu1  ;;  %3921 = vmatprep.subr.mxu0 %v5321_v48 }
 0xdf2   :  { %v1639_v43 = vadd.f32 %v1635_v41, %v1506_v40  ;;  %v3844_v44 = vpop.f32.mrf.mxu0  ;;  %v5325_v42 = vld [vmem:[#allocation2_spill] sm:$0xff] }
 0xdf3   :  { %v5326_v44 = vld [vmem:[#allocation3_spill] sm:$0xff] }
 0xdf8   :  { %v1750_v45 = vpop.f32.mrf.mxu1 }
 0xdf9   :  { %v1754_v23 = vadd.f32 %v4907_v38, %v1750_v45  ;;  %v1865_v25 = vpop.f32.mrf.mxu0 }
 0xdfa   :  { %v3855_v28 = vpop.f32.mrf.mxu1 }
 0xdfb   :  { %v1869_v47 = vadd.f32 %v1865_v25, %v1754_v23  ;;  %v3866_v49 = vpop.f32.mrf.mxu0  ;;  %v5327_v23 = vld [vmem:[#allocation10_spill] sm:$0xff]  ;;  %v5328_v25 = vld [vmem:[#allocation11_spill] sm:$0xff] }
 0xdfc   :  { %v5329_v49 = vld [vmem:[#allocation7_spill] sm:$0xff] }
 0xdfd   :  { %v1871_v20 = vrot.slane %v1869_v47, 6 }
 0xdff   :  { %v4912_v61 = vsel %vm1873_vm10, %v1639_v43, %v1871_v20 }
 0xe01   :  { %v2007_v59 = vpop.f32.mrf.mxu1 }
 0xe02   :  { %v2008_v54 = vadd.f32 %v4087_v36, %v2007_v59  ;;  %v5330_v59 = vld [vmem:[#allocation8_spill] sm:$0xff]  ;;  %v5331_v36 = vld [vmem:[#allocation9_spill] sm:$0xff] }
 0xe03   :  { %v3877_v7 = vpop.f32.mrf.mxu1 }
 0xe04   :  { %v2011_v56 = vsel %vm151_vm0, %v2008_v54, 0.0 }
 0xe05   :  { %2012 = vadd.xlane.f32.xlu0 %v2011_v56 }
 0xe8e   :  { %v2013_v17 = vpop.xlane.xlu0 %2012 }
 0xe8f   :  { %v2014_v32 = vmul.f32 0.03125, %v2013_v17 }
 0xe91   :  { %v2015_v62 = vsub.f32 %v2008_v54, %v2014_v32 }
 0xe93   :  { %v2016_v8 = vmul.f32 %v2015_v62, %v2015_v62 }
 0xe95   :  { %v2017_v9 = vsel %vm151_vm0, %v2016_v8, 0.0  ;;  %v5333_v8 = vld [vmem:[#allocation13_spill] sm:$0xff] }
 0xe96   :  { %2018 = vadd.xlane.f32.xlu0 %v2017_v9  ;;  %v5334_v9 = vld [vmem:[#allocation14_spill] sm:$0xff] }
 0xea9   :  { %v2096_v10 = vpop.f32.mrf.mxu0 }
 0xeaa   :  { %v2097_v52 = vadd.f32 %v5330_v59, %v2096_v10  ;;  %v5335_v10 = vld [vmem:[#allocation15_spill] sm:$0xff]  ;;  %v5346_v59 = vld [vmem:[#allocation24_spill] sm:$0xff] }
 0xeab   :  { %v3888_v11 = vpop.f32.mrf.mxu0 }
 0xeac   :  { %v5336_v11 = vld [vmem:[#allocation16_spill] sm:$0xff] }
 0xf1f   :  { %v2019_v16 = vpop.xlane.xlu0 %2018 }
 0xf20   :  { %v2020_v18 = vmul.f32 0.03125, %v2019_v16  ;;  %v5337_v16 = vld [vmem:[#allocation17_spill] sm:$0xff] }
 0xf22   :  { %v2021_v39 = vadd.f32 1e-05, %v2020_v18  ;;  %v5338_v18 = vld [vmem:[#allocation18_spill] sm:$0xff] }
 0xf24   :  { %4063 = vrsqrt.f32 %v2021_v39  ;;  %v5341_v39 = vld [vmem:[#allocation28_spill] sm:$0xff] }
 0xf31   :  { %v4064_v40 = vpop.eup %4063 }
 0xf32   :  { %v2023_v41 = vmul.f32 %v4064_v40, %v2015_v62  ;;  %v5332_v62 = vld [vmem:[#allocation12_spill] sm:$0xff] }
 0xf34   :  { %v2024_v43 = vmul.f32 %v5325_v42, %v2023_v41  ;;  %v5342_v41 = vld [vmem:[#allocation20_spill] sm:$0xff] }
 0xf36   :  { %v4943_v45 = vadd.f32 %v5326_v44, %v2024_v43  ;;  %v5343_v43 = vld [vmem:[#allocation21_spill] sm:$0xff]  ;;  %v5344_v44 = vld [vmem:[#allocation22_spill] sm:$0xff] }
 0xf38   :  { %3898 = vmatmul.mubr.msk.f32.vlgmr.msra.gmra.mxu1 %vm201_vm2, %v4943_v45  ;;  %3909 = vmatmul.mubr.msk.f32.vlgmr.msra.gmra.mxu0 %vm201_vm2, %v4943_v45 }
 0xf39   :  { %3913 = vmatprep.mubr.msk.f32.mxu1 %vm4100_vm1, %v5321_v48  ;;  %3922 = vmatpush3.msra.mxu0 %v5327_v23 }
 0xf3a   :  { %3923 = vmatprep.subr.mxu0 %v5321_v48  ;;  %3925 = vmatprep.mubr.msk.f32.mxu0 %vm4100_vm1, %v5321_v48 }
 0xf3b   :  { %3924 = vmatpush3.msra.mxu0 %v5328_v25  ;;  %v5345_v25 = vld [vmem:[#allocation23_spill] sm:$0xff] }
 0xf3c   :  { %3939 = vmatprep.subr.mxu0 %v5321_v48 }
 0xff8   :  { %v2169_v28 = vpop.f32.mrf.mxu1  ;;  %v2239_v47 = vpop.f32.mrf.mxu0 }
 0xff9   :  { %v2170_v20 = vadd.f32 %v5329_v49, %v2169_v28  ;;  %v2240_v54 = vadd.f32 %v5331_v36, %v2239_v47 }
 0xffa   :  { %v3899_v2 = vpop.f32.mrf.mxu1  ;;  %v3910_v46 = vpop.f32.mrf.mxu0 }
 0xffb   :  { %3912 = vmatpush3.xpose.msk.msra.mxu1 %vm536_vm3, %v2170_v20 }
 0xffc   :  { %3916 = vmatprep.subr.mxu1 %v5321_v48 }
 0xffe   :  { %3914 = vmatmul.mubr.msk.f32.vlgmr.msra.gmra.mxu1 %vm536_vm3, %v2097_v52 }
 0xfff   :  { %3917 = vmatpush3.msk.msra.mxu1 %vm630_vm4, %v2240_v54  ;;  %3918 = vmatprep.mubr.msk.f32.mxu1 %vm4100_vm1, %v5321_v48  ;;  %v5347_v54 = vld [vmem:[#allocation25_spill] sm:$0xff] }
0x1000   :  { %3928 = vmatprep.subr.mxu1 %v5321_v48 }
0x10be   :  { %v2315_v7 = vpop.f32.mrf.mxu1 }
0x10bf   :  { %v2319_v56 = vmul.f32 0.25, %v2315_v7 }
0x10c0   :  { %v3915_v34 = vpop.f32.mrf.mxu1 }
0x10c1   :  { %v2320_v37 = vsel %vm614_vm5, %v2319_v56, -inf }
0x10c2   :  { %2321 = vmax.xlane.f32.xlu0 %v2320_v37 }
0x114b   :  { %v2322_v60 = vpop.xlane.xlu0 %2321 }
0x114c   :  { %v2323_v57 = vsub.f32 %v2319_v56, %v2322_v60 }
0x114e   :  { %v2324_v33 = vmul.f32 1.442695, %v2323_v57 }
0x1150   :  { %4065 = vpow2.f32 %v2324_v33 }
0x115d   :  { %v4066_v31 = vpop.eup %4065 }
0x115e   :  { %v2326_v5 = vsel %vm614_vm5, %v4066_v31, 0.0 }
0x115f   :  { %2327 = vadd.xlane.f32.xlu1 %v2326_v5 }
0x11e8   :  { %v2328_v1 = vpop.xlane.xlu1 %2327 }
0x11e9   :  { %4067 = vrcp.f32 %v2328_v1 }
0x11f6   :  { %v4068_v17 = vpop.eup %4067 }
0x11f7   :  { %v2330_v32 = vmul.f32 %v4068_v17, %v4066_v31 }
0x11f9   :  { %3919 = vmatmul.mubr.msk.f32.vlgmr.msra.gmra.mxu1 %vm626_vm6, %v2330_v32 }
0x11fa   :  { %3929 = vmatpush3.msra.mxu1 %v5332_v62  ;;  %3936 = vmatprep.mubr.msk.f32.mxu1 %vm4100_vm1, %v5321_v48 }
0x11fb   :  { %3930 = vmatprep.subr.mxu1 %v5321_v48 }
0x11fc   :  { %3931 = vmatpush3.msra.mxu1 %v5333_v8 }
0x11fd   :  { %3932 = vmatprep.subr.mxu1 %v5321_v48 }
0x11fe   :  { %3933 = vmatpush3.msra.mxu1 %v5334_v9  ;;  %v5349_v9 = vld [vmem:[#allocation31_spill] sm:$0xff] }
0x11ff   :  { %3934 = vmatprep.subr.mxu1 %v5321_v48 }
0x1200   :  { %3935 = vmatpush3.msra.mxu1 %v5335_v10  ;;  %v5350_v10 = vld [vmem:[#allocation32_spill] sm:$0xff] }
0x1201   :  { %3937 = vmatmul.mubr.msk.f32.vlgmr.msra.gmra.mxu1 %vm201_vm2, %v2027_v55  ;;  %3950 = vmatprep.subr.mxu1 %v5321_v48  ;;  %v5340_v55 = vld [vmem:[#allocation27_spill] sm:$0xff] }
0x1202   :  { %3951 = vmatpush3.msra.mxu1 %v5336_v11  ;;  %3958 = vmatprep.mubr.msk.f32.mxu1 %vm4100_vm1, %v5321_v48  ;;  %v5351_v11 = vld [vmem:[#allocation33_spill] sm:$0xff] }
0x1203   :  { %3952 = vmatprep.subr.mxu1 %v5321_v48 }
0x1204   :  { %3953 = vmatpush3.msra.mxu1 %v5337_v16  ;;  %v5352_v16 = vld [vmem:[#allocation34_spill] sm:$0xff] }
0x1205   :  { %3954 = vmatprep.subr.mxu1 %v5321_v48 }
0x1206   :  { %3955 = vmatpush3.msra.mxu1 %v5338_v18 }
0x1207   :  { %3956 = vmatprep.subr.mxu1 %v5321_v48 }
0x1208   :  { %3957 = vmatpush3.msra.mxu1 %v5339_v12 }
0x1209   :  { %3959 = vmatmul.mubr.msk.f32.vlgmr.msra.gmra.mxu1 %vm201_vm2, %v4943_v45  ;;  %3971 = vmatprep.subr.mxu1 %v5321_v48 }
0x120a   :  { %3972 = vmatpush3.msra.mxu1 %v5340_v55  ;;  %3975 = vmatprep.mubr.msk.f32.mxu1 %vm4100_vm1, %v5321_v48  ;;  %v5353_v55 = vld [vmem:[#allocation29_spill] sm:$0xff] }
0x120b   :  { %3973 = vmatprep.subr.mxu1 %v5321_v48 }
0x120c   :  { %3974 = vmatpush3.msra.mxu1 %v5341_v39 }
0x120d   :  { %3989 = vmatprep.subr.mxu1 %v5321_v48 }
0x12b9   :  { %v2403_v40 = vpop.f32.mrf.mxu1 }
0x12ba   :  { %3926 = vmatmul.mubr.msk.f32.vlgmr.msra.gmra.mxu0 %vm536_vm3, %v2403_v40 }
0x12bb   :  { %3940 = vmatpush3.msra.mxu0 %v5342_v41  ;;  %v3920_v42 = vpop.f32.mrf.mxu1  ;;  %3947 = vmatprep.mubr.msk.f32.mxu0 %vm4100_vm1, %v5321_v48 }
0x12bc   :  { %3941 = vmatprep.subr.mxu0 %v5321_v48 }
0x12bd   :  { %3942 = vmatpush3.msra.mxu0 %v5343_v43 }
0x12be   :  { %3943 = vmatprep.subr.mxu0 %v5321_v48 }
0x12bf   :  { %3944 = vmatpush3.msra.mxu0 %v5344_v44  ;;  %v5354_v44 = vld [vmem:[#allocation30_spill] sm:$0xff] }
0x12c0   :  { %3945 = vmatprep.subr.mxu0 %v5321_v48 }
0x12c1   :  { %v2547_v23 = vpop.f32.mrf.mxu1  ;;  %3946 = vmatpush3.msra.mxu0 %v5345_v25 }
0x12c2   :  { %3948 = vmatmul.mubr.msk.f32.vlgmr.msra.gmra.mxu0 %vm201_vm2, %v4943_v45  ;;  %3961 = vmatprep.subr.mxu0 %v5321_v48  ;;  %v2548_v7 = vadd.f32 %v5347_v54, %v2547_v23  ;;  %v5348_v45 = vld [vmem:[#allocation26_spill] sm:$0xff] }
0x12c3   :  { %v3938_v28 = vpop.f32.mrf.mxu1  ;;  %3963 = vmatprep.mubr.msk.f32.mxu0 %vm4100_vm1, %v5321_v48 }
0x12c9   :  { %v2687_v47 = vpop.f32.mrf.mxu1 }
0x12ca   :  { %v2688_v56 = vadd.f32 %v5348_v45, %v2687_v47 }
0x12cb   :  { %v3960_v49 = vpop.f32.mrf.mxu1 }
0x137a   :  { %v2476_v20 = vpop.f32.mrf.mxu0 }
0x137b   :  { %v2480_v39 = vadd.f32 %v5353_v55, %v2476_v20 }
0x137c   :  { %v3927_v2 = vpop.f32.mrf.mxu0 }
0x1382   :  { %v2617_v46 = vpop.f32.mrf.mxu0 }
0x1383   :  { %v2618_v52 = vadd.f32 %v5346_v59, %v2617_v46 }
0x1384   :  { %v3949_v36 = vpop.f32.mrf.mxu0 }
0x1385   :  { %3962 = vmatpush3.xpose.msk.msra.mxu0 %vm536_vm3, %v2618_v52 }
0x1386   :  { %3966 = vmatprep.subr.mxu0 %v5321_v48 }
0x1388   :  { %3964 = vmatmul.mubr.msk.f32.vlgmr.msra.gmra.mxu0 %vm536_vm3, %v2548_v7 }
0x1389   :  { %3967 = vmatpush3.msk.msra.mxu0 %vm630_vm4, %v2688_v56  ;;  %3968 = vmatprep.mubr.msk.f32.mxu0 %vm4100_vm1, %v5321_v48 }
0x138a   :  { %3978 = vmatprep.subr.mxu0 %v5321_v48 }
0x1448   :  { %v2763_v34 = vpop.f32.mrf.mxu0 }
0x1449   :  { %v2767_v37 = vmul.f32 0.25, %v2763_v34 }
0x144a   :  { %v3965_v60 = vpop.f32.mrf.mxu0 }
0x144b   :  { %v2768_v57 = vsel %vm614_vm5, %v2767_v37, -inf }
0x144c   :  { %2769 = vmax.xlane.f32.xlu0 %v2768_v57  ;;  %v5355_v57 = vld [vmem:[#allocation35_spill] sm:$0xff] }
0x14d5   :  { %v2770_v33 = vpop.xlane.xlu0 %2769 }
0x14d6   :  { %v2771_v31 = vsub.f32 %v2767_v37, %v2770_v33 }
0x14d8   :  { %v2772_v5 = vmul.f32 1.442695, %v2771_v31 }
0x14da   :  { %4069 = vpow2.f32 %v2772_v5  ;;  %v5068_v5 = vld [vmem:[%s5200_s24] ss:$0 sm:$0xff] }
0x14e7   :  { %v4070_v1 = vpop.eup %4069 }
0x14e8   :  { %v2774_v17 = vsel %vm614_vm5, %v4070_v1, 0.0 }
0x14e9   :  { %2775 = vadd.xlane.f32.xlu1 %v2774_v17  ;;  %v5356_v17 = vld [vmem:[#allocation36_spill] sm:$0xff] }
0x1572   :  { %v2776_v32 = vpop.xlane.xlu1 %2775 }
0x1573   :  { %4071 = vrcp.f32 %v2776_v32 }
0x1580   :  { %v4072_v62 = vpop.eup %4071 }
0x1581   :  { %v2778_v8 = vmul.f32 %v4072_v62, %v4070_v1  ;;  %v5074_v62 = vld [vmem:[%s5201_s25] ss:$0 sm:$0xff] }
0x1583   :  { %3969 = vmatmul.mubr.msk.f32.vlgmr.msra.gmra.mxu0 %vm626_vm6, %v2778_v8 }
0x1584   :  { %3979 = vmatpush3.msra.mxu0 %v5349_v9  ;;  %3986 = vmatprep.mubr.msk.f32.mxu0 %vm4100_vm1, %v5321_v48 }
0x1585   :  { %3980 = vmatprep.subr.mxu0 %v5321_v48 }
0x1586   :  { %3981 = vmatpush3.msra.mxu0 %v5350_v10 }
0x1587   :  { %3982 = vmatprep.subr.mxu0 %v5321_v48 }
0x1588   :  { %3983 = vmatpush3.msra.mxu0 %v5351_v11  ;;  %v5357_v11 = vld [vmem:[#allocation37_spill] sm:$0xff] }
0x1589   :  { %3984 = vmatprep.subr.mxu0 %v5321_v48 }
0x158a   :  { %3985 = vmatpush3.msra.mxu0 %v5352_v16 }
0x158b   :  { %4000 = vmatprep.subr.mxu0 %v5321_v48 }
0x1643   :  { %v2851_v18 = vpop.f32.mrf.mxu0 }
0x1644   :  { %3976 = vmatmul.mubr.msk.f32.vlgmr.msra.gmra.mxu1 %vm536_vm3, %v2851_v18 }
0x1645   :  { %v3970_v12 = vpop.f32.mrf.mxu0  ;;  %3990 = vmatpush3.msra.mxu1 %v4679_v4  ;;  %3997 = vmatprep.mubr.msk.f32.mxu1 %vm4100_vm1, %v5321_v48 }
0x1646   :  { %3991 = vmatprep.subr.mxu1 %v5321_v48 }
0x1647   :  { %3992 = vmatpush3.msra.mxu1 %v4689_v6  ;;  %v4090_v6 = vld [vmem:[%s5272_s7] sm:$0xff] }
0x1648   :  { %3993 = vmatprep.subr.mxu1 %v5321_v48 }
0x1649   :  { %3994 = vmatpush3.msra.mxu1 %v4703_v26 }
0x164a   :  { %3995 = vmatprep.subr.mxu1 %v5321_v48 }
0x164b   :  { %3996 = vmatpush3.msra.mxu1 %v4717_v29  ;;  %v1875_v29 = vadd.f32 %v4912_v61, %v5354_v44 }
0x164c   :  { %4011 = vmatprep.subr.mxu1 %v5321_v48 }
0x164d   :  { %v1878_v23 = vsel %vm151_vm0, %v1875_v29, 0.0 }
0x1704   :  { %v2924_v4 = vpop.f32.mrf.mxu1 }
0x1705   :  { %v2928_v40 = vadd.f32 %v2924_v4, %v2480_v39 }
0x1706   :  { %v3977_v41 = vpop.f32.mrf.mxu1 }
0x1707   :  { %v2930_v42 = vrot.slane %v2928_v40, 4 }
0x1709   :  { %v5054_v43 = vadd.f32 %v4090_v6, %v2930_v42 }
0x170b   :  { %v2933_v26 = vsel %vm1906_vm7, %v5054_v43, 0.0 }
0x170c   :  { %2934 = vadd.xlane.f32.xlu0 %v2933_v26  ;;  %v5358_v26 = vld [vmem:[#allocation38_spill] sm:$0xff] }
0x1710   :  { %1879 = vadd.xlane.f32.xlu0 %v1878_v23  ;;  %v5359_v23 = vld [vmem:[#allocation41_spill] sm:$0xff] }
0x1795   :  { %v2935_v25 = vpop.xlane.xlu0 %2934 }
0x1796   :  { %v2936_v28 = vmul.f32 0.03125, %v2935_v25 }
0x1798   :  { %v2937_v47 = vsub.f32 %v5054_v43, %v2936_v28 }
0x1799   :  { %v1880_v49 = vpop.xlane.xlu0 %1879 }
0x179a   :  { %v1881_v20 = vmul.f32 0.03125, %v1880_v49  ;;  %v2938_v2 = vmul.f32 %v2937_v47, %v2937_v47 }
0x179c   :  { %v1882_v46 = vsub.f32 %v1875_v29, %v1881_v20  ;;  %v2939_v59 = vsel %vm1906_vm7, %v2938_v2, 0.0 }
0x179d   :  { %2940 = vadd.xlane.f32.xlu1 %v2939_v59 }
0x179e   :  { %v1883_v52 = vmul.f32 %v1882_v46, %v1882_v46 }
0x17a0   :  { %v1884_v36 = vsel %vm151_vm0, %v1883_v52, 0.0 }
0x17a1   :  { %1885 = vadd.xlane.f32.xlu0 %v1884_v36 }
0x1826   :  { %v2941_v61 = vpop.xlane.xlu1 %2940 }
0x1827   :  { %v2942_v54 = vmul.f32 0.03125, %v2941_v61  ;;  %v5361_v61 = vld [vmem:[#allocation42_spill] sm:$0xff] }
0x1829   :  { %v2943_v7 = vadd.f32 1e-05, %v2942_v54 }
0x182a   :  { %v1886_v45 = vpop.xlane.xlu0 %1885 }
0x182b   :  { %4073 = vrsqrt.f32 %v2943_v7  ;;  %v1887_v56 = vmul.f32 0.03125, %v1886_v45  ;;  %v5362_v7 = vld [vmem:[#allocation43_spill] sm:$0xff] }
0x182d   :  { %v1888_v34 = vadd.f32 1e-05, %v1887_v56 }
0x182f   :  { %4075 = vrsqrt.f32 %v1888_v34 }
0x1838   :  { %v4074_v37 = vpop.eup %4073 }
0x1839   :  { %v2945_v60 = vmul.f32 %v4074_v37, %v2937_v47  ;;  %v5363_v37 = vld [vmem:[#allocation39_spill] sm:$0xff] }
0x183b   :  { %v2946_v33 = vmul.f32 %v5355_v57, %v2945_v60 }
0x183c   :  { %v4076_v31 = vpop.eup %4075 }
0x183d   :  { %v1890_v1 = vmul.f32 %v4076_v31, %v1882_v46  ;;  %v2947_v32 = vadd.f32 %v5356_v17, %v2946_v33  ;;  %v5360_v46 = vld [vmem:[#allocation40_spill] sm:$0xff] }
0x183f   :  { %v1897_v8 = vmul.f32 %v5068_v5, %v1890_v1  ;;  %v2949_v9 = vrot.slane %v2947_v32, 4 }
0x1841   :  { %v1904_v10 = vadd.f32 %v5074_v62, %v1897_v8  ;;  %3987 = vmatmul.mubr.msk.f32.vlgmr.msra.gmra.mxu0 %vm201_vm2, %v2949_v9 }
0x1842   :  { %4001 = vmatpush3.msra.mxu0 %v4684_v35  ;;  %4008 = vmatprep.mubr.msk.f32.mxu0 %vm4100_vm1, %v5321_v48 }
0x1843   :  { %1905 = vst.msk [vmem:[%s5202_s26] sm:$0xf] %vm151_vm0, %v1904_v10  ;;  %4002 = vmatprep.subr.mxu0 %v5321_v48 }
0x1844   :  { %4003 = vmatpush3.msra.mxu0 %v4696_v15 }
0x1845   :  { %4004 = vmatprep.subr.mxu0 %v5321_v48 }
0x1846   :  { %4005 = vmatpush3.msra.mxu0 %v4708_v27 }
0x1847   :  { %4006 = vmatprep.subr.mxu0 %v5321_v48 }
0x1848   :  { %4007 = vmatpush3.msra.mxu0 %v4722_v30 }
0x1849   :  { %4022 = vmatprep.subr.mxu0 %v5321_v48 }
0x1901   :  { %v3018_v35 = vpop.f32.mrf.mxu0 }
0x1902   :  { %v3019_v16 = vadd.f32 %v5357_v11, %v3018_v35 }
0x1903   :  { %v3988_v18 = vpop.f32.mrf.mxu0 }
0x1904   :  { %v3023_v12 = vrot.slane %v3019_v16, 7  ;;  %v3027_v55 = vrot.slane %v3019_v16, 1 }
0x1906   :  { %v3025_v39 = vsel %vm1360_vm8, 0.0, %v3023_v12  ;;  %v3029_v15 = vsel %vm1360_vm8, 0.0, %v3027_v55  ;;  %v5364_v55 = vld [vmem:[#allocation44_spill] sm:$0xff] }
0x1907   :  { %v3026_v4 = vsel %vm1362_vm9, %v3025_v39, 0.0  ;;  %v3030_v27 = vsel %vm1362_vm9, %v3029_v15, 0.0 }
0x1908   :  { %v3032_v40 = vmul.f32 %v3026_v4, %v4748_v58  ;;  %v3037_v30 = vmul.f32 %v3026_v4, %v4750_v19  ;;  %v3135_v41 = vmul.f32 %v3026_v4, %v4756_v14  ;;  %v3031_v42 = vmul.f32 %v3026_v4, %v4746_v22 }
0x1909   :  { %v3044_v44 = vmul.f32 %v3030_v27, %v5358_v26  ;;  %v3140_v29 = vmul.f32 %v3026_v4, %v4762_v50  ;;  %v3049_v25 = vmul.f32 %v5359_v23, %v3030_v27  ;;  %v3134_v28 = vmul.f32 %v3026_v4, %v4760_v51 }
0x190a   :  { %v3034_v6 = vrot.slane %v3032_v40, 1  ;;  %v3137_v47 = vrot.slane %v3135_v41, 1  ;;  %v3039_v20 = vrot.slane %v3037_v30, 2  ;;  %v3042_v2 = vmul.f32 %v3030_v27, %v4752_v13 }
0x190b   :  { %v3147_v59 = vmul.f32 %v3030_v27, %v5360_v46  ;;  %v3142_v36 = vrot.slane %v3140_v29, 2  ;;  %v3238_v54 = vmul.f32 %v3026_v4, %v5361_v61  ;;  %v3243_v45 = vmul.f32 %v3026_v4, %v5362_v7 }
0x190c   :  { %v3036_v49 = vadd.f32 %v3034_v6, %v3031_v42  ;;  %v3139_v52 = vadd.f32 %v3137_v47, %v3134_v28  ;;  %v3046_v34 = vrot.slane %v3044_v44, 1  ;;  %v3145_v60 = vmul.f32 %v3030_v27, %v5363_v37 }
0x190d   :  { %v3152_v57 = vmul.f32 %v4799_v24, %v3030_v27  ;;  %v3051_v33 = vrot.slane %v3049_v25, 2  ;;  %v3237_v1 = vmul.f32 %v3026_v4, %v4779_v21  ;;  %v3240_v17 = vrot.slane %v3238_v54, 1 }
0x190e   :  { %v3041_v56 = vadd.f32 %v3039_v20, %v3036_v49  ;;  %v3144_v31 = vadd.f32 %v3142_v36, %v3139_v52  ;;  %v3149_v32 = vrot.slane %v3147_v59, 1  ;;  %v3250_v8 = vmul.f32 %v3030_v27, %v4748_v58 }
0x190f   :  { %v3341_v9 = vmul.f32 %v3026_v4, %v4788_v0  ;;  %v3242_v35 = vadd.f32 %v3240_v17, %v3237_v1  ;;  %v3245_v11 = vrot.slane %v3243_v45, 2  ;;  %v3346_v16 = vmul.f32 %v3026_v4, %v4802_v3  ;;  %v4094_v1 = vld [vmem:[%s5195_s22 + $0x30] sm:$0xff] }
0x1910   :  { %v3043_v13 = vadd.f32 %v3042_v2, %v3041_v56  ;;  %v3146_v10 = vadd.f32 %v3145_v60, %v3144_v31  ;;  %v3154_v12 = vrot.slane %v3152_v57, 2  ;;  %v3340_v24 = vmul.f32 %v3026_v4, %v5364_v55 }
0x1911   :  { %v3343_v39 = vrot.slane %v3341_v9, 1  ;;  %v3247_v40 = vadd.f32 %v3245_v11, %v3242_v35  ;;  %v3248_v21 = vmul.f32 %v3030_v27, %v4746_v22  ;;  %v3255_v30 = vmul.f32 %v3030_v27, %v4750_v19  ;;  %v4098_v11 = vld [vmem:[%s5195_s22 + $0x20] sm:$0xff] }
0x1912   :  { %v3048_v18 = vadd.f32 %v3046_v34, %v3043_v13  ;;  %v3151_v15 = vadd.f32 %v3149_v32, %v3146_v10  ;;  %v3348_v42 = vrot.slane %v3346_v16, 2  ;;  %v3353_v0 = vmul.f32 %v3030_v27, %v4756_v14  ;;  %v4095_v13 = vld [vmem:[%s5195_s22 + $0x8] sm:$0xff]  ;;  %v4097_v10 = vld [vmem:[%s5195_s22] sm:$0xff] }
0x1913   :  { %v3345_v58 = vadd.f32 %v3343_v39, %v3340_v24  ;;  %v3249_v26 = vadd.f32 %v3248_v21, %v3247_v40  ;;  %v3252_v44 = vrot.slane %v3250_v8, 1  ;;  %v3351_v4 = vmul.f32 %v3030_v27, %v4760_v51  ;;  %v4096_v8 = vld [vmem:[%s5195_s22 + $0x28] sm:$0xff] }
0x1914   :  { %v3053_v41 = vadd.f32 %v3051_v33, %v3048_v18  ;;  %v3156_v6 = vadd.f32 %v3154_v12, %v3151_v15  ;;  %v3358_v23 = vmul.f32 %v3030_v27, %v4762_v50  ;;  %v3257_v28 = vrot.slane %v3255_v30, 2  ;;  %v4093_v33 = vld [vmem:[%s5195_s22 + $0x10] sm:$0xff] }
0x1915   :  { %v3350_v29 = vadd.f32 %v3348_v42, %v3345_v58  ;;  %v3254_v22 = vadd.f32 %v3252_v44, %v3249_v26  ;;  %v3355_v49 = vrot.slane %v3353_v0, 1 }
0x1916   :  { %v3054_v3 = vadd.f32 %v4823_v53, %v3053_v41  ;;  %v3157_v25 = vadd.f32 %v4832_v63, %v3156_v6  ;;  %v3360_v46 = vrot.slane %v3358_v23, 2 }
0x1917   :  { %v3352_v47 = vadd.f32 %v3351_v4, %v3350_v29  ;;  %v3259_v2 = vadd.f32 %v3257_v28, %v3254_v22 }
0x1918   :  { %v3056_v19 = vmul.f32 0.70710677, %v3054_v3  ;;  %v3159_v20 = vmul.f32 0.70710677, %v3157_v25  ;;  %v3055_v54 = vmul.f32 0.5, %v3054_v3  ;;  %v3158_v45 = vmul.f32 0.5, %v3157_v25 }
0x1919   :  { %v3357_v14 = vadd.f32 %v3355_v49, %v3352_v47  ;;  %v3260_v59 = vadd.f32 %v4823_v53, %v3259_v2  ;;  %v4091_v53 = vld [vmem:[%s5195_s22 + $0x18] sm:$0xff] }
0x191a   :  { %4077 = verf.f32 %v3056_v19 }
0x191b   :  { %4079 = verf.f32 %v3159_v20  ;;  %v3362_v52 = vadd.f32 %v3360_v46, %v3357_v14  ;;  %v3262_v36 = vmul.f32 0.70710677, %v3260_v59  ;;  %v3261_v32 = vmul.f32 0.5, %v3260_v59 }
0x191d   :  { %v3363_v51 = vadd.f32 %v4832_v63, %v3362_v52  ;;  %4081 = verf.f32 %v3262_v36  ;;  %v4092_v63 = vld [vmem:[%s5195_s22 + $0x38] sm:$0xff] }
0x191f   :  { %v3365_v50 = vmul.f32 0.70710677, %v3363_v51  ;;  %v3364_v9 = vmul.f32 0.5, %v3363_v51 }
0x1921   :  { %4083 = verf.f32 %v3365_v50 }
0x1927   :  { %v4078_v27 = vpop.eup %4077 }
0x1928   :  { %v4080_v61 = vpop.eup %4079  ;;  %v3058_v7 = vadd.f32 1.0, %v4078_v27 }
0x1929   :  { %v3161_v56 = vadd.f32 1.0, %v4080_v61 }
0x192a   :  { %v3059_v34 = vmul.f32 %v3058_v7, %v3055_v54  ;;  %v4082_v60 = vpop.eup %4081 }
0x192b   :  { %v3162_v37 = vmul.f32 %v3161_v56, %v3158_v45  ;;  %v3264_v31 = vadd.f32 1.0, %v4082_v60 }
0x192c   :  { %3998 = vmatmul.mubr.msk.f32.vlgmr.msra.gmra.mxu1 %vm201_vm2, %v3059_v34 }
0x192d   :  { %4009 = vmatmul.mubr.msk.f32.vlgmr.msra.gmra.mxu0 %vm201_vm2, %v3162_v37  ;;  %4012 = vmatpush3.msra.mxu1 %v4091_v53  ;;  %v3265_v35 = vmul.f32 %v3264_v31, %v3261_v32 }
0x192e   :  { %4023 = vmatpush3.msra.mxu0 %v4092_v63  ;;  %4013 = vmatprep.subr.mxu1 %v5321_v48  ;;  %v4084_v57 = vpop.eup %4083 }
0x192f   :  { %4024 = vmatprep.subr.mxu0 %v5321_v48  ;;  %4014 = vmatpush3.msra.mxu1 %v4093_v33  ;;  %v3367_v17 = vadd.f32 1.0, %v4084_v57 }
0x1930   :  { %4025 = vmatpush3.msra.mxu0 %v4094_v1  ;;  %4015 = vmatprep.subr.mxu1 %v5321_v48 }
0x1931   :  { %4026 = vmatprep.subr.mxu0 %v5321_v48  ;;  %4016 = vmatpush3.msra.mxu1 %v4095_v13  ;;  %v3368_v16 = vmul.f32 %v3367_v17, %v3364_v9 }
0x1932   :  { %4027 = vmatpush3.msra.mxu0 %v4096_v8  ;;  %4017 = vmatprep.subr.mxu1 %v5321_v48 }
0x1933   :  { %4028 = vmatprep.subr.mxu0 %v5321_v48  ;;  %4018 = vmatpush3.msra.mxu1 %v4097_v10 }
0x1934   :  { %4019 = vmatprep.mubr.msk.f32.mxu1 %vm4100_vm1, %v5321_v48  ;;  %4029 = vmatpush3.msra.mxu0 %v4098_v11 }
0x1935   :  { %4030 = vmatprep.mubr.msk.f32.mxu0 %vm4100_vm1, %v5321_v48  ;;  %4020 = vmatmul.mubr.msk.f32.vlgmr.msra.gmra.mxu1 %vm201_vm2, %v3265_v35 }
0x1936   :  { %4031 = vmatmul.mubr.msk.f32.vlgmr.msra.gmra.mxu0 %vm201_vm2, %v3368_v16 }
0x19ec   :  { %v3129_v18 = vpop.f32.mrf.mxu1 }
0x19ed   :  { %v3232_v12 = vpop.f32.mrf.mxu0  ;;  %v3133_v15 = vadd.f32 %v4907_v38, %v3129_v18 }
0x19ee   :  { %v3999_v55 = vpop.f32.mrf.mxu1 }
0x19ef   :  { %v4010_v24 = vpop.f32.mrf.mxu0  ;;  %v3236_v42 = vadd.f32 %v3232_v12, %v3133_v15 }
0x19f5   :  { %v3335_v39 = vpop.f32.mrf.mxu1 }
0x19f6   :  { %v3339_v40 = vadd.f32 %v4907_v38, %v3335_v39  ;;  %v3438_v21 = vpop.f32.mrf.mxu0 }
0x19f7   :  { %v4021_v30 = vpop.f32.mrf.mxu1 }
0x19f8   :  { %v3442_v41 = vadd.f32 %v3438_v21, %v3339_v40  ;;  %v4032_v58 = vpop.f32.mrf.mxu0 }
0x19fa   :  { %v3444_v0 = vrot.slane %v3442_v41, 6 }
0x19fc   :  { %v3446_v48 = vsel %vm1873_vm10, %v3236_v42, %v3444_v0 }
0x19fd   :  { %v3448_v6 = vrot.slane %v3446_v48, 4 }
0x19ff   :  { %v3450_v26 = vadd.f32 %v3448_v6, %v5054_v43 }
0x1a01   :  { %v3453_v44 = vsel %vm1906_vm7, %v3450_v26, 0.0 }
0x1a02   :  { %3454 = vadd.xlane.f32.xlu1 %v3453_v44 }
0x1a8b   :  { %v3455_v3 = vpop.xlane.xlu1 %3454 }
0x1a8c   :  { %v3456_v29 = vmul.f32 0.03125, %v3455_v3 }
0x1a8e   :  { %v3457_v4 = vsub.f32 %v3450_v26, %v3456_v29 }
0x1a90   :  { %v3458_v23 = vmul.f32 %v3457_v4, %v3457_v4 }
0x1a92   :  { %v3459_v38 = vsel %vm1906_vm7, %v3458_v23, 0.0 }
0x1a93   :  { %3460 = vadd.xlane.f32.xlu1 %v3459_v38 }
0x1b1c   :  { %v3461_v25 = vpop.xlane.xlu1 %3460 }
0x1b1d   :  { %v3462_v22 = vmul.f32 0.03125, %v3461_v25 }
0x1b1f   :  { %v3463_v28 = vadd.f32 1e-05, %v3462_v22 }
0x1b21   :  { %4085 = vrsqrt.f32 %v3463_v28 }
0x1b2e   :  { %v4086_v19 = vpop.eup %4085 }
0x1b2f   :  { %v3465_v47 = vmul.f32 %v4086_v19, %v3457_v4 }
0x1b31   :  { %v3472_v49 = vmul.f32 %v5068_v5, %v3465_v47 }
0x1b33   :  { %v3479_v43 = vadd.f32 %v5074_v62, %v3472_v49 }
0x1b35   :  { %3480 = vst.msk [vmem:[%s5202_s26] sm:$0xf0] %vm1906_vm7, %v3479_v43 }

</bundles_post_ra>
